<compile_context>
chip_gen: v6e
topology: v6e:2x2x1
jax: 0.10.0
libtpu: 0.0.40
codegen_flags: <defaults>
</compile_context>

<pallas_src>
import functools

import jax
import jax.numpy as jnp
from jax import lax
from jax.experimental import pallas as pl
from jax.experimental.pallas import tpu as pltpu

P_DROP = 0.1            # BigG(prob=0.1)
BN_EPS = 1e-5           # PyTorch BatchNorm2d default
BN_MOMENTUM = 0.1       # PyTorch BatchNorm2d default
_STAGES = ((5, 3, 96), (3, 96, 144), (5, 144, 256))   # (kernel, Cin, Cout)


def _round_up(n, m):
    return ((n + m - 1) // m) * m


# --------------------------- Pallas kernels ---------------------------------

def _conv_affine_pool_kernel(*refs, pool, use_mask, sp):
    """conv (one combined MXU matmul) + per-channel affine [+ ReLU + 2x2
    maxpool + dropout2d] for ONE sample.

    x_ref    : (4*Sp, KKCp) bf16   im2col patches, pool-position-major slabs
    w_ref    : (KKCp, Coutp) bf16  conv weight (contraction x out-channels)
    a_ref    : (1, Coutp)  f32     per-channel scale
    c_ref    : (1, Coutp)  f32     per-channel shift
    mask_ref : (1, Coutp)  f32     dropout2d keep/(1-p) mask   (use_mask only)
    o_ref    : (Sp, Coutp) f32 if pool else (4*Sp, Coutp) f32
    """
    if use_mask:
        x_ref, w_ref, a_ref, c_ref, mask_ref, o_ref = refs
    else:
        x_ref, w_ref, a_ref, c_ref, o_ref = refs

    # Single (4*Sp, KKCp) x (KKCp, Coutp) matmul: bf16 operands, f32 accumulate.
    y = jnp.dot(x_ref[...], w_ref[...], preferred_element_type=jnp.float32)
    y = y * a_ref[...] + c_ref[...]
    if pool:
        y = jnp.maximum(y, 0.0)
        # 2x2 max pool == elementwise max over the four pool-window positions,
        # stored as four contiguous, sublane-aligned Sp-row slabs.
        y = jnp.maximum(jnp.maximum(y[0:sp], y[sp:2 * sp]),
                        jnp.maximum(y[2 * sp:3 * sp], y[3 * sp:4 * sp]))
        if use_mask:
            y = y * mask_ref[...]
    o_ref[...] = y


def _affine_relu_pool_kernel(*refs, use_mask, sp):
    """Training phase B: BN affine + ReLU + 2x2 maxpool + dropout2d (one sample).

    y_ref    : (4*Sp, Coutp) f32   conv(+bias) output from phase A
    a_ref    : (1, Coutp) f32      gamma / sqrt(var + eps)
    c_ref    : (1, Coutp) f32      beta - mean * a
    mask_ref : (1, Coutp) f32      dropout2d keep/(1-p) mask   (use_mask only)
    o_ref    : (Sp, Coutp) f32
    """
    if use_mask:
        y_ref, a_ref, c_ref, mask_ref, o_ref = refs
    else:
        y_ref, a_ref, c_ref, o_ref = refs
    y = y_ref[...] * a_ref[...] + c_ref[...]
    y = jnp.maximum(y, 0.0)
    y = jnp.maximum(jnp.maximum(y[0:sp], y[sp:2 * sp]),
                    jnp.maximum(y[2 * sp:3 * sp], y[3 * sp:4 * sp]))
    if use_mask:
        y = y * mask_ref[...]
    o_ref[...] = y


# --------------------------- pallas_call wrappers ----------------------------

def _per_sample_call(kernel, args, in_specs, out_rows, coutp, batch):
    """Grid over samples; every block is a single sample's tile.  Blocks are
    small (<~1 MiB) so the default scoped VMEM limit is ample on all of
    v5e/v6e/v7x; double-buffering overlaps the im2col DMA with the matmul and
    the 'parallel' axis feeds both v7x TensorCores."""
    return pl.pallas_call(
        kernel,
        grid=(batch,),
        in_specs=in_specs,
        out_specs=pl.BlockSpec((None, out_rows, coutp), lambda b: (b, 0, 0)),
        out_shape=jax.ShapeDtypeStruct((batch, out_rows, coutp), jnp.float32),
        compiler_params=pltpu.CompilerParams(
            dimension_semantics=("parallel",)),
    )(*args)


def _conv_call(xcol, wp, a, c, mask, *, pool, sp):
    batch, four_sp, kkcp = xcol.shape
    coutp = wp.shape[1]
    use_mask = mask is not None
    args = [xcol, wp, a.reshape(1, coutp), c.reshape(1, coutp)]
    in_specs = [
        pl.BlockSpec((None, four_sp, kkcp), lambda b: (b, 0, 0)),
        pl.BlockSpec((kkcp, coutp), lambda b: (0, 0)),
        pl.BlockSpec((1, coutp), lambda b: (0, 0)),
        pl.BlockSpec((1, coutp), lambda b: (0, 0)),
    ]
    if use_mask:
        args.append(mask.reshape(batch, 1, coutp))
        in_specs.append(pl.BlockSpec((None, 1, coutp), lambda b: (b, 0, 0)))
    kernel = functools.partial(_conv_affine_pool_kernel,
                               pool=pool, use_mask=use_mask, sp=sp)
    out_rows = sp if pool else four_sp
    return _per_sample_call(kernel, args, in_specs, out_rows, coutp, batch)


def _bn_pool_call(y, a, c, mask, *, sp):
    batch, four_sp, coutp = y.shape
    use_mask = mask is not None
    args = [y, a.reshape(1, coutp), c.reshape(1, coutp)]
    in_specs = [
        pl.BlockSpec((None, four_sp, coutp), lambda b: (b, 0, 0)),
        pl.BlockSpec((1, coutp), lambda b: (0, 0)),
        pl.BlockSpec((1, coutp), lambda b: (0, 0)),
    ]
    if use_mask:
        args.append(mask.reshape(batch, 1, coutp))
        in_specs.append(pl.BlockSpec((None, 1, coutp), lambda b: (b, 0, 0)))
    kernel = functools.partial(_affine_relu_pool_kernel,
                               use_mask=use_mask, sp=sp)
    return _per_sample_call(kernel, args, in_specs, sp, coutp, batch)


# --------------------------- layout plumbing (XLA side) ----------------------

def _im2col_pool4(x, k, kkcp, s_pad):
    """'same'-padded KxK patches grouped by 2x2 pool-window position.

    x: (B, H, W, Cin) bf16.  Returns (B, 4*Sp, kkcp) bf16 where rows
    [j*Sp, (j+1)*Sp) hold pool-window position j = (h%2)*2 + (w%2) in
    (h//2, w//2) row order.  The contraction dim is zero-padded to kkcp
    (multiple of 128) and rows-per-position to Sp (multiple of 8) so every
    kernel slice / store is tile-aligned.  Pure layout plumbing in XLA.
    """
    b, h, w, c = x.shape
    h2, w2 = h // 2, w // 2
    s = h2 * w2
    pad = k // 2
    kkc = k * k * c
    xp = jnp.pad(x, ((0, 0), (pad, pad), (pad, pad), (0, 0)))
    taps = [xp[:, dy:dy + h, dx:dx + w, :] for dy in range(k) for dx in range(k)]
    patches = jnp.concatenate(taps, axis=-1)                 # (B, H, W, K*K*Cin)
    if kkcp > kkc:
        patches = jnp.pad(patches, ((0, 0), (0, 0), (0, 0), (0, kkcp - kkc)))
    p = patches.reshape(b, h2, 2, w2, 2, kkcp)
    p = jnp.transpose(p, (0, 2, 4, 1, 3, 5))                 # (B,2,2,H2,W2,KKCp)
    p = p.reshape(b, 4, s, kkcp)
    if s_pad > s:
        p = jnp.pad(p, ((0, 0), (0, 0), (0, s_pad - s), (0, 0)))
    return p.reshape(b, 4 * s_pad, kkcp)


def _conv_stage(x_nhwc, w_hwio, bias, gamma, beta, rmean, rvar, mask,
                *, bn_training, use_dropout):
    """One Conv2d -> BatchNorm2d -> ReLU -> max_pool2d(2) -> dropout2d block.

    Returns (pooled NHWC f32 activation with the REAL Cout channels,
             (batch_mean, batch_var, count) or None).
    """
    B, H, W, Cin = x_nhwc.shape
    K, _, _, Cout = w_hwio.shape
    H2, W2 = H // 2, W // 2
    S = H2 * W2
    Sp = _round_up(S, 8)                    # sublane-aligned rows per sample
    KKC = K * K * Cin
    KKCp = _round_up(KKC, 128)              # lane-aligned contraction dim
    Coutp = _round_up(Cout, 128)
    if Coutp - Cout > Cout // 2:
        # TODO(synk): benchmark padding 144 -> 256 (+78% MXU flops) on real HW.
        Coutp = Cout

    # Pad weights / per-channel params to the aligned shapes.  Zero padding
    # never changes the conv result; padded BN channels get gamma=0 -> 0 out.
    wp = jnp.pad(w_hwio.reshape(KKC, Cout),
                 ((0, KKCp - KKC), (0, Coutp - Cout))).astype(jnp.bfloat16)

    def padc(v, fill=0.0):
        return jnp.pad(v, (0, Coutp - Cout), constant_values=fill)

    bias_p, gamma_p, beta_p = padc(bias), padc(gamma), padc(beta)
    rmean_p, rvar_p = padc(rmean), padc(rvar, 1.0)
    mask_p = (jnp.pad(mask, ((0, 0), (0, Coutp - Cout)))
              if use_dropout else None)

    xcol = _im2col_pool4(x_nhwc.astype(jnp.bfloat16), K, KKCp, Sp)

    stats = None
    if bn_training:
        # Phase A: conv + bias only (batch statistics need every row first).
        ones = jnp.ones((Coutp,), jnp.float32)
        y = _conv_call(xcol, wp, ones, bias_p, None, pool=False, sp=Sp)
        # Centered two-pass batch statistics over the real rows only
        # (avoids the E[x^2]-E[x]^2 cancellation of the previous version).
        y_real = y.reshape(B, 4, Sp, Coutp)[:, :, :S, :]
        mean = jnp.mean(y_real, axis=(0, 1, 2))
        var = jnp.mean(jnp.square(y_real - mean), axis=(0, 1, 2))
        a = gamma_p * lax.rsqrt(var + BN_EPS)
        c = beta_p - mean * a
        # Phase B: affine + ReLU + pool + dropout2d.
        out = _bn_pool_call(y, a, c, mask_p, sp=Sp)
        stats = (mean[:Cout], var[:Cout], B * H * W)
    else:
        # Eval: fold running stats AND the conv bias into one per-channel affine.
        a = gamma_p * lax.rsqrt(rvar_p + BN_EPS)
        c = beta_p + (bias_p - rmean_p) * a
        out = _conv_call(xcol, wp, a, c, mask_p, pool=True, sp=Sp)

    out = out[:, :S, :Cout].reshape(B, H2, W2, Cout)
    return out, stats


# --------------------------- public forward ---------------------------------

@functools.partial(jax.jit,
                   static_argnames=("bn_training", "dropout",
                                    "return_running_stats"))
def bigg_forward(x_nchw, params, masks, *, bn_training=True, dropout=True,
                 return_running_stats=False):
    """BigG forward.  bn_training selects batch vs running BN statistics;
    dropout mirrors the module's `dropout` flag for F.dropout2d.  In training
    mode the updated running_mean/running_var (PyTorch momentum rule, unbiased
    variance) are returned when return_running_stats=True."""
    x = jnp.transpose(x_nchw, (0, 2, 3, 1)).astype(jnp.float32)    # NHWC
    new_stats = []
    for i, (w, b, gamma, beta, rmean, rvar) in enumerate(params):
        mask = masks[i] if dropout else None
        x, stats = _conv_stage(x, w, b, gamma, beta, rmean, rvar, mask,
                               bn_training=bn_training, use_dropout=dropout)
        if stats is not None:
            mean, var, count = stats
            unbiased = var * (count / (count - 1.0))
            new_stats.append(
                ((1.0 - BN_MOMENTUM) * rmean + BN_MOMENTUM * mean,
                 (1.0 - BN_MOMENTUM) * rvar + BN_MOMENTUM * unbiased))
        else:
            new_stats.append((rmean, rvar))
    B = x.shape[0]
    # Match torch's NCHW .view(B, 6400) flatten order.
    out = jnp.transpose(x, (0, 3, 1, 2)).reshape(B, -1)
    if return_running_stats:
        return out, tuple(new_stats)
    return out


# --------------------------- params / masks / reference ----------------------

def init_params(key):
    """Kaiming-normal(fan_out) conv weights (HWIO), zero bias, BN at init."""
    params = []
    for (k, cin, cout), kk in zip(_STAGES, jax.random.split(key, len(_STAGES))):
        std = (2.0 / (cout * k * k)) ** 0.5
        w = std * jax.random.normal(kk, (k, k, cin, cout), jnp.float32)
        params.append((w,
                       jnp.zeros((cout,), jnp.float32),   # conv bias
                       jnp.ones((cout,), jnp.float32),    # bn gamma
                       jnp.zeros((cout,), jnp.float32),   # bn beta
                       jnp.zeros((cout,), jnp.float32),   # bn running_mean
                       jnp.ones((cout,), jnp.float32)))   # bn running_var
    return tuple(params)


def make_dropout2d_masks(key, batch, p=P_DROP):
    """Per-(sample, channel) keep masks for dropout2d, pre-scaled by 1/(1-p)."""
    masks = []
    for (_, _, cout), kk in zip(_STAGES, jax.random.split(key, len(_STAGES))):
        keep = jax.random.bernoulli(kk, 1.0 - p, (batch, cout))
        masks.append(keep.astype(jnp.float32) * (1.0 / (1.0 - p)))
    return tuple(masks)


def reference_forward(x_nchw, params, masks, *, bn_training):
    """Pure-JAX reference.  Conv operands are cast to bf16 with f32
    accumulation to mirror the kernels' MXU precision (like-for-like check);
    everything else is f32."""
    x = jnp.transpose(x_nchw, (0, 2, 3, 1)).astype(jnp.float32)
    for i, (w, b, gamma, beta, rmean, rvar) in enumerate(params):
        k = w.shape[0]
        pad = k // 2
        y = lax.conv_general_dilated(
            x.astype(jnp.bfloat16), w.astype(jnp.bfloat16),
            window_strides=(1, 1), padding=[(pad, pad), (pad, pad)],
            dimension_numbers=("NHWC", "HWIO", "NHWC"),
            preferred_element_type=jnp.float32) + b
        if bn_training:
            mean = jnp.mean(y, axis=(0, 1, 2))
            var = jnp.mean(jnp.square(y - mean), axis=(0, 1, 2))
        else:
            mean, var = rmean, rvar
        y = (y - mean) * lax.rsqrt(var + BN_EPS) * gamma + beta
        y = jnp.maximum(y, 0.0)
        B, H, W, C = y.shape
        y = y.reshape(B, H // 2, 2, W // 2, 2, C).max(axis=(2, 4))
        if masks is not None:
            y = y * masks[i][:, None, None, :]
        x = y
    B = x.shape[0]
    return jnp.transpose(x, (0, 3, 1, 2)).reshape(B, -1)


# --------------------------- self test ---------------------------------------

if __name__ == "__main__":
    root = jax.random.PRNGKey(0)
    kx, kp, kd = jax.random.split(root, 3)

    B, H, W = 2, 40, 40            # 40x40 -> 3 pools -> 5x5x256 = 6400 features
    x = jax.random.normal(kx, (B, 3, H, W), jnp.float32)
    params = init_params(kp)
    masks = make_dropout2d_masks(kd, B)

    # Eval-style path: running BN stats, dropout disabled.
    out_eval = jax.block_until_ready(
        bigg_forward(x, params, masks, bn_training=False, dropout=False))
    ref_eval = reference_forward(x, params, None, bn_training=False)
    assert out_eval.shape == (B, 6400)
    assert bool(jnp.all(jnp.isfinite(out_eval)))
    err = float(jnp.max(jnp.abs(out_eval - ref_eval)))
    assert bool(jnp.allclose(out_eval, ref_eval, rtol=5e-2, atol=5e-2)), err

    # Training-style path (module default): batch-stat BN + dropout2d.  The
    # identical masks feed both the kernels and the reference, so this is a
    # like-for-like check.
    out_train = jax.block_until_ready(
        bigg_forward(x, params, masks, bn_training=True, dropout=True))
    ref_train = reference_forward(x, params, masks, bn_training=True)
    assert out_train.shape == (B, 6400)
    assert bool(jnp.all(jnp.isfinite(out_train)))
    err = float(jnp.max(jnp.abs(out_train - ref_train)))
    assert bool(jnp.allclose(out_train, ref_train, rtol=5e-2, atol=5e-2)), err

    print("KERNEL_OK")
</pallas_src>

<mosaic_0001>
module attributes {stable_mosaic.version = 11 : i64} {
  func.func @_conv_affine_pool_kernel(%arg0: i32, %arg1: memref<1x1600x128xbf16, #tpu.memory_space<vmem>>, %arg2: memref<128x128xbf16, #tpu.memory_space<vmem>>, %arg3: memref<1x128xf32, #tpu.memory_space<vmem>>, %arg4: memref<1x128xf32, #tpu.memory_space<vmem>>, %arg5: memref<1x400x128xf32, #tpu.memory_space<vmem>>) attributes {dimension_semantics = [#tpu.dimension_semantics<parallel>], iteration_bounds = array<i64: 2>, scalar_prefetch = 0 : i64, scratch_operands = 0 : i64, tpu.core_type = #tpu.core_type<tc>, window_params = [{transform_indices = @transform_0, window_bounds = array<i64: 1, 1600, 128>}, {pipeline_mode = #tpu.pipeline_mode<synchronous>, transform_indices = @transform_1, window_bounds = array<i64: 128, 128>}, {pipeline_mode = #tpu.pipeline_mode<synchronous>, transform_indices = @transform_2, window_bounds = array<i64: 1, 128>}, {pipeline_mode = #tpu.pipeline_mode<synchronous>, transform_indices = @transform_3, window_bounds = array<i64: 1, 128>}, {transform_indices = @transform_4, window_bounds = array<i64: 1, 400, 128>}]} {
    %c0 = arith.constant 0 : index
    %c0_0 = arith.constant 0 : index
    %c0_1 = arith.constant 0 : index
    %0 = vector.load %arg1[%c0, %c0_0, %c0_1] : memref<1x1600x128xbf16, #tpu.memory_space<vmem>>, vector<1x1600x128xbf16>
    %1 = vector.shape_cast %0 : vector<1x1600x128xbf16> to vector<1600x128xbf16>
    %c0_2 = arith.constant 0 : index
    %c0_3 = arith.constant 0 : index
    %2 = vector.load %arg2[%c0_2, %c0_3] : memref<128x128xbf16, #tpu.memory_space<vmem>>, vector<128x128xbf16>
    %cst = arith.constant dense<0.000000e+00> : vector<1600x128xf32>
    %3 = tpu.matmul %1, %2, %cst {dimension_numbers = #tpu.dot_dimension_numbers<[1], [0], [0], [1], [0, 0, 1, 1], [], []>} : vector<1600x128xbf16>, vector<128x128xbf16>, vector<1600x128xf32> -> vector<1600x128xf32>
    %c0_4 = arith.constant 0 : index
    %c0_5 = arith.constant 0 : index
    %4 = vector.load %arg3[%c0_4, %c0_5] : memref<1x128xf32, #tpu.memory_space<vmem>>, vector<1x128xf32>
    %5 = vector.broadcast %4 : vector<1x128xf32> to vector<1600x128xf32>
    %6 = arith.mulf %3, %5 : vector<1600x128xf32>
    %c0_6 = arith.constant 0 : index
    %c0_7 = arith.constant 0 : index
    %7 = vector.load %arg4[%c0_6, %c0_7] : memref<1x128xf32, #tpu.memory_space<vmem>>, vector<1x128xf32>
    %8 = vector.broadcast %7 : vector<1x128xf32> to vector<1600x128xf32>
    %9 = arith.addf %6, %8 : vector<1600x128xf32>
    %cst_8 = arith.constant 0.000000e+00 : f32
    %10 = vector.broadcast %cst_8 : f32 to vector<1600x128xf32>
    %11 = arith.maximumf %9, %10 : vector<1600x128xf32>
    %12 = vector.extract_strided_slice %11 {offsets = [0, 0], sizes = [400, 128], strides = [1, 1]} : vector<1600x128xf32> to vector<400x128xf32>
    %13 = vector.extract_strided_slice %11 {offsets = [400, 0], sizes = [400, 128], strides = [1, 1]} : vector<1600x128xf32> to vector<400x128xf32>
    %14 = arith.maximumf %12, %13 : vector<400x128xf32>
    %15 = vector.extract_strided_slice %11 {offsets = [800, 0], sizes = [400, 128], strides = [1, 1]} : vector<1600x128xf32> to vector<400x128xf32>
    %16 = vector.extract_strided_slice %11 {offsets = [1200, 0], sizes = [400, 128], strides = [1, 1]} : vector<1600x128xf32> to vector<400x128xf32>
    %17 = arith.maximumf %15, %16 : vector<400x128xf32>
    %18 = arith.maximumf %14, %17 : vector<400x128xf32>
    %c0_9 = arith.constant 0 : index
    %c0_10 = arith.constant 0 : index
    %c0_11 = arith.constant 0 : index
    %19 = vector.load %arg5[%c0_9, %c0_10, %c0_11] : memref<1x400x128xf32, #tpu.memory_space<vmem>>, vector<1x400x128xf32>
    %20 = vector.shape_cast %19 : vector<1x400x128xf32> to vector<400x128xf32>
    %21 = vector.shape_cast %18 : vector<400x128xf32> to vector<1x400x128xf32>
    tpu.vector_store %arg5[%c0_9, %c0_10, %c0_11], %21 {strides = array<i32>} : memref<1x400x128xf32, #tpu.memory_space<vmem>>, vector<1x400x128xf32>,
    return
  }
  func.func @transform_0(%arg0: i32) -> (i32, i32, i32) {
    %c0_i32 = arith.constant 0 : i32
    %c0_i32_0 = arith.constant 0 : i32
    %c0_i32_1 = arith.constant 0 : i32
    return %arg0, %c0_i32, %c0_i32_0 : i32, i32, i32
  }
  func.func @transform_1(%arg0: i32) -> (i32, i32) {
    %c0_i32 = arith.constant 0 : i32
    %c0_i32_0 = arith.constant 0 : i32
    %c0_i32_1 = arith.constant 0 : i32
    return %c0_i32, %c0_i32_0 : i32, i32
  }
  func.func @transform_2(%arg0: i32) -> (i32, i32) {
    %c0_i32 = arith.constant 0 : i32
    %c0_i32_0 = arith.constant 0 : i32
    %c0_i32_1 = arith.constant 0 : i32
    return %c0_i32, %c0_i32_0 : i32, i32
  }
  func.func @transform_3(%arg0: i32) -> (i32, i32) {
    %c0_i32 = arith.constant 0 : i32
    %c0_i32_0 = arith.constant 0 : i32
    %c0_i32_1 = arith.constant 0 : i32
    return %c0_i32, %c0_i32_0 : i32, i32
  }
  func.func @transform_4(%arg0: i32) -> (i32, i32, i32) {
    %c0_i32 = arith.constant 0 : i32
    %c0_i32_0 = arith.constant 0 : i32
    %c0_i32_1 = arith.constant 0 : i32
    return %arg0, %c0_i32, %c0_i32_0 : i32, i32, i32
  }
}

module attributes {stable_mosaic.version = 11 : i64} {
  func.func @_conv_affine_pool_kernel(%arg0: i32, %arg1: memref<1x416x896xbf16, #tpu.memory_space<vmem>>, %arg2: memref<896x144xbf16, #tpu.memory_space<vmem>>, %arg3: memref<1x144xf32, #tpu.memory_space<vmem>>, %arg4: memref<1x144xf32, #tpu.memory_space<vmem>>, %arg5: memref<1x104x144xf32, #tpu.memory_space<vmem>>) attributes {dimension_semantics = [#tpu.dimension_semantics<parallel>], iteration_bounds = array<i64: 2>, scalar_prefetch = 0 : i64, scratch_operands = 0 : i64, tpu.core_type = #tpu.core_type<tc>, window_params = [{transform_indices = @transform_0, window_bounds = array<i64: 1, 416, 896>}, {pipeline_mode = #tpu.pipeline_mode<synchronous>, transform_indices = @transform_1, window_bounds = array<i64: 896, 144>}, {pipeline_mode = #tpu.pipeline_mode<synchronous>, transform_indices = @transform_2, window_bounds = array<i64: 1, 144>}, {pipeline_mode = #tpu.pipeline_mode<synchronous>, transform_indices = @transform_3, window_bounds = array<i64: 1, 144>}, {transform_indices = @transform_4, window_bounds = array<i64: 1, 104, 144>}]} {
    %c0 = arith.constant 0 : index
    %c0_0 = arith.constant 0 : index
    %c0_1 = arith.constant 0 : index
    %0 = vector.load %arg1[%c0, %c0_0, %c0_1] : memref<1x416x896xbf16, #tpu.memory_space<vmem>>, vector<1x416x896xbf16>
    %1 = vector.shape_cast %0 : vector<1x416x896xbf16> to vector<416x896xbf16>
    %c0_2 = arith.constant 0 : index
    %c0_3 = arith.constant 0 : index
    %2 = vector.load %arg2[%c0_2, %c0_3] : memref<896x144xbf16, #tpu.memory_space<vmem>>, vector<896x144xbf16>
    %cst = arith.constant dense<0.000000e+00> : vector<416x144xf32>
    %3 = tpu.matmul %1, %2, %cst {dimension_numbers = #tpu.dot_dimension_numbers<[1], [0], [0], [1], [0, 0, 1, 1], [], []>} : vector<416x896xbf16>, vector<896x144xbf16>, vector<416x144xf32> -> vector<416x144xf32>
    %c0_4 = arith.constant 0 : index
    %c0_5 = arith.constant 0 : index
    %4 = vector.load %arg3[%c0_4, %c0_5] : memref<1x144xf32, #tpu.memory_space<vmem>>, vector<1x144xf32>
    %5 = vector.broadcast %4 : vector<1x144xf32> to vector<416x144xf32>
    %6 = arith.mulf %3, %5 : vector<416x144xf32>
    %c0_6 = arith.constant 0 : index
    %c0_7 = arith.constant 0 : index
    %7 = vector.load %arg4[%c0_6, %c0_7] : memref<1x144xf32, #tpu.memory_space<vmem>>, vector<1x144xf32>
    %8 = vector.broadcast %7 : vector<1x144xf32> to vector<416x144xf32>
    %9 = arith.addf %6, %8 : vector<416x144xf32>
    %cst_8 = arith.constant 0.000000e+00 : f32
    %10 = vector.broadcast %cst_8 : f32 to vector<416x144xf32>
    %11 = arith.maximumf %9, %10 : vector<416x144xf32>
    %12 = vector.extract_strided_slice %11 {offsets = [0, 0], sizes = [104, 144], strides = [1, 1]} : vector<416x144xf32> to vector<104x144xf32>
    %13 = vector.extract_strided_slice %11 {offsets = [104, 0], sizes = [104, 144], strides = [1, 1]} : vector<416x144xf32> to vector<104x144xf32>
    %14 = arith.maximumf %12, %13 : vector<104x144xf32>
    %15 = vector.extract_strided_slice %11 {offsets = [208, 0], sizes = [104, 144], strides = [1, 1]} : vector<416x144xf32> to vector<104x144xf32>
    %16 = vector.extract_strided_slice %11 {offsets = [312, 0], sizes = [104, 144], strides = [1, 1]} : vector<416x144xf32> to vector<104x144xf32>
    %17 = arith.maximumf %15, %16 : vector<104x144xf32>
    %18 = arith.maximumf %14, %17 : vector<104x144xf32>
    %c0_9 = arith.constant 0 : index
    %c0_10 = arith.constant 0 : index
    %c0_11 = arith.constant 0 : index
    %19 = vector.load %arg5[%c0_9, %c0_10, %c0_11] : memref<1x104x144xf32, #tpu.memory_space<vmem>>, vector<1x104x144xf32>
    %20 = vector.shape_cast %19 : vector<1x104x144xf32> to vector<104x144xf32>
    %21 = vector.shape_cast %18 : vector<104x144xf32> to vector<1x104x144xf32>
    tpu.vector_store %arg5[%c0_9, %c0_10, %c0_11], %21 {strides = array<i32>} : memref<1x104x144xf32, #tpu.memory_space<vmem>>, vector<1x104x144xf32>,
    return
  }
  func.func @transform_0(%arg0: i32) -> (i32, i32, i32) {
    %c0_i32 = arith.constant 0 : i32
    %c0_i32_0 = arith.constant 0 : i32
    %c0_i32_1 = arith.constant 0 : i32
    return %arg0, %c0_i32, %c0_i32_0 : i32, i32, i32
  }
  func.func @transform_1(%arg0: i32) -> (i32, i32) {
    %c0_i32 = arith.constant 0 : i32
    %c0_i32_0 = arith.constant 0 : i32
    %c0_i32_1 = arith.constant 0 : i32
    return %c0_i32, %c0_i32_0 : i32, i32
  }
  func.func @transform_2(%arg0: i32) -> (i32, i32) {
    %c0_i32 = arith.constant 0 : i32
    %c0_i32_0 = arith.constant 0 : i32
    %c0_i32_1 = arith.constant 0 : i32
    return %c0_i32, %c0_i32_0 : i32, i32
  }
  func.func @transform_3(%arg0: i32) -> (i32, i32) {
    %c0_i32 = arith.constant 0 : i32
    %c0_i32_0 = arith.constant 0 : i32
    %c0_i32_1 = arith.constant 0 : i32
    return %c0_i32, %c0_i32_0 : i32, i32
  }
  func.func @transform_4(%arg0: i32) -> (i32, i32, i32) {
    %c0_i32 = arith.constant 0 : i32
    %c0_i32_0 = arith.constant 0 : i32
    %c0_i32_1 = arith.constant 0 : i32
    return %arg0, %c0_i32, %c0_i32_0 : i32, i32, i32
  }
}

module attributes {stable_mosaic.version = 11 : i64} {
  func.func @_conv_affine_pool_kernel(%arg0: i32, %arg1: memref<1x128x3712xbf16, #tpu.memory_space<vmem>>, %arg2: memref<3712x256xbf16, #tpu.memory_space<vmem>>, %arg3: memref<1x256xf32, #tpu.memory_space<vmem>>, %arg4: memref<1x256xf32, #tpu.memory_space<vmem>>, %arg5: memref<1x32x256xf32, #tpu.memory_space<vmem>>) attributes {dimension_semantics = [#tpu.dimension_semantics<parallel>], iteration_bounds = array<i64: 2>, scalar_prefetch = 0 : i64, scratch_operands = 0 : i64, tpu.core_type = #tpu.core_type<tc>, window_params = [{transform_indices = @transform_0, window_bounds = array<i64: 1, 128, 3712>}, {pipeline_mode = #tpu.pipeline_mode<synchronous>, transform_indices = @transform_1, window_bounds = array<i64: 3712, 256>}, {pipeline_mode = #tpu.pipeline_mode<synchronous>, transform_indices = @transform_2, window_bounds = array<i64: 1, 256>}, {pipeline_mode = #tpu.pipeline_mode<synchronous>, transform_indices = @transform_3, window_bounds = array<i64: 1, 256>}, {transform_indices = @transform_4, window_bounds = array<i64: 1, 32, 256>}]} {
    %c0 = arith.constant 0 : index
    %c0_0 = arith.constant 0 : index
    %c0_1 = arith.constant 0 : index
    %0 = vector.load %arg1[%c0, %c0_0, %c0_1] : memref<1x128x3712xbf16, #tpu.memory_space<vmem>>, vector<1x128x3712xbf16>
    %1 = vector.shape_cast %0 : vector<1x128x3712xbf16> to vector<128x3712xbf16>
    %c0_2 = arith.constant 0 : index
    %c0_3 = arith.constant 0 : index
    %2 = vector.load %arg2[%c0_2, %c0_3] : memref<3712x256xbf16, #tpu.memory_space<vmem>>, vector<3712x256xbf16>
    %cst = arith.constant dense<0.000000e+00> : vector<128x256xf32>
    %3 = tpu.matmul %1, %2, %cst {dimension_numbers = #tpu.dot_dimension_numbers<[1], [0], [0], [1], [0, 0, 1, 1], [], []>} : vector<128x3712xbf16>, vector<3712x256xbf16>, vector<128x256xf32> -> vector<128x256xf32>
    %c0_4 = arith.constant 0 : index
    %c0_5 = arith.constant 0 : index
    %4 = vector.load %arg3[%c0_4, %c0_5] : memref<1x256xf32, #tpu.memory_space<vmem>>, vector<1x256xf32>
    %5 = vector.broadcast %4 : vector<1x256xf32> to vector<128x256xf32>
    %6 = arith.mulf %3, %5 : vector<128x256xf32>
    %c0_6 = arith.constant 0 : index
    %c0_7 = arith.constant 0 : index
    %7 = vector.load %arg4[%c0_6, %c0_7] : memref<1x256xf32, #tpu.memory_space<vmem>>, vector<1x256xf32>
    %8 = vector.broadcast %7 : vector<1x256xf32> to vector<128x256xf32>
    %9 = arith.addf %6, %8 : vector<128x256xf32>
    %cst_8 = arith.constant 0.000000e+00 : f32
    %10 = vector.broadcast %cst_8 : f32 to vector<128x256xf32>
    %11 = arith.maximumf %9, %10 : vector<128x256xf32>
    %12 = vector.extract_strided_slice %11 {offsets = [0, 0], sizes = [32, 256], strides = [1, 1]} : vector<128x256xf32> to vector<32x256xf32>
    %13 = vector.extract_strided_slice %11 {offsets = [32, 0], sizes = [32, 256], strides = [1, 1]} : vector<128x256xf32> to vector<32x256xf32>
    %14 = arith.maximumf %12, %13 : vector<32x256xf32>
    %15 = vector.extract_strided_slice %11 {offsets = [64, 0], sizes = [32, 256], strides = [1, 1]} : vector<128x256xf32> to vector<32x256xf32>
    %16 = vector.extract_strided_slice %11 {offsets = [96, 0], sizes = [32, 256], strides = [1, 1]} : vector<128x256xf32> to vector<32x256xf32>
    %17 = arith.maximumf %15, %16 : vector<32x256xf32>
    %18 = arith.maximumf %14, %17 : vector<32x256xf32>
    %c0_9 = arith.constant 0 : index
    %c0_10 = arith.constant 0 : index
    %c0_11 = arith.constant 0 : index
    %19 = vector.load %arg5[%c0_9, %c0_10, %c0_11] : memref<1x32x256xf32, #tpu.memory_space<vmem>>, vector<1x32x256xf32>
    %20 = vector.shape_cast %19 : vector<1x32x256xf32> to vector<32x256xf32>
    %21 = vector.shape_cast %18 : vector<32x256xf32> to vector<1x32x256xf32>
    tpu.vector_store %arg5[%c0_9, %c0_10, %c0_11], %21 {strides = array<i32>} : memref<1x32x256xf32, #tpu.memory_space<vmem>>, vector<1x32x256xf32>,
    return
  }
  func.func @transform_0(%arg0: i32) -> (i32, i32, i32) {
    %c0_i32 = arith.constant 0 : i32
    %c0_i32_0 = arith.constant 0 : i32
    %c0_i32_1 = arith.constant 0 : i32
    return %arg0, %c0_i32, %c0_i32_0 : i32, i32, i32
  }
  func.func @transform_1(%arg0: i32) -> (i32, i32) {
    %c0_i32 = arith.constant 0 : i32
    %c0_i32_0 = arith.constant 0 : i32
    %c0_i32_1 = arith.constant 0 : i32
    return %c0_i32, %c0_i32_0 : i32, i32
  }
  func.func @transform_2(%arg0: i32) -> (i32, i32) {
    %c0_i32 = arith.constant 0 : i32
    %c0_i32_0 = arith.constant 0 : i32
    %c0_i32_1 = arith.constant 0 : i32
    return %c0_i32, %c0_i32_0 : i32, i32
  }
  func.func @transform_3(%arg0: i32) -> (i32, i32) {
    %c0_i32 = arith.constant 0 : i32
    %c0_i32_0 = arith.constant 0 : i32
    %c0_i32_1 = arith.constant 0 : i32
    return %c0_i32, %c0_i32_0 : i32, i32
  }
  func.func @transform_4(%arg0: i32) -> (i32, i32, i32) {
    %c0_i32 = arith.constant 0 : i32
    %c0_i32_0 = arith.constant 0 : i32
    %c0_i32_1 = arith.constant 0 : i32
    return %arg0, %c0_i32, %c0_i32_0 : i32, i32, i32
  }
}

</mosaic_0001>

<bundles_post_ra>
// kernel: bigg_forward.3
= control target key start
LH: loop header
LB: loop body
LE: loop exit
PB: predicated region body
PF: predicated region fallthrough
CT: control target
= control target key end

     0   :  { %s3377_s15 = smov 0   ;;  %s4572_s0 = inlined_call_operand.vmem [shape: bf16[2,1600,128], index: 0, kind: input, shape index: {}]   ;;  %s4573_s1 = inlined_call_operand.vmem [shape: bf16[128,128], index: 1, kind: input, shape index: {}]   ;;  %s4574_s2 = inlined_call_operand.vmem [shape: f32[1,128], index: 2, kind: input, shape index: {}]   ;;  %s4575_s3 = inlined_call_operand.vmem [shape: f32[1,128], index: 3, kind: input, shape index: {}]   ;;  %s4576_s4 = inlined_call_operand.vmem [shape: f32[2,400,128], index: 4, kind: output, shape index: {}]  }
   0x1 LB: > { %s2765_s16 = sadd.s32 4294967295, %s3350_s15   ;;  %p2769_p0 = scmp.ge.s32.totalorder %s3350_s15, 1  ;;  %s3350_s15 = sphi %s3377_s15, %s14_s15  }
   0x2   : > { %p162_p1 = scmp.lt.s32.totalorder %s3350_s15, 3 }
   0x4   : > { %p163_p2 = pnand %p2769_p0, %p162_p1 }
   0x6   : > { %166 = sbr.rel (%p163_p2) target bundleno = 480 (0x1e0), region = 36 }
   0xb   : > { %v3234_v0 = vld [vmem:[%s4573_s1 + $0x38] sm:$0xff]   ;;  %p188_p3 = scmp.lt.s32.totalorder %s2765_s16, 1  ;;  %v3235_v1 = vld [vmem:[%s4573_s1 + $0x30] sm:$0xff]   ;;  %v3236_v2 = vld [vmem:[%s4573_s1 + $0x28] sm:$0xff]  }
   0xc   : > { %2992 = vmatprep.subr.bf16.mxu0 %v3234_v0  ;;  %3208 = vmatprep.subr.bf16.mxu1 %v3234_v0  ;;  %v3237_v3 = vld [vmem:[%s4573_s1 + $0x20] sm:$0xff]   ;;  %v3238_v6 = vld [vmem:[%s4573_s1 + $0x18] sm:$0xff]   ;;  %v3239_v7 = vld [vmem:[%s4573_s1 + $0x10] sm:$0xff]  }
   0xd   : > { %s4839_s16 = smov (!%p188_p3, %s2765_s16), 1  ;;  %2993 = vmatpush3.bf16.msra.mxu0 %v3234_v0  ;;  %3216 = vmatpush3.bf16.msra.mxu1 %v3234_v0  ;;  %v3240_v8 = vld [vmem:[%s4573_s1 + $0x8] sm:$0xff]   ;;  %v3241_v9 = vld [vmem:[%s4573_s1] sm:$0xff]  }
   0xe   : > { %2994 = vmatprep.subr.bf16.mxu0 %v3235_v1  ;;  %3209 = vmatprep.subr.bf16.mxu1 %v3235_v1  ;;  %s3224_s23 = smul.u32 800, %s4839_s16 }
   0xf   : > { %s3225_s17 = smul.u32 400, %s4839_s16 }
  0x10   : > { %s3400_s26 = scalar_lea.vmem %s4572_s0, %s3224_s23 }
  0x11   : > { %2995 = vmatpush3.bf16.msra.mxu0 %v3235_v1  ;;  %3217 = vmatpush3.bf16.msra.mxu1 %v3235_v1  ;;  %v3242_v4 = vld [vmem:[%s3400_s26] sm:$0xff]   ;;  %v3243_v5 = vld [vmem:[%s3400_s26 + $0x190] sm:$0xff]   ;;  %v3244_v10 = vld [vmem:[%s3400_s26 + $0x8] sm:$0xff]   ;;  %s4107_s19 = scalar_lea.vmem %s4576_s4, %s3225_s17 }
  0x12   : > { %2996 = vmatprep.subr.bf16.mxu0 %v3236_v2  ;;  %3210 = vmatprep.subr.bf16.mxu1 %v3236_v2  ;;  %v3245_v11 = vld [vmem:[%s3400_s26 + $0x198] sm:$0xff]   ;;  %v3246_v12 = vld [vmem:[%s3400_s26 + $0x10] sm:$0xff]   ;;  %v3247_v13 = vld [vmem:[%s3400_s26 + $0x1a0] sm:$0xff]  }
  0x13   : > { %3008 = vmatprep.mubr.bf16.mxu0 %v3242_v4  ;;  %3108 = vmatprep.mubr.bf16.mxu1 %v3243_v5  ;;  %v3248_v14 = vld [vmem:[%s3400_s26 + $0x18] sm:$0xff]   ;;  %v3249_v15 = vld [vmem:[%s3400_s26 + $0x1a8] sm:$0xff]   ;;  %v3250_v16 = vld [vmem:[%s3400_s26 + $0x20] sm:$0xff]  }
  0x14   : > { %v3251_v17 = vld [vmem:[%s3400_s26 + $0x1b0] sm:$0xff]   ;;  %v3252_v18 = vld [vmem:[%s3400_s26 + $0x28] sm:$0xff]   ;;  %v3253_v19 = vld [vmem:[%s3400_s26 + $0x1b8] sm:$0xff]  }
  0x15   : > { %2997 = vmatpush3.bf16.msra.mxu0 %v3236_v2  ;;  %3218 = vmatpush3.bf16.msra.mxu1 %v3236_v2  ;;  %v3254_v20 = vld [vmem:[%s3400_s26 + $0x30] sm:$0xff]   ;;  %v3255_v21 = vld [vmem:[%s3400_s26 + $0x1c0] sm:$0xff]   ;;  %v3256_v22 = vld [vmem:[%s3400_s26 + $0x38] sm:$0xff]  }
  0x16   : > { %2998 = vmatprep.subr.bf16.mxu0 %v3237_v3  ;;  %3211 = vmatprep.subr.bf16.mxu1 %v3237_v3  ;;  %v3257_v23 = vld [vmem:[%s3400_s26 + $0x1c8] sm:$0xff]   ;;  %v3258_v24 = vld [vmem:[%s3400_s26 + $0x40] sm:$0xff]   ;;  %v3259_v25 = vld [vmem:[%s3400_s26 + $0x1d0] sm:$0xff]  }
  0x17   : > { %v3260_v26 = vld [vmem:[%s3400_s26 + $0x48] sm:$0xff]   ;;  %v3261_v27 = vld [vmem:[%s3400_s26 + $0x1d8] sm:$0xff]   ;;  %v3262_v28 = vld [vmem:[%s3400_s26 + $0x50] sm:$0xff]  }
  0x18   : > { %v3263_v29 = vld [vmem:[%s3400_s26 + $0x1e0] sm:$0xff]   ;;  %v3264_v30 = vld [vmem:[%s3400_s26 + $0x58] sm:$0xff]   ;;  %v3265_v31 = vld [vmem:[%s3400_s26 + $0x1e8] sm:$0xff]  }
  0x19   : > { %2999 = vmatpush3.bf16.msra.mxu0 %v3237_v3  ;;  %3219 = vmatpush3.bf16.msra.mxu1 %v3237_v3  ;;  %v3266_v32 = vld [vmem:[%s3400_s26 + $0x60] sm:$0xff]   ;;  %v3267_v33 = vld [vmem:[%s3400_s26 + $0x1f0] sm:$0xff]   ;;  %v3268_v34 = vld [vmem:[%s3400_s26 + $0x68] sm:$0xff]  }
  0x1a   : > { %3000 = vmatprep.subr.bf16.mxu0 %v3238_v6  ;;  %3212 = vmatprep.subr.bf16.mxu1 %v3238_v6  ;;  %v3269_v35 = vld [vmem:[%s3400_s26 + $0x1f8] sm:$0xff]   ;;  %v3270_v36 = vld [vmem:[%s3400_s26 + $0x70] sm:$0xff]   ;;  %v3271_v37 = vld [vmem:[%s3400_s26 + $0x200] sm:$0xff]  }
  0x1b   : > { %v3272_v38 = vld [vmem:[%s3400_s26 + $0x78] sm:$0xff]   ;;  %v3273_v39 = vld [vmem:[%s3400_s26 + $0x208] sm:$0xff]   ;;  %v3274_v40 = vld [vmem:[%s3400_s26 + $0x80] sm:$0xff]  }
  0x1c   : > { %v3275_v41 = vld [vmem:[%s3400_s26 + $0x210] sm:$0xff]   ;;  %v3276_v42 = vld [vmem:[%s3400_s26 + $0x88] sm:$0xff]   ;;  %v3277_v43 = vld [vmem:[%s3400_s26 + $0x218] sm:$0xff]  }
  0x1d   : > { %3001 = vmatpush3.bf16.msra.mxu0 %v3238_v6  ;;  %3220 = vmatpush3.bf16.msra.mxu1 %v3238_v6  ;;  %v3278_v44 = vld [vmem:[%s3400_s26 + $0x90] sm:$0xff]   ;;  %v3279_v45 = vld [vmem:[%s3400_s26 + $0x220] sm:$0xff]   ;;  %v3280_v46 = vld [vmem:[%s3400_s26 + $0x98] sm:$0xff]  }
  0x1e   : > { %3002 = vmatprep.subr.bf16.mxu0 %v3239_v7  ;;  %3213 = vmatprep.subr.bf16.mxu1 %v3239_v7  ;;  %v3281_v47 = vld [vmem:[%s3400_s26 + $0x228] sm:$0xff]   ;;  %v3282_v48 = vld [vmem:[%s3400_s26 + $0xa0] sm:$0xff]   ;;  %v3283_v49 = vld [vmem:[%s3400_s26 + $0x230] sm:$0xff]  }
  0x1f   : > { %v3284_v50 = vld [vmem:[%s3400_s26 + $0xa8] sm:$0xff]   ;;  %v3285_v51 = vld [vmem:[%s3400_s26 + $0x238] sm:$0xff]   ;;  %v3286_v52 = vld [vmem:[%s3400_s26 + $0xb0] sm:$0xff]  }
  0x20   : > { %v3287_v53 = vld [vmem:[%s3400_s26 + $0x240] sm:$0xff]   ;;  %v3288_v54 = vld [vmem:[%s3400_s26 + $0xb8] sm:$0xff]   ;;  %v3289_v55 = vld [vmem:[%s3400_s26 + $0x248] sm:$0xff]  }
  0x21   : > { %3003 = vmatpush3.bf16.msra.mxu0 %v3239_v7  ;;  %3221 = vmatpush3.bf16.msra.mxu1 %v3239_v7  ;;  %v3290_v56 = vld [vmem:[%s3400_s26 + $0xc0] sm:$0xff]   ;;  %v3291_v57 = vld [vmem:[%s3400_s26 + $0x250] sm:$0xff]   ;;  %v3292_v58 = vld [vmem:[%s3400_s26 + $0xc8] sm:$0xff]  }
  0x22   : > { %3004 = vmatprep.subr.bf16.mxu0 %v3240_v8  ;;  %3214 = vmatprep.subr.bf16.mxu1 %v3240_v8  ;;  %v3293_v59 = vld [vmem:[%s3400_s26 + $0x258] sm:$0xff]   ;;  %v3294_v60 = vld [vmem:[%s3400_s26 + $0xd0] sm:$0xff]   ;;  %v3295_v61 = vld [vmem:[%s3400_s26 + $0x260] sm:$0xff]  }
  0x23   : > { %v3296_v62 = vld [vmem:[%s3400_s26 + $0xd8] sm:$0xff]   ;;  %v3297_v63 = vld [vmem:[%s3400_s26 + $0x268] sm:$0xff]   ;;  %v3298_v0 = vld [vmem:[%s3400_s26 + $0xe0] sm:$0xff]  }
  0x24   : > { %v3299_v1 = vld [vmem:[%s3400_s26 + $0x270] sm:$0xff]   ;;  %v3300_v2 = vld [vmem:[%s3400_s26 + $0xe8] sm:$0xff]   ;;  %v3301_v3 = vld [vmem:[%s3400_s26 + $0x278] sm:$0xff]  }
  0x25   : > { %3005 = vmatpush3.bf16.msra.mxu0 %v3240_v8  ;;  %3222 = vmatpush3.bf16.msra.mxu1 %v3240_v8  ;;  %v3302_v4 = vld [vmem:[%s3400_s26 + $0xf0] sm:$0xff]   ;;  %v3303_v5 = vld [vmem:[%s3400_s26 + $0x280] sm:$0xff]   ;;  %v3304_v6 = vld [vmem:[%s3400_s26 + $0xf8] sm:$0xff]  }
  0x26   : > { %3006 = vmatprep.subr.bf16.mxu0 %v3241_v9  ;;  %3215 = vmatprep.subr.bf16.mxu1 %v3241_v9  ;;  %v3305_v7 = vld [vmem:[%s3400_s26 + $0x288] sm:$0xff]   ;;  %v3306_v8 = vld [vmem:[%s3400_s26 + $0x100] sm:$0xff]  }
  0x29   : > { %3007 = vmatpush3.bf16.msra.mxu0 %v3241_v9  ;;  %3223 = vmatpush3.bf16.msra.mxu1 %v3241_v9  ;;  %v3307_v9 = vld [vmem:[%s3400_s26 + $0x290] sm:$0xff]  }
  0x2c   : > { %3009 = vmatmul.mubr.bf16.vlgmr.msra.gmra.mxu0 %v3244_v10  ;;  %3109 = vmatmul.mubr.bf16.vlgmr.msra.gmra.mxu1 %v3245_v11  ;;  %v3308_v10 = vld [vmem:[%s3400_s26 + $0x108] sm:$0xff]   ;;  %v3309_v11 = vld [vmem:[%s3400_s26 + $0x298] sm:$0xff]  }
  0x2d   : > { %3012 = vmatprep.mubr.bf16.mxu0 %v3246_v12  ;;  %3112 = vmatprep.mubr.bf16.mxu1 %v3247_v13  ;;  %v3310_v12 = vld [vmem:[%s3400_s26 + $0x110] sm:$0xff]   ;;  %v3311_v13 = vld [vmem:[%s3400_s26 + $0x2a0] sm:$0xff]  }
  0x34   : > { %3013 = vmatmul.mubr.bf16.gmra.mxu0 %v3248_v14  ;;  %3113 = vmatmul.mubr.bf16.gmra.mxu1 %v3249_v15  ;;  %v3312_v14 = vld [vmem:[%s3400_s26 + $0x118] sm:$0xff]   ;;  %v3313_v15 = vld [vmem:[%s3400_s26 + $0x2a8] sm:$0xff]  }
  0x35   : > { %3016 = vmatprep.mubr.bf16.mxu0 %v3250_v16  ;;  %3116 = vmatprep.mubr.bf16.mxu1 %v3251_v17  ;;  %v3314_v16 = vld [vmem:[%s3400_s26 + $0x120] sm:$0xff]   ;;  %v3315_v17 = vld [vmem:[%s3400_s26 + $0x2b0] sm:$0xff]  }
  0x3c   : > { %3017 = vmatmul.mubr.bf16.gmra.mxu0 %v3252_v18  ;;  %3117 = vmatmul.mubr.bf16.gmra.mxu1 %v3253_v19  ;;  %v3316_v18 = vld [vmem:[%s3400_s26 + $0x128] sm:$0xff]   ;;  %v3317_v19 = vld [vmem:[%s3400_s26 + $0x2b8] sm:$0xff]  }
  0x3d   : > { %3020 = vmatprep.mubr.bf16.mxu0 %v3254_v20  ;;  %3120 = vmatprep.mubr.bf16.mxu1 %v3255_v21  ;;  %v3318_v20 = vld [vmem:[%s3400_s26 + $0x130] sm:$0xff]   ;;  %v3319_v21 = vld [vmem:[%s3400_s26 + $0x2c0] sm:$0xff]  }
  0x44   : > { %3021 = vmatmul.mubr.bf16.gmra.mxu0 %v3256_v22  ;;  %3121 = vmatmul.mubr.bf16.gmra.mxu1 %v3257_v23  ;;  %v3320_v22 = vld [vmem:[%s3400_s26 + $0x138] sm:$0xff]   ;;  %v3321_v23 = vld [vmem:[%s3400_s26 + $0x2c8] sm:$0xff]  }
  0x45   : > { %3024 = vmatprep.mubr.bf16.mxu0 %v3258_v24  ;;  %3124 = vmatprep.mubr.bf16.mxu1 %v3259_v25  ;;  %v3322_v24 = vld [vmem:[%s3400_s26 + $0x140] sm:$0xff]   ;;  %v3323_v25 = vld [vmem:[%s3400_s26 + $0x2d0] sm:$0xff]  }
  0x4c   : > { %3025 = vmatmul.mubr.bf16.gmra.mxu0 %v3260_v26  ;;  %3125 = vmatmul.mubr.bf16.gmra.mxu1 %v3261_v27  ;;  %v3324_v26 = vld [vmem:[%s3400_s26 + $0x148] sm:$0xff]   ;;  %v3325_v27 = vld [vmem:[%s3400_s26 + $0x2d8] sm:$0xff]  }
  0x4d   : > { %3028 = vmatprep.mubr.bf16.mxu0 %v3262_v28  ;;  %3128 = vmatprep.mubr.bf16.mxu1 %v3263_v29  ;;  %v3326_v28 = vld [vmem:[%s3400_s26 + $0x150] sm:$0xff]   ;;  %v3327_v29 = vld [vmem:[%s3400_s26 + $0x2e0] sm:$0xff]  }
  0x54   : > { %3029 = vmatmul.mubr.bf16.gmra.mxu0 %v3264_v30  ;;  %3129 = vmatmul.mubr.bf16.gmra.mxu1 %v3265_v31  ;;  %v3328_v30 = vld [vmem:[%s3400_s26 + $0x158] sm:$0xff]   ;;  %v3329_v31 = vld [vmem:[%s3400_s26 + $0x2e8] sm:$0xff]  }
  0x55   : > { %3032 = vmatprep.mubr.bf16.mxu0 %v3266_v32  ;;  %3132 = vmatprep.mubr.bf16.mxu1 %v3267_v33  ;;  %v3330_v32 = vld [vmem:[%s3400_s26 + $0x160] sm:$0xff]   ;;  %v3331_v33 = vld [vmem:[%s3400_s26 + $0x2f0] sm:$0xff]  }
  0x5c   : > { %3033 = vmatmul.mubr.bf16.gmra.mxu0 %v3268_v34  ;;  %3133 = vmatmul.mubr.bf16.gmra.mxu1 %v3269_v35  ;;  %v3332_v34 = vld [vmem:[%s3400_s26 + $0x168] sm:$0xff]   ;;  %v3333_v35 = vld [vmem:[%s3400_s26 + $0x2f8] sm:$0xff]  }
  0x5d   : > { %3036 = vmatprep.mubr.bf16.mxu0 %v3270_v36  ;;  %3136 = vmatprep.mubr.bf16.mxu1 %v3271_v37  ;;  %v3334_v36 = vld [vmem:[%s3400_s26 + $0x170] sm:$0xff]   ;;  %v3335_v37 = vld [vmem:[%s3400_s26 + $0x300] sm:$0xff]  }
  0x64   : > { %3037 = vmatmul.mubr.bf16.gmra.mxu0 %v3272_v38  ;;  %3137 = vmatmul.mubr.bf16.gmra.mxu1 %v3273_v39  ;;  %v3336_v38 = vld [vmem:[%s3400_s26 + $0x178] sm:$0xff]   ;;  %v3337_v39 = vld [vmem:[%s3400_s26 + $0x308] sm:$0xff]  }
  0x65   : > { %3040 = vmatprep.mubr.bf16.mxu0 %v3274_v40  ;;  %3140 = vmatprep.mubr.bf16.mxu1 %v3275_v41  ;;  %v3338_v40 = vld [vmem:[%s3400_s26 + $0x180] sm:$0xff]   ;;  %v3339_v41 = vld [vmem:[%s3400_s26 + $0x310] sm:$0xff]  }
  0x6c   : > { %3041 = vmatmul.mubr.bf16.gmra.mxu0 %v3276_v42  ;;  %3141 = vmatmul.mubr.bf16.gmra.mxu1 %v3277_v43  ;;  %v3340_v42 = vld [vmem:[%s3400_s26 + $0x188] sm:$0xff]   ;;  %v3341_v43 = vld [vmem:[%s3400_s26 + $0x318] sm:$0xff]  }
  0x6d   : > { %3044 = vmatprep.mubr.bf16.mxu0 %v3278_v44  ;;  %3144 = vmatprep.mubr.bf16.mxu1 %v3279_v45 }
  0x74   : > { %3045 = vmatmul.mubr.bf16.gmra.mxu0 %v3280_v46  ;;  %3145 = vmatmul.mubr.bf16.gmra.mxu1 %v3281_v47 }
  0x75   : > { %3048 = vmatprep.mubr.bf16.mxu0 %v3282_v48  ;;  %3148 = vmatprep.mubr.bf16.mxu1 %v3283_v49 }
  0x7c   : > { %3049 = vmatmul.mubr.bf16.gmra.mxu0 %v3284_v50  ;;  %3149 = vmatmul.mubr.bf16.gmra.mxu1 %v3285_v51 }
  0x7d   : > { %3052 = vmatprep.mubr.bf16.mxu0 %v3286_v52  ;;  %3152 = vmatprep.mubr.bf16.mxu1 %v3287_v53 }
  0x84   : > { %3053 = vmatmul.mubr.bf16.gmra.mxu0 %v3288_v54  ;;  %3153 = vmatmul.mubr.bf16.gmra.mxu1 %v3289_v55 }
  0x85   : > { %3056 = vmatprep.mubr.bf16.mxu0 %v3290_v56  ;;  %3156 = vmatprep.mubr.bf16.mxu1 %v3291_v57 }
  0x8c   : > { %3057 = vmatmul.mubr.bf16.gmra.mxu0 %v3292_v58  ;;  %3157 = vmatmul.mubr.bf16.gmra.mxu1 %v3293_v59 }
  0x8d   : > { %3060 = vmatprep.mubr.bf16.mxu0 %v3294_v60  ;;  %3160 = vmatprep.mubr.bf16.mxu1 %v3295_v61 }
  0x94   : > { %3061 = vmatmul.mubr.bf16.gmra.mxu0 %v3296_v62  ;;  %3161 = vmatmul.mubr.bf16.gmra.mxu1 %v3297_v63 }
  0x95   : > { %3064 = vmatprep.mubr.bf16.mxu0 %v3298_v0  ;;  %3164 = vmatprep.mubr.bf16.mxu1 %v3299_v1 }
  0x9c   : > { %3065 = vmatmul.mubr.bf16.gmra.mxu0 %v3300_v2  ;;  %3165 = vmatmul.mubr.bf16.gmra.mxu1 %v3301_v3 }
  0x9d   : > { %3068 = vmatprep.mubr.bf16.mxu0 %v3302_v4  ;;  %3168 = vmatprep.mubr.bf16.mxu1 %v3303_v5  ;;  %v3524_v4 = vld [vmem:[%s4574_s2] ss:$0 sm:$0xff] }
  0xa4   : > { %3069 = vmatmul.mubr.bf16.gmra.mxu0 %v3304_v6  ;;  %3169 = vmatmul.mubr.bf16.gmra.mxu1 %v3305_v7 }
  0xa5   : > { %3072 = vmatprep.mubr.bf16.mxu0 %v3306_v8  ;;  %3172 = vmatprep.mubr.bf16.mxu1 %v3307_v9 }
  0xac   : > { %3073 = vmatmul.mubr.bf16.gmra.mxu0 %v3308_v10  ;;  %3173 = vmatmul.mubr.bf16.gmra.mxu1 %v3309_v11  ;;  %v3539_v11 = vld [vmem:[%s4575_s3] ss:$0 sm:$0xff] }
  0xad   : > { %3076 = vmatprep.mubr.bf16.mxu0 %v3310_v12  ;;  %3176 = vmatprep.mubr.bf16.mxu1 %v3311_v13 }
  0xb4   : > { %3077 = vmatmul.mubr.bf16.gmra.mxu0 %v3312_v14  ;;  %3177 = vmatmul.mubr.bf16.gmra.mxu1 %v3313_v15 }
  0xb5   : > { %3080 = vmatprep.mubr.bf16.mxu0 %v3314_v16  ;;  %3180 = vmatprep.mubr.bf16.mxu1 %v3315_v17 }
  0xbc   : > { %3081 = vmatmul.mubr.bf16.gmra.mxu0 %v3316_v18  ;;  %3181 = vmatmul.mubr.bf16.gmra.mxu1 %v3317_v19 }
  0xbd   : > { %3084 = vmatprep.mubr.bf16.mxu0 %v3318_v20  ;;  %3184 = vmatprep.mubr.bf16.mxu1 %v3319_v21 }
  0xc4   : > { %3085 = vmatmul.mubr.bf16.gmra.mxu0 %v3320_v22  ;;  %3185 = vmatmul.mubr.bf16.gmra.mxu1 %v3321_v23 }
  0xc5   : > { %3088 = vmatprep.mubr.bf16.mxu0 %v3322_v24  ;;  %3188 = vmatprep.mubr.bf16.mxu1 %v3323_v25 }
  0xcc   : > { %3089 = vmatmul.mubr.bf16.gmra.mxu0 %v3324_v26  ;;  %3189 = vmatmul.mubr.bf16.gmra.mxu1 %v3325_v27 }
  0xcd   : > { %3092 = vmatprep.mubr.bf16.mxu0 %v3326_v28  ;;  %3192 = vmatprep.mubr.bf16.mxu1 %v3327_v29 }
  0xd4   : > { %3093 = vmatmul.mubr.bf16.gmra.mxu0 %v3328_v30  ;;  %3193 = vmatmul.mubr.bf16.gmra.mxu1 %v3329_v31 }
  0xd5   : > { %3096 = vmatprep.mubr.bf16.mxu0 %v3330_v32  ;;  %3196 = vmatprep.mubr.bf16.mxu1 %v3331_v33 }
  0xdc   : > { %3097 = vmatmul.mubr.bf16.gmra.mxu0 %v3332_v34  ;;  %3197 = vmatmul.mubr.bf16.gmra.mxu1 %v3333_v35 }
  0xdd   : > { %3100 = vmatprep.mubr.bf16.mxu0 %v3334_v36  ;;  %3200 = vmatprep.mubr.bf16.mxu1 %v3335_v37 }
  0xe4   : > { %3101 = vmatmul.mubr.bf16.gmra.mxu0 %v3336_v38  ;;  %3201 = vmatmul.mubr.bf16.gmra.mxu1 %v3337_v39 }
  0xe5   : > { %3104 = vmatprep.mubr.bf16.mxu0 %v3338_v40  ;;  %3204 = vmatprep.mubr.bf16.mxu1 %v3339_v41 }
  0xec   : > { %v3010_v44 = vpop.f32.mrf.mxu0  ;;  %3105 = vmatmul.mubr.bf16.gmra.mxu0 %v3340_v42  ;;  %v3110_v45 = vpop.f32.mrf.mxu1  ;;  %3205 = vmatmul.mubr.bf16.gmra.mxu1 %v3341_v43 }
  0xed   : > { %v1905_v7 = vmul.f32 %v3010_v44, %v3524_v4  ;;  %v2005_v8 = vmul.f32 %v3110_v45, %v3524_v4 }
  0xee   : > { %v1097_v46 = vpop.f32.mrf.mxu0  ;;  %v1497_v47 = vpop.f32.mrf.mxu1 }
  0xef   : > { %v1903_v12 = vmul.f32 %v3524_v4, %v1097_v46  ;;  %v2003_v13 = vmul.f32 %v3524_v4, %v1497_v47  ;;  %v3550_v18 = vadd.f32 %v3539_v11, %v1905_v7  ;;  %v3553_v19 = vadd.f32 %v3539_v11, %v2005_v8 }
  0xf0   : > { %v3011_v48 = vpop.f32.mrf.mxu0  ;;  %v3111_v49 = vpop.f32.mrf.mxu1 }
  0xf1   : > { %v1906_v14 = vmul.f32 %v3011_v48, %v3524_v4  ;;  %v2006_v15 = vmul.f32 %v3111_v49, %v3524_v4  ;;  %v3562_v24 = vadd.f32 %v3539_v11, %v1903_v12  ;;  %v3565_v25 = vadd.f32 %v3539_v11, %v2003_v13 }
  0xf2   : > { %v1100_v50 = vpop.f32.mrf.mxu0  ;;  %v1500_v51 = vpop.f32.mrf.mxu1 }
  0xf3   : > { %v1904_v20 = vmul.f32 %v3524_v4, %v1100_v50  ;;  %v2004_v21 = vmul.f32 %v3524_v4, %v1500_v51  ;;  %v3568_v26 = vadd.f32 %v3539_v11, %v1906_v14  ;;  %v3571_v27 = vadd.f32 %v3539_v11, %v2006_v15 }
  0xf4   : > { %v3014_v52 = vpop.f32.mrf.mxu0  ;;  %v3114_v53 = vpop.f32.mrf.mxu1 }
  0xf5   : > { %v1909_v28 = vmul.f32 %v3014_v52, %v3524_v4  ;;  %v2009_v29 = vmul.f32 %v3114_v53, %v3524_v4  ;;  %v3584_v36 = vadd.f32 %v3539_v11, %v1904_v20  ;;  %v3587_v37 = vadd.f32 %v3539_v11, %v2004_v21 }
  0xf6   : > { %v1113_v54 = vpop.f32.mrf.mxu0  ;;  %v1513_v55 = vpop.f32.mrf.mxu1 }
  0xf7   : > { %v1907_v32 = vmul.f32 %v3524_v4, %v1113_v54  ;;  %v2007_v33 = vmul.f32 %v3524_v4, %v1513_v55  ;;  %v3598_v44 = vadd.f32 %v3539_v11, %v1909_v28  ;;  %v3601_v45 = vadd.f32 %v3539_v11, %v2009_v29 }
  0xf8   : > { %v3015_v56 = vpop.f32.mrf.mxu0  ;;  %v3115_v57 = vpop.f32.mrf.mxu1 }
  0xf9   : > { %v1910_v46 = vmul.f32 %v3015_v56, %v3524_v4  ;;  %v2010_v47 = vmul.f32 %v3115_v57, %v3524_v4  ;;  %v3610_v50 = vadd.f32 %v3539_v11, %v1907_v32  ;;  %v3613_v51 = vadd.f32 %v3539_v11, %v2007_v33 }
  0xfa   : > { %v1116_v58 = vpop.f32.mrf.mxu0  ;;  %v1516_v59 = vpop.f32.mrf.mxu1 }
  0xfb   : > { %v1908_v52 = vmul.f32 %v3524_v4, %v1116_v58  ;;  %v2008_v53 = vmul.f32 %v3524_v4, %v1516_v59 }
  0xfc   : > { %v3018_v60 = vpop.f32.mrf.mxu0  ;;  %v3118_v61 = vpop.f32.mrf.mxu1 }
  0xfd   : > { %v1913_v56 = vmul.f32 %v3018_v60, %v3524_v4  ;;  %v2013_v57 = vmul.f32 %v3118_v61, %v3524_v4  ;;  %v3632_v60 = vadd.f32 %v3539_v11, %v1910_v46  ;;  %v3635_v61 = vadd.f32 %v3539_v11, %v2010_v47 }
  0xfe   : > { %v1129_v62 = vpop.f32.mrf.mxu0  ;;  %v1529_v63 = vpop.f32.mrf.mxu1 }
  0xff   : > { %v1911_v12 = vmul.f32 %v3524_v4, %v1129_v62  ;;  %v2011_v13 = vmul.f32 %v3524_v4, %v1529_v63  ;;  %v3650_v28 = vadd.f32 %v3539_v11, %v1913_v56  ;;  %v3653_v29 = vadd.f32 %v3539_v11, %v2013_v57 }
 0x100   : > { %v3019_v0 = vpop.f32.mrf.mxu0  ;;  %v3119_v1 = vpop.f32.mrf.mxu1 }
 0x101   : > { %v1914_v58 = vmul.f32 %v3019_v0, %v3524_v4  ;;  %v2014_v59 = vmul.f32 %v3119_v1, %v3524_v4  ;;  %v3644_v0 = vadd.f32 %v3539_v11, %v1908_v52  ;;  %v3647_v1 = vadd.f32 %v3539_v11, %v2008_v53 }
 0x102   : > { %v3517_v2 = vpop.f32.mrf.mxu0  ;;  %v3519_v3 = vpop.f32.mrf.mxu1  ;;  %v3664_v52 = vadd.f32 %v3539_v11, %v1911_v12  ;;  %v3667_v53 = vadd.f32 %v3539_v11, %v2011_v13 }
 0x103   : > { %v1912_v32 = vmul.f32 %v3524_v4, %v3517_v2  ;;  %v2012_v33 = vmul.f32 %v3524_v4, %v3519_v3  ;;  %v3670_v56 = vadd.f32 %v3539_v11, %v1914_v58  ;;  %v3673_v57 = vadd.f32 %v3539_v11, %v2014_v59 }
 0x104   : > { %v3526_v5 = vpop.f32.mrf.mxu0  ;;  %v3528_v6 = vpop.f32.mrf.mxu1 }
 0x105   : > { %4630 = vst [vmem:[#allocation2_spill] sm:$0xff] %v3670_v56  ;;  %4631 = vst [vmem:[#allocation3_spill] sm:$0xff] %v3673_v57  ;;  %v1917_v15 = vmul.f32 %v3526_v5, %v3524_v4  ;;  %v2017_v12 = vmul.f32 %v3528_v6, %v3524_v4  ;;  %v3694_v6 = vadd.f32 %v3539_v11, %v1912_v32 }
 0x106   : > { %v3532_v9 = vpop.f32.mrf.mxu0  ;;  %v3534_v10 = vpop.f32.mrf.mxu1  ;;  %v3697_v42 = vadd.f32 %v3539_v11, %v2012_v33 }
 0x107   : > { %v1915_v59 = vmul.f32 %v3524_v4, %v3532_v9  ;;  %v2015_v3 = vmul.f32 %v3524_v4, %v3534_v10  ;;  %v3708_v5 = vadd.f32 %v3539_v11, %v1917_v15  ;;  %v3711_v32 = vadd.f32 %v3539_v11, %v2017_v12 }
 0x108   : > { %v3545_v16 = vpop.f32.mrf.mxu0  ;;  %v3547_v17 = vpop.f32.mrf.mxu1 }
 0x109   : > { %4632 = vst [vmem:[#allocation4_spill] sm:$0xff] %v3708_v5  ;;  %4633 = vst [vmem:[#allocation5_spill] sm:$0xff] %v3711_v32  ;;  %v1918_v33 = vmul.f32 %v3545_v16, %v3524_v4  ;;  %v2018_v34 = vmul.f32 %v3547_v17, %v3524_v4  ;;  %v3722_v10 = vadd.f32 %v3539_v11, %v1915_v59 }
 0x10a   : > { %v3557_v22 = vpop.f32.mrf.mxu0  ;;  %v3559_v23 = vpop.f32.mrf.mxu1  ;;  %v3725_v2 = vadd.f32 %v3539_v11, %v2015_v3 }
 0x10b   : > { %v1916_v15 = vmul.f32 %v3524_v4, %v3557_v22  ;;  %v2016_v12 = vmul.f32 %v3524_v4, %v3559_v23  ;;  %v3751_v54 = vadd.f32 %v3539_v11, %v2018_v34 }
 0x10c   : > { %v3575_v30 = vpop.f32.mrf.mxu0  ;;  %v3577_v31 = vpop.f32.mrf.mxu1 }
 0x10d   : > { %v1921_v9 = vmul.f32 %v3575_v30, %v3524_v4  ;;  %v2021_v59 = vmul.f32 %v3577_v31, %v3524_v4  ;;  %v3748_v31 = vadd.f32 %v3539_v11, %v1918_v33  ;;  %4635 = vst [vmem:[#allocation7_spill] sm:$0xff] %v3751_v54 }
 0x10e   : > { %v3589_v38 = vpop.f32.mrf.mxu0  ;;  %v3591_v39 = vpop.f32.mrf.mxu1 }
 0x10f   : > { %v1919_v3 = vmul.f32 %v3524_v4, %v3589_v38  ;;  %v2019_v22 = vmul.f32 %v3524_v4, %v3591_v39  ;;  %4634 = vst [vmem:[#allocation6_spill] sm:$0xff] %v3748_v31  ;;  %v3762_v30 = vadd.f32 %v3539_v11, %v1921_v9  ;;  %v3765_v33 = vadd.f32 %v3539_v11, %v2021_v59 }
 0x110   : > { %v3605_v48 = vpop.f32.mrf.mxu0  ;;  %v3607_v49 = vpop.f32.mrf.mxu1 }
 0x111   : > { %v1922_v23 = vmul.f32 %v3605_v48, %v3524_v4  ;;  %v2022_v17 = vmul.f32 %v3607_v49, %v3524_v4  ;;  %v3756_v48 = vadd.f32 %v3539_v11, %v1916_v15  ;;  %v3759_v49 = vadd.f32 %v3539_v11, %v2016_v12  ;;  %4636 = vst [vmem:[#allocation8_spill] sm:$0xff] %v3762_v30 }
 0x112   : > { %v3621_v7 = vpop.f32.mrf.mxu0  ;;  %v3623_v8 = vpop.f32.mrf.mxu1  ;;  %4637 = vst [vmem:[#allocation9_spill] sm:$0xff] %v3765_v33  ;;  %v3772_v15 = vadd.f32 %v3539_v11, %v1919_v3  ;;  %v3775_v12 = vadd.f32 %v3539_v11, %v2019_v22 }
 0x113   : > { %v1920_v34 = vmul.f32 %v3524_v4, %v3621_v7  ;;  %v2020_v16 = vmul.f32 %v3524_v4, %v3623_v8  ;;  %v3778_v9 = vadd.f32 %v3539_v11, %v1922_v23  ;;  %v3781_v59 = vadd.f32 %v3539_v11, %v2022_v17 }
 0x114   : > { %v3637_v20 = vpop.f32.mrf.mxu0  ;;  %v3639_v21 = vpop.f32.mrf.mxu1  ;;  %4638 = vst [vmem:[#allocation10_spill] sm:$0xff] %v3775_v12 }
 0x115   : > { %4639 = vst [vmem:[#allocation11_spill] sm:$0xff] %v3778_v9  ;;  %4640 = vst [vmem:[#allocation12_spill] sm:$0xff] %v3781_v59  ;;  %v1925_v8 = vmul.f32 %v3637_v20, %v3524_v4  ;;  %v2025_v3 = vmul.f32 %v3639_v21, %v3524_v4  ;;  %v3798_v20 = vadd.f32 %v3539_v11, %v1920_v34 }
 0x116   : > { %v3659_v46 = vpop.f32.mrf.mxu0  ;;  %v3661_v47 = vpop.f32.mrf.mxu1  ;;  %v3801_v21 = vadd.f32 %v3539_v11, %v2020_v16 }
 0x117   : > { %v1923_v17 = vmul.f32 %v3524_v4, %v3659_v46  ;;  %v2023_v32 = vmul.f32 %v3524_v4, %v3661_v47  ;;  %4641 = vst [vmem:[#allocation13_spill] sm:$0xff] %v3798_v20  ;;  %v3808_v7 = vadd.f32 %v3539_v11, %v1925_v8  ;;  %v3811_v54 = vadd.f32 %v3539_v11, %v2025_v3 }
 0x118   : > { %v3681_v14 = vpop.f32.mrf.mxu0  ;;  %v3683_v13 = vpop.f32.mrf.mxu1  ;;  %4642 = vst [vmem:[#allocation14_spill] sm:$0xff] %v3801_v21 }
 0x119   : > { %4643 = vst [vmem:[#allocation15_spill] sm:$0xff] %v3808_v7  ;;  %4644 = vst [vmem:[#allocation16_spill] sm:$0xff] %v3811_v54  ;;  %v1926_v16 = vmul.f32 %v3681_v14, %v3524_v4  ;;  %v2026_v34 = vmul.f32 %v3683_v13, %v3524_v4  ;;  %v3818_v56 = vadd.f32 %v3539_v11, %v1923_v17 }
 0x11a   : > { %v3699_v35 = vpop.f32.mrf.mxu0  ;;  %v3701_v58 = vpop.f32.mrf.mxu1  ;;  %v3821_v46 = vadd.f32 %v3539_v11, %v2023_v32 }
 0x11b   : > { %4645 = vst [vmem:[#allocation17_spill] sm:$0xff] %v3818_v56  ;;  %v1924_v8 = vmul.f32 %v3524_v4, %v3699_v35  ;;  %v2024_v3 = vmul.f32 %v3524_v4, %v3701_v58  ;;  %v3840_v21 = vadd.f32 %v3539_v11, %v1926_v16 }
 0x11c   : > { %v3717_v63 = vpop.f32.mrf.mxu0  ;;  %v3719_v43 = vpop.f32.mrf.mxu1  ;;  %4646 = vst [vmem:[#allocation18_spill] sm:$0xff] %v3821_v46 }
 0x11d   : > { %v1929_v13 = vmul.f32 %v3717_v63, %v3524_v4  ;;  %v2029_v17 = vmul.f32 %v3719_v43, %v3524_v4  ;;  %4647 = vst [vmem:[#allocation19_spill] sm:$0xff] %v3840_v21  ;;  %v3843_v63 = vadd.f32 %v3539_v11, %v2026_v34 }
 0x11e   : > { %v1193_v62 = vpop.f32.mrf.mxu0  ;;  %v1593_v55 = vpop.f32.mrf.mxu1 }
 0x11f   : > { %v1927_v32 = vmul.f32 %v3524_v4, %v1193_v62  ;;  %v2027_v30 = vmul.f32 %v3524_v4, %v1593_v55  ;;  %4648 = vst [vmem:[#allocation20_spill] sm:$0xff] %v3843_v63  ;;  %v3854_v14 = vadd.f32 %v3539_v11, %v1929_v13  ;;  %v3857_v16 = vadd.f32 %v3539_v11, %v2029_v17 }
 0x120   : > { %v3035_v38 = vpop.f32.mrf.mxu0  ;;  %v3135_v41 = vpop.f32.mrf.mxu1 }
 0x121   : > { %v1930_v35 = vmul.f32 %v3035_v38, %v3524_v4  ;;  %v2030_v58 = vmul.f32 %v3135_v41, %v3524_v4  ;;  %v3848_v38 = vadd.f32 %v3539_v11, %v1924_v8  ;;  %v3851_v41 = vadd.f32 %v3539_v11, %v2024_v3  ;;  %4649 = vst [vmem:[#allocation21_spill] sm:$0xff] %v3854_v14 }
 0x122   : > { %v1196_v39 = vpop.f32.mrf.mxu0  ;;  %v1596_v40 = vpop.f32.mrf.mxu1  ;;  %4650 = vst [vmem:[#allocation22_spill] sm:$0xff] %v3857_v16  ;;  %v3862_v55 = vadd.f32 %v3539_v11, %v1927_v32  ;;  %v3865_v8 = vadd.f32 %v3539_v11, %v2027_v30 }
 0x123   : > { %v1928_v34 = vmul.f32 %v3524_v4, %v1196_v39  ;;  %v2028_v47 = vmul.f32 %v3524_v4, %v1596_v40  ;;  %v3868_v3 = vadd.f32 %v3539_v11, %v1930_v35  ;;  %v3871_v13 = vadd.f32 %v3539_v11, %v2030_v58 }
 0x124   : > { %v3038_v5 = vpop.f32.mrf.mxu0  ;;  %v3138_v57 = vpop.f32.mrf.mxu1 }
 0x125   : > { %4651 = vst [vmem:[#allocation23_spill] sm:$0xff] %v3868_v3  ;;  %4652 = vst [vmem:[#allocation24_spill] sm:$0xff] %v3871_v13  ;;  %v1933_v40 = vmul.f32 %v3038_v5, %v3524_v4  ;;  %v2033_v7 = vmul.f32 %v3138_v57, %v3524_v4  ;;  %v3884_v39 = vadd.f32 %v3539_v11, %v1928_v34 }
 0x126   : > { %v1209_v31 = vpop.f32.mrf.mxu0  ;;  %v1609_v22 = vpop.f32.mrf.mxu1  ;;  %v3887_v5 = vadd.f32 %v3539_v11, %v2028_v47 }
 0x127   : > { %v1931_v35 = vmul.f32 %v3524_v4, %v1209_v31  ;;  %v2031_v12 = vmul.f32 %v3524_v4, %v1609_v22  ;;  %4653 = vst [vmem:[#allocation25_spill] sm:$0xff] %v3884_v39  ;;  %v3894_v58 = vadd.f32 %v3539_v11, %v1933_v40  ;;  %v3897_v17 = vadd.f32 %v3539_v11, %v2033_v7 }
 0x128   : > { %v3039_v33 = vpop.f32.mrf.mxu0  ;;  %v3139_v23 = vpop.f32.mrf.mxu1  ;;  %4654 = vst [vmem:[#allocation26_spill] sm:$0xff] %v3887_v5 }
 0x129   : > { %4655 = vst [vmem:[#allocation27_spill] sm:$0xff] %v3894_v58  ;;  %4656 = vst [vmem:[#allocation28_spill] sm:$0xff] %v3897_v17  ;;  %v1934_v34 = vmul.f32 %v3039_v33, %v3524_v4  ;;  %v2034_v47 = vmul.f32 %v3139_v23, %v3524_v4  ;;  %v3902_v56 = vadd.f32 %v3539_v11, %v1931_v35 }
 0x12a   : > { %v1212_v59 = vpop.f32.mrf.mxu0  ;;  %v1612_v9 = vpop.f32.mrf.mxu1  ;;  %v3905_v30 = vadd.f32 %v3539_v11, %v2031_v12 }
 0x12b   : > { %4657 = vst [vmem:[#allocation29_spill] sm:$0xff] %v3902_v56  ;;  %v1932_v22 = vmul.f32 %v3524_v4, %v1212_v59  ;;  %v2032_v40 = vmul.f32 %v3524_v4, %v1612_v9  ;;  %v3920_v7 = vadd.f32 %v3539_v11, %v1934_v34 }
 0x12c   : > { %v3042_v43 = vpop.f32.mrf.mxu0  ;;  %v3142_v20 = vpop.f32.mrf.mxu1  ;;  %4658 = vst [vmem:[#allocation30_spill] sm:$0xff] %v3905_v30 }
 0x12d   : > { %v1937_v33 = vmul.f32 %v3042_v43, %v3524_v4  ;;  %v2037_v23 = vmul.f32 %v3142_v20, %v3524_v4  ;;  %4659 = vst [vmem:[#allocation31_spill] sm:$0xff] %v3920_v7  ;;  %v3923_v43 = vadd.f32 %v3539_v11, %v2034_v47 }
 0x12e   : > { %v1225_v54 = vpop.f32.mrf.mxu0  ;;  %v1625_v62 = vpop.f32.mrf.mxu1 }
 0x12f   : > { %v1935_v35 = vmul.f32 %v3524_v4, %v1225_v54  ;;  %v2035_v21 = vmul.f32 %v3524_v4, %v1625_v62  ;;  %4660 = vst [vmem:[#allocation32_spill] sm:$0xff] %v3923_v43  ;;  %v3934_v31 = vadd.f32 %v3539_v11, %v1937_v33  ;;  %v3937_v34 = vadd.f32 %v3539_v11, %v2037_v23 }
 0x130   : > { %v3043_v46 = vpop.f32.mrf.mxu0  ;;  %v3143_v32 = vpop.f32.mrf.mxu1 }
 0x131   : > { %v1938_v12 = vmul.f32 %v3043_v46, %v3524_v4  ;;  %v2038_v59 = vmul.f32 %v3143_v32, %v3524_v4  ;;  %v3928_v46 = vadd.f32 %v3539_v11, %v1932_v22  ;;  %v3931_v32 = vadd.f32 %v3539_v11, %v2032_v40  ;;  %4661 = vst [vmem:[#allocation33_spill] sm:$0xff] %v3934_v31 }
 0x132   : > { %v1228_v57 = vpop.f32.mrf.mxu0  ;;  %v1628_v63 = vpop.f32.mrf.mxu1  ;;  %4662 = vst [vmem:[#allocation34_spill] sm:$0xff] %v3937_v34  ;;  %v3942_v62 = vadd.f32 %v3539_v11, %v1935_v35  ;;  %v3945_v22 = vadd.f32 %v3539_v11, %v2035_v21 }
 0x133   : > { %v1936_v47 = vmul.f32 %v3524_v4, %v1228_v57  ;;  %v2036_v9 = vmul.f32 %v3524_v4, %v1628_v63  ;;  %v3948_v40 = vadd.f32 %v3539_v11, %v1938_v12  ;;  %v3951_v33 = vadd.f32 %v3539_v11, %v2038_v59 }
 0x134   : > { %v3046_v16 = vpop.f32.mrf.mxu0  ;;  %v3146_v14 = vpop.f32.mrf.mxu1 }
 0x135   : > { %4663 = vst [vmem:[#allocation35_spill] sm:$0xff] %v3948_v40  ;;  %4664 = vst [vmem:[#allocation36_spill] sm:$0xff] %v3951_v33  ;;  %v1941_v57 = vmul.f32 %v3046_v16, %v3524_v4  ;;  %v2041_v63 = vmul.f32 %v3146_v14, %v3524_v4  ;;  %v3964_v16 = vadd.f32 %v3539_v11, %v1936_v47 }
 0x136   : > { %v1241_v13 = vpop.f32.mrf.mxu0  ;;  %v1641_v3 = vpop.f32.mrf.mxu1  ;;  %v3967_v14 = vadd.f32 %v3539_v11, %v2036_v9 }
 0x137   : > { %v1939_v58 = vmul.f32 %v3524_v4, %v1241_v13  ;;  %v2039_v39 = vmul.f32 %v3524_v4, %v1641_v3  ;;  %4665 = vst [vmem:[#allocation37_spill] sm:$0xff] %v3964_v16  ;;  %v3974_v59 = vadd.f32 %v3539_v11, %v1941_v57  ;;  %v3977_v23 = vadd.f32 %v3539_v11, %v2041_v63 }
 0x138   : > { %v3047_v20 = vpop.f32.mrf.mxu0  ;;  %v3147_v5 = vpop.f32.mrf.mxu1  ;;  %4666 = vst [vmem:[#allocation38_spill] sm:$0xff] %v3967_v14 }
 0x139   : > { %4667 = vst [vmem:[#allocation39_spill] sm:$0xff] %v3974_v59  ;;  %4668 = vst [vmem:[#allocation40_spill] sm:$0xff] %v3977_v23  ;;  %v3980_v47 = vadd.f32 %v3539_v11, %v1939_v58  ;;  %v1942_v9 = vmul.f32 %v3047_v20, %v3524_v4  ;;  %v3984_v56 = vadd.f32 %v3539_v11, %v2039_v39 }
 0x13a   : > { %v1244_v17 = vpop.f32.mrf.mxu0  ;;  %v1644_v54 = vpop.f32.mrf.mxu1  ;;  %v2042_v12 = vmul.f32 %v3147_v5, %v3524_v4 }
 0x13b   : > { %4669 = vst [vmem:[#allocation41_spill] sm:$0xff] %v3980_v47  ;;  %4670 = vst [vmem:[#allocation42_spill] sm:$0xff] %v3984_v56  ;;  %v1940_v3 = vmul.f32 %v3524_v4, %v1244_v17  ;;  %v2040_v57 = vmul.f32 %v3524_v4, %v1644_v54 }
 0x13c   : > { %v3050_v30 = vpop.f32.mrf.mxu0  ;;  %v3150_v35 = vpop.f32.mrf.mxu1 }
 0x13d   : > { %v1945_v58 = vmul.f32 %v3050_v30, %v3524_v4  ;;  %v2045_v33 = vmul.f32 %v3150_v35, %v3524_v4  ;;  %v4001_v30 = vadd.f32 %v3539_v11, %v1942_v9 }
 0x13e   : > { %v1257_v13 = vpop.f32.mrf.mxu0  ;;  %v1657_v7 = vpop.f32.mrf.mxu1 }
 0x13f   : > { %v1943_v43 = vmul.f32 %v3524_v4, %v1257_v13  ;;  %v2043_v39 = vmul.f32 %v3524_v4, %v1657_v7  ;;  %4671 = vst [vmem:[#allocation43_spill] sm:$0xff] %v4001_v30  ;;  %v4005_v13 = vadd.f32 %v3539_v11, %v2042_v12  ;;  %v4008_v7 = vadd.f32 %v3539_v11, %v1940_v3 }
 0x140   : > { %v3051_v34 = vpop.f32.mrf.mxu0  ;;  %v3151_v31 = vpop.f32.mrf.mxu1  ;;  %v4017_v21 = vadd.f32 %v3539_v11, %v2045_v33 }
 0x141   : > { %v1946_v5 = vmul.f32 %v3051_v34, %v3524_v4  ;;  %v2046_v17 = vmul.f32 %v3151_v31, %v3524_v4  ;;  %4672 = vst [vmem:[#allocation44_spill] sm:$0xff] %v4005_v13  ;;  %v4011_v31 = vadd.f32 %v3539_v11, %v2040_v57  ;;  %v4014_v34 = vadd.f32 %v3539_v11, %v1945_v58 }
 0x142   : > { %v1260_v20 = vpop.f32.mrf.mxu0  ;;  %v1660_v40 = vpop.f32.mrf.mxu1  ;;  %4674 = vst [vmem:[#allocation46_spill] sm:$0xff] %v4017_v21  ;;  %v4022_v12 = vadd.f32 %v3539_v11, %v1943_v43  ;;  %v4025_v3 = vadd.f32 %v3539_v11, %v2043_v39 }
 0x143   : > { %4673 = vst [vmem:[#allocation45_spill] sm:$0xff] %v4014_v34  ;;  %v1944_v9 = vmul.f32 %v3524_v4, %v1260_v20  ;;  %v2044_v54 = vmul.f32 %v3524_v4, %v1660_v40  ;;  %v4028_v57 = vadd.f32 %v3539_v11, %v1946_v5  ;;  %v4031_v58 = vadd.f32 %v3539_v11, %v2046_v17 }
 0x144   : > { %v3054_v35 = vpop.f32.mrf.mxu0  ;;  %v3154_v14 = vpop.f32.mrf.mxu1 }
 0x145   : > { %4675 = vst [vmem:[#allocation47_spill] sm:$0xff] %v4028_v57  ;;  %4676 = vst [vmem:[#allocation48_spill] sm:$0xff] %v4031_v58  ;;  %v1949_v20 = vmul.f32 %v3054_v35, %v3524_v4  ;;  %v2049_v40 = vmul.f32 %v3154_v14, %v3524_v4  ;;  %v4044_v35 = vadd.f32 %v3539_v11, %v1944_v9 }
 0x146   : > { %v1273_v16 = vpop.f32.mrf.mxu0  ;;  %v1673_v63 = vpop.f32.mrf.mxu1  ;;  %v4047_v14 = vadd.f32 %v3539_v11, %v2044_v54 }
 0x147   : > { %v1947_v23 = vmul.f32 %v3524_v4, %v1273_v16  ;;  %v2047_v47 = vmul.f32 %v3524_v4, %v1673_v63  ;;  %4677 = vst [vmem:[#allocation49_spill] sm:$0xff] %v4044_v35  ;;  %v4054_v17 = vadd.f32 %v3539_v11, %v1949_v20  ;;  %v4057_v33 = vadd.f32 %v3539_v11, %v2049_v40 }
 0x148   : > { %v3055_v59 = vpop.f32.mrf.mxu0  ;;  %v3155_v43 = vpop.f32.mrf.mxu1  ;;  %4678 = vst [vmem:[#allocation50_spill] sm:$0xff] %v4047_v14 }
 0x149   : > { %4679 = vst [vmem:[#allocation51_spill] sm:$0xff] %v4054_v17  ;;  %4680 = vst [vmem:[#allocation52_spill] sm:$0xff] %v4057_v33  ;;  %v4060_v9 = vadd.f32 %v3539_v11, %v1947_v23  ;;  %v4064_v56 = vadd.f32 %v3539_v11, %v2047_v47  ;;  %v1950_v23 = vmul.f32 %v3055_v59, %v3524_v4 }
 0x14a   : > { %v1276_v16 = vpop.f32.mrf.mxu0  ;;  %v1676_v30 = vpop.f32.mrf.mxu1 }
 0x14b   : > { %v1948_v54 = vmul.f32 %v3524_v4, %v1276_v16  ;;  %v2048_v5 = vmul.f32 %v3524_v4, %v1676_v30  ;;  %v2050_v16 = vmul.f32 %v3155_v43, %v3524_v4 }
 0x14c   : > { %v3058_v21 = vpop.f32.mrf.mxu0  ;;  %v3158_v34 = vpop.f32.mrf.mxu1 }
 0x14d   : > { %v1953_v63 = vmul.f32 %v3058_v21, %v3524_v4  ;;  %v2053_v20 = vmul.f32 %v3158_v34, %v3524_v4  ;;  %v4074_v47 = vadd.f32 %v3539_v11, %v1948_v54  ;;  %v4086_v35 = vadd.f32 %v3539_v11, %v2048_v5 }
 0x14e   : > { %v1289_v58 = vpop.f32.mrf.mxu0  ;;  %v1689_v57 = vpop.f32.mrf.mxu1  ;;  %v4097_v17 = vadd.f32 %v3539_v11, %v2050_v16 }
 0x14f   : > { %4681 = vst [vmem:[#allocation53_spill] sm:$0xff] %v4074_v47  ;;  %v2160_v30 = vadd.f32 %v3539_v11, %v1953_v63  ;;  %v2260_v13 = vadd.f32 %v3539_v11, %v2053_v20  ;;  %v1951_v21 = vmul.f32 %v3524_v4, %v1289_v58  ;;  %v2051_v59 = vmul.f32 %v3524_v4, %v1689_v57 }
 0x150   : > { %v3059_v43 = vpop.f32.mrf.mxu0  ;;  %v3159_v14 = vpop.f32.mrf.mxu1  ;;  %v4089_v58 = vadd.f32 %v3539_v11, %v1950_v23  ;;  %4684 = vst [vmem:[#allocation56_spill] sm:$0xff] %v4097_v17  ;;  %v4686_v23 = vmax.f32 %v3565_v25, 0.0 }
 0x151   : > { %v2360_v63 = vmax.f32 %v2160_v30, 0.0  ;;  %v2460_v20 = vmax.f32 %v2260_v13, 0.0  ;;  %v4092_v34 = vadd.f32 %v3539_v11, %v1951_v21  ;;  %v1954_v40 = vmul.f32 %v3059_v43, %v3524_v4 }
 0x152   : > { %4682 = vst [vmem:[#allocation54_spill] sm:$0xff] %v4089_v58  ;;  %v2054_v39 = vmul.f32 %v3159_v14, %v3524_v4  ;;  %v1292_v57 = vpop.f32.mrf.mxu0  ;;  %v1692_v33 = vpop.f32.mrf.mxu1  ;;  %v4685_v30 = vmax.f32 %v3562_v24, 0.0  ;;  %v4110_v14 = vadd.f32 %v3539_v11, %v2051_v59 }
 0x153   : > { %4683 = vst [vmem:[#allocation55_spill] sm:$0xff] %v4092_v34  ;;  %v2560_v54 = vmax.f32 %v4686_v23, %v2460_v20  ;;  %v2161_v16 = vadd.f32 %v3539_v11, %v1954_v40  ;;  %v1952_v43 = vmul.f32 %v3524_v4, %v1292_v57  ;;  %v2052_v58 = vmul.f32 %v3524_v4, %v1692_v33 }
 0x154   : > { %v2510_v13 = vmax.f32 %v4685_v30, %v2360_v63  ;;  %v2261_v21 = vadd.f32 %v3539_v11, %v2054_v39  ;;  %v3062_v24 = vpop.f32.mrf.mxu0  ;;  %v3162_v63 = vpop.f32.mrf.mxu1 }
 0x155   : > { %v1957_v30 = vmul.f32 %v3062_v24, %v3524_v4  ;;  %v2057_v23 = vmul.f32 %v3162_v63, %v3524_v4  ;;  %v2361_v59 = vmax.f32 %v2161_v16, 0.0  ;;  %v4687_v24 = vmax.f32 %v3584_v36, 0.0 }
 0x156   : > { %v2610_v20 = vmax.f32 %v2510_v13, %v2560_v54  ;;  %v2461_v17 = vmax.f32 %v2261_v21, 0.0  ;;  %v1305_v40 = vpop.f32.mrf.mxu0  ;;  %v1705_v47 = vpop.f32.mrf.mxu1  ;;  %v4688_v16 = vmax.f32 %v3587_v37, 0.0  ;;  %v4131_v33 = vadd.f32 %v3539_v11, %v1952_v43 }
 0x157   : > { %v2164_v39 = vadd.f32 %v3539_v11, %v1957_v30  ;;  %v2264_v57 = vadd.f32 %v3539_v11, %v2057_v23  ;;  %v1955_v25 = vmul.f32 %v3524_v4, %v1305_v40  ;;  %v2055_v54 = vmul.f32 %v3524_v4, %v1705_v47 }
 0x158   : > { %2660 = vst [vmem:[%s4107_s19] sm:$0xff] %v2610_v20  ;;  %v2511_v63 = vmax.f32 %v4687_v24, %v2361_v59  ;;  %v2561_v21 = vmax.f32 %v4688_v16, %v2461_v17  ;;  %v3063_v20 = vpop.f32.mrf.mxu0  ;;  %v3163_v30 = vpop.f32.mrf.mxu1  ;;  %v4136_v13 = vadd.f32 %v3539_v11, %v2052_v58  ;;  %v4690_v59 = vmax.f32 %v3610_v50, 0.0 }
 0x159   : > { %v2364_v5 = vmax.f32 %v2164_v39, 0.0  ;;  %v2464_v23 = vmax.f32 %v2264_v57, 0.0  ;;  %v2162_v40 = vadd.f32 %v3539_v11, %v1955_v25  ;;  %v2262_v47 = vadd.f32 %v3539_v11, %v2055_v54 }
 0x15a   : > { %v2611_v34 = vmax.f32 %v2511_v63, %v2561_v21  ;;  %4689 = vst [vmem:[#allocation57_spill] sm:$0xff] %v4136_v13  ;;  %v1958_v36 = vmul.f32 %v3063_v20, %v3524_v4  ;;  %v2058_v37 = vmul.f32 %v3163_v30, %v3524_v4  ;;  %v1308_v17 = vpop.f32.mrf.mxu0  ;;  %v1708_v43 = vpop.f32.mrf.mxu1  ;;  %v4691_v39 = vmax.f32 %v3613_v51, 0.0 }
 0x15b   : > { %v2514_v24 = vmax.f32 %v4690_v59, %v2364_v5  ;;  %v2362_v16 = vmax.f32 %v2162_v40, 0.0  ;;  %v2462_v25 = vmax.f32 %v2262_v47, 0.0  ;;  %v1956_v63 = vmul.f32 %v3524_v4, %v1308_v17 }
 0x15c   : > { %v2564_v57 = vmax.f32 %v4691_v39, %v2464_v23  ;;  %2661 = vst [vmem:[%s4107_s19 + $0x8] sm:$0xff] %v2611_v34  ;;  %v2165_v54 = vadd.f32 %v3539_v11, %v1958_v36  ;;  %v2265_v58 = vadd.f32 %v3539_v11, %v2058_v37  ;;  %v2056_v21 = vmul.f32 %v3524_v4, %v1708_v43  ;;  %v3066_v20 = vpop.f32.mrf.mxu0  ;;  %v3166_v30 = vpop.f32.mrf.mxu1 }
 0x15d   : > { %v4692_v50 = vmax.f32 %v3550_v18, 0.0  ;;  %v4693_v51 = vmax.f32 %v3553_v19, 0.0  ;;  %v1961_v34 = vmul.f32 %v3066_v20, %v3524_v4  ;;  %v2163_v36 = vadd.f32 %v3539_v11, %v1956_v63 }
 0x15e   : > { %v2614_v13 = vmax.f32 %v2514_v24, %v2564_v57  ;;  %v2365_v40 = vmax.f32 %v2165_v54, 0.0  ;;  %v2465_v47 = vmax.f32 %v2265_v58, 0.0  ;;  %v2263_v37 = vadd.f32 %v3539_v11, %v2056_v21  ;;  %v1321_v17 = vpop.f32.mrf.mxu0  ;;  %v1721_v43 = vpop.f32.mrf.mxu1 }
 0x15f   : > { %v2512_v5 = vmax.f32 %v4692_v50, %v2362_v16  ;;  %v2562_v23 = vmax.f32 %v4693_v51, %v2462_v25  ;;  %v2168_v24 = vadd.f32 %v3539_v11, %v1961_v34  ;;  %v2061_v18 = vmul.f32 %v3166_v30, %v3524_v4 }
 0x160   : > { %2664 = vst [vmem:[%s4107_s19 + $0x20] sm:$0xff] %v2614_v13  ;;  %v1959_v19 = vmul.f32 %v3524_v4, %v1321_v17  ;;  %v4694_v39 = vmax.f32 %v3644_v0, 0.0  ;;  %v4695_v16 = vmax.f32 %v3647_v1, 0.0  ;;  %v2363_v54 = vmax.f32 %v2163_v36, 0.0  ;;  %v3067_v63 = vpop.f32.mrf.mxu0  ;;  %v3167_v21 = vpop.f32.mrf.mxu1 }
 0x161   : > { %v2612_v59 = vmax.f32 %v2512_v5, %v2562_v23  ;;  %v2463_v58 = vmax.f32 %v2263_v37, 0.0  ;;  %v2368_v13 = vmax.f32 %v2168_v24, 0.0  ;;  %v2268_v20 = vadd.f32 %v3539_v11, %v2061_v18 }
 0x162   : > { %v2515_v57 = vmax.f32 %v4694_v39, %v2365_v40  ;;  %v2565_v25 = vmax.f32 %v4695_v16, %v2465_v47  ;;  %v2166_v50 = vadd.f32 %v3539_v11, %v1959_v19  ;;  %v2059_v30 = vmul.f32 %v3524_v4, %v1721_v43  ;;  %v1324_v40 = vpop.f32.mrf.mxu0  ;;  %v1724_v47 = vpop.f32.mrf.mxu1 }
 0x163   : > { %2662 = vst [vmem:[%s4107_s19 + $0x10] sm:$0xff] %v2612_v59  ;;  %v4696_v0 = vmax.f32 %v3568_v26, 0.0  ;;  %v4697_v1 = vmax.f32 %v3571_v27, 0.0  ;;  %v1962_v34 = vmul.f32 %v3067_v63, %v3524_v4  ;;  %v4698_v36 = vmax.f32 %v3664_v52, 0.0 }
 0x164   : > { %v2615_v5 = vmax.f32 %v2515_v57, %v2565_v25  ;;  %v2468_v17 = vmax.f32 %v2268_v20, 0.0  ;;  %v2366_v59 = vmax.f32 %v2166_v50, 0.0  ;;  %v2266_v24 = vadd.f32 %v3539_v11, %v2059_v30  ;;  %v3070_v19 = vpop.f32.mrf.mxu0  ;;  %v3170_v39 = vpop.f32.mrf.mxu1 }
 0x165   : > { %v2513_v51 = vmax.f32 %v4696_v0, %v2363_v54  ;;  %v2563_v23 = vmax.f32 %v4697_v1, %v2463_v58  ;;  %v2518_v37 = vmax.f32 %v4698_v36, %v2368_v13  ;;  %v2169_v26 = vadd.f32 %v3539_v11, %v1962_v34 }
 0x166   : > { %2665 = vst [vmem:[%s4107_s19 + $0x28] sm:$0xff] %v2615_v5  ;;  %v2062_v18 = vmul.f32 %v3167_v21, %v3524_v4  ;;  %v1960_v27 = vmul.f32 %v3524_v4, %v1324_v40  ;;  %v4699_v57 = vmax.f32 %v3667_v53, 0.0  ;;  %v4700_v52 = vmax.f32 %v3598_v44, 0.0  ;;  %v1337_v50 = vpop.f32.mrf.mxu0  ;;  %v1737_v30 = vpop.f32.mrf.mxu1 }
 0x167   : > { %v2613_v43 = vmax.f32 %v2513_v51, %v2563_v23  ;;  %v2466_v54 = vmax.f32 %v2266_v24, 0.0  ;;  %v2060_v58 = vmul.f32 %v3524_v4, %v1724_v47  ;;  %v2369_v63 = vmax.f32 %v2169_v26, 0.0 }
 0x168   : > { %v2568_v16 = vmax.f32 %v4699_v57, %v2468_v17  ;;  %v2516_v25 = vmax.f32 %v4700_v52, %v2366_v59  ;;  %v2269_v13 = vadd.f32 %v3539_v11, %v2062_v18  ;;  %v2167_v21 = vadd.f32 %v3539_v11, %v1960_v27  ;;  %v3071_v36 = vpop.f32.mrf.mxu0  ;;  %v3171_v17 = vpop.f32.mrf.mxu1 }
 0x169   : > { %2663 = vst [vmem:[%s4107_s19 + $0x18] sm:$0xff] %v2613_v43  ;;  %v1965_v20 = vmul.f32 %v3070_v19, %v3524_v4  ;;  %v4701_v53 = vmax.f32 %v3601_v45, 0.0  ;;  %v2267_v44 = vadd.f32 %v3539_v11, %v2060_v58  ;;  %v2065_v51 = vmul.f32 %v3170_v39, %v3524_v4 }
 0x16a   : > { %v2618_v5 = vmax.f32 %v2518_v37, %v2568_v16  ;;  %v4702_v1 = vmax.f32 %v3694_v6, 0.0  ;;  %v2469_v34 = vmax.f32 %v2269_v13, 0.0  ;;  %v2367_v40 = vmax.f32 %v2167_v21, 0.0  ;;  %v1340_v39 = vpop.f32.mrf.mxu0  ;;  %v1740_v57 = vpop.f32.mrf.mxu1  ;;  %v4215_v21 = vld [vmem:[%s4574_s2] ss:$0 sm:$0xff] }
 0x16b   : > { %v2566_v0 = vmax.f32 %v4701_v53, %v2466_v54  ;;  %v2172_v47 = vadd.f32 %v3539_v11, %v1965_v20  ;;  %v2467_v37 = vmax.f32 %v2267_v44, 0.0  ;;  %v2272_v45 = vadd.f32 %v3539_v11, %v2065_v51 }
 0x16c   : > { %v2519_v23 = vmax.f32 %v4702_v1, %v2369_v63  ;;  %2668 = vst [vmem:[%s4107_s19 + $0x40] sm:$0xff] %v2618_v5  ;;  %v1963_v24 = vmul.f32 %v3524_v4, %v1337_v50  ;;  %v4703_v43 = vmax.f32 %v3697_v42, 0.0  ;;  %v4704_v6 = vmax.f32 %v3632_v60, 0.0  ;;  %v3074_v20 = vpop.f32.mrf.mxu0  ;;  %v3174_v50 = vpop.f32.mrf.mxu1 }
 0x16d   : > { %v2616_v59 = vmax.f32 %v2516_v25, %v2566_v0  ;;  %v2372_v27 = vmax.f32 %v2172_v47, 0.0  ;;  %v2063_v19 = vmul.f32 %v3524_v4, %v1737_v30  ;;  %v4705_v16 = vmax.f32 %v3635_v61, 0.0 }
 0x16e   : > { %v2569_v26 = vmax.f32 %v4703_v43, %v2469_v34  ;;  %v2517_v18 = vmax.f32 %v4704_v6, %v2367_v40  ;;  %v2472_v25 = vmax.f32 %v2272_v45, 0.0  ;;  %v2170_v54 = vadd.f32 %v3539_v11, %v1963_v24 }
 0x16f   : > { %2666 = vst [vmem:[%s4107_s19 + $0x30] sm:$0xff] %v2616_v59  ;;  %v2567_v52 = vmax.f32 %v4705_v16, %v2467_v37  ;;  %v1966_v58 = vmul.f32 %v3071_v36, %v3524_v4  ;;  %v4706_v63 = vmax.f32 %v3722_v10, 0.0  ;;  %v2270_v13 = vadd.f32 %v3539_v11, %v2063_v19  ;;  %v4223_v10 = vld [vmem:[%s4575_s3] ss:$0 sm:$0xff] }
 0x170   : > { %v2619_v42 = vmax.f32 %v2519_v23, %v2569_v26  ;;  %v2066_v61 = vmul.f32 %v4215_v21, %v3171_v17  ;;  %v4707_v5 = vmax.f32 %v3725_v2, 0.0  ;;  %v2370_v53 = vmax.f32 %v2170_v54, 0.0  ;;  %v1353_v23 = vpop.f32.mrf.mxu0  ;;  %v1753_v2 = vpop.f32.mrf.mxu1 }
 0x171   : > { %v2522_v60 = vmax.f32 %v4706_v63, %v2372_v27  ;;  %v2617_v30 = vmax.f32 %v2517_v18, %v2567_v52  ;;  %v2173_v11 = vadd.f32 %v4223_v10, %v1966_v58  ;;  %v2470_v0 = vmax.f32 %v2270_v13, 0.0 }
 0x172   : > { %v2572_v4 = vmax.f32 %v4707_v5, %v2472_v25  ;;  %2669 = vst [vmem:[%s4107_s19 + $0x48] sm:$0xff] %v2619_v42  ;;  %v2273_v44 = vadd.f32 %v4223_v10, %v2066_v61  ;;  %v1964_v51 = vmul.f32 %v4215_v21, %v1340_v39  ;;  %v2064_v1 = vmul.f32 %v4215_v21, %v1740_v57  ;;  %v3075_v26 = vpop.f32.mrf.mxu0  ;;  %v3175_v6 = vpop.f32.mrf.mxu1  ;;  %v4712_v61 = vld [vmem:[#allocation2_spill] sm:$0xff] }
 0x173   : > { %2667 = vst [vmem:[%s4107_s19 + $0x38] sm:$0xff] %v2617_v30  ;;  %v4708_v40 = vmax.f32 %v3650_v28, 0.0  ;;  %v2373_v36 = vmax.f32 %v2173_v11, 0.0  ;;  %v1969_v17 = vmul.f32 %v4215_v21, %v3074_v20  ;;  %v4709_v59 = vmax.f32 %v3653_v29, 0.0  ;;  %v4714_v30 = vld [vmem:[#allocation3_spill] sm:$0xff] }
 0x174   : > { %v2622_v34 = vmax.f32 %v2522_v60, %v2572_v4  ;;  %v2473_v45 = vmax.f32 %v2273_v44, 0.0  ;;  %v2171_v24 = vadd.f32 %v4223_v10, %v1964_v51  ;;  %v2271_v43 = vadd.f32 %v4223_v10, %v2064_v1  ;;  %v1356_v54 = vpop.f32.mrf.mxu0  ;;  %v1756_v58 = vpop.f32.mrf.mxu1 }
 0x175   : > { %v2520_v47 = vmax.f32 %v4708_v40, %v2370_v53  ;;  %v2570_v37 = vmax.f32 %v4709_v59, %v2470_v0  ;;  %v4710_v18 = vmax.f32 %v3756_v48, 0.0  ;;  %v2176_v28 = vadd.f32 %v4223_v10, %v1969_v17  ;;  %v4717_v59 = vld [vmem:[#allocation10_spill] sm:$0xff] }
 0x176   : > { %2672 = vst [vmem:[%s4107_s19 + $0x60] sm:$0xff] %v2622_v34  ;;  %v2069_v19 = vmul.f32 %v4215_v21, %v3174_v50  ;;  %v1967_v39 = vmul.f32 %v4215_v21, %v1353_v23  ;;  %v4711_v57 = vmax.f32 %v3759_v49, 0.0  ;;  %v2371_v52 = vmax.f32 %v2171_v24, 0.0  ;;  %v3078_v53 = vpop.f32.mrf.mxu0  ;;  %v3178_v11 = vpop.f32.mrf.mxu1 }
 0x177   : > { %v2523_v27 = vmax.f32 %v4710_v18, %v2373_v36  ;;  %v2620_v29 = vmax.f32 %v2520_v47, %v2570_v37  ;;  %v2471_v25 = vmax.f32 %v2271_v43, 0.0  ;;  %v2376_v42 = vmax.f32 %v2176_v28, 0.0 }
 0x178   : > { %v2573_v16 = vmax.f32 %v4711_v57, %v2473_v45  ;;  %v2276_v63 = vadd.f32 %v4223_v10, %v2069_v19  ;;  %v2174_v48 = vadd.f32 %v4223_v10, %v1967_v39  ;;  %v2067_v60 = vmul.f32 %v4215_v21, %v1753_v2  ;;  %v1369_v36 = vpop.f32.mrf.mxu0  ;;  %v1769_v17 = vpop.f32.mrf.mxu1 }
 0x179   : > { %2670 = vst [vmem:[%s4107_s19 + $0x50] sm:$0xff] %v2620_v29  ;;  %v4713_v20 = vmax.f32 %v4712_v61, 0.0  ;;  %v4715_v49 = vmax.f32 %v4714_v30, 0.0  ;;  %v1970_v4 = vmul.f32 %v4215_v21, %v3075_v26  ;;  %v4716_v0 = vmax.f32 %v3772_v15, 0.0  ;;  %v4719_v15 = vld [vmem:[#allocation4_spill] sm:$0xff] }
 0x17a   : > { %v2623_v13 = vmax.f32 %v2523_v27, %v2573_v16  ;;  %v2476_v51 = vmax.f32 %v2276_v63, 0.0  ;;  %v2374_v1 = vmax.f32 %v2174_v48, 0.0  ;;  %v2274_v23 = vadd.f32 %v4223_v10, %v2067_v60  ;;  %v3079_v39 = vpop.f32.mrf.mxu0  ;;  %v3179_v29 = vpop.f32.mrf.mxu1  ;;  %v4721_v16 = vld [vmem:[#allocation5_spill] sm:$0xff] }
 0x17b   : > { %v2521_v50 = vmax.f32 %v4713_v20, %v2371_v52  ;;  %v2571_v5 = vmax.f32 %v4715_v49, %v2471_v25  ;;  %v2526_v44 = vmax.f32 %v4716_v0, %v2376_v42  ;;  %v2177_v34 = vadd.f32 %v4223_v10, %v1970_v4 }
 0x17c   : > { %2673 = vst [vmem:[%s4107_s19 + $0x68] sm:$0xff] %v2623_v13  ;;  %v2070_v40 = vmul.f32 %v4215_v21, %v3175_v6  ;;  %v1968_v47 = vmul.f32 %v4215_v21, %v1356_v54  ;;  %v4718_v37 = vmax.f32 %v4717_v59, 0.0  ;;  %v4720_v24 = vmax.f32 %v4719_v15, 0.0  ;;  %v1372_v20 = vpop.f32.mrf.mxu0 }
 0x17d   : > { %v2621_v2 = vmax.f32 %v2521_v50, %v2571_v5  ;;  %v2474_v26 = vmax.f32 %v2274_v23, 0.0  ;;  %v2068_v18 = vmul.f32 %v4215_v21, %v1756_v58  ;;  %v2377_v27 = vmax.f32 %v2177_v34, 0.0  ;;  %v4723_v58 = vld [vmem:[#allocation13_spill] sm:$0xff]  ;;  %v1772_v50 = vpop.f32.mrf.mxu1 }
 0x17e   : > { %v2576_v45 = vmax.f32 %v4718_v37, %v2476_v51  ;;  %v2524_v43 = vmax.f32 %v4720_v24, %v2374_v1  ;;  %v2277_v28 = vadd.f32 %v4223_v10, %v2070_v40  ;;  %v2175_v6 = vadd.f32 %v4223_v10, %v1968_v47  ;;  %v3082_v34 = vpop.f32.mrf.mxu0  ;;  %v4729_v47 = vld [vmem:[#allocation7_spill] sm:$0xff] }
 0x17f   : > { %2671 = vst [vmem:[%s4107_s19 + $0x58] sm:$0xff] %v2621_v2  ;;  %v1973_v19 = vmul.f32 %v4215_v21, %v3078_v53  ;;  %v4722_v52 = vmax.f32 %v4721_v16, 0.0  ;;  %v2275_v54 = vadd.f32 %v4223_v10, %v2068_v18  ;;  %v2073_v42 = vmul.f32 %v4215_v21, %v3178_v11  ;;  %v4725_v53 = vld [vmem:[#allocation14_spill] sm:$0xff]  ;;  %v3182_v40 = vpop.f32.mrf.mxu1 }
 0x180   : > { %v2626_v57 = vmax.f32 %v2526_v44, %v2576_v45  ;;  %v4724_v63 = vmax.f32 %v4723_v58, 0.0  ;;  %v2477_v60 = vmax.f32 %v2277_v28, 0.0  ;;  %v2375_v13 = vmax.f32 %v2175_v6, 0.0  ;;  %v4727_v44 = vld [vmem:[#allocation6_spill] sm:$0xff]  ;;  %v1385_v28 = vpop.f32.mrf.mxu0 }
 0x181   : > { %v2574_v25 = vmax.f32 %v4722_v52, %v2474_v26  ;;  %v2180_v61 = vadd.f32 %v4223_v10, %v1973_v19  ;;  %v2475_v49 = vmax.f32 %v2275_v54, 0.0  ;;  %v2280_v5 = vadd.f32 %v4223_v10, %v2073_v42  ;;  %v1785_v6 = vpop.f32.mrf.mxu1 }
 0x182   : > { %v2527_v48 = vmax.f32 %v4724_v63, %v2377_v27  ;;  %2676 = vst [vmem:[%s4107_s19 + $0x80] sm:$0xff] %v2626_v57  ;;  %v1971_v4 = vmul.f32 %v4215_v21, %v1369_v36  ;;  %v4726_v0 = vmax.f32 %v4725_v53, 0.0  ;;  %v4728_v51 = vmax.f32 %v4727_v44, 0.0  ;;  %v4733_v57 = vld [vmem:[#allocation18_spill] sm:$0xff] }
 0x183   : > { %v2624_v30 = vmax.f32 %v2524_v43, %v2574_v25  ;;  %v2380_v23 = vmax.f32 %v2180_v61, 0.0  ;;  %v2071_v2 = vmul.f32 %v4215_v21, %v1769_v17  ;;  %v4730_v59 = vmax.f32 %v4729_v47, 0.0  ;;  %v4731_v43 = vld [vmem:[#allocation17_spill] sm:$0xff] }
 0x184   : > { %v2577_v11 = vmax.f32 %v4726_v0, %v2477_v60  ;;  %v2525_v1 = vmax.f32 %v4728_v51, %v2375_v13  ;;  %v2480_v45 = vmax.f32 %v2280_v5, 0.0  ;;  %v2178_v15 = vadd.f32 %v4223_v10, %v1971_v4  ;;  %v4735_v13 = vld [vmem:[#allocation8_spill] sm:$0xff]  ;;  %v4737_v4 = vld [vmem:[#allocation9_spill] sm:$0xff] }
 0x185   : > { %2674 = vst [vmem:[%s4107_s19 + $0x70] sm:$0xff] %v2624_v30  ;;  %v2575_v37 = vmax.f32 %v4730_v59, %v2475_v49  ;;  %v1974_v36 = vmul.f32 %v4215_v21, %v3079_v39  ;;  %v4732_v26 = vmax.f32 %v4731_v43, 0.0  ;;  %v2278_v27 = vadd.f32 %v4223_v10, %v2071_v2 }
 0x186   : > { %v2627_v24 = vmax.f32 %v2527_v48, %v2577_v11  ;;  %v2074_v17 = vmul.f32 %v4215_v21, %v3179_v29  ;;  %v4734_v16 = vmax.f32 %v4733_v57, 0.0  ;;  %v2378_v25 = vmax.f32 %v2178_v15, 0.0  ;;  %v3083_v48 = vpop.f32.mrf.mxu0  ;;  %v3183_v29 = vpop.f32.mrf.mxu1  ;;  %v4743_v57 = vld [vmem:[#allocation12_spill] sm:$0xff] }
 0x187   : > { %v2530_v18 = vmax.f32 %v4732_v26, %v2380_v23  ;;  %v2625_v19 = vmax.f32 %v2525_v1, %v2575_v37  ;;  %v2181_v54 = vadd.f32 %v4223_v10, %v1974_v36  ;;  %v2478_v39 = vmax.f32 %v2278_v27, 0.0 }
 0x188   : > { %v2580_v52 = vmax.f32 %v4734_v16, %v2480_v45  ;;  %2677 = vst [vmem:[%s4107_s19 + $0x88] sm:$0xff] %v2627_v24  ;;  %v2281_v42 = vadd.f32 %v4223_v10, %v2074_v17  ;;  %v1972_v58 = vmul.f32 %v4215_v21, %v1372_v20  ;;  %v2072_v63 = vmul.f32 %v4215_v21, %v1772_v50  ;;  %v1388_v51 = vpop.f32.mrf.mxu0  ;;  %v1788_v50 = vpop.f32.mrf.mxu1  ;;  %v4741_v17 = vld [vmem:[#allocation11_spill] sm:$0xff] }
 0x189   : > { %2675 = vst [vmem:[%s4107_s19 + $0x78] sm:$0xff] %v2625_v19  ;;  %v4736_v61 = vmax.f32 %v4735_v13, 0.0  ;;  %v2381_v49 = vmax.f32 %v2181_v54, 0.0  ;;  %v1977_v5 = vmul.f32 %v4215_v21, %v3082_v34  ;;  %v4738_v53 = vmax.f32 %v4737_v4, 0.0 }
 0x18a   : > { %v2630_v60 = vmax.f32 %v2530_v18, %v2580_v52  ;;  %v2481_v11 = vmax.f32 %v2281_v42, 0.0  ;;  %v2179_v44 = vadd.f32 %v4223_v10, %v1972_v58  ;;  %v2279_v20 = vadd.f32 %v4223_v10, %v2072_v63  ;;  %v3086_v24 = vpop.f32.mrf.mxu0  ;;  %v3186_v43 = vpop.f32.mrf.mxu1 }
 0x18b   : > { %v2528_v30 = vmax.f32 %v4736_v61, %v2378_v25  ;;  %v2578_v0 = vmax.f32 %v4738_v53, %v2478_v39  ;;  %v4739_v1 = vmax.f32 %v3848_v38, 0.0  ;;  %v2184_v2 = vadd.f32 %v4223_v10, %v1977_v5 }
 0x18c   : > { %2680 = vst [vmem:[%s4107_s19 + $0xa0] sm:$0xff] %v2630_v60  ;;  %v2077_v47 = vmul.f32 %v4215_v21, %v3182_v40  ;;  %v1975_v34 = vmul.f32 %v4215_v21, %v1385_v28  ;;  %v4740_v37 = vmax.f32 %v3851_v41, 0.0  ;;  %v2379_v15 = vmax.f32 %v2179_v44, 0.0  ;;  %v1401_v25 = vpop.f32.mrf.mxu0  ;;  %v1801_v54 = vpop.f32.mrf.mxu1 }
 0x18d   : > { %v2531_v23 = vmax.f32 %v4739_v1, %v2381_v49  ;;  %v2628_v59 = vmax.f32 %v2528_v30, %v2578_v0  ;;  %v2479_v36 = vmax.f32 %v2279_v20, 0.0  ;;  %v2384_v26 = vmax.f32 %v2184_v2, 0.0 }
 0x18e   : > { %v2581_v45 = vmax.f32 %v4740_v37, %v2481_v11  ;;  %v2284_v18 = vadd.f32 %v4223_v10, %v2077_v47  ;;  %v2182_v38 = vadd.f32 %v4223_v10, %v1975_v34  ;;  %v2075_v27 = vmul.f32 %v4215_v21, %v1785_v6  ;;  %v3087_v49 = vpop.f32.mrf.mxu0 }
 0x18f   : > { %2678 = vst [vmem:[%s4107_s19 + $0x90] sm:$0xff] %v2628_v59  ;;  %v4742_v28 = vmax.f32 %v4741_v17, 0.0  ;;  %v4744_v41 = vmax.f32 %v4743_v57, 0.0  ;;  %v1978_v52 = vmul.f32 %v4215_v21, %v3083_v48  ;;  %v4745_v39 = vmax.f32 %v3862_v55, 0.0  ;;  %v3187_v48 = vpop.f32.mrf.mxu1  ;;  %v4747_v55 = vld [vmem:[#allocation15_spill] sm:$0xff]  ;;  %v4753_v57 = vld [vmem:[#allocation26_spill] sm:$0xff] }
 0x190   : > { %v2631_v40 = vmax.f32 %v2531_v23, %v2581_v45  ;;  %v2484_v58 = vmax.f32 %v2284_v18, 0.0  ;;  %v2382_v63 = vmax.f32 %v2182_v38, 0.0  ;;  %v2282_v6 = vadd.f32 %v4223_v10, %v2075_v27  ;;  %v1404_v23 = vpop.f32.mrf.mxu0 }
 0x191   : > { %v2529_v19 = vmax.f32 %v4742_v28, %v2379_v15  ;;  %v2579_v16 = vmax.f32 %v4744_v41, %v2479_v36  ;;  %v2534_v42 = vmax.f32 %v4745_v39, %v2384_v26  ;;  %v2185_v13 = vadd.f32 %v4223_v10, %v1978_v52  ;;  %v1804_v2 = vpop.f32.mrf.mxu1 }
 0x192   : > { %2681 = vst [vmem:[%s4107_s19 + $0xa8] sm:$0xff] %v2631_v40  ;;  %v2078_v61 = vmul.f32 %v4215_v21, %v3183_v29  ;;  %v1976_v30 = vmul.f32 %v4215_v21, %v1388_v51  ;;  %v4746_v5 = vmax.f32 %v3865_v8, 0.0  ;;  %v4748_v53 = vmax.f32 %v4747_v55, 0.0  ;;  %v4749_v8 = vld [vmem:[#allocation16_spill] sm:$0xff]  ;;  %v3090_v27 = vpop.f32.mrf.mxu0  ;;  %v4759_v55 = vld [vmem:[#allocation29_spill] sm:$0xff] }
 0x193   : > { %v2629_v60 = vmax.f32 %v2529_v19, %v2579_v16  ;;  %v2482_v11 = vmax.f32 %v2282_v6, 0.0  ;;  %v2076_v44 = vmul.f32 %v4215_v21, %v1788_v50  ;;  %v2385_v20 = vmax.f32 %v2185_v13, 0.0  ;;  %v4751_v50 = vld [vmem:[#allocation25_spill] sm:$0xff]  ;;  %v4755_v16 = vld [vmem:[#allocation19_spill] sm:$0xff] }
 0x194   : > { %v2584_v4 = vmax.f32 %v4746_v5, %v2484_v58  ;;  %v2532_v0 = vmax.f32 %v4748_v53, %v2382_v63  ;;  %v2285_v1 = vadd.f32 %v4223_v10, %v2078_v61  ;;  %v2183_v29 = vadd.f32 %v4223_v10, %v1976_v30  ;;  %v1417_v63 = vpop.f32.mrf.mxu0 }
 0x195   : > { %2679 = vst [vmem:[%s4107_s19 + $0x98] sm:$0xff] %v2629_v60  ;;  %v1981_v51 = vmul.f32 %v4215_v21, %v3086_v24  ;;  %v4750_v34 = vmax.f32 %v4749_v8, 0.0  ;;  %v2283_v37 = vadd.f32 %v4223_v10, %v2076_v44  ;;  %v2081_v45 = vmul.f32 %v4215_v21, %v3186_v43  ;;  %v3190_v24 = vpop.f32.mrf.mxu1  ;;  %v4757_v60 = vld [vmem:[#allocation20_spill] sm:$0xff] }
 0x196   : > { %v2634_v47 = vmax.f32 %v2534_v42, %v2584_v4  ;;  %v4752_v15 = vmax.f32 %v4751_v50, 0.0  ;;  %v2485_v26 = vmax.f32 %v2285_v1, 0.0  ;;  %v2383_v18 = vmax.f32 %v2183_v29, 0.0  ;;  %v3091_v44 = vpop.f32.mrf.mxu0  ;;  %v4761_v29 = vld [vmem:[#allocation30_spill] sm:$0xff] }
 0x197   : > { %v2582_v59 = vmax.f32 %v4750_v34, %v2482_v11  ;;  %v2188_v38 = vadd.f32 %v4223_v10, %v1981_v51  ;;  %v2483_v17 = vmax.f32 %v2283_v37, 0.0  ;;  %v2288_v28 = vadd.f32 %v4223_v10, %v2081_v45  ;;  %v1817_v6 = vpop.f32.mrf.mxu1 }
 0x198   : > { %v2535_v36 = vmax.f32 %v4752_v15, %v2385_v20  ;;  %2684 = vst [vmem:[%s4107_s19 + $0xc0] sm:$0xff] %v2634_v47  ;;  %v1979_v19 = vmul.f32 %v4215_v21, %v1401_v25  ;;  %v4754_v41 = vmax.f32 %v4753_v57, 0.0  ;;  %v4756_v52 = vmax.f32 %v4755_v16, 0.0  ;;  %v1420_v50 = vpop.f32.mrf.mxu0 }
 0x199   : > { %v2632_v40 = vmax.f32 %v2532_v0, %v2582_v59  ;;  %v2388_v42 = vmax.f32 %v2188_v38, 0.0  ;;  %v2079_v58 = vmul.f32 %v4215_v21, %v1801_v54  ;;  %v4758_v13 = vmax.f32 %v4757_v60, 0.0  ;;  %v3191_v20 = vpop.f32.mrf.mxu1 }
 0x19a   : > { %v2585_v43 = vmax.f32 %v4754_v41, %v2485_v26  ;;  %v2533_v39 = vmax.f32 %v4756_v52, %v2383_v18  ;;  %v2488_v30 = vmax.f32 %v2288_v28, 0.0  ;;  %v2186_v5 = vadd.f32 %v4223_v10, %v1979_v19 }
 0x19b   : > { %2682 = vst [vmem:[%s4107_s19 + $0xb0] sm:$0xff] %v2632_v40  ;;  %v2583_v61 = vmax.f32 %v4758_v13, %v2483_v17  ;;  %v1982_v25 = vmul.f32 %v4215_v21, %v3087_v49  ;;  %v4760_v53 = vmax.f32 %v4759_v55, 0.0  ;;  %v2286_v11 = vadd.f32 %v4223_v10, %v2079_v58  ;;  %v4765_v17 = vld [vmem:[#allocation22_spill] sm:$0xff] }
 0x19c   : > { %v2635_v4 = vmax.f32 %v2535_v36, %v2585_v43  ;;  %v2082_v54 = vmul.f32 %v4215_v21, %v3187_v48  ;;  %v4762_v51 = vmax.f32 %v4761_v29, 0.0  ;;  %v2386_v8 = vmax.f32 %v2186_v5, 0.0  ;;  %v1820_v48 = vpop.f32.mrf.mxu1  ;;  %v4763_v36 = vld [vmem:[#allocation21_spill] sm:$0xff]  ;;  %v3094_v43 = vpop.f32.mrf.mxu0 }
 0x19d   : > { %v2538_v0 = vmax.f32 %v4760_v53, %v2388_v42  ;;  %v2633_v1 = vmax.f32 %v2533_v39, %v2583_v61  ;;  %v2189_v34 = vadd.f32 %v4223_v10, %v1982_v25  ;;  %v2486_v49 = vmax.f32 %v2286_v11, 0.0 }
 0x19e   : > { %v2588_v47 = vmax.f32 %v4762_v51, %v2488_v30  ;;  %2685 = vst [vmem:[%s4107_s19 + $0xc8] sm:$0xff] %v2635_v4  ;;  %v2289_v59 = vadd.f32 %v4223_v10, %v2082_v54  ;;  %v1980_v37 = vmul.f32 %v4215_v21, %v1404_v23  ;;  %v2080_v45 = vmul.f32 %v4215_v21, %v1804_v2  ;;  %v3194_v2 = vpop.f32.mrf.mxu1  ;;  %v1433_v5 = vpop.f32.mrf.mxu0  ;;  %v4771_v54 = vld [vmem:[#allocation24_spill] sm:$0xff] }
 0x19f   : > { %2683 = vst [vmem:[%s4107_s19 + $0xb8] sm:$0xff] %v2633_v1  ;;  %v4764_v26 = vmax.f32 %v4763_v36, 0.0  ;;  %v2389_v38 = vmax.f32 %v2189_v34, 0.0  ;;  %v1985_v40 = vmul.f32 %v4215_v21, %v3090_v27  ;;  %v4766_v28 = vmax.f32 %v4765_v17, 0.0 }
 0x1a0   : > { %v2638_v15 = vmax.f32 %v2538_v0, %v2588_v47  ;;  %v2489_v57 = vmax.f32 %v2289_v59, 0.0  ;;  %v2187_v41 = vadd.f32 %v4223_v10, %v1980_v37  ;;  %v2287_v23 = vadd.f32 %v4223_v10, %v2080_v45  ;;  %v1833_v25 = vpop.f32.mrf.mxu1  ;;  %v4769_v0 = vld [vmem:[#allocation23_spill] sm:$0xff]  ;;  %v3095_v51 = vpop.f32.mrf.mxu0 }
 0x1a1   : > { %v2536_v18 = vmax.f32 %v4764_v26, %v2386_v8  ;;  %v2586_v19 = vmax.f32 %v4766_v28, %v2486_v49  ;;  %v4767_v16 = vmax.f32 %v3928_v46, 0.0  ;;  %v2192_v39 = vadd.f32 %v4223_v10, %v1985_v40 }
 0x1a2   : > { %2688 = vst [vmem:[%s4107_s19 + $0xe0] sm:$0xff] %v2638_v15  ;;  %v2085_v42 = vmul.f32 %v4215_v21, %v3190_v24  ;;  %v1983_v27 = vmul.f32 %v4215_v21, %v1417_v63  ;;  %v4768_v60 = vmax.f32 %v3931_v32, 0.0  ;;  %v2387_v61 = vmax.f32 %v2187_v41, 0.0  ;;  %v3195_v47 = vpop.f32.mrf.mxu1  ;;  %v1436_v26 = vpop.f32.mrf.mxu0 }
 0x1a3   : > { %v2539_v52 = vmax.f32 %v4767_v16, %v2389_v38  ;;  %v2636_v58 = vmax.f32 %v2536_v18, %v2586_v19  ;;  %v2487_v30 = vmax.f32 %v2287_v23, 0.0  ;;  %v2392_v4 = vmax.f32 %v2192_v39, 0.0 }
 0x1a4   : > { %v2589_v13 = vmax.f32 %v4768_v60, %v2489_v57  ;;  %v2292_v55 = vadd.f32 %v4223_v10, %v2085_v42  ;;  %v2190_v46 = vadd.f32 %v4223_v10, %v1983_v27  ;;  %v2083_v53 = vmul.f32 %v4215_v21, %v1817_v6  ;;  %v3098_v23 = vpop.f32.mrf.mxu0 }
 0x1a5   : > { %2686 = vst [vmem:[%s4107_s19 + $0xd0] sm:$0xff] %v2636_v58  ;;  %v4770_v63 = vmax.f32 %v4769_v0, 0.0  ;;  %v4772_v32 = vmax.f32 %v4771_v54, 0.0  ;;  %v1986_v29 = vmul.f32 %v4215_v21, %v3091_v44  ;;  %v4773_v8 = vmax.f32 %v3942_v62, 0.0  ;;  %v1836_v44 = vpop.f32.mrf.mxu1  ;;  %v4775_v62 = vld [vmem:[#allocation27_spill] sm:$0xff] }
 0x1a6   : > { %v2639_v24 = vmax.f32 %v2539_v52, %v2589_v13  ;;  %v2492_v49 = vmax.f32 %v2292_v55, 0.0  ;;  %v2390_v59 = vmax.f32 %v2190_v46, 0.0  ;;  %v2290_v6 = vadd.f32 %v4223_v10, %v2083_v53  ;;  %v1449_v55 = vpop.f32.mrf.mxu0  ;;  %v4783_v54 = vld [vmem:[#allocation31_spill] sm:$0xff] }
 0x1a7   : > { %v2537_v11 = vmax.f32 %v4770_v63, %v2387_v61  ;;  %v2587_v1 = vmax.f32 %v4772_v32, %v2487_v30  ;;  %v2542_v34 = vmax.f32 %v4773_v8, %v2392_v4  ;;  %v2193_v45 = vadd.f32 %v4223_v10, %v1986_v29  ;;  %v3198_v16 = vpop.f32.mrf.mxu1  ;;  %v4781_v63 = vld [vmem:[#allocation38_spill] sm:$0xff] }
 0x1a8   : > { %2689 = vst [vmem:[%s4107_s19 + $0xe8] sm:$0xff] %v2639_v24  ;;  %v2086_v15 = vmul.f32 %v4215_v21, %v3191_v20  ;;  %v1984_v36 = vmul.f32 %v4215_v21, %v1420_v50  ;;  %v4774_v18 = vmax.f32 %v3945_v22, 0.0  ;;  %v4776_v40 = vmax.f32 %v4775_v62, 0.0  ;;  %v4777_v22 = vld [vmem:[#allocation28_spill] sm:$0xff] }
 0x1a9   : > { %v2637_v37 = vmax.f32 %v2537_v11, %v2587_v1  ;;  %v2490_v28 = vmax.f32 %v2290_v6, 0.0  ;;  %v2084_v19 = vmul.f32 %v4215_v21, %v1820_v48  ;;  %v2393_v57 = vmax.f32 %v2193_v45, 0.0  ;;  %v4779_v48 = vld [vmem:[#allocation37_spill] sm:$0xff] }
 0x1aa   : > { %v2592_v38 = vmax.f32 %v4774_v18, %v2492_v49  ;;  %v2540_v17 = vmax.f32 %v4776_v40, %v2390_v59  ;;  %v2293_v41 = vadd.f32 %v4223_v10, %v2086_v15  ;;  %v2191_v20 = vadd.f32 %v4223_v10, %v1984_v36  ;;  %v4785_v59 = vld [vmem:[#allocation32_spill] sm:$0xff]  ;;  %v4787_v18 = vld [vmem:[#allocation41_spill] sm:$0xff] }
 0x1ab   : > { %2687 = vst [vmem:[%s4107_s19 + $0xd8] sm:$0xff] %v2637_v37  ;;  %v1989_v50 = vmul.f32 %v4215_v21, %v3094_v43  ;;  %v4778_v39 = vmax.f32 %v4777_v22, 0.0  ;;  %v2291_v27 = vadd.f32 %v4223_v10, %v2084_v19  ;;  %v2089_v58 = vmul.f32 %v4215_v21, %v3194_v2  ;;  %v1849_v43 = vpop.f32.mrf.mxu1 }
 0x1ac   : > { %v2642_v52 = vmax.f32 %v2542_v34, %v2592_v38  ;;  %v4780_v60 = vmax.f32 %v4779_v48, 0.0  ;;  %v2493_v61 = vmax.f32 %v2293_v41, 0.0  ;;  %v2391_v30 = vmax.f32 %v2191_v20, 0.0  ;;  %v3099_v34 = vpop.f32.mrf.mxu0  ;;  %v4791_v48 = vld [vmem:[#allocation33_spill] sm:$0xff] }
 0x1ad   : > { %v2590_v42 = vmax.f32 %v4778_v39, %v2490_v28  ;;  %v2196_v4 = vadd.f32 %v4223_v10, %v1989_v50  ;;  %v2491_v53 = vmax.f32 %v2291_v27, 0.0  ;;  %v2296_v24 = vadd.f32 %v4223_v10, %v2089_v58  ;;  %v3199_v49 = vpop.f32.mrf.mxu1 }
 0x1ae   : > { %v2543_v13 = vmax.f32 %v4780_v60, %v2393_v57  ;;  %2692 = vst [vmem:[%s4107_s19 + $0x100] sm:$0xff] %v2642_v52  ;;  %v1987_v0 = vmul.f32 %v4215_v21, %v1433_v5  ;;  %v4782_v11 = vmax.f32 %v4781_v63, 0.0  ;;  %v4784_v32 = vmax.f32 %v4783_v54, 0.0  ;;  %v4789_v57 = vld [vmem:[#allocation42_spill] sm:$0xff] }
 0x1af   : > { %v2640_v46 = vmax.f32 %v2540_v17, %v2590_v42  ;;  %v2396_v29 = vmax.f32 %v2196_v4, 0.0  ;;  %v2087_v8 = vmul.f32 %v4215_v21, %v1833_v25  ;;  %v4786_v6 = vmax.f32 %v4785_v59, 0.0  ;;  %v1452_v17 = vpop.f32.mrf.mxu0  ;;  %v1852_v28 = vpop.f32.mrf.mxu1  ;;  %v4793_v4 = vld [vmem:[#allocation34_spill] sm:$0xff] }
 0x1b0   : > { %v2593_v2 = vmax.f32 %v4782_v11, %v2493_v61  ;;  %v2541_v1 = vmax.f32 %v4784_v32, %v2391_v30  ;;  %v2496_v45 = vmax.f32 %v2296_v24, 0.0  ;;  %v2194_v15 = vadd.f32 %v4223_v10, %v1987_v0 }
 0x1b1   : > { %2690 = vst [vmem:[%s4107_s19 + $0xf0] sm:$0xff] %v2640_v46  ;;  %v2591_v37 = vmax.f32 %v4786_v6, %v2491_v53  ;;  %v1990_v5 = vmul.f32 %v4215_v21, %v3095_v51  ;;  %v4788_v38 = vmax.f32 %v4787_v18, 0.0  ;;  %v2294_v40 = vadd.f32 %v4223_v10, %v2087_v8  ;;  %v3102_v27 = vpop.f32.mrf.mxu0  ;;  %v4797_v18 = vld [vmem:[#allocation35_spill] sm:$0xff] }
 0x1b2   : > { %v2643_v36 = vmax.f32 %v2543_v13, %v2593_v2  ;;  %v2090_v25 = vmul.f32 %v4215_v21, %v3195_v47  ;;  %v4790_v41 = vmax.f32 %v4789_v57, 0.0  ;;  %v2394_v50 = vmax.f32 %v2194_v15, 0.0  ;;  %v3202_v47 = vpop.f32.mrf.mxu1 }
 0x1b3   : > { %v2546_v62 = vmax.f32 %v4788_v38, %v2396_v29  ;;  %v2641_v19 = vmax.f32 %v2541_v1, %v2591_v37  ;;  %v2197_v52 = vadd.f32 %v4223_v10, %v1990_v5  ;;  %v2494_v51 = vmax.f32 %v2294_v40, 0.0  ;;  %v1465_v63 = vpop.f32.mrf.mxu0 }
 0x1b4   : > { %v2596_v20 = vmax.f32 %v4790_v41, %v2496_v45  ;;  %2693 = vst [vmem:[%s4107_s19 + $0x108] sm:$0xff] %v2643_v36  ;;  %v2297_v22 = vadd.f32 %v4223_v10, %v2090_v25  ;;  %v1988_v39 = vmul.f32 %v4215_v21, %v1436_v26  ;;  %v2088_v42 = vmul.f32 %v4215_v21, %v1836_v44  ;;  %v1865_v44 = vpop.f32.mrf.mxu1 }
 0x1b5   : > { %2691 = vst [vmem:[%s4107_s19 + $0xf8] sm:$0xff] %v2641_v19  ;;  %v4792_v60 = vmax.f32 %v4791_v48, 0.0  ;;  %v2397_v61 = vmax.f32 %v2197_v52, 0.0  ;;  %v1993_v30 = vmul.f32 %v4215_v21, %v3098_v23  ;;  %v4794_v46 = vmax.f32 %v4793_v4, 0.0  ;;  %v3103_v37 = vpop.f32.mrf.mxu0 }
 0x1b6   : > { %v2646_v58 = vmax.f32 %v2546_v62, %v2596_v20  ;;  %v2497_v24 = vmax.f32 %v2297_v22, 0.0  ;;  %v2195_v0 = vadd.f32 %v4223_v10, %v1988_v39  ;;  %v2295_v26 = vadd.f32 %v4223_v10, %v2088_v42  ;;  %v3203_v45 = vpop.f32.mrf.mxu1  ;;  %v4799_v62 = vld [vmem:[#allocation36_spill] sm:$0xff] }
 0x1b7   : > { %v2544_v13 = vmax.f32 %v4792_v60, %v2394_v50  ;;  %v2594_v53 = vmax.f32 %v4794_v46, %v2494_v51  ;;  %v4795_v11 = vmax.f32 %v4008_v7, 0.0  ;;  %v2200_v54 = vadd.f32 %v4223_v10, %v1993_v30  ;;  %v1468_v52 = vpop.f32.mrf.mxu0 }
 0x1b8   : > { %2696 = vst [vmem:[%s4107_s19 + $0x120] sm:$0xff] %v2646_v58  ;;  %v2093_v32 = vmul.f32 %v4215_v21, %v3198_v16  ;;  %v1991_v23 = vmul.f32 %v4215_v21, %v1449_v55  ;;  %v4796_v29 = vmax.f32 %v4011_v31, 0.0  ;;  %v2395_v59 = vmax.f32 %v2195_v0, 0.0  ;;  %v1868_v42 = vpop.f32.mrf.mxu1 }
 0x1b9   : > { %v2547_v2 = vmax.f32 %v4795_v11, %v2397_v61  ;;  %v2644_v1 = vmax.f32 %v2544_v13, %v2594_v53  ;;  %v2495_v6 = vmax.f32 %v2295_v26, 0.0  ;;  %v2400_v15 = vmax.f32 %v2200_v54, 0.0  ;;  %v4805_v53 = vld [vmem:[#allocation40_spill] sm:$0xff]  ;;  %v3106_v11 = vpop.f32.mrf.mxu0 }
 0x1ba   : > { %v2597_v8 = vmax.f32 %v4796_v29, %v2497_v24  ;;  %v2300_v5 = vadd.f32 %v4223_v10, %v2093_v32  ;;  %v2198_v7 = vadd.f32 %v4223_v10, %v1991_v23  ;;  %v2091_v36 = vmul.f32 %v4215_v21, %v1849_v43  ;;  %v3206_v29 = vpop.f32.mrf.mxu1 }
 0x1bb   : > { %2694 = vst [vmem:[%s4107_s19 + $0x110] sm:$0xff] %v2644_v1  ;;  %v4798_v55 = vmax.f32 %v4797_v18, 0.0  ;;  %v4800_v31 = vmax.f32 %v4799_v62, 0.0  ;;  %v1994_v25 = vmul.f32 %v4215_v21, %v3099_v34  ;;  %v4801_v19 = vmax.f32 %v4022_v12, 0.0  ;;  %v4803_v12 = vld [vmem:[#allocation39_spill] sm:$0xff] }
 0x1bc   : > { %v2647_v16 = vmax.f32 %v2547_v2, %v2597_v8  ;;  %v2500_v41 = vmax.f32 %v2300_v5, 0.0  ;;  %v2398_v20 = vmax.f32 %v2198_v7, 0.0  ;;  %v2298_v50 = vadd.f32 %v4223_v10, %v2091_v36  ;;  %v4811_v7 = vld [vmem:[#allocation43_spill] sm:$0xff] }
 0x1bd   : > { %v2545_v38 = vmax.f32 %v4798_v55, %v2395_v59  ;;  %v2595_v40 = vmax.f32 %v4800_v31, %v2495_v6  ;;  %v2550_v57 = vmax.f32 %v4801_v19, %v2400_v15  ;;  %v2201_v51 = vadd.f32 %v4223_v10, %v1994_v25  ;;  %v4809_v15 = vld [vmem:[#allocation50_spill] sm:$0xff] }
 0x1be   : > { %2697 = vst [vmem:[%s4107_s19 + $0x128] sm:$0xff] %v2647_v16  ;;  %v2094_v22 = vmul.f32 %v4215_v21, %v3199_v49  ;;  %v1992_v39 = vmul.f32 %v4215_v21, %v1452_v17  ;;  %v4802_v34 = vmax.f32 %v4025_v3, 0.0  ;;  %v4804_v48 = vmax.f32 %v4803_v12, 0.0 }
 0x1bf   : > { %v2645_v43 = vmax.f32 %v2545_v38, %v2595_v40  ;;  %v2498_v13 = vmax.f32 %v2298_v50, 0.0  ;;  %v2092_v61 = vmul.f32 %v4215_v21, %v1852_v28  ;;  %v2401_v30 = vmax.f32 %v2201_v51, 0.0  ;;  %v4807_v28 = vld [vmem:[#allocation49_spill] sm:$0xff]  ;;  %v4813_v38 = vld [vmem:[#allocation44_spill] sm:$0xff] }
 0x1c0   : > { %v2600_v58 = vmax.f32 %v4802_v34, %v2500_v41  ;;  %v2548_v60 = vmax.f32 %v4804_v48, %v2398_v20  ;;  %v2301_v4 = vadd.f32 %v4223_v10, %v2094_v22  ;;  %v2199_v46 = vadd.f32 %v4223_v10, %v1992_v39 }
 0x1c1   : > { %2695 = vst [vmem:[%s4107_s19 + $0x118] sm:$0xff] %v2645_v43  ;;  %v1997_v49 = vmul.f32 %v4215_v21, %v3102_v27  ;;  %v4806_v24 = vmax.f32 %v4805_v53, 0.0  ;;  %v2299_v0 = vadd.f32 %v4223_v10, %v2092_v61  ;;  %v2097_v26 = vmul.f32 %v4215_v21, %v3202_v47  ;;  %v1881_v43 = vpop.f32.mrf.mxu1 }
 0x1c2   : > { %v2650_v17 = vmax.f32 %v2550_v57, %v2600_v58  ;;  %v4808_v2 = vmax.f32 %v4807_v28, 0.0  ;;  %v2501_v32 = vmax.f32 %v2301_v4, 0.0  ;;  %v2399_v23 = vmax.f32 %v2199_v46, 0.0  ;;  %v4819_v46 = vld [vmem:[#allocation46_spill] sm:$0xff] }
 0x1c3   : > { %v2598_v3 = vmax.f32 %v4806_v24, %v2498_v13  ;;  %v2204_v1 = vadd.f32 %v4223_v10, %v1997_v49  ;;  %v2499_v8 = vmax.f32 %v2299_v0, 0.0  ;;  %v2304_v59 = vadd.f32 %v4223_v10, %v2097_v26 }
 0x1c4   : > { %v2551_v54 = vmax.f32 %v4808_v2, %v2401_v30  ;;  %2700 = vst [vmem:[%s4107_s19 + $0x140] sm:$0xff] %v2650_v17  ;;  %v1995_v6 = vmul.f32 %v4215_v21, %v1465_v63  ;;  %v4810_v5 = vmax.f32 %v4809_v15, 0.0  ;;  %v4812_v36 = vmax.f32 %v4811_v7, 0.0  ;;  %v1481_v63 = vpop.f32.mrf.mxu0 }
 0x1c5   : > { %v2648_v27 = vmax.f32 %v2548_v60, %v2598_v3  ;;  %v2404_v18 = vmax.f32 %v2204_v1, 0.0  ;;  %v2095_v55 = vmul.f32 %v4215_v21, %v1865_v44  ;;  %v4814_v62 = vmax.f32 %v4813_v38, 0.0 }
 0x1c6   : > { %v2601_v47 = vmax.f32 %v4810_v5, %v2501_v32  ;;  %v2549_v16 = vmax.f32 %v4812_v36, %v2399_v23  ;;  %v2504_v40 = vmax.f32 %v2304_v59, 0.0  ;;  %v2202_v25 = vadd.f32 %v4223_v10, %v1995_v6  ;;  %v3107_v4 = vpop.f32.mrf.mxu0 }
 0x1c7   : > { %2698 = vst [vmem:[%s4107_s19 + $0x130] sm:$0xff] %v2648_v27  ;;  %v2599_v31 = vmax.f32 %v4814_v62, %v2499_v8  ;;  %v1998_v19 = vmul.f32 %v4215_v21, %v3103_v37  ;;  %v4815_v41 = vmax.f32 %v4060_v9, 0.0  ;;  %v2302_v50 = vadd.f32 %v4223_v10, %v2095_v55  ;;  %v4828_v62 = vld [vmem:[#allocation55_spill] sm:$0xff] }
 0x1c8   : > { %v2651_v57 = vmax.f32 %v2551_v54, %v2601_v47  ;;  %v2098_v44 = vmul.f32 %v4215_v21, %v3203_v45  ;;  %v4816_v22 = vmax.f32 %v4064_v56, 0.0  ;;  %v2402_v34 = vmax.f32 %v2202_v25, 0.0  ;;  %v4817_v45 = vld [vmem:[#allocation45_spill] sm:$0xff]  ;;  %v1484_v5 = vpop.f32.mrf.mxu0 }
 0x1c9   : > { %v2554_v20 = vmax.f32 %v4815_v41, %v2404_v18  ;;  %v2649_v51 = vmax.f32 %v2549_v16, %v2599_v31  ;;  %v2205_v58 = vadd.f32 %v4223_v10, %v1998_v19  ;;  %v2502_v37 = vmax.f32 %v2302_v50, 0.0  ;;  %v4826_v16 = vld [vmem:[#allocation48_spill] sm:$0xff] }
 0x1ca   : > { %v2604_v39 = vmax.f32 %v4816_v22, %v2504_v40  ;;  %2701 = vst [vmem:[%s4107_s19 + $0x148] sm:$0xff] %v2651_v57  ;;  %v2305_v12 = vadd.f32 %v4223_v10, %v2098_v44  ;;  %v1996_v9 = vmul.f32 %v4215_v21, %v1468_v52  ;;  %v2096_v48 = vmul.f32 %v4215_v21, %v1868_v42  ;;  %v3207_v52 = vpop.f32.mrf.mxu1  ;;  %v4821_v42 = vld [vmem:[#allocation53_spill] sm:$0xff] }
 0x1cb   : > { %2699 = vst [vmem:[%s4107_s19 + $0x138] sm:$0xff] %v2649_v51  ;;  %v4818_v13 = vmax.f32 %v4817_v45, 0.0  ;;  %v2405_v30 = vmax.f32 %v2205_v58, 0.0  ;;  %v2001_v56 = vmul.f32 %v4215_v21, %v3106_v11  ;;  %v4820_v49 = vmax.f32 %v4819_v46, 0.0  ;;  %v4831_v51 = vld [vmem:[#allocation51_spill] sm:$0xff] }
 0x1cc   : > { %v2654_v60 = vmax.f32 %v2554_v20, %v2604_v39  ;;  %v2505_v53 = vmax.f32 %v2305_v12, 0.0  ;;  %v2203_v24 = vadd.f32 %v4223_v10, %v1996_v9  ;;  %v2303_v3 = vadd.f32 %v4223_v10, %v2096_v48  ;;  %v1884_v38 = vpop.f32.mrf.mxu1 }
 0x1cd   : > { %v2552_v61 = vmax.f32 %v4818_v13, %v2402_v34  ;;  %v2602_v17 = vmax.f32 %v4820_v49, %v2502_v37  ;;  %v4822_v0 = vmax.f32 %v4821_v42, 0.0  ;;  %v2208_v28 = vadd.f32 %v4223_v10, %v2001_v56  ;;  %v4834_v13 = vld [vmem:[#allocation52_spill] sm:$0xff] }
 0x1ce   : > { %2704 = vst [vmem:[%s4107_s19 + $0x160] sm:$0xff] %v2654_v60  ;;  %v2101_v2 = vmul.f32 %v4215_v21, %v3206_v29  ;;  %v1999_v11 = vmul.f32 %v4215_v21, %v1481_v63  ;;  %v4823_v32 = vmax.f32 %v4086_v35, 0.0  ;;  %v2403_v1 = vmax.f32 %v2203_v24, 0.0  ;;  %v4824_v29 = vld [vmem:[#allocation47_spill] sm:$0xff]  ;;  %v4833_v60 = vld [vmem:[#allocation54_spill] sm:$0xff] }
 0x1cf   : > { %v2555_v26 = vmax.f32 %v4822_v0, %v2405_v30  ;;  %v2652_v54 = vmax.f32 %v2552_v61, %v2602_v17  ;;  %v2503_v27 = vmax.f32 %v2303_v3, 0.0  ;;  %v2408_v8 = vmax.f32 %v2208_v28, 0.0  ;;  %v4837_v17 = vld [vmem:[#allocation56_spill] sm:$0xff] }
 0x1d0   : > { %v2605_v23 = vmax.f32 %v4823_v32, %v2505_v53  ;;  %v2308_v59 = vadd.f32 %v4223_v10, %v2101_v2  ;;  %v2206_v6 = vadd.f32 %v4223_v10, %v1999_v11  ;;  %v2099_v15 = vmul.f32 %v4215_v21, %v1881_v43 }
 0x1d1   : > { %2702 = vst [vmem:[%s4107_s19 + $0x150] sm:$0xff] %v2652_v54  ;;  %v4825_v7 = vmax.f32 %v4824_v29, 0.0  ;;  %v4827_v18 = vmax.f32 %v4826_v16, 0.0  ;;  %v2002_v55 = vmul.f32 %v4215_v21, %v3107_v4  ;;  %v4829_v31 = vmax.f32 %v4828_v62, 0.0  ;;  %v4836_v4 = vld [vmem:[#allocation57_spill] sm:$0xff] }
 0x1d2   : > { %v2655_v47 = vmax.f32 %v2555_v26, %v2605_v23  ;;  %v2508_v25 = vmax.f32 %v2308_v59, 0.0  ;;  %v2406_v19 = vmax.f32 %v2206_v6, 0.0  ;;  %v2306_v63 = vadd.f32 %v4223_v10, %v2099_v15 }
 0x1d3   : > { %v2553_v36 = vmax.f32 %v4825_v7, %v2403_v1  ;;  %v2603_v35 = vmax.f32 %v4827_v18, %v2503_v27  ;;  %v2558_v40 = vmax.f32 %v4829_v31, %v2408_v8  ;;  %v2209_v41 = vadd.f32 %v4223_v10, %v2002_v55 }
 0x1d4   : > { %2705 = vst [vmem:[%s4107_s19 + $0x168] sm:$0xff] %v2655_v47  ;;  %v2102_v20 = vmul.f32 %v4215_v21, %v3207_v52  ;;  %v2000_v50 = vmul.f32 %v4215_v21, %v1484_v5  ;;  %v4830_v44 = vmax.f32 %v4110_v14, 0.0  ;;  %v4832_v22 = vmax.f32 %v4831_v51, 0.0 }
 0x1d5   : > { %v2653_v57 = vmax.f32 %v2553_v36, %v2603_v35  ;;  %v2506_v34 = vmax.f32 %v2306_v63, 0.0  ;;  %v2100_v58 = vmul.f32 %v4215_v21, %v1884_v38  ;;  %v2359_v37 = vmax.f32 %v4131_v33, 0.0 }
 0x1d6   : > { %v2608_v43 = vmax.f32 %v4830_v44, %v2508_v25  ;;  %v2556_v39 = vmax.f32 %v4832_v22, %v2406_v19  ;;  %v2409_v12 = vmax.f32 %v2209_v41, 0.0  ;;  %v2309_v9 = vadd.f32 %v4223_v10, %v2102_v20 }
 0x1d7   : > { %2703 = vst [vmem:[%s4107_s19 + $0x158] sm:$0xff] %v2653_v57  ;;  %v2207_v48 = vadd.f32 %v4223_v10, %v2000_v50  ;;  %v2357_v45 = vmax.f32 %v4833_v60, 0.0  ;;  %v4835_v61 = vmax.f32 %v4834_v13, 0.0  ;;  %v2307_v56 = vadd.f32 %v4223_v10, %v2100_v58 }
 0x1d8   : > { %v2658_v14 = vmax.f32 %v2558_v40, %v2608_v43  ;;  %v2459_v21 = vmax.f32 %v4836_v4, 0.0  ;;  %v2559_v33 = vmax.f32 %v2359_v37, %v2409_v12  ;;  %v2509_v46 = vmax.f32 %v2309_v9, 0.0 }
 0x1d9   : > { %v2606_v30 = vmax.f32 %v4835_v61, %v2506_v34  ;;  %v2407_v49 = vmax.f32 %v2207_v48, 0.0  ;;  %v2457_v53 = vmax.f32 %v4837_v17, 0.0  ;;  %v2507_v3 = vmax.f32 %v2307_v56, 0.0 }
 0x1da   : > { %2708 = vst [vmem:[%s4107_s19 + $0x180] sm:$0xff] %v2658_v14  ;;  %v2609_v52 = vmax.f32 %v2459_v21, %v2509_v46 }
 0x1db   : > { %v2656_v24 = vmax.f32 %v2556_v39, %v2606_v30  ;;  %v2557_v42 = vmax.f32 %v2357_v45, %v2407_v49  ;;  %v2607_v0 = vmax.f32 %v2457_v53, %v2507_v3 }
 0x1dc   : > { %v2659_v26 = vmax.f32 %v2559_v33, %v2609_v52 }
 0x1dd   : > { %2706 = vst [vmem:[%s4107_s19 + $0x170] sm:$0xff] %v2656_v24  ;;  %v2657_v28 = vmax.f32 %v2557_v42, %v2607_v0 }
 0x1de   : > { %2709 = vst [vmem:[%s4107_s19 + $0x188] sm:$0xff] %v2659_v26 }
 0x1df   : > { %2707 = vst [vmem:[%s4107_s19 + $0x178] sm:$0xff] %v2657_v28 }
 0x1e0 PF: > { %s14_s15 = sadd.s32 1, %s3350_s15  }
 0x1e1   : > { %p11_p4 = scmp.ge.s32.totalorder %s14_s15, 4  }
 0x1e3   :  { %13 = sbr.rel (!%p11_p4) target bundleno = 1 (0x1), region = 66 }

// kernel: bigg_forward.4
= control target key start
LH: loop header
LB: loop body
LE: loop exit
PB: predicated region body
PF: predicated region fallthrough
CT: control target
= control target key end

     0   :  { %s4459_s15 = smov 0   ;;  %s5999_s0 = inlined_call_operand.vmem [shape: bf16[2,416,896], index: 0, kind: input, shape index: {}]   ;;  %s6000_s1 = inlined_call_operand.vmem [shape: bf16[896,144], index: 1, kind: input, shape index: {}]   ;;  %s6001_s2 = inlined_call_operand.vmem [shape: f32[1,144], index: 2, kind: input, shape index: {}]   ;;  %s6002_s3 = inlined_call_operand.vmem [shape: f32[1,144], index: 3, kind: input, shape index: {}]   ;;  %s6003_s4 = inlined_call_operand.vmem [shape: f32[2,104,144], index: 4, kind: output, shape index: {}]  }
   0x1 LB: > { %s3683_s16 = sadd.s32 4294967295, %s4431_s15   ;;  %p3687_p0 = scmp.ge.s32.totalorder %s4431_s15, 1  ;;  %s4431_s15 = sphi %s4459_s15, %s14_s15  }
   0x2   : > { %p162_p1 = scmp.lt.s32.totalorder %s4431_s15, 3 }
   0x4   : > { %p163_p2 = pnand %p3687_p0, %p162_p1 }
   0x6   : > { %166 = sbr.rel (%p163_p2) target bundleno = 701 (0x2bd), region = 36 }
   0xb   : > { %v3997_v0 = vld [vmem:[%s6000_s1 + $0x74] ss:$8 sps:$4 sm:$0xff]   ;;  %v4001_v2 = vld [vmem:[%s6000_s1 + $0x70] ss:$8 sps:$4 sm:$0xff]   ;;  %v4003_v4 = vld [vmem:[%s6000_s1 + $0x64] ss:$8 sps:$4 sm:$0xff]  }
   0xc   : > { %v3999_v1 = vld [vmem:[%s6000_s1 + $0x174] ss:$8 sps:$4 sm:$0xff]   ;;  %2015 = vmatprep.subr.bf16.mxu0 %v3997_v0  ;;  %v4002_v3 = vld [vmem:[%s6000_s1 + $0x170] ss:$8 sps:$4 sm:$0xff]   ;;  %v4005_v5 = vld [vmem:[%s6000_s1 + $0x164] ss:$8 sps:$4 sm:$0xff]  }
   0xd   : > { %2308 = vmatprep.subr.bf16.mxu1 %v3999_v1  ;;  %2016 = vmatpush1.bf16.msra.mxu0 %v4001_v2  ;;  %v4007_v6 = vld [vmem:[%s6000_s1 + $0x60] ss:$8 sps:$4 sm:$0xff]   ;;  %v4009_v8 = vld [vmem:[%s6000_s1 + $0x54] ss:$8 sps:$4 sm:$0xff]   ;;  %v4013_v10 = vld [vmem:[%s6000_s1 + $0x50] ss:$8 sps:$4 sm:$0xff]  }
   0xe   : > { %2309 = vmatpush1.bf16.msra.mxu1 %v4002_v3  ;;  %2017 = vmatprep.subr.bf16.mxu0 %v4003_v4  ;;  %v4008_v7 = vld [vmem:[%s6000_s1 + $0x160] ss:$8 sps:$4 sm:$0xff]   ;;  %v4011_v9 = vld [vmem:[%s6000_s1 + $0x154] ss:$8 sps:$4 sm:$0xff]   ;;  %v4014_v11 = vld [vmem:[%s6000_s1 + $0x150] ss:$8 sps:$4 sm:$0xff]  }
   0xf   : > { %2310 = vmatprep.subr.bf16.mxu1 %v4005_v5  ;;  %v4015_v12 = vld [vmem:[%s6000_s1 + $0x44] ss:$8 sps:$4 sm:$0xff]   ;;  %v4019_v14 = vld [vmem:[%s6000_s1 + $0x40] ss:$8 sps:$4 sm:$0xff]   ;;  %v4021_v16 = vld [vmem:[%s6000_s1 + $0x34] ss:$8 sps:$4 sm:$0xff]  }
  0x10   : > { %v4017_v13 = vld [vmem:[%s6000_s1 + $0x144] ss:$8 sps:$4 sm:$0xff]   ;;  %v4020_v15 = vld [vmem:[%s6000_s1 + $0x140] ss:$8 sps:$4 sm:$0xff]   ;;  %v4023_v17 = vld [vmem:[%s6000_s1 + $0x134] ss:$8 sps:$4 sm:$0xff]  }
  0x11   : > { %2018 = vmatpush1.bf16.msra.mxu0 %v4007_v6  ;;  %v4025_v18 = vld [vmem:[%s6000_s1 + $0x30] ss:$8 sps:$4 sm:$0xff]   ;;  %v4027_v20 = vld [vmem:[%s6000_s1 + $0x24] ss:$8 sps:$4 sm:$0xff]   ;;  %v4031_v22 = vld [vmem:[%s6000_s1 + $0x20] ss:$8 sps:$4 sm:$0xff]  }
  0x12   : > { %2311 = vmatpush1.bf16.msra.mxu1 %v4008_v7  ;;  %2019 = vmatprep.subr.bf16.mxu0 %v4009_v8  ;;  %v4026_v19 = vld [vmem:[%s6000_s1 + $0x130] ss:$8 sps:$4 sm:$0xff]   ;;  %v4029_v21 = vld [vmem:[%s6000_s1 + $0x124] ss:$8 sps:$4 sm:$0xff]   ;;  %v4032_v23 = vld [vmem:[%s6000_s1 + $0x120] ss:$8 sps:$4 sm:$0xff]  }
  0x13   : > { %2312 = vmatprep.subr.bf16.mxu1 %v4011_v9  ;;  %v4033_v24 = vld [vmem:[%s6000_s1 + $0x14] ss:$8 sps:$4 sm:$0xff]   ;;  %v4037_v26 = vld [vmem:[%s6000_s1 + $0x10] ss:$8 sps:$4 sm:$0xff]   ;;  %v4039_v28 = vld [vmem:[%s6000_s1 + $0x4] ss:$8 sps:$4 sm:$0xff]  }
  0x14   : > { %v4035_v25 = vld [vmem:[%s6000_s1 + $0x114] ss:$8 sps:$4 sm:$0xff]   ;;  %v4038_v27 = vld [vmem:[%s6000_s1 + $0x110] ss:$8 sps:$4 sm:$0xff]   ;;  %v4041_v29 = vld [vmem:[%s6000_s1 + $0x104] ss:$8 sps:$4 sm:$0xff]  }
  0x15   : > { %2020 = vmatpush1.bf16.msra.mxu0 %v4013_v10  ;;  %v4043_v30 = vld [vmem:[%s6000_s1] ss:$8 sps:$4 sm:$0xff]   ;;  %v4045_v32 = vld [vmem:[%s6000_s1 + $0xf4] ss:$8 sps:$4 sm:$0xff]   ;;  %p188_p3 = scmp.lt.s32.totalorder %s3683_s16, 1  ;;  %vm3602_vm0 = vcmask 130048  }
  0x16   : > { %2313 = vmatpush1.bf16.msra.mxu1 %v4014_v11  ;;  %2021 = vmatprep.subr.bf16.mxu0 %v4015_v12  ;;  %v4044_v31 = vld [vmem:[%s6000_s1 + $0x100] ss:$8 sps:$4 sm:$0xff]   ;;  %v4047_v33 = vld [vmem:[%s6000_s1 + $0x1f4] ss:$8 sps:$4 sm:$0xff]   ;;  %v4049_v34 = vld [vmem:[%s6000_s1 + $0xf0] ss:$8 sps:$4 sm:$0xff]  }
  0x17   : > { %2314 = vmatprep.subr.bf16.mxu1 %v4017_v13  ;;  %v4050_v35 = vld [vmem:[%s6000_s1 + $0x1f0] ss:$8 sps:$4 sm:$0xff]   ;;  %v4051_v36 = vld [vmem:[%s6000_s1 + $0xe4] ss:$8 sps:$4 sm:$0xff]   ;;  %s6183_s16 = smov (!%p188_p3, %s3683_s16), 1 }
  0x18   : > { %v4053_v37 = vld [vmem:[%s6000_s1 + $0x1e4] ss:$8 sps:$4 sm:$0xff]   ;;  %v4055_v38 = vld [vmem:[%s6000_s1 + $0xe0] ss:$8 sps:$4 sm:$0xff]   ;;  %v4057_v40 = vld [vmem:[%s6000_s1 + $0xd4] ss:$8 sps:$4 sm:$0xff]  }
  0x19   : > { %2022 = vmatpush1.bf16.msra.mxu0 %v4019_v14  ;;  %v4056_v39 = vld [vmem:[%s6000_s1 + $0x1e0] ss:$8 sps:$4 sm:$0xff]   ;;  %s3986_s27 = smul.u32 1456, %s6183_s16  ;;  %v4059_v41 = vld [vmem:[%s6000_s1 + $0x1d4] ss:$8 sps:$4 sm:$0xff]  }
  0x1a   : > { %2315 = vmatpush1.bf16.msra.mxu1 %v4020_v15  ;;  %2023 = vmatprep.subr.bf16.mxu0 %v4021_v16  ;;  %v4061_v42 = vld [vmem:[%s6000_s1 + $0xd0] ss:$8 sps:$4 sm:$0xff]   ;;  %v4063_v44 = vld [vmem:[%s6000_s1 + $0xc4] ss:$8 sps:$4 sm:$0xff]   ;;  %v4067_v46 = vld [vmem:[%s6000_s1 + $0xc0] ss:$8 sps:$4 sm:$0xff]  }
  0x1b   : > { %2316 = vmatprep.subr.bf16.mxu1 %v4023_v17  ;;  %v4062_v43 = vld [vmem:[%s6000_s1 + $0x1d0] ss:$8 sps:$4 sm:$0xff]   ;;  %s4612_s12 = scalar_lea.vmem %s5999_s0, %s3986_s27  ;;  %v4065_v45 = vld [vmem:[%s6000_s1 + $0x1c4] ss:$8 sps:$4 sm:$0xff]   ;;  %v4068_v47 = vld [vmem:[%s6000_s1 + $0x1c0] ss:$8 sps:$4 sm:$0xff]  }
  0x1c   : > { %v4069_v48 = vld [vmem:[%s6000_s1 + $0xb4] ss:$8 sps:$4 sm:$0xff]   ;;  %v4095_v49 = vld [vmem:[%s4612_s12 + $0x4] ss:$28 sps:$4 sm:$0xff]   ;;  %v4098_v51 = vld [vmem:[%s4612_s12 + $0xc] ss:$28 sps:$4 sm:$0xff]  }
  0x1d   : > { %2024 = vmatpush1.bf16.msra.mxu0 %v4025_v18  ;;  %v4071_v50 = vld [vmem:[%s6000_s1 + $0x1b4] ss:$8 sps:$4 sm:$0xff]   ;;  %2047 = vmatprep.mubr.bf16.mxu0 %v4095_v49  ;;  %v4073_v52 = vld [vmem:[%s6000_s1 + $0xb0] ss:$8 sps:$4 sm:$0xff]   ;;  %v4075_v54 = vld [vmem:[%s6000_s1 + $0xa4] ss:$8 sps:$4 sm:$0xff]  }
  0x1e   : > { %2317 = vmatpush1.bf16.msra.mxu1 %v4026_v19  ;;  %2025 = vmatprep.subr.bf16.mxu0 %v4027_v20  ;;  %v4074_v53 = vld [vmem:[%s6000_s1 + $0x1b0] ss:$8 sps:$4 sm:$0xff]   ;;  %v4077_v55 = vld [vmem:[%s6000_s1 + $0x1a4] ss:$8 sps:$4 sm:$0xff]   ;;  %v4079_v56 = vld [vmem:[%s6000_s1 + $0xa0] ss:$8 sps:$4 sm:$0xff]  }
  0x1f   : > { %2318 = vmatprep.subr.bf16.mxu1 %v4029_v21  ;;  %2340 = vmatprep.mubr.bf16.mxu1 %v4098_v51  ;;  %v4080_v57 = vld [vmem:[%s6000_s1 + $0x1a0] ss:$8 sps:$4 sm:$0xff]   ;;  %v4081_v58 = vld [vmem:[%s6000_s1 + $0x94] ss:$8 sps:$4 sm:$0xff]   ;;  %v4085_v60 = vld [vmem:[%s6000_s1 + $0x90] ss:$8 sps:$4 sm:$0xff]  }
  0x20   : > { %v4083_v59 = vld [vmem:[%s6000_s1 + $0x194] ss:$8 sps:$4 sm:$0xff]   ;;  %v4086_v61 = vld [vmem:[%s6000_s1 + $0x190] ss:$8 sps:$4 sm:$0xff]   ;;  %v4087_v62 = vld [vmem:[%s6000_s1 + $0x84] ss:$8 sps:$4 sm:$0xff]  }
  0x21   : > { %2026 = vmatpush1.bf16.msra.mxu0 %v4031_v22  ;;  %v4089_v63 = vld [vmem:[%s6000_s1 + $0x184] ss:$8 sps:$4 sm:$0xff]   ;;  %v4091_v0 = vld [vmem:[%s6000_s1 + $0x80] ss:$8 sps:$4 sm:$0xff]   ;;  %v4101_v2 = vld [vmem:[%s6000_s1 + $0x274] ss:$8 sps:$4 sm:$0xff]  }
  0x22   : > { %2319 = vmatpush1.bf16.msra.mxu1 %v4032_v23  ;;  %2027 = vmatprep.subr.bf16.mxu0 %v4033_v24  ;;  %v4092_v1 = vld [vmem:[%s6000_s1 + $0x180] ss:$8 sps:$4 sm:$0xff]   ;;  %v4104_v3 = vld [vmem:[%s6000_s1 + $0x374] ss:$8 sps:$4 sm:$0xff]   ;;  %v4099_v6 = vld [vmem:[%s6000_s1 + $0x270] ss:$8 sps:$4 sm:$0xff]  }
  0x23   : > { %2320 = vmatprep.subr.bf16.mxu1 %v4035_v25  ;;  %v4093_v4 = vld [vmem:[%s4612_s12] ss:$28 sps:$4 sm:$0xff]   ;;  %v4096_v5 = vld [vmem:[%s4612_s12 + $0x8] ss:$28 sps:$4 sm:$0xff]   ;;  %v4102_v7 = vld [vmem:[%s6000_s1 + $0x370] ss:$8 sps:$4 sm:$0xff]  }
  0x24   : > { %v4105_v8 = vld [vmem:[%s4612_s12 + $0x3c] ss:$28 sps:$4 sm:$0xff]   ;;  %v4107_v9 = vld [vmem:[%s4612_s12 + $0x44] ss:$28 sps:$4 sm:$0xff]   ;;  %v4114_v17 = vld [vmem:[%s4612_s12 + $0x74] ss:$28 sps:$4 sm:$0xff]  }
  0x25   : > { %2028 = vmatpush1.bf16.msra.mxu0 %v4037_v26  ;;  %v4113_v10 = vld [vmem:[%s6000_s1 + $0x264] ss:$8 sps:$4 sm:$0xff]   ;;  %v4111_v12 = vld [vmem:[%s6000_s1 + $0x260] ss:$8 sps:$4 sm:$0xff]   ;;  %v4109_v14 = vld [vmem:[%s4612_s12 + $0x38] ss:$28 sps:$4 sm:$0xff]  }
  0x26   : > { %2321 = vmatpush1.bf16.msra.mxu1 %v4038_v27  ;;  %2029 = vmatprep.subr.bf16.mxu0 %v4039_v28  ;;  %v4131_v11 = vld [vmem:[%s6000_s1 + $0x364] ss:$8 sps:$4 sm:$0xff]   ;;  %v4129_v13 = vld [vmem:[%s6000_s1 + $0x360] ss:$8 sps:$4 sm:$0xff]   ;;  %v4128_v15 = vld [vmem:[%s6000_s1 + $0x254] ss:$8 sps:$4 sm:$0xff]  }
  0x27   : > { %2322 = vmatprep.subr.bf16.mxu1 %v4041_v29  ;;  %v4110_v16 = vld [vmem:[%s4612_s12 + $0x40] ss:$28 sps:$4 sm:$0xff]   ;;  %v4126_v20 = vld [vmem:[%s6000_s1 + $0x250] ss:$8 sps:$4 sm:$0xff]   ;;  %v4144_v22 = vld [vmem:[%s6000_s1 + $0x244] ss:$8 sps:$4 sm:$0xff]  }
  0x28   : > { %v4116_v18 = vld [vmem:[%s4612_s12 + $0x7c] ss:$28 sps:$4 sm:$0xff]   ;;  %v4142_v23 = vld [vmem:[%s6000_s1 + $0x240] ss:$8 sps:$4 sm:$0xff]   ;;  %v4118_v24 = vld [vmem:[%s4612_s12 + $0x70] ss:$28 sps:$4 sm:$0xff]  }
  0x29   : > { %2030 = vmatpush1.bf16.msra.mxu0 %v4043_v30  ;;  %v4158_v19 = vld [vmem:[%s6000_s1 + $0x354] ss:$8 sps:$4 sm:$0xff]   ;;  %v4156_v21 = vld [vmem:[%s6000_s1 + $0x350] ss:$8 sps:$4 sm:$0xff]   ;;  %v4120_v27 = vld [vmem:[%s4612_s12 + $0xac] ss:$28 sps:$4 sm:$0xff]  }
  0x2a   : > { %2323 = vmatpush1.bf16.msra.mxu1 %v4044_v31  ;;  %2031 = vmatprep.subr.bf16.mxu0 %v4045_v32  ;;  %v4155_v25 = vld [vmem:[%s6000_s1 + $0x234] ss:$8 sps:$4 sm:$0xff]   ;;  %v4153_v29 = vld [vmem:[%s6000_s1 + $0x230] ss:$8 sps:$4 sm:$0xff]   ;;  %v4173_v30 = vld [vmem:[%s6000_s1 + $0x224] ss:$8 sps:$4 sm:$0xff]  }
  0x2b   : > { %2324 = vmatprep.subr.bf16.mxu1 %v4047_v33  ;;  %v4119_v26 = vld [vmem:[%s4612_s12 + $0x78] ss:$28 sps:$4 sm:$0xff]   ;;  %v4171_v31 = vld [vmem:[%s6000_s1 + $0x220] ss:$8 sps:$4 sm:$0xff]   ;;  %s3987_s11 = smul.u32 208, %s6183_s16 }
  0x2c   : > { %v4122_v28 = vld [vmem:[%s4612_s12 + $0xb4] ss:$28 sps:$4 sm:$0xff]   ;;  %v4124_v32 = vld [vmem:[%s4612_s12 + $0xa8] ss:$28 sps:$4 sm:$0xff]  }
  0x2d   : > { %2032 = vmatpush2.bf16.msra.mxu0 %v4049_v34  ;;  %v4182_v33 = vld [vmem:[%s6000_s1 + $0x214] ss:$8 sps:$4 sm:$0xff]   ;;  %v4189_v34 = vld [vmem:[%s6000_s1 + $0x340] ss:$8 sps:$4 sm:$0xff]   ;;  %s5788_s14 = scalar_lea.vmem %s6003_s4, %s3987_s11 }
  0x2e   : > { %2325 = vmatpush2.bf16.msra.mxu1 %v4050_v35  ;;  %2033 = vmatprep.subr.bf16.mxu0 %v4051_v36  ;;  %v4191_v35 = vld [vmem:[%s6000_s1 + $0x344] ss:$8 sps:$4 sm:$0xff]   ;;  %v4218_v49 = vld [vmem:[%s6000_s1 + $0x334] ss:$8 sps:$4 sm:$0xff]   ;;  %v4225_v51 = vld [vmem:[%s6000_s1 + $0x2e0] ss:$8 sps:$4 sm:$0xff]  }
  0x2f   : > { %2326 = vmatprep.subr.bf16.mxu1 %v4053_v37  ;;  %v4125_v36 = vld [vmem:[%s4612_s12 + $0xb0] ss:$28 sps:$4 sm:$0xff]   ;;  %v4132_v37 = vld [vmem:[%s4612_s12 + $0xe4] ss:$28 sps:$4 sm:$0xff]  }
  0x31   : > { %2034 = vmatpush2.bf16.msra.mxu0 %v4055_v38  ;;  %v4134_v38 = vld [vmem:[%s4612_s12 + $0xec] ss:$28 sps:$4 sm:$0xff]  }
  0x32   : > { %2327 = vmatpush2.bf16.msra.mxu1 %v4056_v39  ;;  %2035 = vmatprep.subr.bf16.mxu0 %v4057_v40  ;;  %v4180_v39 = vld [vmem:[%s6000_s1 + $0x210] ss:$8 sps:$4 sm:$0xff]   ;;  %v4200_v40 = vld [vmem:[%s6000_s1 + $0x204] ss:$8 sps:$4 sm:$0xff]  }
  0x33   : > { %2328 = vmatprep.subr.bf16.mxu1 %v4059_v41  ;;  %v4198_v41 = vld [vmem:[%s6000_s1 + $0x200] ss:$8 sps:$4 sm:$0xff]  }
  0x35   : > { %2036 = vmatpush2.bf16.msra.mxu0 %v4061_v42  ;;  %v4136_v42 = vld [vmem:[%s4612_s12 + $0xe0] ss:$28 sps:$4 sm:$0xff]  }
  0x36   : > { %2329 = vmatpush2.bf16.msra.mxu1 %v4062_v43  ;;  %2037 = vmatprep.subr.bf16.mxu0 %v4063_v44  ;;  %v4137_v43 = vld [vmem:[%s4612_s12 + $0xe8] ss:$28 sps:$4 sm:$0xff]   ;;  %v4138_v44 = vld [vmem:[%s4612_s12 + $0x11c] ss:$28 sps:$4 sm:$0xff]  }
  0x37   : > { %2330 = vmatprep.subr.bf16.mxu1 %v4065_v45  ;;  %v4140_v45 = vld [vmem:[%s4612_s12 + $0x124] ss:$28 sps:$4 sm:$0xff]  }
  0x39   : > { %2038 = vmatpush2.bf16.msra.mxu0 %v4067_v46  ;;  %v4213_v46 = vld [vmem:[%s6000_s1 + $0x2f0] ss:$8 sps:$4 sm:$0xff]  }
  0x3a   : > { %2331 = vmatpush2.bf16.msra.mxu1 %v4068_v47  ;;  %2039 = vmatprep.subr.bf16.mxu0 %v4069_v48  ;;  %v4215_v47 = vld [vmem:[%s6000_s1 + $0x2f4] ss:$8 sps:$4 sm:$0xff]   ;;  %v4216_v48 = vld [vmem:[%s6000_s1 + $0x330] ss:$8 sps:$4 sm:$0xff]  }
  0x3b   : > { %2332 = vmatprep.subr.bf16.mxu1 %v4071_v50  ;;  %v4145_v50 = vld [vmem:[%s4612_s12 + $0x118] ss:$28 sps:$4 sm:$0xff]  }
  0x3d   : > { %2040 = vmatpush2.bf16.msra.mxu0 %v4073_v52  ;;  %v4227_v52 = vld [vmem:[%s6000_s1 + $0x2e4] ss:$8 sps:$4 sm:$0xff]  }
  0x3e   : > { %2333 = vmatpush2.bf16.msra.mxu1 %v4074_v53  ;;  %2041 = vmatprep.subr.bf16.mxu0 %v4075_v54  ;;  %v4146_v53 = vld [vmem:[%s4612_s12 + $0x120] ss:$28 sps:$4 sm:$0xff]   ;;  %v4147_v54 = vld [vmem:[%s4612_s12 + $0x154] ss:$28 sps:$4 sm:$0xff]  }
  0x3f   : > { %2334 = vmatprep.subr.bf16.mxu1 %v4077_v55  ;;  %v4149_v55 = vld [vmem:[%s4612_s12 + $0x15c] ss:$28 sps:$4 sm:$0xff]  }
  0x41   : > { %2042 = vmatpush2.bf16.msra.mxu0 %v4079_v56  ;;  %v4240_v56 = vld [vmem:[%s6000_s1 + $0x2d0] ss:$8 sps:$4 sm:$0xff]  }
  0x42   : > { %2335 = vmatpush2.bf16.msra.mxu1 %v4080_v57  ;;  %2043 = vmatprep.subr.bf16.mxu0 %v4081_v58  ;;  %v4151_v57 = vld [vmem:[%s4612_s12 + $0x150] ss:$28 sps:$4 sm:$0xff]   ;;  %v4242_v58 = vld [vmem:[%s6000_s1 + $0x2d4] ss:$8 sps:$4 sm:$0xff]  }
  0x43   : > { %2336 = vmatprep.subr.bf16.mxu1 %v4083_v59  ;;  %v4243_v59 = vld [vmem:[%s6000_s1 + $0x320] ss:$8 sps:$4 sm:$0xff]  }
  0x45   : > { %2044 = vmatpush2.bf16.msra.mxu0 %v4085_v60  ;;  %v4245_v60 = vld [vmem:[%s6000_s1 + $0x324] ss:$8 sps:$4 sm:$0xff]  }
  0x46   : > { %2337 = vmatpush2.bf16.msra.mxu1 %v4086_v61  ;;  %2045 = vmatprep.subr.bf16.mxu0 %v4087_v62  ;;  %v4152_v61 = vld [vmem:[%s4612_s12 + $0x158] ss:$28 sps:$4 sm:$0xff]   ;;  %v4159_v62 = vld [vmem:[%s4612_s12 + $0x18c] ss:$28 sps:$4 sm:$0xff]  }
  0x47   : > { %2338 = vmatprep.subr.bf16.mxu1 %v4089_v63  ;;  %v4161_v63 = vld [vmem:[%s4612_s12 + $0x194] ss:$28 sps:$4 sm:$0xff]  }
  0x49   : > { %2046 = vmatpush2.bf16.msra.mxu0 %v4091_v0  ;;  %v4256_v0 = vld [vmem:[%s6000_s1 + $0x2c0] ss:$8 sps:$4 sm:$0xff]  }
  0x4a   : > { %2339 = vmatpush2.bf16.msra.mxu1 %v4092_v1  ;;  %2601 = vmatprep.subr.bf16.mxu0 %v4101_v2  ;;  %v4258_v1 = vld [vmem:[%s6000_s1 + $0x2c4] ss:$8 sps:$4 sm:$0xff]  }
  0x4b   : > { %2894 = vmatprep.subr.bf16.mxu1 %v4104_v3  ;;  %v4163_v2 = vld [vmem:[%s4612_s12 + $0x188] ss:$28 sps:$4 sm:$0xff]   ;;  %v4164_v3 = vld [vmem:[%s4612_s12 + $0x190] ss:$28 sps:$4 sm:$0xff]  }
  0x4c   : > { %2048 = vmatmul.mubr.bf16.vlgmr.msra.gmra.mxu0 %v4093_v4  ;;  %v4165_v4 = vld [vmem:[%s4612_s12 + $0x1c4] ss:$28 sps:$4 sm:$0xff]  }
  0x4d   : > { %2341 = vmatmul.mubr.bf16.vlgmr.msra.gmra.mxu1 %v4096_v5  ;;  %2602 = vmatpush1.bf16.msra.mxu0 %v4099_v6  ;;  %v4167_v5 = vld [vmem:[%s4612_s12 + $0x1cc] ss:$28 sps:$4 sm:$0xff]   ;;  %v4267_v6 = vld [vmem:[%s6000_s1 + $0x2b0] ss:$8 sps:$4 sm:$0xff]  }
  0x4e   : > { %2895 = vmatpush1.bf16.msra.mxu1 %v4102_v7  ;;  %2057 = vmatprep.mubr.bf16.mxu0 %v4105_v8  ;;  %v4269_v7 = vld [vmem:[%s6000_s1 + $0x2b4] ss:$8 sps:$4 sm:$0xff]   ;;  %v4270_v8 = vld [vmem:[%s6000_s1 + $0x310] ss:$8 sps:$4 sm:$0xff]  }
  0x4f   : > { %2350 = vmatprep.mubr.bf16.mxu1 %v4107_v9  ;;  %2603 = vmatprep.subr.bf16.mxu0 %v4113_v10  ;;  %v4272_v9 = vld [vmem:[%s6000_s1 + $0x314] ss:$8 sps:$4 sm:$0xff]  }
  0x50   : > { %2896 = vmatprep.subr.bf16.mxu1 %v4131_v11  ;;  %v4169_v10 = vld [vmem:[%s4612_s12 + $0x1c0] ss:$28 sps:$4 sm:$0xff]   ;;  %v4170_v11 = vld [vmem:[%s4612_s12 + $0x1c8] ss:$28 sps:$4 sm:$0xff]  }
  0x51   : > { %2604 = vmatpush1.bf16.msra.mxu0 %v4111_v12  ;;  %v4174_v12 = vld [vmem:[%s4612_s12 + $0x1fc] ss:$28 sps:$4 sm:$0xff]  }
  0x52   : > { %2897 = vmatpush1.bf16.msra.mxu1 %v4129_v13  ;;  %2605 = vmatprep.subr.bf16.mxu0 %v4128_v15  ;;  %v4176_v13 = vld [vmem:[%s4612_s12 + $0x204] ss:$28 sps:$4 sm:$0xff]  }
  0x53   : > { %2898 = vmatprep.subr.bf16.mxu1 %v4158_v19  ;;  %v4285_v15 = vld [vmem:[%s6000_s1 + $0x2a0] ss:$8 sps:$4 sm:$0xff]  }
  0x54   : > { %2058 = vmatmul.mubr.bf16.gmra.mxu0 %v4109_v14  ;;  %v4287_v14 = vld [vmem:[%s6000_s1 + $0x2a4] ss:$8 sps:$4 sm:$0xff]   ;;  %v4179_v19 = vld [vmem:[%s4612_s12 + $0x200] ss:$28 sps:$4 sm:$0xff]  }
  0x55   : > { %2351 = vmatmul.mubr.bf16.gmra.mxu1 %v4110_v16  ;;  %2067 = vmatprep.mubr.bf16.mxu0 %v4114_v17  ;;  %v4296_v16 = vld [vmem:[%s6000_s1 + $0x294] ss:$8 sps:$4 sm:$0xff]   ;;  %v4294_v17 = vld [vmem:[%s6000_s1 + $0x290] ss:$8 sps:$4 sm:$0xff]  }
  0x56   : > { %2360 = vmatprep.mubr.bf16.mxu1 %v4116_v18  ;;  %2606 = vmatpush1.bf16.msra.mxu0 %v4126_v20  ;;  %v4178_v18 = vld [vmem:[%s4612_s12 + $0x1f8] ss:$28 sps:$4 sm:$0xff]  }
  0x57   : > { %2899 = vmatpush1.bf16.msra.mxu1 %v4156_v21  ;;  %2607 = vmatprep.subr.bf16.mxu0 %v4144_v22  ;;  %v4183_v20 = vld [vmem:[%s4612_s12 + $0x234] ss:$28 sps:$4 sm:$0xff]   ;;  %v4185_v21 = vld [vmem:[%s4612_s12 + $0x23c] ss:$28 sps:$4 sm:$0xff]   ;;  %v4305_v22 = vld [vmem:[%s6000_s1 + $0x304] ss:$8 sps:$4 sm:$0xff]  }
  0x58   : > { %2900 = vmatprep.subr.bf16.mxu1 %v4191_v35  ;;  %v4206_v35 = vld [vmem:[%s4612_s12 + $0x2a8] ss:$28 sps:$4 sm:$0xff]  }
  0x5a   : > { %2608 = vmatpush1.bf16.msra.mxu0 %v4142_v23  ;;  %v4303_v23 = vld [vmem:[%s6000_s1 + $0x300] ss:$8 sps:$4 sm:$0xff]  }
  0x5b   : > { %2609 = vmatprep.subr.bf16.mxu0 %v4155_v25  ;;  %2901 = vmatpush1.bf16.msra.mxu1 %v4189_v34  ;;  %v4314_v25 = vld [vmem:[%s6000_s1 + $0x284] ss:$8 sps:$4 sm:$0xff]   ;;  %v4205_v34 = vld [vmem:[%s4612_s12 + $0x2a0] ss:$28 sps:$4 sm:$0xff]  }
  0x5c   : > { %2068 = vmatmul.mubr.bf16.gmra.mxu0 %v4118_v24  ;;  %2902 = vmatprep.subr.bf16.mxu1 %v4218_v49  ;;  %v4312_v24 = vld [vmem:[%s6000_s1 + $0x280] ss:$8 sps:$4 sm:$0xff]  }
  0x5d   : > { %2361 = vmatmul.mubr.bf16.gmra.mxu1 %v4119_v26  ;;  %2077 = vmatprep.mubr.bf16.mxu0 %v4120_v27  ;;  %v4187_v26 = vld [vmem:[%s4612_s12 + $0x230] ss:$28 sps:$4 sm:$0xff]   ;;  %v4188_v27 = vld [vmem:[%s4612_s12 + $0x238] ss:$28 sps:$4 sm:$0xff]  }
  0x5e   : > { %2370 = vmatprep.mubr.bf16.mxu1 %v4122_v28  ;;  %2610 = vmatpush1.bf16.msra.mxu0 %v4153_v29  ;;  %v4192_v28 = vld [vmem:[%s4612_s12 + $0x26c] ss:$28 sps:$4 sm:$0xff]   ;;  %v4194_v29 = vld [vmem:[%s4612_s12 + $0x274] ss:$28 sps:$4 sm:$0xff]  }
  0x5f   : > { %2611 = vmatprep.subr.bf16.mxu0 %v4173_v30  ;;  %2903 = vmatpush1.bf16.msra.mxu1 %v4216_v48  ;;  %v4196_v30 = vld [vmem:[%s4612_s12 + $0x268] ss:$28 sps:$4 sm:$0xff]  }
  0x60   : > { %2904 = vmatprep.subr.bf16.mxu1 %v4245_v60  ;;  %v4234_v48 = vld [vmem:[%s4612_s12 + $0x384] ss:$28 sps:$4 sm:$0xff]   ;;  %v4236_v49 = vld [vmem:[%s4612_s12 + $0x38c] ss:$28 sps:$4 sm:$0xff]  }
  0x61   : > { %v4261_v60 = vld [vmem:[%s4612_s12 + $0x42c] ss:$28 sps:$4 sm:$0xff]  }
  0x62   : > { %2612 = vmatpush1.bf16.msra.mxu0 %v4171_v31  ;;  %v4197_v31 = vld [vmem:[%s4612_s12 + $0x270] ss:$28 sps:$4 sm:$0xff]  }
  0x63   : > { %2613 = vmatprep.subr.bf16.mxu0 %v4182_v33  ;;  %2905 = vmatpush1.bf16.msra.mxu1 %v4243_v59  ;;  %v4203_v33 = vld [vmem:[%s4612_s12 + $0x2ac] ss:$28 sps:$4 sm:$0xff]   ;;  %v4260_v59 = vld [vmem:[%s4612_s12 + $0x3f8] ss:$28 sps:$4 sm:$0xff]  }
  0x64   : > { %2078 = vmatmul.mubr.bf16.gmra.mxu0 %v4124_v32  ;;  %2906 = vmatprep.subr.bf16.mxu1 %v4272_v9  ;;  %v4201_v32 = vld [vmem:[%s4612_s12 + $0x2a4] ss:$28 sps:$4 sm:$0xff]   ;;  %v4290_v9 = vld [vmem:[%s4612_s12 + $0x4dc] ss:$28 sps:$4 sm:$0xff]  }
  0x65   : > { %2371 = vmatmul.mubr.bf16.gmra.mxu1 %v4125_v36  ;;  %2087 = vmatprep.mubr.bf16.mxu0 %v4132_v37  ;;  %v4207_v36 = vld [vmem:[%s4612_s12 + $0x2dc] ss:$28 sps:$4 sm:$0xff]   ;;  %v4209_v37 = vld [vmem:[%s4612_s12 + $0x2e4] ss:$28 sps:$4 sm:$0xff]  }
  0x66   : > { %2380 = vmatprep.mubr.bf16.mxu1 %v4134_v38  ;;  %2614 = vmatpush1.bf16.msra.mxu0 %v4180_v39  ;;  %v4211_v38 = vld [vmem:[%s4612_s12 + $0x2d8] ss:$28 sps:$4 sm:$0xff]   ;;  %v4212_v39 = vld [vmem:[%s4612_s12 + $0x2e0] ss:$28 sps:$4 sm:$0xff]  }
  0x67   : > { %2615 = vmatprep.subr.bf16.mxu0 %v4200_v40  ;;  %2907 = vmatpush1.bf16.msra.mxu1 %v4270_v8  ;;  %v4219_v40 = vld [vmem:[%s4612_s12 + $0x314] ss:$28 sps:$4 sm:$0xff]  }
  0x68   : > { %2908 = vmatprep.subr.bf16.mxu1 %v4305_v22  ;;  %v4288_v8 = vld [vmem:[%s4612_s12 + $0x4d4] ss:$28 sps:$4 sm:$0xff]  }
  0x6a   : > { %2616 = vmatpush1.bf16.msra.mxu0 %v4198_v41  ;;  %v4221_v41 = vld [vmem:[%s4612_s12 + $0x31c] ss:$28 sps:$4 sm:$0xff]  }
  0x6b   : > { %2617 = vmatprep.subr.bf16.mxu0 %v4215_v47  ;;  %2909 = vmatpush1.bf16.msra.mxu1 %v4303_v23  ;;  %v4233_v47 = vld [vmem:[%s4612_s12 + $0x350] ss:$28 sps:$4 sm:$0xff]  }
  0x6c   : > { %2088 = vmatmul.mubr.bf16.gmra.mxu0 %v4136_v42  ;;  %v4223_v42 = vld [vmem:[%s4612_s12 + $0x310] ss:$28 sps:$4 sm:$0xff]  }
  0x6d   : > { %2381 = vmatmul.mubr.bf16.gmra.mxu1 %v4137_v43  ;;  %2097 = vmatprep.mubr.bf16.mxu0 %v4138_v44  ;;  %v4224_v43 = vld [vmem:[%s4612_s12 + $0x318] ss:$28 sps:$4 sm:$0xff]   ;;  %v4228_v44 = vld [vmem:[%s4612_s12 + $0x34c] ss:$28 sps:$4 sm:$0xff]  }
  0x6e   : > { %2390 = vmatprep.mubr.bf16.mxu1 %v4140_v45  ;;  %2618 = vmatpush2.bf16.msra.mxu0 %v4213_v46  ;;  %v4230_v45 = vld [vmem:[%s4612_s12 + $0x354] ss:$28 sps:$4 sm:$0xff]   ;;  %v4232_v46 = vld [vmem:[%s4612_s12 + $0x348] ss:$28 sps:$4 sm:$0xff]  }
  0x6f   : > { %2619 = vmatprep.subr.bf16.mxu0 %v4227_v52  ;;  %v4246_v52 = vld [vmem:[%s4612_s12 + $0x3bc] ss:$28 sps:$4 sm:$0xff]  }
  0x72   : > { %2620 = vmatpush2.bf16.msra.mxu0 %v4225_v51  ;;  %v4239_v51 = vld [vmem:[%s4612_s12 + $0x388] ss:$28 sps:$4 sm:$0xff]  }
  0x73   : > { %2621 = vmatprep.subr.bf16.mxu0 %v4242_v58  ;;  %v4259_v58 = vld [vmem:[%s4612_s12 + $0x3f0] ss:$28 sps:$4 sm:$0xff]  }
  0x74   : > { %2098 = vmatmul.mubr.bf16.gmra.mxu0 %v4145_v50  ;;  %v4238_v50 = vld [vmem:[%s4612_s12 + $0x380] ss:$28 sps:$4 sm:$0xff]  }
  0x75   : > { %2391 = vmatmul.mubr.bf16.gmra.mxu1 %v4146_v53  ;;  %2107 = vmatprep.mubr.bf16.mxu0 %v4147_v54  ;;  %v4248_v53 = vld [vmem:[%s4612_s12 + $0x3c4] ss:$28 sps:$4 sm:$0xff]   ;;  %v4250_v54 = vld [vmem:[%s4612_s12 + $0x3b8] ss:$28 sps:$4 sm:$0xff]  }
  0x76   : > { %2400 = vmatprep.mubr.bf16.mxu1 %v4149_v55  ;;  %2622 = vmatpush2.bf16.msra.mxu0 %v4240_v56  ;;  %v4251_v55 = vld [vmem:[%s4612_s12 + $0x3c0] ss:$28 sps:$4 sm:$0xff]   ;;  %v4252_v56 = vld [vmem:[%s4612_s12 + $0x3f4] ss:$28 sps:$4 sm:$0xff]  }
  0x77   : > { %2623 = vmatprep.subr.bf16.mxu0 %v4258_v1  ;;  %v4275_v1 = vld [vmem:[%s4612_s12 + $0x46c] ss:$28 sps:$4 sm:$0xff]  }
  0x7a   : > { %2624 = vmatpush2.bf16.msra.mxu0 %v4256_v0  ;;  %v4273_v0 = vld [vmem:[%s4612_s12 + $0x464] ss:$28 sps:$4 sm:$0xff]  }
  0x7b   : > { %2625 = vmatprep.subr.bf16.mxu0 %v4269_v7  ;;  %v4284_v7 = vld [vmem:[%s4612_s12 + $0x4a0] ss:$28 sps:$4 sm:$0xff]  }
  0x7c   : > { %2108 = vmatmul.mubr.bf16.gmra.mxu0 %v4151_v57  ;;  %v4254_v57 = vld [vmem:[%s4612_s12 + $0x3fc] ss:$28 sps:$4 sm:$0xff]  }
  0x7d   : > { %2401 = vmatmul.mubr.bf16.gmra.mxu1 %v4152_v61  ;;  %2117 = vmatprep.mubr.bf16.mxu0 %v4159_v62  ;;  %v4263_v61 = vld [vmem:[%s4612_s12 + $0x434] ss:$28 sps:$4 sm:$0xff]   ;;  %v4265_v62 = vld [vmem:[%s4612_s12 + $0x428] ss:$28 sps:$4 sm:$0xff]  }
  0x7e   : > { %2410 = vmatprep.mubr.bf16.mxu1 %v4161_v63  ;;  %2626 = vmatpush2.bf16.msra.mxu0 %v4267_v6  ;;  %v4266_v63 = vld [vmem:[%s4612_s12 + $0x430] ss:$28 sps:$4 sm:$0xff]   ;;  %v4283_v6 = vld [vmem:[%s4612_s12 + $0x498] ss:$28 sps:$4 sm:$0xff]  }
  0x7f   : > { %2627 = vmatprep.subr.bf16.mxu0 %v4287_v14  ;;  %v4301_v14 = vld [vmem:[%s4612_s12 + $0x508] ss:$28 sps:$4 sm:$0xff]  }
  0x82   : > { %2628 = vmatpush2.bf16.msra.mxu0 %v4285_v15  ;;  %v4302_v15 = vld [vmem:[%s4612_s12 + $0x510] ss:$28 sps:$4 sm:$0xff]  }
  0x83   : > { %2629 = vmatprep.subr.bf16.mxu0 %v4296_v16  ;;  %v4306_v16 = vld [vmem:[%s4612_s12 + $0x544] ss:$28 sps:$4 sm:$0xff]  }
  0x84   : > { %2118 = vmatmul.mubr.bf16.gmra.mxu0 %v4163_v2  ;;  %v4277_v2 = vld [vmem:[%s4612_s12 + $0x460] ss:$28 sps:$4 sm:$0xff]  }
  0x85   : > { %2411 = vmatmul.mubr.bf16.gmra.mxu1 %v4164_v3  ;;  %2127 = vmatprep.mubr.bf16.mxu0 %v4165_v4  ;;  %v4278_v3 = vld [vmem:[%s4612_s12 + $0x468] ss:$28 sps:$4 sm:$0xff]   ;;  %v4279_v4 = vld [vmem:[%s4612_s12 + $0x49c] ss:$28 sps:$4 sm:$0xff]  }
  0x86   : > { %2420 = vmatprep.mubr.bf16.mxu1 %v4167_v5  ;;  %2630 = vmatpush2.bf16.msra.mxu0 %v4294_v17  ;;  %v4281_v5 = vld [vmem:[%s4612_s12 + $0x4a4] ss:$28 sps:$4 sm:$0xff]   ;;  %v4308_v17 = vld [vmem:[%s4612_s12 + $0x54c] ss:$28 sps:$4 sm:$0xff]  }
  0x87   : > { %2631 = vmatprep.subr.bf16.mxu0 %v4314_v25 }
  0x8a   : > { %2632 = vmatpush2.bf16.msra.mxu0 %v4312_v24 }
  0x8c   : > { %2128 = vmatmul.mubr.bf16.gmra.mxu0 %v4169_v10  ;;  %v4292_v10 = vld [vmem:[%s4612_s12 + $0x4d0] ss:$28 sps:$4 sm:$0xff]  }
  0x8d   : > { %2421 = vmatmul.mubr.bf16.gmra.mxu1 %v4170_v11  ;;  %2137 = vmatprep.mubr.bf16.mxu0 %v4174_v12  ;;  %v4293_v11 = vld [vmem:[%s4612_s12 + $0x4d8] ss:$28 sps:$4 sm:$0xff]   ;;  %v4297_v12 = vld [vmem:[%s4612_s12 + $0x50c] ss:$28 sps:$4 sm:$0xff]  }
  0x8e   : > { %2430 = vmatprep.mubr.bf16.mxu1 %v4176_v13  ;;  %v4299_v13 = vld [vmem:[%s4612_s12 + $0x514] ss:$28 sps:$4 sm:$0xff]  }
  0x94   : > { %2138 = vmatmul.mubr.bf16.gmra.mxu0 %v4178_v18  ;;  %v4310_v18 = vld [vmem:[%s4612_s12 + $0x540] ss:$28 sps:$4 sm:$0xff]  }
  0x95   : > { %2431 = vmatmul.mubr.bf16.gmra.mxu1 %v4179_v19  ;;  %2147 = vmatprep.mubr.bf16.mxu0 %v4183_v20  ;;  %v4311_v19 = vld [vmem:[%s4612_s12 + $0x548] ss:$28 sps:$4 sm:$0xff]   ;;  %v4315_v20 = vld [vmem:[%s4612_s12 + $0x57c] ss:$28 sps:$4 sm:$0xff]  }
  0x96   : > { %2440 = vmatprep.mubr.bf16.mxu1 %v4185_v21  ;;  %v4317_v21 = vld [vmem:[%s4612_s12 + $0x584] ss:$28 sps:$4 sm:$0xff]  }
  0x9c   : > { %2148 = vmatmul.mubr.bf16.gmra.mxu0 %v4187_v26 }
  0x9d   : > { %2441 = vmatmul.mubr.bf16.gmra.mxu1 %v4188_v27  ;;  %2157 = vmatprep.mubr.bf16.mxu0 %v4192_v28 }
  0x9e   : > { %2450 = vmatprep.mubr.bf16.mxu1 %v4194_v29 }
  0xa4   : > { %2158 = vmatmul.mubr.bf16.gmra.mxu0 %v4196_v30  ;;  %v4319_v30 = vld [vmem:[%s4612_s12 + $0x578] ss:$28 sps:$4 sm:$0xff]  }
  0xa5   : > { %2451 = vmatmul.mubr.bf16.gmra.mxu1 %v4197_v31  ;;  %2167 = vmatprep.mubr.bf16.mxu0 %v4201_v32  ;;  %v4320_v31 = vld [vmem:[%s4612_s12 + $0x580] ss:$28 sps:$4 sm:$0xff]  }
  0xa6   : > { %2460 = vmatprep.mubr.bf16.mxu1 %v4203_v33  ;;  %v4323_v33 = vld [vmem:[%s4612_s12 + $0x14] ss:$28 sps:$4 sm:$0xff]  }
  0xac   : > { %2168 = vmatmul.mubr.bf16.gmra.mxu0 %v4205_v34 }
  0xad   : > { %2461 = vmatmul.mubr.bf16.gmra.mxu1 %v4206_v35  ;;  %2177 = vmatprep.mubr.bf16.mxu0 %v4207_v36 }
  0xae   : > { %2470 = vmatprep.mubr.bf16.mxu1 %v4209_v37 }
  0xb4   : > { %2178 = vmatmul.mubr.bf16.gmra.mxu0 %v4211_v38 }
  0xb5   : > { %2471 = vmatmul.mubr.bf16.gmra.mxu1 %v4212_v39  ;;  %2187 = vmatprep.mubr.bf16.mxu0 %v4219_v40  ;;  %v4433_v40 = vmov 0  }
  0xb6   : > { %2480 = vmatprep.mubr.bf16.mxu1 %v4221_v41 }
  0xbc   : > { %2188 = vmatmul.mubr.bf16.gmra.mxu0 %v4223_v42 }
  0xbd   : > { %2481 = vmatmul.mubr.bf16.gmra.mxu1 %v4224_v43  ;;  %2197 = vmatprep.mubr.bf16.mxu0 %v4228_v44 }
  0xbe   : > { %2490 = vmatprep.mubr.bf16.mxu1 %v4230_v45 }
  0xc4   : > { %2198 = vmatmul.mubr.bf16.gmra.mxu0 %v4232_v46  ;;  %v4321_v46 = vld [vmem:[%s4612_s12 + $0x10] ss:$28 sps:$4 sm:$0xff]  }
  0xc5   : > { %2491 = vmatmul.mubr.bf16.gmra.mxu1 %v4233_v47  ;;  %2207 = vmatprep.mubr.bf16.mxu0 %v4234_v48  ;;  %v4324_v47 = vld [vmem:[%s4612_s12 + $0x18] ss:$28 sps:$4 sm:$0xff]  }
  0xc6   : > { %2500 = vmatprep.mubr.bf16.mxu1 %v4236_v49  ;;  %v4325_v49 = vld [vmem:[%s4612_s12 + $0x4c] ss:$28 sps:$4 sm:$0xff]  }
  0xcc   : > { %2208 = vmatmul.mubr.bf16.gmra.mxu0 %v4238_v50 }
  0xcd   : > { %2501 = vmatmul.mubr.bf16.gmra.mxu1 %v4239_v51  ;;  %2217 = vmatprep.mubr.bf16.mxu0 %v4246_v52 }
  0xce   : > { %2510 = vmatprep.mubr.bf16.mxu1 %v4248_v53 }
  0xd4   : > { %2218 = vmatmul.mubr.bf16.gmra.mxu0 %v4250_v54 }
  0xd5   : > { %2511 = vmatmul.mubr.bf16.gmra.mxu1 %v4251_v55  ;;  %2227 = vmatprep.mubr.bf16.mxu0 %v4252_v56 }
  0xd6   : > { %2520 = vmatprep.mubr.bf16.mxu1 %v4254_v57 }
  0xdc   : > { %2228 = vmatmul.mubr.bf16.gmra.mxu0 %v4259_v58 }
  0xdd   : > { %2521 = vmatmul.mubr.bf16.gmra.mxu1 %v4260_v59  ;;  %2237 = vmatprep.mubr.bf16.mxu0 %v4261_v60 }
  0xde   : > { %2530 = vmatprep.mubr.bf16.mxu1 %v4263_v61  ;;  %v4327_v61 = vld [vmem:[%s4612_s12 + $0x48] ss:$28 sps:$4 sm:$0xff]  }
  0xe4   : > { %2238 = vmatmul.mubr.bf16.gmra.mxu0 %v4265_v62  ;;  %v4328_v62 = vld [vmem:[%s4612_s12 + $0x50] ss:$28 sps:$4 sm:$0xff]  }
  0xe5   : > { %2531 = vmatmul.mubr.bf16.gmra.mxu1 %v4266_v63  ;;  %2247 = vmatprep.mubr.bf16.mxu0 %v4273_v0  ;;  %v4331_v0 = vld [vmem:[%s4612_s12 + $0x84] ss:$28 sps:$4 sm:$0xff]  }
  0xe6   : > { %2540 = vmatprep.mubr.bf16.mxu1 %v4275_v1 }
  0xec   : > { %2248 = vmatmul.mubr.bf16.gmra.mxu0 %v4277_v2 }
  0xed   : > { %2541 = vmatmul.mubr.bf16.gmra.mxu1 %v4278_v3  ;;  %2257 = vmatprep.mubr.bf16.mxu0 %v4279_v4 }
  0xee   : > { %2550 = vmatprep.mubr.bf16.mxu1 %v4281_v5 }
  0xf4   : > { %2258 = vmatmul.mubr.bf16.gmra.mxu0 %v4283_v6 }
  0xf5   : > { %2551 = vmatmul.mubr.bf16.gmra.mxu1 %v4284_v7  ;;  %2267 = vmatprep.mubr.bf16.mxu0 %v4288_v8 }
  0xf6   : > { %2560 = vmatprep.mubr.bf16.mxu1 %v4290_v9 }
  0xfc   : > { %2268 = vmatmul.mubr.bf16.gmra.mxu0 %v4292_v10 }
  0xfd   : > { %2561 = vmatmul.mubr.bf16.gmra.mxu1 %v4293_v11  ;;  %2277 = vmatprep.mubr.bf16.mxu0 %v4297_v12  ;;  %v4329_v12 = vld [vmem:[%s4612_s12 + $0x80] ss:$28 sps:$4 sm:$0xff]  }
  0xfe   : > { %2570 = vmatprep.mubr.bf16.mxu1 %v4299_v13  ;;  %v4332_v13 = vld [vmem:[%s4612_s12 + $0x88] ss:$28 sps:$4 sm:$0xff]  }
 0x104   : > { %2278 = vmatmul.mubr.bf16.gmra.mxu0 %v4301_v14 }
 0x105   : > { %2571 = vmatmul.mubr.bf16.gmra.mxu1 %v4302_v15  ;;  %2287 = vmatprep.mubr.bf16.mxu0 %v4306_v16  ;;  %v4335_v15 = vld [vmem:[%s4612_s12 + $0xbc] ss:$28 sps:$4 sm:$0xff]  }
 0x106   : > { %2580 = vmatprep.mubr.bf16.mxu1 %v4308_v17 }
 0x10c   : > { %v2049_v22 = vpop.f32.mrf.mxu0  ;;  %2288 = vmatmul.mubr.bf16.gmra.mxu0 %v4310_v18 }
 0x10d   : > { %v2342_v23 = vpop.f32.mrf.mxu1  ;;  %2581 = vmatmul.mubr.bf16.gmra.mxu1 %v4311_v19  ;;  %2297 = vmatprep.mubr.bf16.mxu0 %v4315_v20 }
 0x10e   : > { %v4917_v24 = vadd.f32 %v2342_v23, %v2049_v22  ;;  %2590 = vmatprep.mubr.bf16.mxu1 %v4317_v21  ;;  %v2051_v25 = vpop.f32.mrf.mxu0 }
 0x10f   : > { %v2344_v26 = vpop.f32.mrf.mxu1 }
 0x110   : > { %v4919_v27 = vadd.f32 %v2344_v26, %v2051_v25  ;;  %v2053_v28 = vpop.f32.mrf.mxu0 }
 0x111   : > { %v2346_v29 = vpop.f32.mrf.mxu1 }
 0x112   : > { %v4923_v32 = vadd.f32 %v2346_v29, %v2053_v28  ;;  %v2055_v34 = vpop.f32.mrf.mxu0  ;;  %v4333_v29 = vld [vmem:[%s4612_s12 + $0xb8] ss:$28 sps:$4 sm:$0xff]  }
 0x113   : > { %v2348_v35 = vpop.f32.mrf.mxu1 }
 0x114   : > { %v4926_v36 = vadd.f32 %v2348_v35, %v2055_v34  ;;  %v2059_v37 = vpop.f32.mrf.mxu0  ;;  %2298 = vmatmul.mubr.bf16.gmra.mxu0 %v4319_v30  ;;  %v4336_v30 = vld [vmem:[%s4612_s12 + $0xc0] ss:$28 sps:$4 sm:$0xff]  }
 0x115   : > { %v2352_v38 = vpop.f32.mrf.mxu1  ;;  %2591 = vmatmul.mubr.bf16.gmra.mxu1 %v4320_v31  ;;  %2633 = vmatprep.mubr.bf16.mxu0 %v4323_v33  ;;  %v4339_v33 = vld [vmem:[%s4612_s12 + $0xf4] ss:$28 sps:$4 sm:$0xff]  }
 0x116   : > { %v4928_v39 = vadd.f32 %v2352_v38, %v2059_v37  ;;  %2926 = vmatprep.mubr.bf16.mxu1 %v4433_v40  ;;  %v2061_v41 = vpop.f32.mrf.mxu0 }
 0x117   : > { %v2354_v42 = vpop.f32.mrf.mxu1 }
 0x118   : > { %v4931_v43 = vadd.f32 %v2354_v42, %v2061_v41  ;;  %v2063_v44 = vpop.f32.mrf.mxu0 }
 0x119   : > { %v2356_v45 = vpop.f32.mrf.mxu1 }
 0x11a   : > { %v4935_v48 = vadd.f32 %v2356_v45, %v2063_v44  ;;  %v2065_v50 = vpop.f32.mrf.mxu0 }
 0x11b   : > { %v2358_v51 = vpop.f32.mrf.mxu1 }
 0x11c   : > { %v4938_v52 = vadd.f32 %v2358_v51, %v2065_v50  ;;  %v2069_v53 = vpop.f32.mrf.mxu0  ;;  %2634 = vmatmul.mubr.bf16.vlgmr.msra.gmra.mxu0 %v4321_v46  ;;  %v4337_v50 = vld [vmem:[%s4612_s12 + $0xf0] ss:$28 sps:$4 sm:$0xff]   ;;  %v4340_v51 = vld [vmem:[%s4612_s12 + $0xf8] ss:$28 sps:$4 sm:$0xff]  }
 0x11d   : > { %v2362_v54 = vpop.f32.mrf.mxu1  ;;  %2927 = vmatmul.mubr.bf16.vlgmr.msra.gmra.mxu1 %v4324_v47  ;;  %2643 = vmatprep.mubr.bf16.mxu0 %v4325_v49 }
 0x11e   : > { %v4940_v55 = vadd.f32 %v2362_v54, %v2069_v53  ;;  %2936 = vmatprep.mubr.bf16.mxu1 %v4433_v40  ;;  %v2071_v56 = vpop.f32.mrf.mxu0  ;;  %v4343_v54 = vld [vmem:[%s4612_s12 + $0x12c] ss:$28 sps:$4 sm:$0xff]  }
 0x11f   : > { %v2364_v57 = vpop.f32.mrf.mxu1 }
 0x120   : > { %v4943_v58 = vadd.f32 %v2364_v57, %v2071_v56  ;;  %v2073_v59 = vpop.f32.mrf.mxu0 }
 0x121   : > { %v2366_v60 = vpop.f32.mrf.mxu1 }
 0x122   : > { %v4947_v63 = vadd.f32 %v2366_v60, %v2073_v59  ;;  %v2075_v1 = vpop.f32.mrf.mxu0 }
 0x123   : > { %v2368_v2 = vpop.f32.mrf.mxu1 }
 0x124   : > { %v4950_v3 = vadd.f32 %v2368_v2, %v2075_v1  ;;  %v2079_v4 = vpop.f32.mrf.mxu0  ;;  %2644 = vmatmul.mubr.bf16.gmra.mxu0 %v4327_v61 }
 0x125   : > { %v2372_v5 = vpop.f32.mrf.mxu1  ;;  %2937 = vmatmul.mubr.bf16.gmra.mxu1 %v4328_v62  ;;  %2653 = vmatprep.mubr.bf16.mxu0 %v4331_v0 }
 0x126   : > { %v4952_v6 = vadd.f32 %v2372_v5, %v2079_v4  ;;  %2946 = vmatprep.mubr.bf16.mxu1 %v4433_v40  ;;  %v2081_v7 = vpop.f32.mrf.mxu0 }
 0x127   : > { %v2374_v8 = vpop.f32.mrf.mxu1 }
 0x128   : > { %v4955_v9 = vadd.f32 %v2374_v8, %v2081_v7  ;;  %v2083_v10 = vpop.f32.mrf.mxu0  ;;  %v4341_v7 = vld [vmem:[%s4612_s12 + $0x128] ss:$28 sps:$4 sm:$0xff]   ;;  %v4344_v8 = vld [vmem:[%s4612_s12 + $0x130] ss:$28 sps:$4 sm:$0xff]  }
 0x129   : > { %v2376_v11 = vpop.f32.mrf.mxu1 }
 0x12a   : > { %v4959_v14 = vadd.f32 %v2376_v11, %v2083_v10  ;;  %v2085_v16 = vpop.f32.mrf.mxu0  ;;  %v4347_v11 = vld [vmem:[%s4612_s12 + $0x164] ss:$28 sps:$4 sm:$0xff]  }
 0x12b   : > { %v2378_v17 = vpop.f32.mrf.mxu1 }
 0x12c   : > { %v4962_v18 = vadd.f32 %v2378_v17, %v2085_v16  ;;  %v2089_v19 = vpop.f32.mrf.mxu0  ;;  %2654 = vmatmul.mubr.bf16.gmra.mxu0 %v4329_v12 }
 0x12d   : > { %v2382_v20 = vpop.f32.mrf.mxu1  ;;  %2947 = vmatmul.mubr.bf16.gmra.mxu1 %v4332_v13  ;;  %2663 = vmatprep.mubr.bf16.mxu0 %v4335_v15 }
 0x12e   : > { %v4964_v21 = vadd.f32 %v2382_v20, %v2089_v19  ;;  %2956 = vmatprep.mubr.bf16.mxu1 %v4433_v40  ;;  %v2091_v22 = vpop.f32.mrf.mxu0 }
 0x12f   : > { %v2384_v23 = vpop.f32.mrf.mxu1 }
 0x130   : > { %v4967_v25 = vadd.f32 %v2384_v23, %v2091_v22  ;;  %v2093_v26 = vpop.f32.mrf.mxu0 }
 0x131   : > { %v2386_v28 = vpop.f32.mrf.mxu1 }
 0x132   : > { %v4971_v31 = vadd.f32 %v2386_v28, %v2093_v26  ;;  %v2095_v34 = vpop.f32.mrf.mxu0 }
 0x133   : > { %v2388_v35 = vpop.f32.mrf.mxu1 }
 0x134   : > { %v4974_v37 = vadd.f32 %v2388_v35, %v2095_v34  ;;  %v2099_v38 = vpop.f32.mrf.mxu0  ;;  %2664 = vmatmul.mubr.bf16.gmra.mxu0 %v4333_v29  ;;  %v4345_v29 = vld [vmem:[%s4612_s12 + $0x160] ss:$28 sps:$4 sm:$0xff]  }
 0x135   : > { %v2392_v41 = vpop.f32.mrf.mxu1  ;;  %2957 = vmatmul.mubr.bf16.gmra.mxu1 %v4336_v30  ;;  %2673 = vmatprep.mubr.bf16.mxu0 %v4339_v33  ;;  %v4348_v30 = vld [vmem:[%s4612_s12 + $0x168] ss:$28 sps:$4 sm:$0xff]   ;;  %v4351_v34 = vld [vmem:[%s4612_s12 + $0x19c] ss:$28 sps:$4 sm:$0xff]  }
 0x136   : > { %v4976_v42 = vadd.f32 %v2392_v41, %v2099_v38  ;;  %2966 = vmatprep.mubr.bf16.mxu1 %v4433_v40  ;;  %v2101_v44 = vpop.f32.mrf.mxu0 }
 0x137   : > { %v2394_v45 = vpop.f32.mrf.mxu1 }
 0x138   : > { %v4979_v46 = vadd.f32 %v2394_v45, %v2101_v44  ;;  %v2103_v47 = vpop.f32.mrf.mxu0 }
 0x139   : > { %v2396_v49 = vpop.f32.mrf.mxu1 }
 0x13a   : > { %v4983_v53 = vadd.f32 %v2396_v49, %v2103_v47  ;;  %v2105_v56 = vpop.f32.mrf.mxu0 }
 0x13b   : > { %v2398_v57 = vpop.f32.mrf.mxu1 }
 0x13c   : > { %v4986_v59 = vadd.f32 %v2398_v57, %v2105_v56  ;;  %v2109_v60 = vpop.f32.mrf.mxu0  ;;  %2674 = vmatmul.mubr.bf16.gmra.mxu0 %v4337_v50  ;;  %v4349_v57 = vld [vmem:[%s4612_s12 + $0x198] ss:$28 sps:$4 sm:$0xff]  }
 0x13d   : > { %v2402_v61 = vpop.f32.mrf.mxu1  ;;  %2967 = vmatmul.mubr.bf16.gmra.mxu1 %v4340_v51  ;;  %2683 = vmatprep.mubr.bf16.mxu0 %v4343_v54 }
 0x13e   : > { %v4988_v62 = vadd.f32 %v2402_v61, %v2109_v60  ;;  %2976 = vmatprep.mubr.bf16.mxu1 %v4433_v40  ;;  %v2111_v0 = vpop.f32.mrf.mxu0  ;;  %v4352_v60 = vld [vmem:[%s4612_s12 + $0x1a0] ss:$28 sps:$4 sm:$0xff]  }
 0x13f   : > { %v2404_v1 = vpop.f32.mrf.mxu1 }
 0x140   : > { %v4991_v2 = vadd.f32 %v2404_v1, %v2111_v0  ;;  %v2113_v4 = vpop.f32.mrf.mxu0  ;;  %v4355_v0 = vld [vmem:[%s4612_s12 + $0x1d4] ss:$28 sps:$4 sm:$0xff]  }
 0x141   : > { %v2406_v5 = vpop.f32.mrf.mxu1 }
 0x142   : > { %v4995_v10 = vadd.f32 %v2406_v5, %v2113_v4  ;;  %v2115_v12 = vpop.f32.mrf.mxu0 }
 0x143   : > { %v2408_v13 = vpop.f32.mrf.mxu1 }
 0x144   : > { %v4998_v15 = vadd.f32 %v2408_v13, %v2115_v12  ;;  %v2119_v16 = vpop.f32.mrf.mxu0  ;;  %2684 = vmatmul.mubr.bf16.gmra.mxu0 %v4341_v7 }
 0x145   : > { %v2412_v17 = vpop.f32.mrf.mxu1  ;;  %2977 = vmatmul.mubr.bf16.gmra.mxu1 %v4344_v8  ;;  %2693 = vmatprep.mubr.bf16.mxu0 %v4347_v11 }
 0x146   : > { %v5000_v19 = vadd.f32 %v2412_v17, %v2119_v16  ;;  %2986 = vmatprep.mubr.bf16.mxu1 %v4433_v40  ;;  %v2121_v20 = vpop.f32.mrf.mxu0 }
 0x147   : > { %v2414_v22 = vpop.f32.mrf.mxu1 }
 0x148   : > { %v5003_v23 = vadd.f32 %v2414_v22, %v2121_v20  ;;  %v2123_v26 = vpop.f32.mrf.mxu0  ;;  %v4353_v22 = vld [vmem:[%s4612_s12 + $0x1d0] ss:$28 sps:$4 sm:$0xff]  }
 0x149   : > { %v2416_v28 = vpop.f32.mrf.mxu1 }
 0x14a   : > { %v5007_v33 = vadd.f32 %v2416_v28, %v2123_v26  ;;  %v2125_v35 = vpop.f32.mrf.mxu0  ;;  %v4356_v26 = vld [vmem:[%s4612_s12 + $0x1d8] ss:$28 sps:$4 sm:$0xff]  }
 0x14b   : > { %v2418_v38 = vpop.f32.mrf.mxu1 }
 0x14c   : > { %v5010_v41 = vadd.f32 %v2418_v38, %v2125_v35  ;;  %v2129_v44 = vpop.f32.mrf.mxu0  ;;  %2694 = vmatmul.mubr.bf16.gmra.mxu0 %v4345_v29  ;;  %v4359_v29 = vld [vmem:[%s4612_s12 + $0x20c] ss:$28 sps:$4 sm:$0xff]  }
 0x14d   : > { %v2422_v45 = vpop.f32.mrf.mxu1  ;;  %2987 = vmatmul.mubr.bf16.gmra.mxu1 %v4348_v30  ;;  %2703 = vmatprep.mubr.bf16.mxu0 %v4351_v34 }
 0x14e   : > { %v5012_v47 = vadd.f32 %v2422_v45, %v2129_v44  ;;  %2996 = vmatprep.mubr.bf16.mxu1 %v4433_v40  ;;  %v2131_v49 = vpop.f32.mrf.mxu0 }
 0x14f   : > { %v2424_v50 = vpop.f32.mrf.mxu1 }
 0x150   : > { %v5015_v51 = vadd.f32 %v2424_v50, %v2131_v49  ;;  %v2133_v54 = vpop.f32.mrf.mxu0 }
 0x151   : > { %v2426_v56 = vpop.f32.mrf.mxu1 }
 0x152   : > { %v5019_v61 = vadd.f32 %v2426_v56, %v2133_v54  ;;  %v2135_v1 = vpop.f32.mrf.mxu0 }
 0x153   : > { %v2428_v4 = vpop.f32.mrf.mxu1 }
 0x154   : > { %v5022_v5 = vadd.f32 %v2428_v4, %v2135_v1  ;;  %v2139_v7 = vpop.f32.mrf.mxu0  ;;  %2704 = vmatmul.mubr.bf16.gmra.mxu0 %v4349_v57  ;;  %v4363_v4 = vld [vmem:[%s4612_s12 + $0x244] ss:$28 sps:$4 sm:$0xff]  }
 0x155   : > { %v2432_v8 = vpop.f32.mrf.mxu1  ;;  %2997 = vmatmul.mubr.bf16.gmra.mxu1 %v4352_v60  ;;  %2713 = vmatprep.mubr.bf16.mxu0 %v4355_v0  ;;  %v4357_v60 = vld [vmem:[%s4612_s12 + $0x208] ss:$28 sps:$4 sm:$0xff]   ;;  %v4360_v0 = vld [vmem:[%s4612_s12 + $0x210] ss:$28 sps:$4 sm:$0xff]  }
 0x156   : > { %v5024_v11 = vadd.f32 %v2432_v8, %v2139_v7  ;;  %3006 = vmatprep.mubr.bf16.mxu1 %v4433_v40  ;;  %v2141_v12 = vpop.f32.mrf.mxu0 }
 0x157   : > { %v2434_v13 = vpop.f32.mrf.mxu1 }
 0x158   : > { %v5027_v16 = vadd.f32 %v2434_v13, %v2141_v12  ;;  %v2143_v17 = vpop.f32.mrf.mxu0 }
 0x159   : > { %v2436_v20 = vpop.f32.mrf.mxu1 }
 0x15a   : > { %v5031_v28 = vadd.f32 %v2436_v20, %v2143_v17  ;;  %v2145_v30 = vpop.f32.mrf.mxu0 }
 0x15b   : > { %v2438_v34 = vpop.f32.mrf.mxu1 }
 0x15c   : > { %v5034_v35 = vadd.f32 %v2438_v34, %v2145_v30  ;;  %v2149_v38 = vpop.f32.mrf.mxu0  ;;  %2714 = vmatmul.mubr.bf16.gmra.mxu0 %v4353_v22 }
 0x15d   : > { %v2442_v44 = vpop.f32.mrf.mxu1  ;;  %3007 = vmatmul.mubr.bf16.gmra.mxu1 %v4356_v26  ;;  %2723 = vmatprep.mubr.bf16.mxu0 %v4359_v29 }
 0x15e   : > { %v5036_v45 = vadd.f32 %v2442_v44, %v2149_v38  ;;  %3016 = vmatprep.mubr.bf16.mxu1 %v4433_v40  ;;  %v2151_v49 = vpop.f32.mrf.mxu0  ;;  %v4361_v38 = vld [vmem:[%s4612_s12 + $0x240] ss:$28 sps:$4 sm:$0xff]   ;;  %v4364_v44 = vld [vmem:[%s4612_s12 + $0x248] ss:$28 sps:$4 sm:$0xff]  }
 0x15f   : > { %v2444_v50 = vpop.f32.mrf.mxu1 }
 0x160   : > { %v5039_v54 = vadd.f32 %v2444_v50, %v2151_v49  ;;  %v2153_v56 = vpop.f32.mrf.mxu0  ;;  %v4367_v50 = vld [vmem:[%s4612_s12 + $0x27c] ss:$28 sps:$4 sm:$0xff]  }
 0x161   : > { %v2446_v57 = vpop.f32.mrf.mxu1 }
 0x162   : > { %v5043_v1 = vadd.f32 %v2446_v57, %v2153_v56  ;;  %v2155_v7 = vpop.f32.mrf.mxu0 }
 0x163   : > { %v2448_v8 = vpop.f32.mrf.mxu1 }
 0x164   : > { %v5046_v12 = vadd.f32 %v2448_v8, %v2155_v7  ;;  %v2159_v13 = vpop.f32.mrf.mxu0  ;;  %2724 = vmatmul.mubr.bf16.gmra.mxu0 %v4357_v60 }
 0x165   : > { %v2452_v17 = vpop.f32.mrf.mxu1  ;;  %3017 = vmatmul.mubr.bf16.gmra.mxu1 %v4360_v0  ;;  %2733 = vmatprep.mubr.bf16.mxu0 %v4363_v4 }
 0x166   : > { %v5048_v20 = vadd.f32 %v2452_v17, %v2159_v13  ;;  %3026 = vmatprep.mubr.bf16.mxu1 %v4433_v40  ;;  %v2161_v22 = vpop.f32.mrf.mxu0 }
 0x167   : > { %v2454_v26 = vpop.f32.mrf.mxu1 }
 0x168   : > { %v5051_v29 = vadd.f32 %v2454_v26, %v2161_v22  ;;  %v2163_v30 = vpop.f32.mrf.mxu0 }
 0x169   : > { %v2456_v34 = vpop.f32.mrf.mxu1 }
 0x16a   : > { %v5055_v49 = vadd.f32 %v2456_v34, %v2163_v30  ;;  %v2165_v56 = vpop.f32.mrf.mxu0  ;;  %v4365_v30 = vld [vmem:[%s4612_s12 + $0x278] ss:$28 sps:$4 sm:$0xff]   ;;  %v4368_v34 = vld [vmem:[%s4612_s12 + $0x280] ss:$28 sps:$4 sm:$0xff]  }
 0x16b   : > { %v2458_v57 = vpop.f32.mrf.mxu1 }
 0x16c   : > { %6006 = vst [vmem:[#allocation2_spill] sm:$0xff] %v5055_v49  ;;  %v5058_v60 = vadd.f32 %v2458_v57, %v2165_v56  ;;  %v2169_v0 = vpop.f32.mrf.mxu0  ;;  %2734 = vmatmul.mubr.bf16.gmra.mxu0 %v4361_v38  ;;  %v4371_v57 = vld [vmem:[%s4612_s12 + $0x2b4] ss:$28 sps:$4 sm:$0xff]  }
 0x16d   : > { %v2462_v4 = vpop.f32.mrf.mxu1  ;;  %3027 = vmatmul.mubr.bf16.gmra.mxu1 %v4364_v44  ;;  %2743 = vmatprep.mubr.bf16.mxu0 %v4367_v50 }
 0x16e   : > { %6007 = vst [vmem:[#allocation3_spill] sm:$0xff] %v5058_v60  ;;  %v5060_v7 = vadd.f32 %v2462_v4, %v2169_v0  ;;  %3036 = vmatprep.mubr.bf16.mxu1 %v4433_v40  ;;  %v2171_v8 = vpop.f32.mrf.mxu0 }
 0x16f   : > { %v2464_v13 = vpop.f32.mrf.mxu1 }
 0x170   : > { %6008 = vst [vmem:[#allocation4_spill] sm:$0xff] %v5060_v7  ;;  %v5063_v17 = vadd.f32 %v2464_v13, %v2171_v8  ;;  %v2173_v22 = vpop.f32.mrf.mxu0  ;;  %v4372_v7 = vld [vmem:[%s4612_s12 + $0x2b8] ss:$28 sps:$4 sm:$0xff]  }
 0x171   : > { %v2466_v26 = vpop.f32.mrf.mxu1 }
 0x172   : > { %6009 = vst [vmem:[#allocation5_spill] sm:$0xff] %v5063_v17  ;;  %v5067_v56 = vadd.f32 %v2466_v26, %v2173_v22  ;;  %v2175_v60 = vpop.f32.mrf.mxu0  ;;  %v4369_v17 = vld [vmem:[%s4612_s12 + $0x2b0] ss:$28 sps:$4 sm:$0xff]  }
 0x173   : > { %v2468_v38 = vpop.f32.mrf.mxu1 }
 0x174   : > { %6010 = vst [vmem:[#allocation6_spill] sm:$0xff] %v5067_v56  ;;  %v5070_v44 = vadd.f32 %v2468_v38, %v2175_v60  ;;  %v2179_v50 = vpop.f32.mrf.mxu0  ;;  %2744 = vmatmul.mubr.bf16.gmra.mxu0 %v4365_v30  ;;  %v4375_v38 = vld [vmem:[%s4612_s12 + $0x2ec] ss:$28 sps:$4 sm:$0xff]  }
 0x175   : > { %v2472_v0 = vpop.f32.mrf.mxu1  ;;  %3037 = vmatmul.mubr.bf16.gmra.mxu1 %v4368_v34  ;;  %2753 = vmatprep.mubr.bf16.mxu0 %v4371_v57 }
 0x176   : > { %6011 = vst [vmem:[#allocation7_spill] sm:$0xff] %v5070_v44  ;;  %v5072_v4 = vadd.f32 %v2472_v0, %v2179_v50  ;;  %3046 = vmatprep.mubr.bf16.mxu1 %v4433_v40  ;;  %v2181_v8 = vpop.f32.mrf.mxu0 }
 0x177   : > { %v2474_v13 = vpop.f32.mrf.mxu1 }
 0x178   : > { %6012 = vst [vmem:[#allocation8_spill] sm:$0xff] %v5072_v4  ;;  %v5075_v22 = vadd.f32 %v2474_v13, %v2181_v8  ;;  %v2183_v26 = vpop.f32.mrf.mxu0  ;;  %v4376_v4 = vld [vmem:[%s4612_s12 + $0x2f0] ss:$28 sps:$4 sm:$0xff]  }
 0x179   : > { %v2476_v56 = vpop.f32.mrf.mxu1 }
 0x17a   : > { %6013 = vst [vmem:[#allocation9_spill] sm:$0xff] %v5075_v22  ;;  %v5079_v60 = vadd.f32 %v2476_v56, %v2183_v26  ;;  %v2185_v44 = vpop.f32.mrf.mxu0  ;;  %v4373_v22 = vld [vmem:[%s4612_s12 + $0x2e8] ss:$28 sps:$4 sm:$0xff]  }
 0x17b   : > { %v2478_v30 = vpop.f32.mrf.mxu1 }
 0x17c   : > { %6014 = vst [vmem:[#allocation10_spill] sm:$0xff] %v5079_v60  ;;  %v5082_v34 = vadd.f32 %v2478_v30, %v2185_v44  ;;  %v2189_v57 = vpop.f32.mrf.mxu0  ;;  %2754 = vmatmul.mubr.bf16.gmra.mxu0 %v4369_v17  ;;  %v4379_v30 = vld [vmem:[%s4612_s12 + $0x324] ss:$28 sps:$4 sm:$0xff]  }
 0x17d   : > { %v2482_v50 = vpop.f32.mrf.mxu1  ;;  %3047 = vmatmul.mubr.bf16.gmra.mxu1 %v4372_v7  ;;  %2763 = vmatprep.mubr.bf16.mxu0 %v4375_v38 }
 0x17e   : > { %6015 = vst [vmem:[#allocation11_spill] sm:$0xff] %v5082_v34  ;;  %v5084_v0 = vadd.f32 %v2482_v50, %v2189_v57  ;;  %3056 = vmatprep.mubr.bf16.mxu1 %v4433_v40  ;;  %v2191_v8 = vpop.f32.mrf.mxu0 }
 0x17f   : > { %v2484_v56 = vpop.f32.mrf.mxu1 }
 0x180   : > { %6016 = vst [vmem:[#allocation12_spill] sm:$0xff] %v5084_v0  ;;  %v5087_v13 = vadd.f32 %v2484_v56, %v2191_v8  ;;  %v2193_v26 = vpop.f32.mrf.mxu0  ;;  %v4380_v0 = vld [vmem:[%s4612_s12 + $0x328] ss:$28 sps:$4 sm:$0xff]  }
 0x181   : > { %v2486_v60 = vpop.f32.mrf.mxu1 }
 0x182   : > { %6017 = vst [vmem:[#allocation13_spill] sm:$0xff] %v5087_v13  ;;  %v5091_v44 = vadd.f32 %v2486_v60, %v2193_v26  ;;  %v2195_v34 = vpop.f32.mrf.mxu0  ;;  %v4377_v13 = vld [vmem:[%s4612_s12 + $0x320] ss:$28 sps:$4 sm:$0xff]  }
 0x183   : > { %v2488_v7 = vpop.f32.mrf.mxu1 }
 0x184   : > { %6018 = vst [vmem:[#allocation14_spill] sm:$0xff] %v5091_v44  ;;  %v5094_v17 = vadd.f32 %v2488_v7, %v2195_v34  ;;  %v2199_v38 = vpop.f32.mrf.mxu0  ;;  %2764 = vmatmul.mubr.bf16.gmra.mxu0 %v4373_v22  ;;  %v4383_v7 = vld [vmem:[%s4612_s12 + $0x35c] ss:$28 sps:$4 sm:$0xff]  }
 0x185   : > { %v2492_v57 = vpop.f32.mrf.mxu1  ;;  %3057 = vmatmul.mubr.bf16.gmra.mxu1 %v4376_v4  ;;  %2773 = vmatprep.mubr.bf16.mxu0 %v4379_v30 }
 0x186   : > { %6019 = vst [vmem:[#allocation15_spill] sm:$0xff] %v5094_v17  ;;  %v5096_v50 = vadd.f32 %v2492_v57, %v2199_v38  ;;  %3066 = vmatprep.mubr.bf16.mxu1 %v4433_v40  ;;  %v2201_v8 = vpop.f32.mrf.mxu0 }
 0x187   : > { %v2494_v60 = vpop.f32.mrf.mxu1 }
 0x188   : > { %6020 = vst [vmem:[#allocation16_spill] sm:$0xff] %v5096_v50  ;;  %v5099_v56 = vadd.f32 %v2494_v60, %v2201_v8  ;;  %v2203_v26 = vpop.f32.mrf.mxu0  ;;  %v4384_v50 = vld [vmem:[%s4612_s12 + $0x360] ss:$28 sps:$4 sm:$0xff]  }
 0x189   : > { %v2496_v44 = vpop.f32.mrf.mxu1 }
 0x18a   : > { %6021 = vst [vmem:[#allocation17_spill] sm:$0xff] %v5099_v56  ;;  %v5103_v34 = vadd.f32 %v2496_v44, %v2203_v26  ;;  %v2205_v17 = vpop.f32.mrf.mxu0  ;;  %v4381_v56 = vld [vmem:[%s4612_s12 + $0x358] ss:$28 sps:$4 sm:$0xff]  }
 0x18b   : > { %v2498_v4 = vpop.f32.mrf.mxu1 }
 0x18c   : > { %6022 = vst [vmem:[#allocation18_spill] sm:$0xff] %v5103_v34  ;;  %v5106_v22 = vadd.f32 %v2498_v4, %v2205_v17  ;;  %v2209_v30 = vpop.f32.mrf.mxu0  ;;  %2774 = vmatmul.mubr.bf16.gmra.mxu0 %v4377_v13  ;;  %v4387_v4 = vld [vmem:[%s4612_s12 + $0x394] ss:$28 sps:$4 sm:$0xff]  }
 0x18d   : > { %v2502_v38 = vpop.f32.mrf.mxu1  ;;  %3067 = vmatmul.mubr.bf16.gmra.mxu1 %v4380_v0  ;;  %2783 = vmatprep.mubr.bf16.mxu0 %v4383_v7 }
 0x18e   : > { %6023 = vst [vmem:[#allocation19_spill] sm:$0xff] %v5106_v22  ;;  %v5108_v57 = vadd.f32 %v2502_v38, %v2209_v30  ;;  %3076 = vmatprep.mubr.bf16.mxu1 %v4433_v40  ;;  %v2211_v8 = vpop.f32.mrf.mxu0 }
 0x18f   : > { %v2504_v44 = vpop.f32.mrf.mxu1 }
 0x190   : > { %6024 = vst [vmem:[#allocation20_spill] sm:$0xff] %v5108_v57  ;;  %v5111_v60 = vadd.f32 %v2504_v44, %v2211_v8  ;;  %v2213_v26 = vpop.f32.mrf.mxu0  ;;  %v4388_v57 = vld [vmem:[%s4612_s12 + $0x398] ss:$28 sps:$4 sm:$0xff]  }
 0x191   : > { %v2506_v34 = vpop.f32.mrf.mxu1 }
 0x192   : > { %6025 = vst [vmem:[#allocation21_spill] sm:$0xff] %v5111_v60  ;;  %v5115_v17 = vadd.f32 %v2506_v34, %v2213_v26  ;;  %v2215_v22 = vpop.f32.mrf.mxu0  ;;  %v4385_v60 = vld [vmem:[%s4612_s12 + $0x390] ss:$28 sps:$4 sm:$0xff]  }
 0x193   : > { %v2508_v0 = vpop.f32.mrf.mxu1 }
 0x194   : > { %6026 = vst [vmem:[#allocation22_spill] sm:$0xff] %v5115_v17  ;;  %v5118_v13 = vadd.f32 %v2508_v0, %v2215_v22  ;;  %v2219_v7 = vpop.f32.mrf.mxu0  ;;  %2784 = vmatmul.mubr.bf16.gmra.mxu0 %v4381_v56  ;;  %v4391_v0 = vld [vmem:[%s4612_s12 + $0x3cc] ss:$28 sps:$4 sm:$0xff]  }
 0x195   : > { %v2512_v30 = vpop.f32.mrf.mxu1  ;;  %3077 = vmatmul.mubr.bf16.gmra.mxu1 %v4384_v50  ;;  %2793 = vmatprep.mubr.bf16.mxu0 %v4387_v4 }
 0x196   : > { %6027 = vst [vmem:[#allocation23_spill] sm:$0xff] %v5118_v13  ;;  %v5120_v38 = vadd.f32 %v2512_v30, %v2219_v7  ;;  %3086 = vmatprep.mubr.bf16.mxu1 %v4433_v40  ;;  %v2221_v8 = vpop.f32.mrf.mxu0 }
 0x197   : > { %v2514_v34 = vpop.f32.mrf.mxu1 }
 0x198   : > { %6028 = vst [vmem:[#allocation24_spill] sm:$0xff] %v5120_v38  ;;  %v5123_v44 = vadd.f32 %v2514_v34, %v2221_v8  ;;  %v2223_v26 = vpop.f32.mrf.mxu0  ;;  %v4392_v38 = vld [vmem:[%s4612_s12 + $0x3d0] ss:$28 sps:$4 sm:$0xff]  }
 0x199   : > { %v2516_v17 = vpop.f32.mrf.mxu1 }
 0x19a   : > { %6029 = vst [vmem:[#allocation25_spill] sm:$0xff] %v5123_v44  ;;  %v5127_v22 = vadd.f32 %v2516_v17, %v2223_v26  ;;  %v2225_v13 = vpop.f32.mrf.mxu0  ;;  %v4389_v44 = vld [vmem:[%s4612_s12 + $0x3c8] ss:$28 sps:$4 sm:$0xff]  }
 0x19b   : > { %v2518_v50 = vpop.f32.mrf.mxu1 }
 0x19c   : > { %6030 = vst [vmem:[#allocation26_spill] sm:$0xff] %v5127_v22  ;;  %v5130_v56 = vadd.f32 %v2518_v50, %v2225_v13  ;;  %v2229_v4 = vpop.f32.mrf.mxu0  ;;  %2794 = vmatmul.mubr.bf16.gmra.mxu0 %v4385_v60  ;;  %v4395_v50 = vld [vmem:[%s4612_s12 + $0x404] ss:$28 sps:$4 sm:$0xff]  }
 0x19d   : > { %v2522_v7 = vpop.f32.mrf.mxu1  ;;  %3087 = vmatmul.mubr.bf16.gmra.mxu1 %v4388_v57  ;;  %2803 = vmatprep.mubr.bf16.mxu0 %v4391_v0 }
 0x19e   : > { %6031 = vst [vmem:[#allocation27_spill] sm:$0xff] %v5130_v56  ;;  %v5132_v30 = vadd.f32 %v2522_v7, %v2229_v4  ;;  %3096 = vmatprep.mubr.bf16.mxu1 %v4433_v40  ;;  %v2231_v8 = vpop.f32.mrf.mxu0 }
 0x19f   : > { %v2524_v17 = vpop.f32.mrf.mxu1 }
 0x1a0   : > { %6032 = vst [vmem:[#allocation28_spill] sm:$0xff] %v5132_v30  ;;  %v5135_v34 = vadd.f32 %v2524_v17, %v2231_v8  ;;  %v2233_v26 = vpop.f32.mrf.mxu0  ;;  %v4396_v30 = vld [vmem:[%s4612_s12 + $0x408] ss:$28 sps:$4 sm:$0xff]  }
 0x1a1   : > { %v2526_v22 = vpop.f32.mrf.mxu1 }
 0x1a2   : > { %6033 = vst [vmem:[#allocation29_spill] sm:$0xff] %v5135_v34  ;;  %v5139_v13 = vadd.f32 %v2526_v22, %v2233_v26  ;;  %v2235_v56 = vpop.f32.mrf.mxu0  ;;  %v4393_v34 = vld [vmem:[%s4612_s12 + $0x400] ss:$28 sps:$4 sm:$0xff]  }
 0x1a3   : > { %v2528_v57 = vpop.f32.mrf.mxu1 }
 0x1a4   : > { %6034 = vst [vmem:[#allocation30_spill] sm:$0xff] %v5139_v13  ;;  %v5142_v60 = vadd.f32 %v2528_v57, %v2235_v56  ;;  %v2239_v0 = vpop.f32.mrf.mxu0  ;;  %2804 = vmatmul.mubr.bf16.gmra.mxu0 %v4389_v44  ;;  %v4399_v57 = vld [vmem:[%s4612_s12 + $0x43c] ss:$28 sps:$4 sm:$0xff]  }
 0x1a5   : > { %v2532_v4 = vpop.f32.mrf.mxu1  ;;  %3097 = vmatmul.mubr.bf16.gmra.mxu1 %v4392_v38  ;;  %2813 = vmatprep.mubr.bf16.mxu0 %v4395_v50 }
 0x1a6   : > { %6035 = vst [vmem:[#allocation31_spill] sm:$0xff] %v5142_v60  ;;  %v5144_v7 = vadd.f32 %v2532_v4, %v2239_v0  ;;  %3106 = vmatprep.mubr.bf16.mxu1 %v4433_v40  ;;  %v2241_v8 = vpop.f32.mrf.mxu0 }
 0x1a7   : > { %v2534_v22 = vpop.f32.mrf.mxu1 }
 0x1a8   : > { %6036 = vst [vmem:[#allocation32_spill] sm:$0xff] %v5144_v7  ;;  %v5147_v17 = vadd.f32 %v2534_v22, %v2241_v8  ;;  %v2243_v26 = vpop.f32.mrf.mxu0  ;;  %v4397_v7 = vld [vmem:[%s4612_s12 + $0x438] ss:$28 sps:$4 sm:$0xff]  }
 0x1a9   : > { %v2536_v13 = vpop.f32.mrf.mxu1 }
 0x1aa   : > { %6037 = vst [vmem:[#allocation33_spill] sm:$0xff] %v5147_v17  ;;  %v5151_v56 = vadd.f32 %v2536_v13, %v2243_v26  ;;  %v2245_v60 = vpop.f32.mrf.mxu0 }
 0x1ab   : > { %v2538_v38 = vpop.f32.mrf.mxu1 }
 0x1ac   : > { %6038 = vst [vmem:[#allocation34_spill] sm:$0xff] %v5151_v56  ;;  %v5154_v44 = vadd.f32 %v2538_v38, %v2245_v60  ;;  %v2249_v50 = vpop.f32.mrf.mxu0  ;;  %2814 = vmatmul.mubr.bf16.gmra.mxu0 %v4393_v34  ;;  %v4400_v56 = vld [vmem:[%s4612_s12 + $0x440] ss:$28 sps:$4 sm:$0xff]   ;;  %v4403_v38 = vld [vmem:[%s4612_s12 + $0x474] ss:$28 sps:$4 sm:$0xff]  }
 0x1ad   : > { %v2542_v0 = vpop.f32.mrf.mxu1  ;;  %3107 = vmatmul.mubr.bf16.gmra.mxu1 %v4396_v30  ;;  %2823 = vmatprep.mubr.bf16.mxu0 %v4399_v57 }
 0x1ae   : > { %6039 = vst [vmem:[#allocation35_spill] sm:$0xff] %v5154_v44  ;;  %v5156_v4 = vadd.f32 %v2542_v0, %v2249_v50  ;;  %3116 = vmatprep.mubr.bf16.mxu1 %v4433_v40  ;;  %v2251_v8 = vpop.f32.mrf.mxu0 }
 0x1af   : > { %v2544_v13 = vpop.f32.mrf.mxu1 }
 0x1b0   : > { %6040 = vst [vmem:[#allocation36_spill] sm:$0xff] %v5156_v4  ;;  %v5159_v22 = vadd.f32 %v2544_v13, %v2251_v8  ;;  %v2253_v26 = vpop.f32.mrf.mxu0  ;;  %v4404_v4 = vld [vmem:[%s4612_s12 + $0x478] ss:$28 sps:$4 sm:$0xff]  }
 0x1b1   : > { %v2546_v17 = vpop.f32.mrf.mxu1 }
 0x1b2   : > { %6041 = vst [vmem:[#allocation37_spill] sm:$0xff] %v5159_v22  ;;  %v5163_v60 = vadd.f32 %v2546_v17, %v2253_v26  ;;  %v2255_v44 = vpop.f32.mrf.mxu0  ;;  %v4401_v22 = vld [vmem:[%s4612_s12 + $0x470] ss:$28 sps:$4 sm:$0xff]  }
 0x1b3   : > { %v2548_v30 = vpop.f32.mrf.mxu1 }
 0x1b4   : > { %6042 = vst [vmem:[#allocation38_spill] sm:$0xff] %v5163_v60  ;;  %v5166_v34 = vadd.f32 %v2548_v30, %v2255_v44  ;;  %v2259_v57 = vpop.f32.mrf.mxu0  ;;  %2824 = vmatmul.mubr.bf16.gmra.mxu0 %v4397_v7  ;;  %v4407_v30 = vld [vmem:[%s4612_s12 + $0x4ac] ss:$28 sps:$4 sm:$0xff]  }
 0x1b5   : > { %v2552_v50 = vpop.f32.mrf.mxu1  ;;  %3117 = vmatmul.mubr.bf16.gmra.mxu1 %v4400_v56  ;;  %2833 = vmatprep.mubr.bf16.mxu0 %v4403_v38 }
 0x1b6   : > { %6043 = vst [vmem:[#allocation39_spill] sm:$0xff] %v5166_v34  ;;  %v5168_v0 = vadd.f32 %v2552_v50, %v2259_v57  ;;  %3126 = vmatprep.mubr.bf16.mxu1 %v4433_v40  ;;  %v2261_v8 = vpop.f32.mrf.mxu0 }
 0x1b7   : > { %v2554_v17 = vpop.f32.mrf.mxu1 }
 0x1b8   : > { %6044 = vst [vmem:[#allocation40_spill] sm:$0xff] %v5168_v0  ;;  %v5171_v13 = vadd.f32 %v2554_v17, %v2261_v8  ;;  %v2263_v26 = vpop.f32.mrf.mxu0  ;;  %v4408_v0 = vld [vmem:[%s4612_s12 + $0x4b0] ss:$28 sps:$4 sm:$0xff]  }
 0x1b9   : > { %v2556_v60 = vpop.f32.mrf.mxu1 }
 0x1ba   : > { %6045 = vst [vmem:[#allocation41_spill] sm:$0xff] %v5171_v13  ;;  %v5175_v44 = vadd.f32 %v2556_v60, %v2263_v26  ;;  %v2265_v34 = vpop.f32.mrf.mxu0  ;;  %v4405_v13 = vld [vmem:[%s4612_s12 + $0x4a8] ss:$28 sps:$4 sm:$0xff]  }
 0x1bb   : > { %v2558_v7 = vpop.f32.mrf.mxu1 }
 0x1bc   : > { %6046 = vst [vmem:[#allocation42_spill] sm:$0xff] %v5175_v44  ;;  %v5178_v56 = vadd.f32 %v2558_v7, %v2265_v34  ;;  %v2269_v38 = vpop.f32.mrf.mxu0  ;;  %2834 = vmatmul.mubr.bf16.gmra.mxu0 %v4401_v22  ;;  %v4411_v7 = vld [vmem:[%s4612_s12 + $0x4e4] ss:$28 sps:$4 sm:$0xff]  }
 0x1bd   : > { %v2562_v57 = vpop.f32.mrf.mxu1  ;;  %3127 = vmatmul.mubr.bf16.gmra.mxu1 %v4404_v4  ;;  %2843 = vmatprep.mubr.bf16.mxu0 %v4407_v30 }
 0x1be   : > { %6047 = vst [vmem:[#allocation43_spill] sm:$0xff] %v5178_v56  ;;  %v5180_v50 = vadd.f32 %v2562_v57, %v2269_v38  ;;  %3136 = vmatprep.mubr.bf16.mxu1 %v4433_v40  ;;  %v2271_v8 = vpop.f32.mrf.mxu0 }
 0x1bf   : > { %v2564_v60 = vpop.f32.mrf.mxu1 }
 0x1c0   : > { %6048 = vst [vmem:[#allocation44_spill] sm:$0xff] %v5180_v50  ;;  %v5183_v17 = vadd.f32 %v2564_v60, %v2271_v8  ;;  %v2273_v26 = vpop.f32.mrf.mxu0  ;;  %v4412_v50 = vld [vmem:[%s4612_s12 + $0x4e8] ss:$28 sps:$4 sm:$0xff]  }
 0x1c1   : > { %v2566_v44 = vpop.f32.mrf.mxu1 }
 0x1c2   : > { %6049 = vst [vmem:[#allocation45_spill] sm:$0xff] %v5183_v17  ;;  %v5187_v34 = vadd.f32 %v2566_v44, %v2273_v26  ;;  %v2275_v56 = vpop.f32.mrf.mxu0  ;;  %v4409_v17 = vld [vmem:[%s4612_s12 + $0x4e0] ss:$28 sps:$4 sm:$0xff]  }
 0x1c3   : > { %v2568_v4 = vpop.f32.mrf.mxu1 }
 0x1c4   : > { %6050 = vst [vmem:[#allocation46_spill] sm:$0xff] %v5187_v34  ;;  %v5190_v22 = vadd.f32 %v2568_v4, %v2275_v56  ;;  %v2279_v30 = vpop.f32.mrf.mxu0  ;;  %2844 = vmatmul.mubr.bf16.gmra.mxu0 %v4405_v13  ;;  %v4415_v4 = vld [vmem:[%s4612_s12 + $0x51c] ss:$28 sps:$4 sm:$0xff]  }
 0x1c5   : > { %v2572_v38 = vpop.f32.mrf.mxu1  ;;  %3137 = vmatmul.mubr.bf16.gmra.mxu1 %v4408_v0  ;;  %2853 = vmatprep.mubr.bf16.mxu0 %v4411_v7 }
 0x1c6   : > { %6051 = vst [vmem:[#allocation47_spill] sm:$0xff] %v5190_v22  ;;  %v5192_v57 = vadd.f32 %v2572_v38, %v2279_v30  ;;  %3146 = vmatprep.mubr.bf16.mxu1 %v4433_v40  ;;  %v2281_v8 = vpop.f32.mrf.mxu0 }
 0x1c7   : > { %v2574_v44 = vpop.f32.mrf.mxu1 }
 0x1c8   : > { %6052 = vst [vmem:[#allocation48_spill] sm:$0xff] %v5192_v57  ;;  %v5195_v60 = vadd.f32 %v2574_v44, %v2281_v8  ;;  %v2283_v26 = vpop.f32.mrf.mxu0  ;;  %v4416_v57 = vld [vmem:[%s4612_s12 + $0x520] ss:$28 sps:$4 sm:$0xff]  }
 0x1c9   : > { %v2576_v34 = vpop.f32.mrf.mxu1 }
 0x1ca   : > { %6053 = vst [vmem:[#allocation49_spill] sm:$0xff] %v5195_v60  ;;  %v5199_v56 = vadd.f32 %v2576_v34, %v2283_v26  ;;  %v2285_v22 = vpop.f32.mrf.mxu0  ;;  %v4413_v60 = vld [vmem:[%s4612_s12 + $0x518] ss:$28 sps:$4 sm:$0xff]  }
 0x1cb   : > { %v2578_v0 = vpop.f32.mrf.mxu1 }
 0x1cc   : > { %6054 = vst [vmem:[#allocation50_spill] sm:$0xff] %v5199_v56  ;;  %v5202_v13 = vadd.f32 %v2578_v0, %v2285_v22  ;;  %v2289_v7 = vpop.f32.mrf.mxu0  ;;  %2854 = vmatmul.mubr.bf16.gmra.mxu0 %v4409_v17  ;;  %v4419_v0 = vld [vmem:[%s4612_s12 + $0x554] ss:$28 sps:$4 sm:$0xff]  }
 0x1cd   : > { %v2582_v30 = vpop.f32.mrf.mxu1  ;;  %3147 = vmatmul.mubr.bf16.gmra.mxu1 %v4412_v50  ;;  %2863 = vmatprep.mubr.bf16.mxu0 %v4415_v4 }
 0x1ce   : > { %6055 = vst [vmem:[#allocation51_spill] sm:$0xff] %v5202_v13  ;;  %v5204_v38 = vadd.f32 %v2582_v30, %v2289_v7  ;;  %3156 = vmatprep.mubr.bf16.mxu1 %v4433_v40  ;;  %v2291_v8 = vpop.f32.mrf.mxu0 }
 0x1cf   : > { %v2584_v34 = vpop.f32.mrf.mxu1 }
 0x1d0   : > { %6056 = vst [vmem:[#allocation52_spill] sm:$0xff] %v5204_v38  ;;  %v5207_v44 = vadd.f32 %v2584_v34, %v2291_v8  ;;  %v2293_v26 = vpop.f32.mrf.mxu0  ;;  %v4420_v38 = vld [vmem:[%s4612_s12 + $0x558] ss:$28 sps:$4 sm:$0xff]  }
 0x1d1   : > { %v2586_v56 = vpop.f32.mrf.mxu1 }
 0x1d2   : > { %6057 = vst [vmem:[#allocation53_spill] sm:$0xff] %v5207_v44  ;;  %v5211_v22 = vadd.f32 %v2586_v56, %v2293_v26  ;;  %v2295_v13 = vpop.f32.mrf.mxu0  ;;  %v4417_v44 = vld [vmem:[%s4612_s12 + $0x550] ss:$28 sps:$4 sm:$0xff]  }
 0x1d3   : > { %v2588_v50 = vpop.f32.mrf.mxu1 }
 0x1d4   : > { %6058 = vst [vmem:[#allocation54_spill] sm:$0xff] %v5211_v22  ;;  %v5214_v17 = vadd.f32 %v2588_v50, %v2295_v13  ;;  %v2299_v4 = vpop.f32.mrf.mxu0  ;;  %2864 = vmatmul.mubr.bf16.gmra.mxu0 %v4413_v60  ;;  %v4423_v50 = vld [vmem:[%s4612_s12 + $0x58c] ss:$28 sps:$4 sm:$0xff]  }
 0x1d5   : > { %v2592_v7 = vpop.f32.mrf.mxu1  ;;  %3157 = vmatmul.mubr.bf16.gmra.mxu1 %v4416_v57  ;;  %2873 = vmatprep.mubr.bf16.mxu0 %v4419_v0 }
 0x1d6   : > { %6059 = vst [vmem:[#allocation55_spill] sm:$0xff] %v5214_v17  ;;  %v5216_v30 = vadd.f32 %v2592_v7, %v2299_v4  ;;  %3166 = vmatprep.mubr.bf16.mxu1 %v4433_v40  ;;  %v2301_v8 = vpop.f32.mrf.mxu0 }
 0x1d7   : > { %v2594_v56 = vpop.f32.mrf.mxu1 }
 0x1d8   : > { %6060 = vst [vmem:[#allocation56_spill] sm:$0xff] %v5216_v30  ;;  %v5219_v34 = vadd.f32 %v2594_v56, %v2301_v8  ;;  %v2303_v26 = vpop.f32.mrf.mxu0  ;;  %v4421_v30 = vld [vmem:[%s4612_s12 + $0x588] ss:$28 sps:$4 sm:$0xff]  }
 0x1d9   : > { %v2596_v22 = vpop.f32.mrf.mxu1 }
 0x1da   : > { %6061 = vst [vmem:[#allocation57_spill] sm:$0xff] %v5219_v34  ;;  %v5223_v13 = vadd.f32 %v2596_v22, %v2303_v26  ;;  %v2305_v17 = vpop.f32.mrf.mxu0 }
 0x1db   : > { %v2598_v60 = vpop.f32.mrf.mxu1 }
 0x1dc   : > { %6062 = vst [vmem:[#allocation58_spill] sm:$0xff] %v5223_v13  ;;  %v5226_v57 = vadd.f32 %v2598_v60, %v2305_v17  ;;  %v2635_v0 = vpop.f32.mrf.mxu0  ;;  %2874 = vmatmul.mubr.bf16.gmra.mxu0 %v4417_v44  ;;  %v4424_v17 = vld [vmem:[%s4612_s12 + $0x590] ss:$28 sps:$4 sm:$0xff]  }
 0x1dd   : > { %v2928_v4 = vpop.f32.mrf.mxu1  ;;  %3167 = vmatmul.mubr.bf16.gmra.mxu1 %v4420_v38  ;;  %v2636_v7 = vadd.f32 %v2635_v0, %v4917_v24  ;;  %2883 = vmatprep.mubr.bf16.mxu0 %v4423_v50 }
 0x1de   : > { %6063 = vst [vmem:[#allocation59_spill] sm:$0xff] %v5226_v57  ;;  %3176 = vmatprep.mubr.bf16.mxu1 %v4433_v40  ;;  %v2637_v8 = vpop.f32.mrf.mxu0 }
 0x1df   : > { %v2930_v56 = vpop.f32.mrf.mxu1  ;;  %v5230_v22 = vadd.f32 %v2928_v4, %v2636_v7  ;;  %v2638_v26 = vadd.f32 %v2637_v8, %v4919_v27 }
 0x1e0   : > { %v2639_v13 = vpop.f32.mrf.mxu0 }
 0x1e1   : > { %v2932_v34 = vpop.f32.mrf.mxu1  ;;  %v5235_v60 = vadd.f32 %v2930_v56, %v2638_v26  ;;  %v2640_v44 = vadd.f32 %v2639_v13, %v4923_v32 }
 0x1e2   : > { %v2641_v38 = vpop.f32.mrf.mxu0 }
 0x1e3   : > { %v2934_v57 = vpop.f32.mrf.mxu1  ;;  %v5238_v24 = vadd.f32 %v2932_v34, %v2640_v44  ;;  %v2642_v40 = vadd.f32 %v2641_v38, %v4926_v36 }
 0x1e4   : > { %v2645_v50 = vpop.f32.mrf.mxu0  ;;  %2884 = vmatmul.mubr.bf16.gmra.mxu0 %v4421_v30 }
 0x1e5   : > { %v2938_v0 = vpop.f32.mrf.mxu1  ;;  %3177 = vmatmul.mubr.bf16.gmra.mxu1 %v4424_v17  ;;  %v5241_v4 = vadd.f32 %v2934_v57, %v2642_v40  ;;  %v2646_v27 = vadd.f32 %v2645_v50, %v4928_v39 }
 0x1e6   : > { %v2647_v7 = vpop.f32.mrf.mxu0 }
 0x1e7   : > { %v2940_v8 = vpop.f32.mrf.mxu1  ;;  %v2648_v56 = vadd.f32 %v2647_v7, %v4931_v43  ;;  %v5245_v26 = vadd.f32 %v2938_v0, %v2646_v27 }
 0x1e8   : > { %v2649_v32 = vpop.f32.mrf.mxu0 }
 0x1e9   : > { %v2942_v13 = vpop.f32.mrf.mxu1  ;;  %v5247_v34 = vadd.f32 %v2940_v8, %v2648_v56  ;;  %v2650_v36 = vadd.f32 %v2649_v32, %v4935_v48 }
 0x1ea   : > { %v2651_v44 = vpop.f32.mrf.mxu0 }
 0x1eb   : > { %v2944_v30 = vpop.f32.mrf.mxu1  ;;  %v5250_v38 = vadd.f32 %v2942_v13, %v2650_v36  ;;  %v2652_v57 = vadd.f32 %v2651_v44, %v4938_v52 }
 0x1ec   : > { %v2655_v17 = vpop.f32.mrf.mxu0 }
 0x1ed   : > { %v2948_v39 = vpop.f32.mrf.mxu1  ;;  %v5253_v40 = vadd.f32 %v2944_v30, %v2652_v57  ;;  %v2656_v43 = vadd.f32 %v2655_v17, %v4940_v55 }
 0x1ee   : > { %v2657_v50 = vpop.f32.mrf.mxu0 }
 0x1ef   : > { %v2950_v0 = vpop.f32.mrf.mxu1  ;;  %v5256_v27 = vadd.f32 %v2948_v39, %v2656_v43  ;;  %v2658_v7 = vadd.f32 %v2657_v50, %v4943_v58 }
 0x1f0   : > { %v2659_v8 = vpop.f32.mrf.mxu0 }
 0x1f1   : > { %v2952_v48 = vpop.f32.mrf.mxu1  ;;  %v2660_v56 = vadd.f32 %v2659_v8, %v4947_v63  ;;  %v5260_v32 = vadd.f32 %v2950_v0, %v2658_v7 }
 0x1f2   : > { %v2661_v13 = vpop.f32.mrf.mxu0 }
 0x1f3   : > { %v2954_v52 = vpop.f32.mrf.mxu1  ;;  %v5262_v36 = vadd.f32 %v2952_v48, %v2660_v56  ;;  %v2662_v44 = vadd.f32 %v2661_v13, %v4950_v3  ;;  %v3189_v56 = vlaneseq }
 0x1f4   : > { %v2665_v30 = vpop.f32.mrf.mxu0 }
 0x1f5   : > { %v2958_v55 = vpop.f32.mrf.mxu1  ;;  %v5265_v57 = vadd.f32 %v2954_v52, %v2662_v44  ;;  %v2666_v17 = vadd.f32 %v2665_v30, %v4952_v6 }
 0x1f6   : > { %v2667_v39 = vpop.f32.mrf.mxu0 }
 0x1f7   : > { %v2960_v58 = vpop.f32.mrf.mxu1  ;;  %v5268_v43 = vadd.f32 %v2958_v55, %v2666_v17  ;;  %v2668_v63 = vadd.f32 %v2667_v39, %v4955_v9  ;;  %v3190_v39 = vshrl.u32 %v3189_v56, 7 }
 0x1f8   : > { %v2669_v50 = vpop.f32.mrf.mxu0 }
 0x1f9   : > { %v2962_v0 = vpop.f32.mrf.mxu1  ;;  %v5271_v7 = vadd.f32 %v2960_v58, %v2668_v63  ;;  %v2670_v8 = vadd.f32 %v2669_v50, %v4959_v14  ;;  %v3195_v56 = vsub.s32 1, %v3190_v39 }
 0x1fa   : > { %v2671_v48 = vpop.f32.mrf.mxu0 }
 0x1fb   : > { %v2964_v3 = vpop.f32.mrf.mxu1  ;;  %v2672_v13 = vadd.f32 %v2671_v48, %v4962_v18  ;;  %v5275_v52 = vadd.f32 %v2962_v0, %v2670_v8  ;;  %v3191_v48 = vsub.s32 0, %v3190_v39  ;;  %v3303_v39 = vld [vmem:[%s6002_s3] sm:$0x3] }
 0x1fc   : > { %v2675_v6 = vpop.f32.mrf.mxu0 }
 0x1fd   : > { %v2968_v44 = vpop.f32.mrf.mxu1  ;;  %v5277_v30 = vadd.f32 %v2964_v3, %v2672_v13  ;;  %v2676_v55 = vadd.f32 %v2675_v6, %v4964_v21  ;;  %v3187_v21 = vld [vmem:[%s6001_s2] sm:$0x3] }
 0x1fe   : > { %v2677_v9 = vpop.f32.mrf.mxu0 }
 0x1ff   : > { %v2970_v17 = vpop.f32.mrf.mxu1  ;;  %v5280_v58 = vadd.f32 %v2968_v44, %v2676_v55  ;;  %v2678_v14 = vadd.f32 %v2677_v9, %v4967_v25 }
 0x200   : > { %v2679_v63 = vpop.f32.mrf.mxu0 }
 0x201   : > { %v2972_v50 = vpop.f32.mrf.mxu1  ;;  %v5283_v49 = vadd.f32 %v2970_v17, %v2678_v14  ;;  %v2680_v18 = vadd.f32 %v2679_v63, %v4971_v31  ;;  %v5295_v17 = vrot.slane %v3187_v21, %v3191_v48 }
 0x202   : > { %v2681_v0 = vpop.f32.mrf.mxu0 }
 0x203   : > { %v2974_v8 = vpop.f32.mrf.mxu1  ;;  %v5286_v3 = vadd.f32 %v2972_v50, %v2680_v18  ;;  %v2682_v13 = vadd.f32 %v2681_v0, %v4974_v37  ;;  %v5303_v50 = vrot.slane %v3187_v21, %v3195_v56 }
 0x204   : > { %v2685_v6 = vpop.f32.mrf.mxu0 }
 0x205   : > { %v2978_v25 = vpop.f32.mrf.mxu1  ;;  %v2686_v44 = vadd.f32 %v2685_v6, %v4976_v42  ;;  %v5293_v55 = vadd.f32 %v2974_v8, %v2682_v13  ;;  %v3199_v6 = vmul.f32 %v5295_v17, %v5230_v22  ;;  %v3200_v21 = vmul.f32 %v5303_v50, %v5235_v60 }
 0x206   : > { %v2687_v9 = vpop.f32.mrf.mxu0  ;;  %v3202_v22 = vmul.f32 %v5303_v50, %v5241_v4  ;;  %v3205_v4 = vmul.f32 %v5295_v17, %v5250_v38  ;;  %v3207_v38 = vmul.f32 %v5295_v17, %v5256_v27 }
 0x207   : > { %v2980_v31 = vpop.f32.mrf.mxu1  ;;  %v5297_v14 = vadd.f32 %v2978_v25, %v2686_v44  ;;  %v2688_v63 = vadd.f32 %v2687_v9, %v4979_v46  ;;  %v5310_v25 = vrot.slane %v3303_v39, %v3191_v48  ;;  %v5317_v9 = vrot.slane %v3303_v39, %v3195_v56 }
 0x208   : > { %v2689_v37 = vpop.f32.mrf.mxu0  ;;  %v3203_v48 = vmul.f32 %v5295_v17, %v5245_v26  ;;  %v3204_v56 = vmul.f32 %v5303_v50, %v5247_v34  ;;  %v3206_v26 = vmul.f32 %v5303_v50, %v5253_v40 }
 0x209   : > { %v2982_v18 = vpop.f32.mrf.mxu1  ;;  %v5305_v0 = vadd.f32 %v2980_v31, %v2688_v63  ;;  %v2690_v42 = vadd.f32 %v2689_v37, %v4983_v53  ;;  %v3201_v53 = vmul.f32 %v5295_v17, %v5238_v24  ;;  %v3315_v60 = vadd.f32 %v5310_v25, %v3199_v6 }
 0x20a   : > { %v2691_v8 = vpop.f32.mrf.mxu0  ;;  %v5333_v24 = vadd.f32 %v5317_v9, %v3200_v21  ;;  %v5348_v34 = vadd.f32 %v5317_v9, %v3202_v22  ;;  %v5351_v21 = vadd.f32 %v5310_v25, %v3203_v48  ;;  %v5361_v22 = vadd.f32 %v5310_v25, %v3205_v4 }
 0x20b   : > { %v2984_v13 = vpop.f32.mrf.mxu1  ;;  %v5312_v46 = vadd.f32 %v2982_v18, %v2690_v42  ;;  %v2692_v44 = vadd.f32 %v2691_v8, %v4986_v59  ;;  %v5342_v6 = vadd.f32 %v5310_v25, %v3201_v53  ;;  %v5364_v48 = vadd.f32 %v5317_v9, %v3206_v26 }
 0x20c   : > { %v2695_v31 = vpop.f32.mrf.mxu0  ;;  %v3208_v4 = vmul.f32 %v5303_v50, %v5260_v32 }
 0x20d   : > { %v2988_v63 = vpop.f32.mrf.mxu1  ;;  %v5321_v37 = vadd.f32 %v2984_v13, %v2692_v44  ;;  %v2696_v59 = vadd.f32 %v2695_v31, %v4988_v62  ;;  %v3421_v27 = vmax.f32 %v5342_v6, 0.0 }
 0x20e   : > { %v2697_v18 = vpop.f32.mrf.mxu0 }
 0x20f   : > { %v2990_v42 = vpop.f32.mrf.mxu1  ;;  %v2698_v39 = vadd.f32 %v2697_v18, %v4991_v2  ;;  %v5339_v8 = vadd.f32 %v2988_v63, %v2696_v59  ;;  %v5356_v63 = vadd.f32 %v5317_v9, %v3204_v56  ;;  %v3419_v18 = vmax.f32 %v3315_v60, 0.0 }
 0x210   : > { %v2699_v62 = vpop.f32.mrf.mxu0 }
 0x211   : > { %v2992_v13 = vpop.f32.mrf.mxu1  ;;  %v5344_v44 = vadd.f32 %v2990_v42, %v2698_v39  ;;  %v2700_v2 = vadd.f32 %v2699_v62, %v4995_v10  ;;  %v3420_v10 = vmax.f32 %v5333_v24, 0.0  ;;  %v5372_v24 = vadd.f32 %v5310_v25, %v3207_v38 }
 0x212   : > { %v2701_v40 = vpop.f32.mrf.mxu0  ;;  %v3209_v38 = vmul.f32 %v5295_v17, %v5262_v36 }
 0x213   : > { %6064 = vst [vmem:[#allocation60_spill] sm:$0xff] %v5344_v44  ;;  %v2994_v31 = vpop.f32.mrf.mxu1  ;;  %v2993_v53 = vadd.f32 %v2992_v13, %v2700_v2  ;;  %v2702_v59 = vadd.f32 %v2701_v40, %v4998_v15  ;;  %v3422_v15 = vmax.f32 %v5348_v34, 0.0 }
 0x214   : > { %v2705_v42 = vpop.f32.mrf.mxu0 }
 0x215   : > { %v2998_v39 = vpop.f32.mrf.mxu1  ;;  %v3225_v62 = vmul.f32 %v5295_v17, %v2993_v53  ;;  %v2995_v56 = vadd.f32 %v2994_v31, %v2702_v59  ;;  %v2706_v13 = vadd.f32 %v2705_v42, %v5000_v19 }
 0x216   : > { %v2707_v26 = vpop.f32.mrf.mxu0 }
 0x217   : > { %v3000_v2 = vpop.f32.mrf.mxu1  ;;  %v3341_v6 = vadd.f32 %v5310_v25, %v3225_v62  ;;  %v3226_v31 = vmul.f32 %v5303_v50, %v2995_v56  ;;  %v2999_v53 = vadd.f32 %v2998_v39, %v2706_v13  ;;  %v2708_v59 = vadd.f32 %v2707_v26, %v5003_v23 }
 0x218   : > { %v2709_v42 = vpop.f32.mrf.mxu0  ;;  %v3427_v39 = vmax.f32 %v5372_v24, 0.0  ;;  %v5389_v56 = vadd.f32 %v5317_v9, %v3208_v4  ;;  %v3210_v13 = vmul.f32 %v5303_v50, %v5265_v57 }
 0x219   : > { %v3002_v32 = vpop.f32.mrf.mxu1  ;;  %v3445_v60 = vmax.f32 %v3341_v6, 0.0  ;;  %v3342_v44 = vadd.f32 %v5317_v9, %v3226_v31  ;;  %v3227_v40 = vmul.f32 %v5295_v17, %v2999_v53  ;;  %v2710_v62 = vadd.f32 %v2709_v42, %v5007_v33 }
 0x21a   : > { %v3001_v36 = vadd.f32 %v3000_v2, %v2708_v59  ;;  %v2711_v34 = vpop.f32.mrf.mxu0  ;;  %v5397_v53 = vadd.f32 %v5310_v25, %v3209_v38  ;;  %v3211_v33 = vmul.f32 %v5295_v17, %v5268_v43  ;;  %v5409_v38 = vadd.f32 %v5317_v9, %v3210_v13 }
 0x21b   : > { %v3004_v23 = vpop.f32.mrf.mxu1  ;;  %v5393_v26 = vmax.f32 %v3419_v18, %v3445_v60  ;;  %v3446_v6 = vmax.f32 %v3342_v44, 0.0  ;;  %v3343_v31 = vadd.f32 %v5310_v25, %v3227_v40  ;;  %v3003_v19 = vadd.f32 %v3002_v32, %v2710_v62 }
 0x21c   : > { %v3228_v4 = vmul.f32 %v5303_v50, %v3001_v36  ;;  %v2712_v42 = vadd.f32 %v2711_v34, %v5010_v41  ;;  %v2715_v57 = vpop.f32.mrf.mxu0  ;;  %v3428_v40 = vmax.f32 %v5389_v56, 0.0 }
 0x21d   : > { %v3008_v2 = vpop.f32.mrf.mxu1  ;;  %v5403_v59 = vmax.f32 %v3420_v10, %v3446_v6  ;;  %v3447_v18 = vmax.f32 %v3343_v31, 0.0  ;;  %v3229_v44 = vmul.f32 %v5295_v17, %v3003_v19  ;;  %v2716_v60 = vadd.f32 %v2715_v57, %v5012_v47 }
 0x21e   : > { %v3344_v43 = vadd.f32 %v5317_v9, %v3228_v4  ;;  %v3005_v32 = vadd.f32 %v3004_v23, %v2712_v42  ;;  %v2717_v62 = vpop.f32.mrf.mxu0  ;;  %v3429_v19 = vmax.f32 %v5397_v53, 0.0  ;;  %v5418_v47 = vadd.f32 %v5310_v25, %v3211_v33 }
 0x21f   : > { %v3010_v36 = vpop.f32.mrf.mxu1  ;;  %v5412_v41 = vmax.f32 %v3421_v27, %v3447_v18  ;;  %v3345_v10 = vadd.f32 %v5310_v25, %v3229_v44  ;;  %v3009_v34 = vadd.f32 %v3008_v2, %v2716_v60  ;;  %v2718_v6 = vadd.f32 %v2717_v62, %v5015_v51 }
 0x220   : > { %v3448_v31 = vmax.f32 %v3344_v43, 0.0  ;;  %v3230_v13 = vmul.f32 %v5303_v50, %v3005_v32  ;;  %v2719_v57 = vpop.f32.mrf.mxu0  ;;  %v3430_v2 = vmax.f32 %v5409_v38, 0.0  ;;  %v3212_v51 = vmul.f32 %v5303_v50, %v5271_v7 }
 0x221   : > { %v3012_v4 = vpop.f32.mrf.mxu1  ;;  %v3449_v23 = vmax.f32 %v3345_v10, 0.0  ;;  %v3231_v42 = vmul.f32 %v5295_v17, %v3009_v34  ;;  %v3011_v27 = vadd.f32 %v3010_v36, %v2718_v6  ;;  %v2720_v18 = vadd.f32 %v2719_v57, %v5019_v61 }
 0x222   : > { %v5426_v44 = vmax.f32 %v3422_v15, %v3448_v31  ;;  %v3346_v33 = vadd.f32 %v5317_v9, %v3230_v13  ;;  %v2721_v60 = vpop.f32.mrf.mxu0  ;;  %v6065_v32 = vmax.f32 %v5351_v21, 0.0  ;;  %v3431_v34 = vmax.f32 %v5418_v47, 0.0 }
 0x223   : > { %v3014_v43 = vpop.f32.mrf.mxu1  ;;  %v3347_v10 = vadd.f32 %v5310_v25, %v3231_v42  ;;  %v3232_v36 = vmul.f32 %v5303_v50, %v3011_v27  ;;  %v3013_v61 = vadd.f32 %v3012_v4, %v2720_v18  ;;  %v3213_v7 = vmul.f32 %v5295_v17, %v5275_v52 }
 0x224   : > { %v5431_v62 = vmax.f32 %v6065_v32, %v3449_v23  ;;  %v3450_v15 = vmax.f32 %v3346_v33, 0.0  ;;  %v2722_v6 = vadd.f32 %v2721_v60, %v5022_v5  ;;  %v2725_v31 = vpop.f32.mrf.mxu0  ;;  %v5443_v27 = vadd.f32 %v5317_v9, %v3212_v51 }
 0x225   : > { %v3018_v13 = vpop.f32.mrf.mxu1  ;;  %v3451_v57 = vmax.f32 %v3347_v10, 0.0  ;;  %v3348_v21 = vadd.f32 %v5317_v9, %v3232_v36  ;;  %v3233_v23 = vmul.f32 %v5295_v17, %v3013_v61  ;;  %v2726_v42 = vadd.f32 %v2725_v31, %v5024_v11 }
 0x226   : > { %v3214_v4 = vmul.f32 %v5303_v50, %v5277_v30  ;;  %v6066_v52 = vmax.f32 %v5356_v63, 0.0  ;;  %v3015_v5 = vadd.f32 %v3014_v43, %v2722_v6  ;;  %v2727_v33 = vpop.f32.mrf.mxu0  ;;  %v6067_v32 = vmax.f32 %v5361_v22, 0.0 }
 0x227   : > { %v3020_v60 = vpop.f32.mrf.mxu1  ;;  %v3452_v36 = vmax.f32 %v3348_v21, 0.0  ;;  %v3349_v11 = vadd.f32 %v5310_v25, %v3233_v23  ;;  %v3019_v61 = vadd.f32 %v3018_v13, %v2726_v42  ;;  %v5457_v51 = vadd.f32 %v5310_v25, %v3213_v7 }
 0x228   : > { %v5449_v18 = vmax.f32 %v6066_v52, %v3450_v15  ;;  %v5453_v10 = vmax.f32 %v6067_v32, %v3451_v57  ;;  %v3215_v30 = vmul.f32 %v5295_v17, %v5280_v58  ;;  %v3234_v63 = vmul.f32 %v5303_v50, %v3015_v5  ;;  %v2729_v15 = vpop.f32.mrf.mxu0 }
 0x229   : > { %v2728_v43 = vadd.f32 %v2727_v33, %v5027_v16  ;;  %v3022_v6 = vpop.f32.mrf.mxu1  ;;  %v6068_v22 = vmax.f32 %v5364_v48, 0.0  ;;  %v3453_v57 = vmax.f32 %v3349_v11, 0.0  ;;  %v3235_v21 = vmul.f32 %v5295_v17, %v3019_v61 }
 0x22a   : > { %v2730_v13 = vadd.f32 %v2729_v15, %v5031_v28  ;;  %v3432_v7 = vmax.f32 %v5443_v27, 0.0  ;;  %v5471_v23 = vadd.f32 %v5317_v9, %v3214_v4  ;;  %v3350_v58 = vadd.f32 %v5317_v9, %v3234_v63  ;;  %v2731_v16 = vpop.f32.mrf.mxu0 }
 0x22b   : > { %v5465_v31 = vmax.f32 %v6068_v22, %v3452_v36  ;;  %v3021_v42 = vadd.f32 %v3020_v60, %v2728_v43  ;;  %v3024_v52 = vpop.f32.mrf.mxu1  ;;  %v5476_v48 = vmax.f32 %v3427_v39, %v3453_v57  ;;  %v3351_v5 = vadd.f32 %v5310_v25, %v3235_v21 }
 0x22c   : > { %v3023_v33 = vadd.f32 %v3022_v6, %v2730_v13  ;;  %v2732_v32 = vadd.f32 %v2731_v16, %v5034_v35  ;;  %v3433_v28 = vmax.f32 %v5457_v51, 0.0  ;;  %v5482_v27 = vadd.f32 %v5310_v25, %v3215_v30  ;;  %v2735_v60 = vpop.f32.mrf.mxu0 }
 0x22d   : > { %v3454_v4 = vmax.f32 %v3350_v58, 0.0  ;;  %v3236_v36 = vmul.f32 %v5303_v50, %v3021_v42  ;;  %v3028_v11 = vpop.f32.mrf.mxu1  ;;  %v3455_v61 = vmax.f32 %v3351_v5, 0.0  ;;  %v2736_v63 = vadd.f32 %v2735_v60, %v5036_v45 }
 0x22e   : > { %v3237_v24 = vmul.f32 %v5295_v17, %v3023_v33  ;;  %v3025_v39 = vadd.f32 %v3024_v52, %v2732_v32  ;;  %v3216_v43 = vmul.f32 %v5303_v50, %v5283_v49  ;;  %v3217_v35 = vmul.f32 %v5295_v17, %v5286_v3  ;;  %v2737_v15 = vpop.f32.mrf.mxu0 }
 0x22f   : > { %v5493_v51 = vmax.f32 %v3428_v40, %v3454_v4  ;;  %v3352_v30 = vadd.f32 %v5317_v9, %v3236_v36  ;;  %v3030_v6 = vpop.f32.mrf.mxu1  ;;  %v5498_v22 = vmax.f32 %v3429_v19, %v3455_v61  ;;  %v3029_v49 = vadd.f32 %v3028_v11, %v2736_v63 }
 0x230   : > { %v3353_v45 = vadd.f32 %v5310_v25, %v3237_v24  ;;  %v3238_v57 = vmul.f32 %v5303_v50, %v3025_v39  ;;  %v3434_v21 = vmax.f32 %v5471_v23, 0.0  ;;  %v3435_v3 = vmax.f32 %v5482_v27, 0.0  ;;  %v2739_v13 = vpop.f32.mrf.mxu0 }
 0x231   : > { %v3456_v56 = vmax.f32 %v3352_v30, 0.0  ;;  %v2738_v40 = vadd.f32 %v2737_v15, %v5039_v54  ;;  %v3032_v58 = vpop.f32.mrf.mxu1  ;;  %v3239_v53 = vmul.f32 %v5295_v17, %v3029_v49  ;;  %v2740_v19 = vadd.f32 %v2739_v13, %v5043_v1 }
 0x232   : > { %v3457_v42 = vmax.f32 %v3353_v45, 0.0  ;;  %v3354_v16 = vadd.f32 %v5317_v9, %v3238_v57  ;;  %v5509_v52 = vadd.f32 %v5317_v9, %v3216_v43  ;;  %v5512_v5 = vadd.f32 %v5310_v25, %v3217_v35  ;;  %v2741_v33 = vpop.f32.mrf.mxu0 }
 0x233   : > { %v5516_v23 = vmax.f32 %v3430_v2, %v3456_v56  ;;  %v3031_v54 = vadd.f32 %v3030_v6, %v2738_v40  ;;  %v3034_v32 = vpop.f32.mrf.mxu1  ;;  %v3355_v1 = vadd.f32 %v5310_v25, %v3239_v53  ;;  %v3033_v36 = vadd.f32 %v3032_v58, %v2740_v19 }
 0x234   : > { %v5520_v27 = vmax.f32 %v3431_v34, %v3457_v42  ;;  %v3458_v4 = vmax.f32 %v3354_v16, 0.0  ;;  %v3218_v60 = vmul.f32 %v5303_v50, %v5293_v55  ;;  %v3219_v11 = vmul.f32 %v5295_v17, %v5297_v14  ;;  %v2745_v61 = vpop.f32.mrf.mxu0 }
 0x235   : > { %6069 = vst [vmem:[#allocation61_spill] sm:$0xff] %v5516_v23  ;;  %v3240_v38 = vmul.f32 %v5303_v50, %v3031_v54  ;;  %v2742_v2 = vadd.f32 %v2741_v33, %v5046_v12  ;;  %v3038_v24 = vpop.f32.mrf.mxu1  ;;  %v3459_v47 = vmax.f32 %v3355_v1, 0.0  ;;  %v3241_v34 = vmul.f32 %v5295_v17, %v3033_v36 }
 0x236   : > { %6070 = vst [vmem:[#allocation62_spill] sm:$0xff] %v5520_v27  ;;  %v5529_v39 = vmax.f32 %v3432_v7, %v3458_v4  ;;  %v2746_v63 = vadd.f32 %v2745_v61, %v5048_v20  ;;  %v3436_v43 = vmax.f32 %v5509_v52, 0.0  ;;  %v3437_v55 = vmax.f32 %v5512_v5, 0.0  ;;  %v2747_v30 = vpop.f32.mrf.mxu0  ;;  %v6101_v27 = vld [vmem:[#allocation18_spill] sm:$0xff] }
 0x237   : > { %v3356_v35 = vadd.f32 %v5317_v9, %v3240_v38  ;;  %v3035_v14 = vadd.f32 %v3034_v32, %v2742_v2  ;;  %v3040_v15 = vpop.f32.mrf.mxu1  ;;  %v5536_v6 = vmax.f32 %v3433_v28, %v3459_v47  ;;  %v3357_v12 = vadd.f32 %v5310_v25, %v3241_v34  ;;  %v6073_v28 = vld [vmem:[#allocation2_spill] sm:$0xff]  ;;  %v6077_v34 = vld [vmem:[#allocation4_spill] sm:$0xff] }
 0x238   : > { %6071 = vst [vmem:[#allocation63_spill] sm:$0xff] %v5529_v39  ;;  %v3039_v7 = vadd.f32 %v3038_v24, %v2746_v63  ;;  %v2748_v45 = vadd.f32 %v2747_v30, %v5051_v29  ;;  %v3334_v57 = vadd.f32 %v5317_v9, %v3218_v60  ;;  %v3335_v20 = vadd.f32 %v5310_v25, %v3219_v11  ;;  %v2749_v40 = vpop.f32.mrf.mxu0 }
 0x239   : > { %6072 = vst [vmem:[#allocation64_spill] sm:$0xff] %v5536_v6  ;;  %v3460_v49 = vmax.f32 %v3356_v35, 0.0  ;;  %v3242_v56 = vmul.f32 %v5303_v50, %v3035_v14  ;;  %v3042_v13 = vpop.f32.mrf.mxu1  ;;  %v3461_v58 = vmax.f32 %v3357_v12, 0.0  ;;  %v2750_v53 = vadd.f32 %v2749_v40, %v6073_v28  ;;  %v6098_v6 = vld [vmem:[#allocation15_spill] sm:$0xff] }
 0x23a   : > { %v3243_v42 = vmul.f32 %v5295_v17, %v3039_v7  ;;  %v3041_v16 = vadd.f32 %v3040_v15, %v2748_v45  ;;  %v3220_v19 = vmul.f32 %v5303_v50, %v5305_v0  ;;  %v3221_v29 = vmul.f32 %v5295_v17, %v5312_v46  ;;  %v2751_v54 = vpop.f32.mrf.mxu0  ;;  %v6076_v0 = vld [vmem:[#allocation3_spill] sm:$0xff] }
 0x23b   : > { %v5549_v52 = vmax.f32 %v3434_v21, %v3460_v49  ;;  %v3358_v5 = vadd.f32 %v5317_v9, %v3242_v56  ;;  %v3044_v33 = vpop.f32.mrf.mxu1  ;;  %v5552_v32 = vmax.f32 %v3435_v3, %v3461_v58  ;;  %v3043_v36 = vadd.f32 %v3042_v13, %v2750_v53  ;;  %v6080_v13 = vld [vmem:[#allocation5_spill] sm:$0xff]  ;;  %v6082_v53 = vld [vmem:[#allocation6_spill] sm:$0xff] }
 0x23c   : > { %v3359_v4 = vadd.f32 %v5310_v25, %v3243_v42  ;;  %v3244_v1 = vmul.f32 %v5303_v50, %v3041_v16  ;;  %v3438_v60 = vmax.f32 %v3334_v57, 0.0  ;;  %v3439_v11 = vmax.f32 %v3335_v20, 0.0  ;;  %v2755_v61 = vpop.f32.mrf.mxu0 }
 0x23d   : > { %6074 = vst [vmem:[#allocation2_spill] sm:$0xff] %v5549_v52  ;;  %6075 = vst [vmem:[#allocation65_spill] sm:$0xff] %v5552_v32  ;;  %v3462_v38 = vmax.f32 %v3358_v5, 0.0  ;;  %v2752_v2 = vadd.f32 %v2751_v54, %v6076_v0  ;;  %v3048_v46 = vpop.f32.mrf.mxu1  ;;  %v3245_v47 = vmul.f32 %v5295_v17, %v3043_v36  ;;  %v2756_v3 = vadd.f32 %v2755_v61, %v6077_v34  ;;  %v6083_v5 = vld [vmem:[#allocation60_spill] sm:$0xff] }
 0x23e   : > { %v3463_v21 = vmax.f32 %v3359_v4, 0.0  ;;  %v3360_v24 = vadd.f32 %v5317_v9, %v3244_v1  ;;  %v3336_v63 = vadd.f32 %v5317_v9, %v3220_v19  ;;  %v3337_v35 = vadd.f32 %v5310_v25, %v3221_v29  ;;  %v2757_v15 = vpop.f32.mrf.mxu0 }
 0x23f   : > { %v5562_v14 = vmax.f32 %v3436_v43, %v3462_v38  ;;  %v3045_v30 = vadd.f32 %v3044_v33, %v2752_v2  ;;  %v3050_v12 = vpop.f32.mrf.mxu1  ;;  %v3361_v57 = vadd.f32 %v5310_v25, %v3245_v47  ;;  %v3049_v20 = vadd.f32 %v3048_v46, %v2756_v3  ;;  %v6085_v38 = vld [vmem:[#allocation7_spill] sm:$0xff] }
 0x240   : > { %v5564_v7 = vmax.f32 %v3437_v55, %v3463_v21  ;;  %v3464_v45 = vmax.f32 %v3360_v24, 0.0  ;;  %v3222_v49 = vmul.f32 %v5303_v50, %v5321_v37  ;;  %v3223_v56 = vmul.f32 %v5295_v17, %v5339_v8  ;;  %v2759_v58 = vpop.f32.mrf.mxu0 }
 0x241   : > { %6078 = vst [vmem:[#allocation3_spill] sm:$0xff] %v5562_v14  ;;  %v3246_v40 = vmul.f32 %v5303_v50, %v3045_v30  ;;  %v2758_v43 = vadd.f32 %v2757_v15, %v6080_v13  ;;  %v3052_v42 = vpop.f32.mrf.mxu1  ;;  %v3465_v55 = vmax.f32 %v3361_v57, 0.0  ;;  %v3247_v28 = vmul.f32 %v5295_v17, %v3049_v20 }
 0x242   : > { %6079 = vst [vmem:[#allocation4_spill] sm:$0xff] %v5564_v7  ;;  %v5573_v16 = vmax.f32 %v3438_v60, %v3464_v45  ;;  %v2760_v19 = vadd.f32 %v2759_v58, %v6082_v53  ;;  %v3440_v29 = vmax.f32 %v3336_v63, 0.0  ;;  %v3224_v37 = vmul.f32 %v5303_v50, %v6083_v5  ;;  %v2761_v33 = vpop.f32.mrf.mxu0 }
 0x243   : > { %v3362_v54 = vadd.f32 %v5317_v9, %v3246_v40  ;;  %v3051_v8 = vadd.f32 %v3050_v12, %v2758_v43  ;;  %v3054_v4 = vpop.f32.mrf.mxu1  ;;  %v5580_v1 = vmax.f32 %v3439_v11, %v3465_v55  ;;  %v3363_v36 = vadd.f32 %v5310_v25, %v3247_v28 }
 0x244   : > { %6081 = vst [vmem:[#allocation5_spill] sm:$0xff] %v5573_v16  ;;  %v3053_v60 = vadd.f32 %v3052_v42, %v2760_v19  ;;  %v2762_v0 = vadd.f32 %v2761_v33, %v6085_v38  ;;  %v3441_v2 = vmax.f32 %v3337_v35, 0.0  ;;  %v3338_v61 = vadd.f32 %v5317_v9, %v3222_v49  ;;  %v2765_v24 = vpop.f32.mrf.mxu0 }
 0x245   : > { %6084 = vst [vmem:[#allocation6_spill] sm:$0xff] %v5580_v1  ;;  %v3466_v46 = vmax.f32 %v3362_v54, 0.0  ;;  %v3248_v21 = vmul.f32 %v5303_v50, %v3051_v8  ;;  %v3058_v47 = vpop.f32.mrf.mxu1  ;;  %v3339_v34 = vadd.f32 %v5310_v25, %v3223_v56  ;;  %v3467_v3 = vmax.f32 %v3363_v36, 0.0 }
 0x246   : > { %v3249_v63 = vmul.f32 %v5295_v17, %v3053_v60  ;;  %v3055_v11 = vadd.f32 %v3054_v4, %v2762_v0  ;;  %v2767_v12 = vpop.f32.mrf.mxu0  ;;  %v3340_v35 = vadd.f32 %v5317_v9, %v3224_v37  ;;  %v3442_v40 = vmax.f32 %v3338_v61, 0.0 }
 0x247   : > { %v5588_v30 = vmax.f32 %v3440_v29, %v3466_v46  ;;  %v3364_v15 = vadd.f32 %v5317_v9, %v3248_v21  ;;  %v3060_v45 = vpop.f32.mrf.mxu1  ;;  %v5592_v57 = vmax.f32 %v3441_v2, %v3467_v3  ;;  %v3443_v58 = vmax.f32 %v3339_v34, 0.0 }
 0x248   : > { %v3365_v20 = vadd.f32 %v5310_v25, %v3249_v63  ;;  %v3250_v49 = vmul.f32 %v5303_v50, %v3055_v11  ;;  %v2769_v13 = vpop.f32.mrf.mxu0  ;;  %v3444_v29 = vmax.f32 %v3340_v35, 0.0  ;;  %v6091_v35 = vld [vmem:[#allocation8_spill] sm:$0xff] }
 0x249   : > { %6086 = vst [vmem:[#allocation60_spill] sm:$0xff] %v5588_v30  ;;  %6087 = vst [vmem:[#allocation7_spill] sm:$0xff] %v5592_v57  ;;  %v3468_v56 = vmax.f32 %v3364_v15, 0.0  ;;  %v3062_v43 = vpop.f32.mrf.mxu1  ;;  %v6094_v30 = vld [vmem:[#allocation11_spill] sm:$0xff] }
 0x24a   : > { %v3469_v42 = vmax.f32 %v3365_v20, 0.0  ;;  %v3366_v55 = vadd.f32 %v5317_v9, %v3250_v49  ;;  %v2771_v53 = vpop.f32.mrf.mxu0  ;;  %v2766_v20 = vadd.f32 %v2765_v24, %v6091_v35  ;;  %v6092_v49 = vld [vmem:[#allocation9_spill] sm:$0xff] }
 0x24b   : > { %v5597_v28 = vmax.f32 %v3442_v40, %v3468_v56  ;;  %v3064_v19 = vpop.f32.mrf.mxu1  ;;  %v2768_v40 = vadd.f32 %v2767_v12, %v6092_v49  ;;  %v2772_v1 = vadd.f32 %v2771_v53, %v6094_v30  ;;  %v6095_v49 = vld [vmem:[#allocation12_spill] sm:$0xff]  ;;  %v6097_v53 = vld [vmem:[#allocation14_spill] sm:$0xff] }
 0x24c   : > { %v5599_v5 = vmax.f32 %v3443_v58, %v3469_v42  ;;  %v3470_v37 = vmax.f32 %v3366_v55, 0.0  ;;  %v2775_v54 = vpop.f32.mrf.mxu0 }
 0x24d   : > { %6088 = vst [vmem:[#allocation66_spill] sm:$0xff] %v5597_v28  ;;  %v3068_v8 = vpop.f32.mrf.mxu1  ;;  %v2776_v14 = vadd.f32 %v2775_v54, %v6095_v49 }
 0x24e   : > { %6089 = vst [vmem:[#allocation67_spill] sm:$0xff] %v5599_v5  ;;  %v5601_v33 = vmax.f32 %v3444_v29, %v3470_v37  ;;  %v2777_v4 = vpop.f32.mrf.mxu0  ;;  %v3059_v29 = vadd.f32 %v3058_v47, %v2766_v20  ;;  %v3061_v37 = vadd.f32 %v3060_v45, %v2768_v40  ;;  %v3065_v47 = vadd.f32 %v3064_v19, %v2772_v1  ;;  %v6096_v45 = vld [vmem:[#allocation13_spill] sm:$0xff]  ;;  %v6099_v19 = vld [vmem:[#allocation16_spill] sm:$0xff] }
 0x24f   : > { %v3070_v36 = vpop.f32.mrf.mxu1 }
 0x250   : > { %6090 = vst [vmem:[#allocation68_spill] sm:$0xff] %v5601_v33  ;;  %v2779_v60 = vpop.f32.mrf.mxu0  ;;  %v6093_v33 = vld [vmem:[#allocation10_spill] sm:$0xff]  ;;  %v3251_v24 = vmul.f32 %v5295_v17, %v3059_v29  ;;  %v3252_v12 = vmul.f32 %v5303_v50, %v3061_v37  ;;  %v3254_v1 = vmul.f32 %v5303_v50, %v3065_v47 }
 0x251   : > { %v3072_v38 = vpop.f32.mrf.mxu1  ;;  %v2770_v5 = vadd.f32 %v2769_v13, %v6093_v33  ;;  %v2778_v13 = vadd.f32 %v2777_v4, %v6096_v45  ;;  %v2780_v40 = vadd.f32 %v2779_v60, %v6097_v53 }
 0x252   : > { %v2781_v0 = vpop.f32.mrf.mxu0  ;;  %v5618_v30 = vadd.f32 %v5310_v25, %v3251_v24  ;;  %v5623_v37 = vadd.f32 %v5317_v9, %v3252_v12  ;;  %v6100_v24 = vld [vmem:[#allocation17_spill] sm:$0xff] }
 0x253   : > { %v3074_v2 = vpop.f32.mrf.mxu1  ;;  %v3063_v35 = vadd.f32 %v3062_v43, %v2770_v5  ;;  %v2782_v29 = vadd.f32 %v2781_v0, %v6098_v6  ;;  %v3069_v5 = vadd.f32 %v3068_v8, %v2776_v14  ;;  %v3071_v45 = vadd.f32 %v3070_v36, %v2778_v13  ;;  %v6102_v14 = vld [vmem:[#allocation19_spill] sm:$0xff] }
 0x254   : > { %v2785_v61 = vpop.f32.mrf.mxu0  ;;  %v3073_v12 = vadd.f32 %v3072_v38, %v2780_v40 }
 0x255   : > { %v3078_v46 = vpop.f32.mrf.mxu1  ;;  %v3253_v43 = vmul.f32 %v5295_v17, %v3063_v35  ;;  %v2786_v4 = vadd.f32 %v2785_v61, %v6099_v19  ;;  %v3075_v35 = vadd.f32 %v3074_v2, %v2782_v29  ;;  %v3255_v36 = vmul.f32 %v5295_v17, %v3069_v5  ;;  %v6103_v61 = vld [vmem:[#allocation20_spill] sm:$0xff]  ;;  %v6104_v2 = vld [vmem:[#allocation21_spill] sm:$0xff] }
 0x256   : > { %v2787_v21 = vpop.f32.mrf.mxu0  ;;  %v3256_v19 = vmul.f32 %v5303_v50, %v3071_v45 }
 0x257   : > { %v3080_v34 = vpop.f32.mrf.mxu1  ;;  %v2788_v39 = vadd.f32 %v2787_v21, %v6100_v24  ;;  %v5638_v47 = vadd.f32 %v5310_v25, %v3253_v43  ;;  %v3079_v38 = vadd.f32 %v3078_v46, %v2786_v4  ;;  %v6107_v46 = vld [vmem:[#allocation24_spill] sm:$0xff] }
 0x258   : > { %v2789_v3 = vpop.f32.mrf.mxu0 }
 0x259   : > { %v3082_v63 = vpop.f32.mrf.mxu1  ;;  %v2790_v60 = vadd.f32 %v2789_v3, %v6101_v27  ;;  %v5647_v3 = vadd.f32 %v5317_v9, %v3254_v1  ;;  %v3081_v43 = vadd.f32 %v3080_v34, %v2788_v39  ;;  %v3258_v1 = vmul.f32 %v5303_v50, %v3075_v35  ;;  %v6108_v34 = vld [vmem:[#allocation25_spill] sm:$0xff] }
 0x25a   : > { %v2791_v11 = vpop.f32.mrf.mxu0 }
 0x25b   : > { %v3084_v15 = vpop.f32.mrf.mxu1  ;;  %v2792_v8 = vadd.f32 %v2791_v11, %v6102_v14  ;;  %v6105_v11 = vld [vmem:[#allocation22_spill] sm:$0xff]  ;;  %v3083_v24 = vadd.f32 %v3082_v63, %v2790_v60  ;;  %v6106_v14 = vld [vmem:[#allocation23_spill] sm:$0xff] }
 0x25c   : > { %v2795_v56 = vpop.f32.mrf.mxu0 }
 0x25d   : > { %v3088_v58 = vpop.f32.mrf.mxu1  ;;  %v2796_v21 = vadd.f32 %v2795_v56, %v6103_v61  ;;  %v3257_v61 = vmul.f32 %v5295_v17, %v3073_v12  ;;  %v3085_v0 = vadd.f32 %v3084_v15, %v2792_v8  ;;  %v3259_v12 = vmul.f32 %v5295_v17, %v3079_v38 }
 0x25e   : > { %v2797_v42 = vpop.f32.mrf.mxu0  ;;  %v3260_v8 = vmul.f32 %v5303_v50, %v3081_v43  ;;  %v5686_v38 = vadd.f32 %v5317_v9, %v3258_v1 }
 0x25f   : > { %v5605_v55 = vpop.f32.mrf.mxu1  ;;  %v2798_v40 = vadd.f32 %v2797_v42, %v6104_v2  ;;  %v3089_v39 = vadd.f32 %v3088_v58, %v2796_v21  ;;  %v3261_v58 = vmul.f32 %v5295_v17, %v3083_v24  ;;  %v5683_v2 = vadd.f32 %v5310_v25, %v3257_v61 }
 0x260   : > { %v2799_v28 = vpop.f32.mrf.mxu0  ;;  %v5699_v61 = vadd.f32 %v5310_v25, %v3259_v12 }
 0x261   : > { %v3092_v57 = vpop.f32.mrf.mxu1  ;;  %v2800_v29 = vadd.f32 %v2799_v28, %v6105_v11  ;;  %v5662_v28 = vadd.f32 %v5310_v25, %v3255_v36  ;;  %v3091_v15 = vadd.f32 %v5605_v55, %v2798_v40  ;;  %v3263_v40 = vmul.f32 %v5295_v17, %v3089_v39 }
 0x262   : > { %v2801_v16 = vpop.f32.mrf.mxu0 }
 0x263   : > { %v5609_v7 = vpop.f32.mrf.mxu1  ;;  %v2802_v5 = vadd.f32 %v2801_v16, %v6106_v14  ;;  %v3093_v35 = vadd.f32 %v3092_v57, %v2800_v29  ;;  %v3262_v57 = vmul.f32 %v5303_v50, %v3085_v0  ;;  %v6109_v29 = vld [vmem:[#allocation26_spill] sm:$0xff]  ;;  %v3264_v0 = vmul.f32 %v5303_v50, %v3091_v15 }
 0x264   : > { %v2805_v32 = vpop.f32.mrf.mxu0  ;;  %v5722_v15 = vadd.f32 %v5310_v25, %v3263_v40 }
 0x265   : > { %v5614_v52 = vpop.f32.mrf.mxu1  ;;  %v2806_v4 = vadd.f32 %v2805_v32, %v6107_v46  ;;  %v5673_v32 = vadd.f32 %v5317_v9, %v3256_v19 }
 0x266   : > { %v2807_v33 = vpop.f32.mrf.mxu0 }
 0x267   : > { %v3100_v20 = vpop.f32.mrf.mxu1  ;;  %v2808_v63 = vadd.f32 %v2807_v33, %v6108_v34  ;;  %v3095_v33 = vadd.f32 %v5609_v7, %v2802_v5  ;;  %v3099_v55 = vadd.f32 %v5614_v52, %v2806_v4  ;;  %v6110_v7 = vld [vmem:[#allocation27_spill] sm:$0xff]  ;;  %v3265_v52 = vmul.f32 %v5295_v17, %v3093_v35 }
 0x268   : > { %v2809_v54 = vpop.f32.mrf.mxu0  ;;  %v5729_v34 = vadd.f32 %v5317_v9, %v3264_v0  ;;  %v6115_v5 = vld [vmem:[#allocation35_spill] sm:$0xff] }
 0x269   : > { %v5626_v49 = vpop.f32.mrf.mxu1  ;;  %v3101_v11 = vadd.f32 %v3100_v20, %v2808_v63  ;;  %v2810_v19 = vadd.f32 %v2809_v54, %v6109_v29  ;;  %v5705_v20 = vadd.f32 %v5317_v9, %v3260_v8  ;;  %v5708_v54 = vadd.f32 %v5310_v25, %v3261_v58 }
 0x26a   : > { %v2811_v53 = vpop.f32.mrf.mxu0  ;;  %v5718_v63 = vadd.f32 %v5317_v9, %v3262_v57  ;;  %v3267_v12 = vmul.f32 %v5295_v17, %v3099_v55  ;;  %v5732_v57 = vadd.f32 %v5310_v25, %v3265_v52  ;;  %v6112_v55 = vld [vmem:[#allocation34_spill] sm:$0xff] }
 0x26b   : > { %v5632_v6 = vpop.f32.mrf.mxu1  ;;  %v2812_v43 = vadd.f32 %v2811_v53, %v6110_v7  ;;  %v3266_v53 = vmul.f32 %v5303_v50, %v3095_v33  ;;  %v3268_v35 = vmul.f32 %v5303_v50, %v3101_v11  ;;  %v3103_v8 = vadd.f32 %v5626_v49, %v2810_v19 }
 0x26c   : > { %v5642_v13 = vpop.f32.mrf.mxu0  ;;  %v5744_v1 = vadd.f32 %v5310_v25, %v3267_v12 }
 0x26d   : > { %v5644_v27 = vpop.f32.mrf.mxu1  ;;  %v3105_v58 = vadd.f32 %v5632_v6, %v2812_v43  ;;  %v5738_v49 = vadd.f32 %v5317_v9, %v3266_v53  ;;  %v6113_v6 = vld [vmem:[#allocation28_spill] sm:$0xff]  ;;  %v5749_v11 = vadd.f32 %v5317_v9, %v3268_v35  ;;  %v3269_v53 = vmul.f32 %v5295_v17, %v3103_v8  ;;  %v6117_v35 = vld [vmem:[#allocation29_spill] sm:$0xff] }
 0x26e   : > { %v5653_v23 = vpop.f32.mrf.mxu0  ;;  %v2816_v19 = vadd.f32 %v5642_v13, %v6113_v6  ;;  %6114 = vst [vmem:[#allocation9_spill] sm:$0xff] %v5744_v1  ;;  %v6118_v8 = vld [vmem:[#allocation36_spill] sm:$0xff] }
 0x26f   : > { %v5655_v56 = vpop.f32.mrf.mxu1  ;;  %6116 = vst [vmem:[#allocation10_spill] sm:$0xff] %v5749_v11  ;;  %v3270_v40 = vmul.f32 %v5303_v50, %v3105_v58 }
 0x270   : > { %v5665_v16 = vpop.f32.mrf.mxu0 }
 0x271   : > { %v5667_v45 = vpop.f32.mrf.mxu1 }
 0x272   : > { %v5678_v36 = vpop.f32.mrf.mxu0 }
 0x273   : > { %v5680_v21 = vpop.f32.mrf.mxu1 }
 0x274   : > { %v5693_v24 = vpop.f32.mrf.mxu0 }
 0x275   : > { %v5695_v14 = vpop.f32.mrf.mxu1 }
 0x276   : > { %v5711_v46 = vpop.f32.mrf.mxu0 }
 0x277   : > { %v5713_v4 = vpop.f32.mrf.mxu1 }
 0x278   : > { %6111 = vst [vmem:[#allocation8_spill] sm:$0xff] %v5713_v4  ;;  %v2829_v33 = vpop.f32.mrf.mxu0  ;;  %v6119_v4 = vld [vmem:[#allocation37_spill] sm:$0xff] }
 0x279   : > { %v3122_v29 = vpop.f32.mrf.mxu1  ;;  %v2830_v39 = vadd.f32 %v2829_v33, %v6112_v55 }
 0x27a   : > { %v2831_v43 = vpop.f32.mrf.mxu0 }
 0x27b   : > { %v3124_v7 = vpop.f32.mrf.mxu1  ;;  %v3123_v52 = vadd.f32 %v3122_v29, %v2830_v39  ;;  %v2832_v33 = vadd.f32 %v2831_v43, %v6115_v5  ;;  %v3109_v29 = vadd.f32 %v5644_v27, %v2816_v19  ;;  %v2818_v43 = vadd.f32 %v5653_v23, %v6117_v35  ;;  %v6120_v5 = vld [vmem:[#allocation38_spill] sm:$0xff] }
 0x27c   : > { %v2835_v13 = vpop.f32.mrf.mxu0  ;;  %v5767_v27 = vadd.f32 %v5310_v25, %v3269_v53  ;;  %v5770_v23 = vadd.f32 %v5317_v9, %v3270_v40 }
 0x27d   : > { %v3128_v6 = vpop.f32.mrf.mxu1  ;;  %v3277_v12 = vmul.f32 %v5295_v17, %v3123_v52  ;;  %v3125_v39 = vadd.f32 %v3124_v7, %v2832_v33  ;;  %v2836_v58 = vadd.f32 %v2835_v13, %v6118_v8  ;;  %v6121_v33 = vld [vmem:[#allocation30_spill] sm:$0xff] }
 0x27e   : > { %v2837_v55 = vpop.f32.mrf.mxu0  ;;  %v2820_v53 = vadd.f32 %v5665_v16, %v6121_v33  ;;  %v6123_v16 = vld [vmem:[#allocation39_spill] sm:$0xff]  ;;  %v6124_v33 = vmax.f32 %v5623_v37, 0.0 }
 0x27f   : > { %v3130_v42 = vpop.f32.mrf.mxu1  ;;  %v3393_v0 = vadd.f32 %v5310_v25, %v3277_v12  ;;  %v3278_v52 = vmul.f32 %v5303_v50, %v3125_v39  ;;  %v2838_v7 = vadd.f32 %v2837_v55, %v6119_v4  ;;  %v3129_v19 = vadd.f32 %v3128_v6, %v2836_v58 }
 0x280   : > { %v2839_v13 = vpop.f32.mrf.mxu0  ;;  %v3271_v4 = vmul.f32 %v5295_v17, %v3109_v29  ;;  %v3111_v55 = vadd.f32 %v5655_v56, %v2818_v43  ;;  %v6122_v6 = vmax.f32 %v5618_v30, 0.0  ;;  %v3490_v29 = vmax.f32 %v5770_v23, 0.0 }
 0x281   : > { %v3132_v35 = vpop.f32.mrf.mxu1  ;;  %v3497_v8 = vmax.f32 %v3393_v0, 0.0  ;;  %v3394_v60 = vadd.f32 %v5317_v9, %v3278_v52  ;;  %v3131_v12 = vadd.f32 %v3130_v42, %v2838_v7  ;;  %v2840_v39 = vadd.f32 %v2839_v13, %v6120_v5 }
 0x282   : > { %v3279_v40 = vmul.f32 %v5295_v17, %v3129_v19  ;;  %v2841_v11 = vpop.f32.mrf.mxu0  ;;  %v3489_v5 = vmax.f32 %v5767_v27, 0.0 }
 0x283   : > { %v3134_v1 = vpop.f32.mrf.mxu1  ;;  %v3549_v58 = vmax.f32 %v6122_v6, %v3497_v8  ;;  %v3498_v0 = vmax.f32 %v3394_v60, 0.0  ;;  %v3280_v52 = vmul.f32 %v5303_v50, %v3131_v12  ;;  %v3133_v42 = vadd.f32 %v3132_v35, %v2840_v39 }
 0x284   : > { %v3395_v56 = vadd.f32 %v5310_v25, %v3279_v40  ;;  %v2842_v43 = vadd.f32 %v2841_v11, %v6123_v16  ;;  %v2845_v30 = vpop.f32.mrf.mxu0  ;;  %v5798_v8 = vadd.f32 %v5310_v25, %v3271_v4  ;;  %v6125_v40 = vld [vmem:[#allocation40_spill] sm:$0xff]  ;;  %v6127_v4 = vmax.f32 %v5638_v47, 0.0 }
 0x285   : > { %v3138_v7 = vpop.f32.mrf.mxu1  ;;  %v3575_v60 = vmax.f32 %v5393_v26, %v3549_v58  ;;  %v3550_v19 = vmax.f32 %v6124_v33, %v3498_v0  ;;  %v3396_v13 = vadd.f32 %v5317_v9, %v3280_v52  ;;  %v3281_v35 = vmul.f32 %v5295_v17, %v3133_v42  ;;  %v6126_v0 = vld [vmem:[#allocation41_spill] sm:$0xff] }
 0x286   : > { %v3499_v12 = vmax.f32 %v3395_v56, 0.0  ;;  %v3135_v39 = vadd.f32 %v3134_v1, %v2842_v43  ;;  %v2846_v6 = vadd.f32 %v2845_v30, %v6125_v40  ;;  %v2847_v11 = vpop.f32.mrf.mxu0  ;;  %v3272_v42 = vmul.f32 %v5303_v50, %v3111_v55 }
 0x287   : > { %v3140_v16 = vpop.f32.mrf.mxu1  ;;  %3601 = vst [vmem:[%s5788_s14] sm:$0xff] %v3575_v60  ;;  %v3576_v26 = vmax.f32 %v5403_v59, %v3550_v19  ;;  %v3500_v58 = vmax.f32 %v3396_v13, 0.0  ;;  %v3397_v37 = vadd.f32 %v5310_v25, %v3281_v35  ;;  %v2848_v52 = vadd.f32 %v2847_v11, %v6126_v0  ;;  %v6129_v35 = vld [vmem:[#allocation42_spill] sm:$0xff]  ;;  %v6132_v0 = vld [vmem:[#allocation43_spill] sm:$0xff] }
 0x288   : > { %v3551_v33 = vmax.f32 %v6127_v4, %v3499_v12  ;;  %v3282_v56 = vmul.f32 %v5303_v50, %v3135_v39  ;;  %v3139_v1 = vadd.f32 %v3138_v7, %v2846_v6  ;;  %v2849_v43 = vpop.f32.mrf.mxu0  ;;  %v6128_v60 = vmax.f32 %v5647_v3, 0.0 }
 0x289   : > { %v3142_v30 = vpop.f32.mrf.mxu1  ;;  %3603 = vst.msk [vmem:[%s5788_s14 + $0x8] sm:$0xff] %vm3602_vm0, %v3576_v26  ;;  %v3501_v19 = vmax.f32 %v3397_v37, 0.0  ;;  %v3141_v13 = vadd.f32 %v3140_v16, %v2848_v52  ;;  %v2850_v40 = vadd.f32 %v2849_v43, %v6129_v35  ;;  %v3113_v55 = vadd.f32 %v5667_v45, %v2820_v53  ;;  %v6131_v37 = vld [vmem:[#allocation31_spill] sm:$0xff] }
 0x28a   : > { %v3552_v59 = vmax.f32 %v6128_v60, %v3500_v58  ;;  %v3577_v47 = vmax.f32 %v5412_v41, %v3551_v33  ;;  %v3398_v12 = vadd.f32 %v5317_v9, %v3282_v56  ;;  %v3283_v7 = vmul.f32 %v5295_v17, %v3139_v1  ;;  %v2851_v39 = vpop.f32.mrf.mxu0  ;;  %v6133_v1 = vld [vmem:[#allocation44_spill] sm:$0xff] }
 0x28b   : > { %v3144_v6 = vpop.f32.mrf.mxu1  ;;  %v6130_v3 = vmax.f32 %v5662_v28, 0.0  ;;  %v3284_v16 = vmul.f32 %v5303_v50, %v3141_v13  ;;  %v3143_v58 = vadd.f32 %v3142_v30, %v2850_v40  ;;  %v2822_v45 = vadd.f32 %v5678_v36, %v6131_v37 }
 0x28c   : > { %v3578_v11 = vmax.f32 %v5426_v44, %v3552_v59  ;;  %3604 = vst [vmem:[%s5788_s14 + $0x10] sm:$0xff] %v3577_v47  ;;  %v3502_v41 = vmax.f32 %v3398_v12, 0.0  ;;  %v3399_v53 = vadd.f32 %v5310_v25, %v3283_v7  ;;  %v2852_v52 = vadd.f32 %v2851_v39, %v6132_v0  ;;  %v2855_v4 = vpop.f32.mrf.mxu0  ;;  %v6135_v12 = vld [vmem:[#allocation45_spill] sm:$0xff] }
 0x28d   : > { %v3553_v26 = vmax.f32 %v6130_v3, %v3501_v19  ;;  %v3148_v33 = vpop.f32.mrf.mxu1  ;;  %v3400_v28 = vadd.f32 %v5317_v9, %v3284_v16  ;;  %v3285_v56 = vmul.f32 %v5295_v17, %v3143_v58  ;;  %v2856_v43 = vadd.f32 %v2855_v4, %v6133_v1 }
 0x28e   : > { %3605 = vst.msk [vmem:[%s5788_s14 + $0x18] sm:$0xff] %vm3602_vm0, %v3578_v11  ;;  %v3491_v36 = vmax.f32 %v5798_v8, 0.0  ;;  %v6134_v30 = vmax.f32 %v5673_v32, 0.0  ;;  %v3503_v59 = vmax.f32 %v3399_v53, 0.0  ;;  %v3145_v19 = vadd.f32 %v3144_v6, %v2852_v52  ;;  %v2857_v13 = vpop.f32.mrf.mxu0  ;;  %v6138_v52 = vld [vmem:[#allocation46_spill] sm:$0xff] }
 0x28f   : > { %v3579_v44 = vmax.f32 %v5431_v62, %v3553_v26  ;;  %v3150_v35 = vpop.f32.mrf.mxu1  ;;  %v3504_v40 = vmax.f32 %v3400_v28, 0.0  ;;  %v3401_v62 = vadd.f32 %v5310_v25, %v3285_v56  ;;  %v3149_v47 = vadd.f32 %v3148_v33, %v2856_v43  ;;  %v6140_v43 = vld [vmem:[#allocation32_spill] sm:$0xff] }
 0x290   : > { %v3554_v60 = vmax.f32 %v6134_v30, %v3502_v41  ;;  %v2858_v7 = vadd.f32 %v2857_v13, %v6135_v12  ;;  %v5840_v39 = vadd.f32 %v5317_v9, %v3272_v42  ;;  %v6136_v32 = vmax.f32 %v5683_v2, 0.0  ;;  %v2859_v26 = vpop.f32.mrf.mxu0 }
 0x291   : > { %3606 = vst [vmem:[%s5788_s14 + $0x20] sm:$0xff] %v3579_v44  ;;  %v3286_v6 = vmul.f32 %v5303_v50, %v3145_v19  ;;  %v3152_v16 = vpop.f32.mrf.mxu1  ;;  %v6137_v58 = vmax.f32 %v5686_v38, 0.0  ;;  %v3505_v41 = vmax.f32 %v3401_v62, 0.0  ;;  %v3287_v53 = vmul.f32 %v5295_v17, %v3149_v47  ;;  %v6142_v62 = vld [vmem:[#allocation48_spill] sm:$0xff] }
 0x292   : > { %v3580_v11 = vmax.f32 %v5449_v18, %v3554_v60  ;;  %v3555_v3 = vmax.f32 %v6136_v32, %v3503_v59  ;;  %v3151_v0 = vadd.f32 %v3150_v35, %v2858_v7  ;;  %v3273_v42 = vmul.f32 %v5295_v17, %v3113_v55  ;;  %v2861_v33 = vpop.f32.mrf.mxu0  ;;  %v6141_v59 = vld [vmem:[#allocation47_spill] sm:$0xff] }
 0x293   : > { %v3556_v37 = vmax.f32 %v6137_v58, %v3504_v40  ;;  %v3402_v2 = vadd.f32 %v5317_v9, %v3286_v6  ;;  %v2860_v4 = vadd.f32 %v2859_v26, %v6138_v52  ;;  %v3154_v44 = vpop.f32.mrf.mxu1  ;;  %v6139_v28 = vmax.f32 %v5699_v61, 0.0 }
 0x294   : > { %3607 = vst.msk [vmem:[%s5788_s14 + $0x28] sm:$0xff] %vm3602_vm0, %v3580_v11  ;;  %v3581_v18 = vmax.f32 %v5453_v10, %v3555_v3  ;;  %v3403_v1 = vadd.f32 %v5310_v25, %v3287_v53  ;;  %v3288_v55 = vmul.f32 %v5303_v50, %v3151_v0  ;;  %v2826_v30 = vadd.f32 %v5693_v24, %v6140_v43  ;;  %v2865_v13 = vpop.f32.mrf.mxu0 }
 0x295   : > { %v3582_v38 = vmax.f32 %v5465_v31, %v3556_v37  ;;  %v3557_v56 = vmax.f32 %v6139_v28, %v3505_v41  ;;  %v3506_v10 = vmax.f32 %v3402_v2, 0.0  ;;  %v3153_v60 = vadd.f32 %v3152_v16, %v2860_v4  ;;  %v3158_v35 = vpop.f32.mrf.mxu1  ;;  %v6145_v37 = vld [vmem:[#allocation49_spill] sm:$0xff]  ;;  %v6147_v28 = vld [vmem:[#allocation50_spill] sm:$0xff] }
 0x296   : > { %3608 = vst [vmem:[%s5788_s14 + $0x30] sm:$0xff] %v3581_v18  ;;  %v2862_v19 = vadd.f32 %v2861_v33, %v6141_v59  ;;  %v3507_v61 = vmax.f32 %v3403_v1, 0.0  ;;  %v3404_v40 = vadd.f32 %v5317_v9, %v3288_v55  ;;  %v2866_v47 = vadd.f32 %v2865_v13, %v6142_v62  ;;  %v2867_v3 = vpop.f32.mrf.mxu0 }
 0x297   : > { %3609 = vst.msk [vmem:[%s5788_s14 + $0x38] sm:$0xff] %vm3602_vm0, %v3582_v38  ;;  %v3583_v31 = vmax.f32 %v5476_v48, %v3557_v56  ;;  %v3115_v12 = vadd.f32 %v5680_v21, %v2822_v45  ;;  %v6143_v24 = vmax.f32 %v5705_v20, 0.0  ;;  %v3289_v11 = vmul.f32 %v5295_v17, %v3153_v60  ;;  %v3160_v6 = vpop.f32.mrf.mxu1  ;;  %v6149_v60 = vld [vmem:[#allocation51_spill] sm:$0xff] }
 0x298   : > { %v3155_v32 = vadd.f32 %v3154_v44, %v2862_v19  ;;  %v6144_v26 = vmax.f32 %v5708_v54, 0.0  ;;  %v3508_v16 = vmax.f32 %v3404_v40, 0.0  ;;  %v3159_v58 = vadd.f32 %v3158_v35, %v2866_v47  ;;  %v2869_v0 = vpop.f32.mrf.mxu0 }
 0x299   : > { %v3558_v7 = vmax.f32 %v6143_v24, %v3506_v10  ;;  %3610 = vst [vmem:[%s5788_s14 + $0x40] sm:$0xff] %v3583_v31  ;;  %v2868_v41 = vadd.f32 %v2867_v3, %v6145_v37  ;;  %v3492_v53 = vmax.f32 %v5840_v39, 0.0  ;;  %v3405_v20 = vadd.f32 %v5310_v25, %v3289_v11  ;;  %v3162_v18 = vpop.f32.mrf.mxu1 }
 0x29a   : > { %v3559_v48 = vmax.f32 %v6144_v26, %v3507_v61  ;;  %v3290_v45 = vmul.f32 %v5303_v50, %v3155_v32  ;;  %v6146_v54 = vmax.f32 %v5718_v63, 0.0  ;;  %v3291_v4 = vmul.f32 %v5295_v17, %v3159_v58  ;;  %v2871_v1 = vpop.f32.mrf.mxu0  ;;  %v6152_v32 = vld [vmem:[#allocation33_spill] sm:$0xff] }
 0x29b   : > { %v3584_v21 = vmax.f32 %v5493_v51, %v3558_v7  ;;  %v3161_v33 = vadd.f32 %v3160_v6, %v2868_v41  ;;  %v5886_v44 = vadd.f32 %v5310_v25, %v3273_v42  ;;  %v3509_v51 = vmax.f32 %v3405_v20, 0.0  ;;  %v3164_v55 = vpop.f32.mrf.mxu1  ;;  %v6151_v7 = vld [vmem:[#allocation52_spill] sm:$0xff] }
 0x29c   : > { %v3585_v2 = vmax.f32 %v5498_v22, %v3559_v48  ;;  %v3560_v52 = vmax.f32 %v6146_v54, %v3508_v16  ;;  %v3406_v38 = vadd.f32 %v5317_v9, %v3290_v45  ;;  %v2870_v56 = vadd.f32 %v2869_v0, %v6147_v28  ;;  %v6148_v22 = vld [vmem:[#allocation61_spill] sm:$0xff]  ;;  %v2875_v61 = vpop.f32.mrf.mxu0 }
 0x29d   : > { %3611 = vst.msk [vmem:[%s5788_s14 + $0x48] sm:$0xff] %vm3602_vm0, %v3584_v21  ;;  %v3407_v43 = vadd.f32 %v5310_v25, %v3291_v4  ;;  %v3292_v10 = vmul.f32 %v5303_v50, %v3161_v33  ;;  %v2872_v42 = vadd.f32 %v2871_v1, %v6149_v60  ;;  %v3119_v59 = vadd.f32 %v5695_v14, %v2826_v30  ;;  %v3168_v40 = vpop.f32.mrf.mxu1  ;;  %v6153_v14 = vld [vmem:[#allocation62_spill] sm:$0xff]  ;;  %v6158_v4 = vld [vmem:[#allocation64_spill] sm:$0xff] }
 0x29e   : > { %3612 = vst [vmem:[%s5788_s14 + $0x50] sm:$0xff] %v3585_v2  ;;  %v3586_v63 = vmax.f32 %v6148_v22, %v3560_v52  ;;  %v6150_v19 = vmax.f32 %v5722_v15, 0.0  ;;  %v3510_v35 = vmax.f32 %v3406_v38, 0.0  ;;  %v3163_v31 = vadd.f32 %v3162_v18, %v2870_v56  ;;  %v2877_v48 = vpop.f32.mrf.mxu0  ;;  %v6157_v18 = vld [vmem:[#allocation53_spill] sm:$0xff] }
 0x29f   : > { %v3511_v62 = vmax.f32 %v3407_v43, 0.0  ;;  %v3408_v47 = vadd.f32 %v5317_v9, %v3292_v10  ;;  %v3165_v24 = vadd.f32 %v3164_v55, %v2872_v42  ;;  %v2876_v11 = vadd.f32 %v2875_v61, %v6151_v7  ;;  %v3170_v16 = vpop.f32.mrf.mxu1  ;;  %v6160_v55 = vld [vmem:[#allocation54_spill] sm:$0xff] }
 0x2a0   : > { %v3561_v13 = vmax.f32 %v6150_v19, %v3509_v51  ;;  %3613 = vst.msk [vmem:[%s5788_s14 + $0x58] sm:$0xff] %vm3602_vm0, %v3586_v63  ;;  %v2828_v3 = vadd.f32 %v5711_v46, %v6152_v32  ;;  %v6154_v15 = vmax.f32 %v5729_v34, 0.0  ;;  %v3293_v26 = vmul.f32 %v5295_v17, %v3163_v31  ;;  %v6156_v46 = vld [vmem:[#allocation63_spill] sm:$0xff]  ;;  %v2879_v54 = vpop.f32.mrf.mxu0  ;;  %v6161_v10 = vld [vmem:[#allocation2_spill] sm:$0xff]  ;;  %v6163_v31 = vld [vmem:[#allocation9_spill] sm:$0xff] }
 0x2a1   : > { %v6155_v58 = vmax.f32 %v5732_v57, 0.0  ;;  %v3512_v41 = vmax.f32 %v3408_v47, 0.0  ;;  %v3294_v21 = vmul.f32 %v5303_v50, %v3165_v24  ;;  %v3169_v20 = vadd.f32 %v3168_v40, %v2876_v11  ;;  %v3172_v52 = vpop.f32.mrf.mxu1  ;;  %v6162_v19 = vld [vmem:[#allocation55_spill] sm:$0xff]  ;;  %v6165_v11 = vld [vmem:[#allocation10_spill] sm:$0xff] }
 0x2a2   : > { %v3587_v30 = vmax.f32 %v6153_v14, %v3561_v13  ;;  %v3562_v6 = vmax.f32 %v6154_v15, %v3510_v35  ;;  %v3274_v45 = vmul.f32 %v5303_v50, %v3115_v12  ;;  %v3409_v34 = vadd.f32 %v5310_v25, %v3293_v26  ;;  %v2881_v63 = vpop.f32.mrf.mxu0 }
 0x2a3   : > { %v3563_v37 = vmax.f32 %v6155_v58, %v3511_v62  ;;  %v2878_v2 = vadd.f32 %v2877_v48, %v6157_v18  ;;  %v6159_v33 = vmax.f32 %v5738_v49, 0.0  ;;  %v3410_v38 = vadd.f32 %v5317_v9, %v3294_v21  ;;  %v3174_v43 = vpop.f32.mrf.mxu1  ;;  %v6168_v48 = vld [vmem:[#allocation8_spill] sm:$0xff] }
 0x2a4   : > { %3614 = vst [vmem:[%s5788_s14 + $0x60] sm:$0xff] %v3587_v30  ;;  %v3588_v0 = vmax.f32 %v6156_v46, %v3562_v6  ;;  %v3295_v28 = vmul.f32 %v5295_v17, %v3169_v20  ;;  %v3493_v12 = vmax.f32 %v5886_v44, 0.0  ;;  %v3513_v56 = vmax.f32 %v3409_v34, 0.0  ;;  %v2885_v24 = vpop.f32.mrf.mxu0  ;;  %v6167_v6 = vld [vmem:[#allocation56_spill] sm:$0xff]  ;;  %v6170_v46 = vld [vmem:[#allocation3_spill] sm:$0xff] }
 0x2a5   : > { %v3589_v57 = vmax.f32 %v6158_v4, %v3563_v37  ;;  %v3564_v51 = vmax.f32 %v6159_v33, %v3512_v41  ;;  %v3171_v1 = vadd.f32 %v3170_v16, %v2878_v2  ;;  %v2880_v22 = vadd.f32 %v2879_v54, %v6160_v55  ;;  %v3178_v7 = vpop.f32.mrf.mxu1  ;;  %v6169_v16 = vld [vmem:[#allocation65_spill] sm:$0xff] }
 0x2a6   : > { %3615 = vst.msk [vmem:[%s5788_s14 + $0x68] sm:$0xff] %vm3602_vm0, %v3588_v0  ;;  %v3514_v49 = vmax.f32 %v3410_v38, 0.0  ;;  %v3411_v42 = vadd.f32 %v5310_v25, %v3295_v28  ;;  %v2882_v13 = vadd.f32 %v2881_v63, %v6162_v19  ;;  %v3275_v35 = vmul.f32 %v5295_v17, %v3119_v59  ;;  %v2887_v21 = vpop.f32.mrf.mxu0  ;;  %v6171_v4 = vld [vmem:[#allocation57_spill] sm:$0xff]  ;;  %v6172_v38 = vld [vmem:[#allocation4_spill] sm:$0xff] }
 0x2a7   : > { %3616 = vst [vmem:[%s5788_s14 + $0x70] sm:$0xff] %v3589_v57  ;;  %v3590_v60 = vmax.f32 %v6161_v10, %v3564_v51  ;;  %v6164_v61 = vmax.f32 %v6163_v31, 0.0  ;;  %v3296_v62 = vmul.f32 %v5303_v50, %v3171_v1  ;;  %v3173_v47 = vadd.f32 %v3172_v52, %v2880_v22  ;;  %v3180_v20 = vpop.f32.mrf.mxu1  ;;  %v6175_v31 = vld [vmem:[#allocation5_spill] sm:$0xff] }
 0x2a8   : > { %v6166_v32 = vmax.f32 %v6165_v11, 0.0  ;;  %v3515_v30 = vmax.f32 %v3411_v42, 0.0  ;;  %v3175_v15 = vadd.f32 %v3174_v43, %v2882_v13  ;;  %v2886_v26 = vadd.f32 %v2885_v24, %v6167_v6  ;;  %v2889_v33 = vpop.f32.mrf.mxu0  ;;  %v6174_v42 = vld [vmem:[#allocation59_spill] sm:$0xff] }
 0x2a9   : > { %v3565_v40 = vmax.f32 %v6164_v61, %v3513_v56  ;;  %3617 = vst.msk [vmem:[%s5788_s14 + $0x78] sm:$0xff] %vm3602_vm0, %v3590_v60  ;;  %v3121_v59 = vadd.f32 %v6168_v48, %v2828_v3  ;;  %v3412_v37 = vadd.f32 %v5317_v9, %v3296_v62  ;;  %v3297_v41 = vmul.f32 %v5295_v17, %v3173_v47  ;;  %v3182_v51 = vpop.f32.mrf.mxu1  ;;  %v6173_v56 = vld [vmem:[#allocation58_spill] sm:$0xff] }
 0x2aa   : > { %v3566_v14 = vmax.f32 %v6166_v32, %v3514_v49  ;;  %v3567_v34 = vmax.f32 %v3489_v5, %v3515_v30  ;;  %v3298_v18 = vmul.f32 %v5303_v50, %v3175_v15  ;;  %v3179_v2 = vadd.f32 %v3178_v7, %v2886_v26  ;;  %v2891_v43 = vpop.f32.mrf.mxu0  ;;  %v6178_v26 = vld [vmem:[#allocation7_spill] sm:$0xff] }
 0x2ab   : > { %v3591_v58 = vmax.f32 %v6169_v16, %v3565_v40  ;;  %v3390_v54 = vadd.f32 %v5317_v9, %v3274_v45  ;;  %v3516_v3 = vmax.f32 %v3412_v37, 0.0  ;;  %v3413_v52 = vadd.f32 %v5310_v25, %v3297_v41  ;;  %v6180_v41 = vld [vmem:[#allocation67_spill] sm:$0xff] }
 0x2ac   : > { %v3592_v0 = vmax.f32 %v6170_v46, %v3566_v14  ;;  %v2888_v57 = vadd.f32 %v2887_v21, %v6171_v4  ;;  %v3593_v28 = vmax.f32 %v6172_v38, %v3567_v34  ;;  %v3414_v27 = vadd.f32 %v5317_v9, %v3298_v18  ;;  %v6181_v46 = vld [vmem:[#allocation68_spill] sm:$0xff] }
 0x2ad   : > { %3618 = vst [vmem:[%s5788_s14 + $0x80] sm:$0xff] %v3591_v58  ;;  %v3299_v5 = vmul.f32 %v5295_v17, %v3179_v2  ;;  %v2890_v1 = vadd.f32 %v2889_v33, %v6173_v56  ;;  %v3276_v45 = vmul.f32 %v5303_v50, %v3121_v59  ;;  %v3568_v55 = vmax.f32 %v3490_v29, %v3516_v3  ;;  %v3184_v29 = vpop.f32.mrf.mxu1 }
 0x2ae   : > { %3619 = vst.msk [vmem:[%s5788_s14 + $0x88] sm:$0xff] %vm3602_vm0, %v3592_v0  ;;  %v3517_v22 = vmax.f32 %v3413_v52, 0.0  ;;  %v3181_v63 = vadd.f32 %v3180_v20, %v2888_v57  ;;  %3620 = vst [vmem:[%s5788_s14 + $0x90] sm:$0xff] %v3593_v28  ;;  %v3518_v10 = vmax.f32 %v3414_v27, 0.0  ;;  %v2892_v19 = vadd.f32 %v2891_v43, %v6174_v42 }
 0x2af   : > { %v3415_v60 = vadd.f32 %v5310_v25, %v3299_v5  ;;  %v3183_v49 = vadd.f32 %v3182_v51, %v2890_v1  ;;  %v3391_v13 = vadd.f32 %v5310_v25, %v3275_v35  ;;  %v3594_v61 = vmax.f32 %v6175_v31, %v3568_v55  ;;  %v6176_v35 = vld [vmem:[#allocation6_spill] sm:$0xff] }
 0x2b0   : > { %v3569_v40 = vmax.f32 %v3491_v36, %v3517_v22  ;;  %v3300_v23 = vmul.f32 %v5303_v50, %v3181_v63  ;;  %v3570_v62 = vmax.f32 %v3492_v53, %v3518_v10  ;;  %v3185_v7 = vadd.f32 %v3184_v29, %v2892_v19  ;;  %v6177_v36 = vld [vmem:[#allocation60_spill] sm:$0xff] }
 0x2b1   : > { %v3519_v47 = vmax.f32 %v3415_v60, 0.0  ;;  %v3301_v24 = vmul.f32 %v5295_v17, %v3183_v49  ;;  %v3392_v11 = vadd.f32 %v5317_v9, %v3276_v45  ;;  %3621 = vst.msk [vmem:[%s5788_s14 + $0x98] sm:$0xff] %vm3602_vm0, %v3594_v61  ;;  %v3494_v17 = vmax.f32 %v3390_v54, 0.0 }
 0x2b2   : > { %v3595_v32 = vmax.f32 %v6176_v35, %v3569_v40  ;;  %v3416_v8 = vadd.f32 %v5317_v9, %v3300_v23  ;;  %v3596_v14 = vmax.f32 %v6177_v36, %v3570_v62  ;;  %v3302_v30 = vmul.f32 %v5303_v50, %v3185_v7  ;;  %v6179_v50 = vld [vmem:[#allocation66_spill] sm:$0xff] }
 0x2b3   : > { %v3571_v39 = vmax.f32 %v3493_v12, %v3519_v47  ;;  %v3417_v53 = vadd.f32 %v5310_v25, %v3301_v24  ;;  %v3495_v6 = vmax.f32 %v3391_v13, 0.0  ;;  %v3496_v12 = vmax.f32 %v3392_v11, 0.0 }
 0x2b4   : > { %3622 = vst [vmem:[%s5788_s14 + $0xa0] sm:$0xff] %v3595_v32  ;;  %v3520_v15 = vmax.f32 %v3416_v8, 0.0  ;;  %3623 = vst.msk [vmem:[%s5788_s14 + $0xa8] sm:$0xff] %vm3602_vm0, %v3596_v14  ;;  %v3418_v16 = vadd.f32 %v5317_v9, %v3302_v30 }
 0x2b5   : > { %v3597_v48 = vmax.f32 %v6178_v26, %v3571_v39  ;;  %v3521_v59 = vmax.f32 %v3417_v53, 0.0 }
 0x2b6   : > { %v3572_v44 = vmax.f32 %v3494_v17, %v3520_v15  ;;  %v3522_v58 = vmax.f32 %v3418_v16, 0.0 }
 0x2b7   : > { %3624 = vst [vmem:[%s5788_s14 + $0xb0] sm:$0xff] %v3597_v48  ;;  %v3573_v25 = vmax.f32 %v3495_v6, %v3521_v59 }
 0x2b8   : > { %v3598_v37 = vmax.f32 %v6179_v50, %v3572_v44  ;;  %v3574_v20 = vmax.f32 %v3496_v12, %v3522_v58 }
 0x2b9   : > { %v3599_v21 = vmax.f32 %v6180_v41, %v3573_v25 }
 0x2ba   : > { %3625 = vst.msk [vmem:[%s5788_s14 + $0xb8] sm:$0xff] %vm3602_vm0, %v3598_v37  ;;  %v3600_v0 = vmax.f32 %v6181_v46, %v3574_v20 }
 0x2bb   : > { %3626 = vst [vmem:[%s5788_s14 + $0xc0] sm:$0xff] %v3599_v21 }
 0x2bc   : > { %3627 = vst.msk [vmem:[%s5788_s14 + $0xc8] sm:$0xff] %vm3602_vm0, %v3600_v0 }
 0x2bd PF: > { %s14_s15 = sadd.s32 1, %s4431_s15  }
 0x2be   : > { %p11_p4 = scmp.ge.s32.totalorder %s14_s15, 4  }
 0x2c0   :  { %13 = sbr.rel (!%p11_p4) target bundleno = 1 (0x1), region = 66 }

// kernel: bigg_forward.5
= control target key start
LH: loop header
LB: loop body
LE: loop exit
PB: predicated region body
PF: predicated region fallthrough
CT: control target
= control target key end

     0   :  { %s8100_s15 = smov 0   ;;  %s10599_s0 = inlined_call_operand.vmem [shape: bf16[2,128,3712], index: 0, kind: input, shape index: {}]   ;;  %s10600_s1 = inlined_call_operand.vmem [shape: bf16[3712,256], index: 1, kind: input, shape index: {}]   ;;  %s10601_s2 = inlined_call_operand.vmem [shape: f32[1,256], index: 2, kind: input, shape index: {}]   ;;  %s10602_s3 = inlined_call_operand.vmem [shape: f32[1,256], index: 3, kind: input, shape index: {}]   ;;  %s10603_s4 = inlined_call_operand.vmem [shape: f32[2,32,256], index: 4, kind: output, shape index: {}]  }
   0x1 LB: > { %s6293_s16 = sadd.s32 4294967295, %s8072_s15   ;;  %p6297_p0 = scmp.ge.s32.totalorder %s8072_s15, 1  ;;  %s8072_s15 = sphi %s8100_s15, %s14_s15  }
   0x2   : > { %p162_p1 = scmp.lt.s32.totalorder %s8072_s15, 3 }
   0x4   : > { %p163_p2 = pnand %p6297_p0, %p162_p1 }
   0x6   : > { %166 = sbr.rel (%p163_p2) target bundleno = 765 (0x2fd), region = 36 }
   0xb   : > { %v7026_v0 = vld [vmem:[%s10600_s1 + $0x74] ss:$8 sps:$4 sm:$0xff]   ;;  %v7030_v2 = vld [vmem:[%s10600_s1 + $0x70] ss:$8 sps:$4 sm:$0xff]   ;;  %v7032_v4 = vld [vmem:[%s10600_s1 + $0x64] ss:$8 sps:$4 sm:$0xff]  }
   0xc   : > { %v7028_v1 = vld [vmem:[%s10600_s1 + $0x174] ss:$8 sps:$4 sm:$0xff]   ;;  %4391 = vmatprep.subr.bf16.mxu0 %v7026_v0  ;;  %v7031_v3 = vld [vmem:[%s10600_s1 + $0x170] ss:$8 sps:$4 sm:$0xff]   ;;  %v7034_v5 = vld [vmem:[%s10600_s1 + $0x164] ss:$8 sps:$4 sm:$0xff]  }
   0xd   : > { %4504 = vmatprep.subr.bf16.mxu1 %v7028_v1  ;;  %4392 = vmatpush1.bf16.msra.mxu0 %v7030_v2  ;;  %v7036_v6 = vld [vmem:[%s10600_s1 + $0x60] ss:$8 sps:$4 sm:$0xff]   ;;  %v7038_v8 = vld [vmem:[%s10600_s1 + $0x54] ss:$8 sps:$4 sm:$0xff]   ;;  %v7042_v10 = vld [vmem:[%s10600_s1 + $0x50] ss:$8 sps:$4 sm:$0xff]  }
   0xe   : > { %4505 = vmatpush1.bf16.msra.mxu1 %v7031_v3  ;;  %4393 = vmatprep.subr.bf16.mxu0 %v7032_v4  ;;  %v7037_v7 = vld [vmem:[%s10600_s1 + $0x160] ss:$8 sps:$4 sm:$0xff]   ;;  %v7040_v9 = vld [vmem:[%s10600_s1 + $0x154] ss:$8 sps:$4 sm:$0xff]   ;;  %v7043_v11 = vld [vmem:[%s10600_s1 + $0x150] ss:$8 sps:$4 sm:$0xff]  }
   0xf   : > { %4506 = vmatprep.subr.bf16.mxu1 %v7034_v5  ;;  %v7044_v12 = vld [vmem:[%s10600_s1 + $0x44] ss:$8 sps:$4 sm:$0xff]   ;;  %v7048_v14 = vld [vmem:[%s10600_s1 + $0x40] ss:$8 sps:$4 sm:$0xff]   ;;  %v7050_v16 = vld [vmem:[%s10600_s1 + $0x34] ss:$8 sps:$4 sm:$0xff]  }
  0x10   : > { %v7046_v13 = vld [vmem:[%s10600_s1 + $0x144] ss:$8 sps:$4 sm:$0xff]   ;;  %v7049_v15 = vld [vmem:[%s10600_s1 + $0x140] ss:$8 sps:$4 sm:$0xff]   ;;  %v7052_v17 = vld [vmem:[%s10600_s1 + $0x134] ss:$8 sps:$4 sm:$0xff]  }
  0x11   : > { %4394 = vmatpush1.bf16.msra.mxu0 %v7036_v6  ;;  %v7054_v18 = vld [vmem:[%s10600_s1 + $0x30] ss:$8 sps:$4 sm:$0xff]   ;;  %v7056_v20 = vld [vmem:[%s10600_s1 + $0x24] ss:$8 sps:$4 sm:$0xff]   ;;  %v7060_v22 = vld [vmem:[%s10600_s1 + $0x20] ss:$8 sps:$4 sm:$0xff]  }
  0x12   : > { %4507 = vmatpush1.bf16.msra.mxu1 %v7037_v7  ;;  %4395 = vmatprep.subr.bf16.mxu0 %v7038_v8  ;;  %v7055_v19 = vld [vmem:[%s10600_s1 + $0x130] ss:$8 sps:$4 sm:$0xff]   ;;  %v7058_v21 = vld [vmem:[%s10600_s1 + $0x124] ss:$8 sps:$4 sm:$0xff]   ;;  %v7061_v23 = vld [vmem:[%s10600_s1 + $0x120] ss:$8 sps:$4 sm:$0xff]  }
  0x13   : > { %4508 = vmatprep.subr.bf16.mxu1 %v7040_v9  ;;  %v7062_v24 = vld [vmem:[%s10600_s1 + $0x14] ss:$8 sps:$4 sm:$0xff]   ;;  %v7066_v26 = vld [vmem:[%s10600_s1 + $0x10] ss:$8 sps:$4 sm:$0xff]   ;;  %v7068_v28 = vld [vmem:[%s10600_s1 + $0x4] ss:$8 sps:$4 sm:$0xff]  }
  0x14   : > { %v7064_v25 = vld [vmem:[%s10600_s1 + $0x114] ss:$8 sps:$4 sm:$0xff]   ;;  %v7067_v27 = vld [vmem:[%s10600_s1 + $0x110] ss:$8 sps:$4 sm:$0xff]   ;;  %v7070_v29 = vld [vmem:[%s10600_s1 + $0x104] ss:$8 sps:$4 sm:$0xff]  }
  0x15   : > { %4396 = vmatpush1.bf16.msra.mxu0 %v7042_v10  ;;  %v7072_v30 = vld [vmem:[%s10600_s1] ss:$8 sps:$4 sm:$0xff]   ;;  %v7074_v32 = vld [vmem:[%s10600_s1 + $0xf4] ss:$8 sps:$4 sm:$0xff]   ;;  %p188_p3 = scmp.lt.s32.totalorder %s6293_s16, 1 }
  0x16   : > { %4509 = vmatpush1.bf16.msra.mxu1 %v7043_v11  ;;  %4397 = vmatprep.subr.bf16.mxu0 %v7044_v12  ;;  %v7073_v31 = vld [vmem:[%s10600_s1 + $0x100] ss:$8 sps:$4 sm:$0xff]   ;;  %v7076_v33 = vld [vmem:[%s10600_s1 + $0x1f4] ss:$8 sps:$4 sm:$0xff]   ;;  %v7078_v34 = vld [vmem:[%s10600_s1 + $0xf0] ss:$8 sps:$4 sm:$0xff]  }
  0x17   : > { %4510 = vmatprep.subr.bf16.mxu1 %v7046_v13  ;;  %v7079_v35 = vld [vmem:[%s10600_s1 + $0x1f0] ss:$8 sps:$4 sm:$0xff]   ;;  %v7080_v36 = vld [vmem:[%s10600_s1 + $0xe4] ss:$8 sps:$4 sm:$0xff]   ;;  %s10637_s16 = smov (!%p188_p3, %s6293_s16), 1 }
  0x18   : > { %v7082_v37 = vld [vmem:[%s10600_s1 + $0x1e4] ss:$8 sps:$4 sm:$0xff]   ;;  %v7084_v38 = vld [vmem:[%s10600_s1 + $0xe0] ss:$8 sps:$4 sm:$0xff]   ;;  %v7086_v40 = vld [vmem:[%s10600_s1 + $0xd4] ss:$8 sps:$4 sm:$0xff]  }
  0x19   : > { %4398 = vmatpush1.bf16.msra.mxu0 %v7048_v14  ;;  %v7085_v39 = vld [vmem:[%s10600_s1 + $0x1e0] ss:$8 sps:$4 sm:$0xff]   ;;  %s7016_s27 = smul.u32 1856, %s10637_s16  ;;  %v7088_v41 = vld [vmem:[%s10600_s1 + $0x1d4] ss:$8 sps:$4 sm:$0xff]   ;;  %s6999_s28 = sshll.u32 %s10637_s16, 6 }
  0x1a   : > { %4511 = vmatpush1.bf16.msra.mxu1 %v7049_v15  ;;  %4399 = vmatprep.subr.bf16.mxu0 %v7050_v16  ;;  %v7090_v42 = vld [vmem:[%s10600_s1 + $0xd0] ss:$8 sps:$4 sm:$0xff]   ;;  %v7092_v44 = vld [vmem:[%s10600_s1 + $0xc4] ss:$8 sps:$4 sm:$0xff]   ;;  %v7096_v46 = vld [vmem:[%s10600_s1 + $0xc0] ss:$8 sps:$4 sm:$0xff]   ;;  %s10530_s30 = scalar_lea.vmem %s10603_s4, %s6999_s28 }
  0x1b   : > { %4512 = vmatprep.subr.bf16.mxu1 %v7052_v17  ;;  %v7091_v43 = vld [vmem:[%s10600_s1 + $0x1d0] ss:$8 sps:$4 sm:$0xff]   ;;  %s8253_s12 = scalar_lea.vmem %s10599_s0, %s7016_s27  ;;  %v7094_v45 = vld [vmem:[%s10600_s1 + $0x1c4] ss:$8 sps:$4 sm:$0xff]   ;;  %v7097_v47 = vld [vmem:[%s10600_s1 + $0x1c0] ss:$8 sps:$4 sm:$0xff]  }
  0x1c   : > { %v7098_v48 = vld [vmem:[%s10600_s1 + $0xb4] ss:$8 sps:$4 sm:$0xff]   ;;  %v7124_v49 = vld [vmem:[%s8253_s12 + $0x4] ss:$116 sps:$4 sm:$0xff]   ;;  %v7127_v51 = vld [vmem:[%s8253_s12 + $0xc] ss:$116 sps:$4 sm:$0xff]  }
  0x1d   : > { %4400 = vmatpush1.bf16.msra.mxu0 %v7054_v18  ;;  %v7100_v50 = vld [vmem:[%s10600_s1 + $0x1b4] ss:$8 sps:$4 sm:$0xff]   ;;  %4423 = vmatprep.mubr.bf16.mxu0 %v7124_v49  ;;  %v7102_v52 = vld [vmem:[%s10600_s1 + $0xb0] ss:$8 sps:$4 sm:$0xff]   ;;  %v7104_v54 = vld [vmem:[%s10600_s1 + $0xa4] ss:$8 sps:$4 sm:$0xff]  }
  0x1e   : > { %4513 = vmatpush1.bf16.msra.mxu1 %v7055_v19  ;;  %4401 = vmatprep.subr.bf16.mxu0 %v7056_v20  ;;  %v7103_v53 = vld [vmem:[%s10600_s1 + $0x1b0] ss:$8 sps:$4 sm:$0xff]   ;;  %v7106_v55 = vld [vmem:[%s10600_s1 + $0x1a4] ss:$8 sps:$4 sm:$0xff]   ;;  %v7108_v56 = vld [vmem:[%s10600_s1 + $0xa0] ss:$8 sps:$4 sm:$0xff]  }
  0x1f   : > { %4514 = vmatprep.subr.bf16.mxu1 %v7058_v21  ;;  %4536 = vmatprep.mubr.bf16.mxu1 %v7127_v51  ;;  %v7109_v57 = vld [vmem:[%s10600_s1 + $0x1a0] ss:$8 sps:$4 sm:$0xff]   ;;  %v7110_v58 = vld [vmem:[%s10600_s1 + $0x94] ss:$8 sps:$4 sm:$0xff]   ;;  %v7114_v60 = vld [vmem:[%s10600_s1 + $0x90] ss:$8 sps:$4 sm:$0xff]  }
  0x20   : > { %v7112_v59 = vld [vmem:[%s10600_s1 + $0x194] ss:$8 sps:$4 sm:$0xff]   ;;  %v7115_v61 = vld [vmem:[%s10600_s1 + $0x190] ss:$8 sps:$4 sm:$0xff]   ;;  %v7116_v62 = vld [vmem:[%s10600_s1 + $0x84] ss:$8 sps:$4 sm:$0xff]  }
  0x21   : > { %4402 = vmatpush1.bf16.msra.mxu0 %v7060_v22  ;;  %v7118_v63 = vld [vmem:[%s10600_s1 + $0x184] ss:$8 sps:$4 sm:$0xff]   ;;  %v7120_v0 = vld [vmem:[%s10600_s1 + $0x80] ss:$8 sps:$4 sm:$0xff]   ;;  %v7130_v2 = vld [vmem:[%s10600_s1 + $0x274] ss:$8 sps:$4 sm:$0xff]  }
  0x22   : > { %4515 = vmatpush1.bf16.msra.mxu1 %v7061_v23  ;;  %4403 = vmatprep.subr.bf16.mxu0 %v7062_v24  ;;  %v7121_v1 = vld [vmem:[%s10600_s1 + $0x180] ss:$8 sps:$4 sm:$0xff]   ;;  %v7133_v3 = vld [vmem:[%s10600_s1 + $0x374] ss:$8 sps:$4 sm:$0xff]   ;;  %v7128_v6 = vld [vmem:[%s10600_s1 + $0x270] ss:$8 sps:$4 sm:$0xff]  }
  0x23   : > { %4516 = vmatprep.subr.bf16.mxu1 %v7064_v25  ;;  %v7122_v4 = vld [vmem:[%s8253_s12] ss:$116 sps:$4 sm:$0xff]   ;;  %v7125_v5 = vld [vmem:[%s8253_s12 + $0x8] ss:$116 sps:$4 sm:$0xff]   ;;  %v7131_v7 = vld [vmem:[%s10600_s1 + $0x370] ss:$8 sps:$4 sm:$0xff]  }
  0x24   : > { %v7136_v8 = vld [vmem:[%s10600_s1 + $0x264] ss:$8 sps:$4 sm:$0xff]   ;;  %v7142_v11 = vld [vmem:[%s8253_s12 + $0xf4] ss:$116 sps:$4 sm:$0xff]   ;;  %v7146_v18 = vld [vmem:[%s10600_s1 + $0x250] ss:$8 sps:$4 sm:$0xff]  }
  0x25   : > { %4404 = vmatpush1.bf16.msra.mxu0 %v7066_v26  ;;  %v7139_v9 = vld [vmem:[%s10600_s1 + $0x364] ss:$8 sps:$4 sm:$0xff]   ;;  %v7134_v12 = vld [vmem:[%s10600_s1 + $0x260] ss:$8 sps:$4 sm:$0xff]   ;;  %v7148_v14 = vld [vmem:[%s10600_s1 + $0x254] ss:$8 sps:$4 sm:$0xff]  }
  0x26   : > { %4517 = vmatpush1.bf16.msra.mxu1 %v7067_v27  ;;  %4405 = vmatprep.subr.bf16.mxu0 %v7068_v28  ;;  %v7140_v10 = vld [vmem:[%s8253_s12 + $0xec] ss:$116 sps:$4 sm:$0xff]   ;;  %v7151_v15 = vld [vmem:[%s10600_s1 + $0x354] ss:$8 sps:$4 sm:$0xff]   ;;  %v7145_v17 = vld [vmem:[%s8253_s12 + $0xf0] ss:$116 sps:$4 sm:$0xff]  }
  0x27   : > { %4518 = vmatprep.subr.bf16.mxu1 %v7070_v29  ;;  %v7137_v13 = vld [vmem:[%s10600_s1 + $0x360] ss:$8 sps:$4 sm:$0xff]   ;;  %v7149_v19 = vld [vmem:[%s10600_s1 + $0x350] ss:$8 sps:$4 sm:$0xff]   ;;  %v7154_v20 = vld [vmem:[%s10600_s1 + $0x244] ss:$8 sps:$4 sm:$0xff]  }
  0x28   : > { %v7144_v16 = vld [vmem:[%s8253_s12 + $0xe8] ss:$116 sps:$4 sm:$0xff]   ;;  %v7157_v21 = vld [vmem:[%s10600_s1 + $0x344] ss:$8 sps:$4 sm:$0xff]  }
  0x29   : > { %4406 = vmatpush1.bf16.msra.mxu0 %v7072_v30  ;;  %v7158_v22 = vld [vmem:[%s8253_s12 + $0x1d4] ss:$116 sps:$4 sm:$0xff]   ;;  %v7160_v23 = vld [vmem:[%s8253_s12 + $0x1dc] ss:$116 sps:$4 sm:$0xff]   ;;  %v7163_v29 = vld [vmem:[%s8253_s12 + $0x1d8] ss:$116 sps:$4 sm:$0xff]  }
  0x2a   : > { %4519 = vmatpush1.bf16.msra.mxu1 %v7073_v31  ;;  %4407 = vmatprep.subr.bf16.mxu0 %v7074_v32  ;;  %v7152_v24 = vld [vmem:[%s10600_s1 + $0x240] ss:$8 sps:$4 sm:$0xff]   ;;  %v7166_v26 = vld [vmem:[%s10600_s1 + $0x234] ss:$8 sps:$4 sm:$0xff]   ;;  %v7162_v28 = vld [vmem:[%s8253_s12 + $0x1d0] ss:$116 sps:$4 sm:$0xff]  }
  0x2b   : > { %4520 = vmatprep.subr.bf16.mxu1 %v7076_v33  ;;  %v7155_v25 = vld [vmem:[%s10600_s1 + $0x340] ss:$8 sps:$4 sm:$0xff]   ;;  %v7169_v27 = vld [vmem:[%s10600_s1 + $0x334] ss:$8 sps:$4 sm:$0xff]   ;;  %v7164_v30 = vld [vmem:[%s10600_s1 + $0x230] ss:$8 sps:$4 sm:$0xff]  }
  0x2c   : > { %v7167_v31 = vld [vmem:[%s10600_s1 + $0x330] ss:$8 sps:$4 sm:$0xff]   ;;  %v7172_v32 = vld [vmem:[%s10600_s1 + $0x224] ss:$8 sps:$4 sm:$0xff]   ;;  %v7191_v49 = vld [vmem:[%s10600_s1 + $0x300] ss:$8 sps:$4 sm:$0xff]  }
  0x2d   : > { %4408 = vmatpush2.bf16.msra.mxu0 %v7078_v34  ;;  %v7175_v33 = vld [vmem:[%s10600_s1 + $0x324] ss:$8 sps:$4 sm:$0xff]   ;;  %v7176_v34 = vld [vmem:[%s8253_s12 + $0x2bc] ss:$116 sps:$4 sm:$0xff]  }
  0x2e   : > { %4521 = vmatpush2.bf16.msra.mxu1 %v7079_v35  ;;  %4409 = vmatprep.subr.bf16.mxu0 %v7080_v36  ;;  %v7178_v35 = vld [vmem:[%s8253_s12 + $0x2c4] ss:$116 sps:$4 sm:$0xff]   ;;  %v7170_v36 = vld [vmem:[%s10600_s1 + $0x220] ss:$8 sps:$4 sm:$0xff]   ;;  %v7205_v51 = vld [vmem:[%s10600_s1 + $0x3f4] ss:$8 sps:$4 sm:$0xff]  }
  0x2f   : > { %4522 = vmatprep.subr.bf16.mxu1 %v7082_v37  ;;  %v7173_v37 = vld [vmem:[%s10600_s1 + $0x320] ss:$8 sps:$4 sm:$0xff]  }
  0x31   : > { %4410 = vmatpush2.bf16.msra.mxu0 %v7084_v38  ;;  %v7184_v38 = vld [vmem:[%s10600_s1 + $0x214] ss:$8 sps:$4 sm:$0xff]  }
  0x32   : > { %4523 = vmatpush2.bf16.msra.mxu1 %v7085_v39  ;;  %4411 = vmatprep.subr.bf16.mxu0 %v7086_v40  ;;  %v7187_v39 = vld [vmem:[%s10600_s1 + $0x314] ss:$8 sps:$4 sm:$0xff]   ;;  %v7180_v40 = vld [vmem:[%s8253_s12 + $0x2b8] ss:$116 sps:$4 sm:$0xff]  }
  0x33   : > { %4524 = vmatprep.subr.bf16.mxu1 %v7088_v41  ;;  %v7181_v41 = vld [vmem:[%s8253_s12 + $0x2c0] ss:$116 sps:$4 sm:$0xff]  }
  0x35   : > { %4412 = vmatpush2.bf16.msra.mxu0 %v7090_v42  ;;  %v7182_v42 = vld [vmem:[%s10600_s1 + $0x210] ss:$8 sps:$4 sm:$0xff]  }
  0x36   : > { %4525 = vmatpush2.bf16.msra.mxu1 %v7091_v43  ;;  %4413 = vmatprep.subr.bf16.mxu0 %v7092_v44  ;;  %v7185_v43 = vld [vmem:[%s10600_s1 + $0x310] ss:$8 sps:$4 sm:$0xff]   ;;  %v7190_v44 = vld [vmem:[%s10600_s1 + $0x204] ss:$8 sps:$4 sm:$0xff]  }
  0x37   : > { %4526 = vmatprep.subr.bf16.mxu1 %v7094_v45  ;;  %v7193_v45 = vld [vmem:[%s10600_s1 + $0x304] ss:$8 sps:$4 sm:$0xff]  }
  0x39   : > { %4414 = vmatpush2.bf16.msra.mxu0 %v7096_v46  ;;  %v7194_v46 = vld [vmem:[%s8253_s12 + $0x3a4] ss:$116 sps:$4 sm:$0xff]  }
  0x3a   : > { %4527 = vmatpush2.bf16.msra.mxu1 %v7097_v47  ;;  %4415 = vmatprep.subr.bf16.mxu0 %v7098_v48  ;;  %v7196_v47 = vld [vmem:[%s8253_s12 + $0x3ac] ss:$116 sps:$4 sm:$0xff]  }
  0x3b   : > { %4528 = vmatprep.subr.bf16.mxu1 %v7100_v50  ;;  %v7188_v48 = vld [vmem:[%s10600_s1 + $0x200] ss:$8 sps:$4 sm:$0xff]   ;;  %v7202_v50 = vld [vmem:[%s10600_s1 + $0x2f4] ss:$8 sps:$4 sm:$0xff]  }
  0x3d   : > { %4416 = vmatpush2.bf16.msra.mxu0 %v7102_v52  ;;  %v7198_v52 = vld [vmem:[%s8253_s12 + $0x3a0] ss:$116 sps:$4 sm:$0xff]  }
  0x3e   : > { %4529 = vmatpush2.bf16.msra.mxu1 %v7103_v53  ;;  %4417 = vmatprep.subr.bf16.mxu0 %v7104_v54  ;;  %v7199_v53 = vld [vmem:[%s8253_s12 + $0x3a8] ss:$116 sps:$4 sm:$0xff]   ;;  %v7200_v54 = vld [vmem:[%s10600_s1 + $0x2f0] ss:$8 sps:$4 sm:$0xff]  }
  0x3f   : > { %4530 = vmatprep.subr.bf16.mxu1 %v7106_v55  ;;  %v7203_v55 = vld [vmem:[%s10600_s1 + $0x3f0] ss:$8 sps:$4 sm:$0xff]  }
  0x41   : > { %4418 = vmatpush2.bf16.msra.mxu0 %v7108_v56  ;;  %v7208_v56 = vld [vmem:[%s10600_s1 + $0x2e4] ss:$8 sps:$4 sm:$0xff]  }
  0x42   : > { %4531 = vmatpush2.bf16.msra.mxu1 %v7109_v57  ;;  %4419 = vmatprep.subr.bf16.mxu0 %v7110_v58  ;;  %v7211_v57 = vld [vmem:[%s10600_s1 + $0x3e4] ss:$8 sps:$4 sm:$0xff]  }
  0x43   : > { %4532 = vmatprep.subr.bf16.mxu1 %v7112_v59  ;;  %v7212_v58 = vld [vmem:[%s8253_s12 + $0x48c] ss:$116 sps:$4 sm:$0xff]   ;;  %v7214_v59 = vld [vmem:[%s8253_s12 + $0x494] ss:$116 sps:$4 sm:$0xff]  }
  0x45   : > { %4420 = vmatpush2.bf16.msra.mxu0 %v7114_v60  ;;  %v7206_v60 = vld [vmem:[%s10600_s1 + $0x2e0] ss:$8 sps:$4 sm:$0xff]  }
  0x46   : > { %4533 = vmatpush2.bf16.msra.mxu1 %v7115_v61  ;;  %4421 = vmatprep.subr.bf16.mxu0 %v7116_v62  ;;  %v7209_v61 = vld [vmem:[%s10600_s1 + $0x3e0] ss:$8 sps:$4 sm:$0xff]   ;;  %v7220_v62 = vld [vmem:[%s10600_s1 + $0x2d4] ss:$8 sps:$4 sm:$0xff]  }
  0x47   : > { %4534 = vmatprep.subr.bf16.mxu1 %v7118_v63  ;;  %v7223_v63 = vld [vmem:[%s10600_s1 + $0x3d4] ss:$8 sps:$4 sm:$0xff]  }
  0x49   : > { %4422 = vmatpush2.bf16.msra.mxu0 %v7120_v0  ;;  %v7216_v0 = vld [vmem:[%s8253_s12 + $0x488] ss:$116 sps:$4 sm:$0xff]  }
  0x4a   : > { %4535 = vmatpush2.bf16.msra.mxu1 %v7121_v1  ;;  %4617 = vmatprep.subr.bf16.mxu0 %v7130_v2  ;;  %v7217_v1 = vld [vmem:[%s8253_s12 + $0x490] ss:$116 sps:$4 sm:$0xff]  }
  0x4b   : > { %4730 = vmatprep.subr.bf16.mxu1 %v7133_v3  ;;  %v7218_v2 = vld [vmem:[%s10600_s1 + $0x2d0] ss:$8 sps:$4 sm:$0xff]  }
  0x4c   : > { %4424 = vmatmul.mubr.bf16.vlgmr.msra.gmra.mxu0 %v7122_v4  ;;  %v7221_v3 = vld [vmem:[%s10600_s1 + $0x3d0] ss:$8 sps:$4 sm:$0xff]   ;;  %v7226_v4 = vld [vmem:[%s10600_s1 + $0x2c4] ss:$8 sps:$4 sm:$0xff]  }
  0x4d   : > { %4537 = vmatmul.mubr.bf16.vlgmr.msra.gmra.mxu1 %v7125_v5  ;;  %4618 = vmatpush1.bf16.msra.mxu0 %v7128_v6  ;;  %v7229_v5 = vld [vmem:[%s10600_s1 + $0x3c4] ss:$8 sps:$4 sm:$0xff]   ;;  %v7230_v6 = vld [vmem:[%s8253_s12 + $0x574] ss:$116 sps:$4 sm:$0xff]  }
  0x4e   : > { %4731 = vmatpush1.bf16.msra.mxu1 %v7131_v7  ;;  %4619 = vmatprep.subr.bf16.mxu0 %v7136_v8  ;;  %v7232_v7 = vld [vmem:[%s8253_s12 + $0x57c] ss:$116 sps:$4 sm:$0xff]   ;;  %v7224_v8 = vld [vmem:[%s10600_s1 + $0x2c0] ss:$8 sps:$4 sm:$0xff]  }
  0x4f   : > { %4732 = vmatprep.subr.bf16.mxu1 %v7139_v9  ;;  %4433 = vmatprep.mubr.bf16.mxu0 %v7140_v10  ;;  %v7227_v9 = vld [vmem:[%s10600_s1 + $0x3c0] ss:$8 sps:$4 sm:$0xff]   ;;  %v7238_v10 = vld [vmem:[%s10600_s1 + $0x2b4] ss:$8 sps:$4 sm:$0xff]  }
  0x50   : > { %4546 = vmatprep.mubr.bf16.mxu1 %v7142_v11  ;;  %v7241_v11 = vld [vmem:[%s10600_s1 + $0x3b4] ss:$8 sps:$4 sm:$0xff]  }
  0x51   : > { %4620 = vmatpush1.bf16.msra.mxu0 %v7134_v12  ;;  %v7234_v12 = vld [vmem:[%s8253_s12 + $0x570] ss:$116 sps:$4 sm:$0xff]  }
  0x52   : > { %4733 = vmatpush1.bf16.msra.mxu1 %v7137_v13  ;;  %4621 = vmatprep.subr.bf16.mxu0 %v7148_v14  ;;  %v7235_v13 = vld [vmem:[%s8253_s12 + $0x578] ss:$116 sps:$4 sm:$0xff]  }
  0x53   : > { %4734 = vmatprep.subr.bf16.mxu1 %v7151_v15  ;;  %v7236_v14 = vld [vmem:[%s10600_s1 + $0x2b0] ss:$8 sps:$4 sm:$0xff]  }
  0x54   : > { %4434 = vmatmul.mubr.bf16.gmra.mxu0 %v7144_v16  ;;  %v7239_v15 = vld [vmem:[%s10600_s1 + $0x3b0] ss:$8 sps:$4 sm:$0xff]   ;;  %v7244_v16 = vld [vmem:[%s10600_s1 + $0x2a4] ss:$8 sps:$4 sm:$0xff]  }
  0x55   : > { %4547 = vmatmul.mubr.bf16.gmra.mxu1 %v7145_v17  ;;  %4622 = vmatpush1.bf16.msra.mxu0 %v7146_v18  ;;  %v7247_v17 = vld [vmem:[%s10600_s1 + $0x3a4] ss:$8 sps:$4 sm:$0xff]   ;;  %v7248_v18 = vld [vmem:[%s8253_s12 + $0x65c] ss:$116 sps:$4 sm:$0xff]  }
  0x56   : > { %4735 = vmatpush1.bf16.msra.mxu1 %v7149_v19  ;;  %4623 = vmatprep.subr.bf16.mxu0 %v7154_v20  ;;  %v7250_v19 = vld [vmem:[%s8253_s12 + $0x664] ss:$116 sps:$4 sm:$0xff]   ;;  %v7242_v20 = vld [vmem:[%s10600_s1 + $0x2a0] ss:$8 sps:$4 sm:$0xff]  }
  0x57   : > { %4736 = vmatprep.subr.bf16.mxu1 %v7157_v21  ;;  %4443 = vmatprep.mubr.bf16.mxu0 %v7158_v22  ;;  %v7245_v21 = vld [vmem:[%s10600_s1 + $0x3a0] ss:$8 sps:$4 sm:$0xff]   ;;  %v7256_v22 = vld [vmem:[%s10600_s1 + $0x294] ss:$8 sps:$4 sm:$0xff]  }
  0x58   : > { %4556 = vmatprep.mubr.bf16.mxu1 %v7160_v23  ;;  %v7259_v23 = vld [vmem:[%s10600_s1 + $0x394] ss:$8 sps:$4 sm:$0xff]  }
  0x59   : > { %4624 = vmatpush1.bf16.msra.mxu0 %v7152_v24  ;;  %v7252_v24 = vld [vmem:[%s8253_s12 + $0x658] ss:$116 sps:$4 sm:$0xff]  }
  0x5a   : > { %4737 = vmatpush1.bf16.msra.mxu1 %v7155_v25  ;;  %4625 = vmatprep.subr.bf16.mxu0 %v7166_v26  ;;  %v7253_v25 = vld [vmem:[%s8253_s12 + $0x660] ss:$116 sps:$4 sm:$0xff]   ;;  %v7254_v26 = vld [vmem:[%s10600_s1 + $0x290] ss:$8 sps:$4 sm:$0xff]  }
  0x5b   : > { %4738 = vmatprep.subr.bf16.mxu1 %v7169_v27  ;;  %v7257_v27 = vld [vmem:[%s10600_s1 + $0x390] ss:$8 sps:$4 sm:$0xff]  }
  0x5c   : > { %4444 = vmatmul.mubr.bf16.gmra.mxu0 %v7162_v28  ;;  %v7262_v28 = vld [vmem:[%s10600_s1 + $0x284] ss:$8 sps:$4 sm:$0xff]  }
  0x5d   : > { %4557 = vmatmul.mubr.bf16.gmra.mxu1 %v7163_v29  ;;  %4626 = vmatpush1.bf16.msra.mxu0 %v7164_v30  ;;  %v7265_v29 = vld [vmem:[%s10600_s1 + $0x384] ss:$8 sps:$4 sm:$0xff]   ;;  %v7268_v30 = vld [vmem:[%s8253_s12 + $0x14] ss:$116 sps:$4 sm:$0xff]  }
  0x5e   : > { %4739 = vmatpush1.bf16.msra.mxu1 %v7167_v31  ;;  %4627 = vmatprep.subr.bf16.mxu0 %v7172_v32  ;;  %v7271_v31 = vld [vmem:[%s8253_s12 + $0x1c] ss:$116 sps:$4 sm:$0xff]   ;;  %v7260_v32 = vld [vmem:[%s10600_s1 + $0x280] ss:$8 sps:$4 sm:$0xff]  }
  0x5f   : > { %4740 = vmatprep.subr.bf16.mxu1 %v7175_v33  ;;  %4453 = vmatprep.mubr.bf16.mxu0 %v7176_v34  ;;  %v7263_v33 = vld [vmem:[%s10600_s1 + $0x380] ss:$8 sps:$4 sm:$0xff]   ;;  %v7274_v34 = vld [vmem:[%s10600_s1 + $0x474] ss:$8 sps:$4 sm:$0xff]  }
  0x60   : > { %4566 = vmatprep.mubr.bf16.mxu1 %v7178_v35  ;;  %v7277_v35 = vld [vmem:[%s10600_s1 + $0x574] ss:$8 sps:$4 sm:$0xff]  }
  0x61   : > { %4628 = vmatpush1.bf16.msra.mxu0 %v7170_v36  ;;  %v7266_v36 = vld [vmem:[%s8253_s12 + $0x10] ss:$116 sps:$4 sm:$0xff]  }
  0x62   : > { %4741 = vmatpush1.bf16.msra.mxu1 %v7173_v37  ;;  %4629 = vmatprep.subr.bf16.mxu0 %v7184_v38  ;;  %v7269_v37 = vld [vmem:[%s8253_s12 + $0x18] ss:$116 sps:$4 sm:$0xff]  }
  0x63   : > { %4742 = vmatprep.subr.bf16.mxu1 %v7187_v39  ;;  %v7272_v38 = vld [vmem:[%s10600_s1 + $0x470] ss:$8 sps:$4 sm:$0xff]  }
  0x64   : > { %4454 = vmatmul.mubr.bf16.gmra.mxu0 %v7180_v40  ;;  %v7275_v39 = vld [vmem:[%s10600_s1 + $0x570] ss:$8 sps:$4 sm:$0xff]   ;;  %v7280_v40 = vld [vmem:[%s10600_s1 + $0x464] ss:$8 sps:$4 sm:$0xff]  }
  0x65   : > { %4567 = vmatmul.mubr.bf16.gmra.mxu1 %v7181_v41  ;;  %4630 = vmatpush1.bf16.msra.mxu0 %v7182_v42  ;;  %v7283_v41 = vld [vmem:[%s10600_s1 + $0x564] ss:$8 sps:$4 sm:$0xff]   ;;  %v7284_v42 = vld [vmem:[%s8253_s12 + $0xfc] ss:$116 sps:$4 sm:$0xff]  }
  0x66   : > { %4743 = vmatpush1.bf16.msra.mxu1 %v7185_v43  ;;  %4631 = vmatprep.subr.bf16.mxu0 %v7190_v44  ;;  %v7286_v43 = vld [vmem:[%s8253_s12 + $0x104] ss:$116 sps:$4 sm:$0xff]   ;;  %v7278_v44 = vld [vmem:[%s10600_s1 + $0x460] ss:$8 sps:$4 sm:$0xff]  }
  0x67   : > { %4744 = vmatprep.subr.bf16.mxu1 %v7193_v45  ;;  %4463 = vmatprep.mubr.bf16.mxu0 %v7194_v46  ;;  %v7281_v45 = vld [vmem:[%s10600_s1 + $0x560] ss:$8 sps:$4 sm:$0xff]   ;;  %v7292_v46 = vld [vmem:[%s10600_s1 + $0x454] ss:$8 sps:$4 sm:$0xff]  }
  0x68   : > { %4576 = vmatprep.mubr.bf16.mxu1 %v7196_v47  ;;  %v7295_v47 = vld [vmem:[%s10600_s1 + $0x554] ss:$8 sps:$4 sm:$0xff]  }
  0x69   : > { %4632 = vmatpush1.bf16.msra.mxu0 %v7188_v48  ;;  %v7288_v48 = vld [vmem:[%s8253_s12 + $0xf8] ss:$116 sps:$4 sm:$0xff]  }
  0x6a   : > { %4745 = vmatpush1.bf16.msra.mxu1 %v7191_v49  ;;  %4633 = vmatprep.subr.bf16.mxu0 %v7202_v50  ;;  %v7289_v49 = vld [vmem:[%s8253_s12 + $0x100] ss:$116 sps:$4 sm:$0xff]   ;;  %v7290_v50 = vld [vmem:[%s10600_s1 + $0x450] ss:$8 sps:$4 sm:$0xff]  }
  0x6b   : > { %4746 = vmatprep.subr.bf16.mxu1 %v7205_v51  ;;  %v7293_v51 = vld [vmem:[%s10600_s1 + $0x550] ss:$8 sps:$4 sm:$0xff]  }
  0x6c   : > { %4464 = vmatmul.mubr.bf16.gmra.mxu0 %v7198_v52  ;;  %v7298_v52 = vld [vmem:[%s10600_s1 + $0x444] ss:$8 sps:$4 sm:$0xff]  }
  0x6d   : > { %4577 = vmatmul.mubr.bf16.gmra.mxu1 %v7199_v53  ;;  %4634 = vmatpush2.bf16.msra.mxu0 %v7200_v54  ;;  %v7301_v53 = vld [vmem:[%s10600_s1 + $0x544] ss:$8 sps:$4 sm:$0xff]  }
  0x6e   : > { %4747 = vmatpush2.bf16.msra.mxu1 %v7203_v55  ;;  %4635 = vmatprep.subr.bf16.mxu0 %v7208_v56  ;;  %v7302_v54 = vld [vmem:[%s8253_s12 + $0x1e4] ss:$116 sps:$4 sm:$0xff]   ;;  %v7304_v55 = vld [vmem:[%s8253_s12 + $0x1ec] ss:$116 sps:$4 sm:$0xff]  }
  0x6f   : > { %4748 = vmatprep.subr.bf16.mxu1 %v7211_v57  ;;  %4473 = vmatprep.mubr.bf16.mxu0 %v7212_v58  ;;  %v7296_v56 = vld [vmem:[%s10600_s1 + $0x440] ss:$8 sps:$4 sm:$0xff]   ;;  %v7310_v58 = vld [vmem:[%s10600_s1 + $0x434] ss:$8 sps:$4 sm:$0xff]  }
  0x70   : > { %4586 = vmatprep.mubr.bf16.mxu1 %v7214_v59  ;;  %v7299_v57 = vld [vmem:[%s10600_s1 + $0x540] ss:$8 sps:$4 sm:$0xff]   ;;  %v7313_v59 = vld [vmem:[%s10600_s1 + $0x534] ss:$8 sps:$4 sm:$0xff]  }
  0x71   : > { %4636 = vmatpush2.bf16.msra.mxu0 %v7206_v60  ;;  %v7306_v60 = vld [vmem:[%s8253_s12 + $0x1e0] ss:$116 sps:$4 sm:$0xff]  }
  0x72   : > { %4749 = vmatpush2.bf16.msra.mxu1 %v7209_v61  ;;  %4637 = vmatprep.subr.bf16.mxu0 %v7220_v62  ;;  %v7307_v61 = vld [vmem:[%s8253_s12 + $0x1e8] ss:$116 sps:$4 sm:$0xff]   ;;  %v7308_v62 = vld [vmem:[%s10600_s1 + $0x430] ss:$8 sps:$4 sm:$0xff]  }
  0x73   : > { %4750 = vmatprep.subr.bf16.mxu1 %v7223_v63  ;;  %v7311_v63 = vld [vmem:[%s10600_s1 + $0x530] ss:$8 sps:$4 sm:$0xff]  }
  0x74   : > { %4474 = vmatmul.mubr.bf16.gmra.mxu0 %v7216_v0  ;;  %v7316_v0 = vld [vmem:[%s10600_s1 + $0x424] ss:$8 sps:$4 sm:$0xff]  }
  0x75   : > { %4587 = vmatmul.mubr.bf16.gmra.mxu1 %v7217_v1  ;;  %4638 = vmatpush2.bf16.msra.mxu0 %v7218_v2  ;;  %v7319_v1 = vld [vmem:[%s10600_s1 + $0x524] ss:$8 sps:$4 sm:$0xff]  }
  0x76   : > { %4751 = vmatpush2.bf16.msra.mxu1 %v7221_v3  ;;  %4639 = vmatprep.subr.bf16.mxu0 %v7226_v4  ;;  %v7320_v2 = vld [vmem:[%s8253_s12 + $0x2cc] ss:$116 sps:$4 sm:$0xff]   ;;  %v7322_v3 = vld [vmem:[%s8253_s12 + $0x2d4] ss:$116 sps:$4 sm:$0xff]  }
  0x77   : > { %4752 = vmatprep.subr.bf16.mxu1 %v7229_v5  ;;  %4483 = vmatprep.mubr.bf16.mxu0 %v7230_v6  ;;  %v7314_v4 = vld [vmem:[%s10600_s1 + $0x420] ss:$8 sps:$4 sm:$0xff]   ;;  %v7328_v6 = vld [vmem:[%s10600_s1 + $0x414] ss:$8 sps:$4 sm:$0xff]  }
  0x78   : > { %4596 = vmatprep.mubr.bf16.mxu1 %v7232_v7  ;;  %v7317_v5 = vld [vmem:[%s10600_s1 + $0x520] ss:$8 sps:$4 sm:$0xff]   ;;  %v7331_v7 = vld [vmem:[%s10600_s1 + $0x514] ss:$8 sps:$4 sm:$0xff]  }
  0x79   : > { %4640 = vmatpush2.bf16.msra.mxu0 %v7224_v8  ;;  %v7324_v8 = vld [vmem:[%s8253_s12 + $0x2c8] ss:$116 sps:$4 sm:$0xff]  }
  0x7a   : > { %4753 = vmatpush2.bf16.msra.mxu1 %v7227_v9  ;;  %4641 = vmatprep.subr.bf16.mxu0 %v7238_v10  ;;  %v7325_v9 = vld [vmem:[%s8253_s12 + $0x2d0] ss:$116 sps:$4 sm:$0xff]  }
  0x7b   : > { %4754 = vmatprep.subr.bf16.mxu1 %v7241_v11  ;;  %v7326_v10 = vld [vmem:[%s10600_s1 + $0x410] ss:$8 sps:$4 sm:$0xff]  }
  0x7c   : > { %4484 = vmatmul.mubr.bf16.gmra.mxu0 %v7234_v12  ;;  %v7329_v11 = vld [vmem:[%s10600_s1 + $0x510] ss:$8 sps:$4 sm:$0xff]   ;;  %v7334_v12 = vld [vmem:[%s10600_s1 + $0x404] ss:$8 sps:$4 sm:$0xff]  }
  0x7d   : > { %4597 = vmatmul.mubr.bf16.gmra.mxu1 %v7235_v13  ;;  %4642 = vmatpush2.bf16.msra.mxu0 %v7236_v14  ;;  %v7337_v13 = vld [vmem:[%s10600_s1 + $0x504] ss:$8 sps:$4 sm:$0xff]   ;;  %v7338_v14 = vld [vmem:[%s8253_s12 + $0x3b4] ss:$116 sps:$4 sm:$0xff]  }
  0x7e   : > { %4755 = vmatpush2.bf16.msra.mxu1 %v7239_v15  ;;  %4643 = vmatprep.subr.bf16.mxu0 %v7244_v16  ;;  %v7340_v15 = vld [vmem:[%s8253_s12 + $0x3bc] ss:$116 sps:$4 sm:$0xff]   ;;  %v7332_v16 = vld [vmem:[%s10600_s1 + $0x400] ss:$8 sps:$4 sm:$0xff]  }
  0x7f   : > { %4756 = vmatprep.subr.bf16.mxu1 %v7247_v17  ;;  %4493 = vmatprep.mubr.bf16.mxu0 %v7248_v18  ;;  %v7335_v17 = vld [vmem:[%s10600_s1 + $0x500] ss:$8 sps:$4 sm:$0xff]   ;;  %v7346_v18 = vld [vmem:[%s10600_s1 + $0x4f4] ss:$8 sps:$4 sm:$0xff]  }
  0x80   : > { %4606 = vmatprep.mubr.bf16.mxu1 %v7250_v19  ;;  %v7349_v19 = vld [vmem:[%s10600_s1 + $0x5f4] ss:$8 sps:$4 sm:$0xff]  }
  0x81   : > { %4644 = vmatpush2.bf16.msra.mxu0 %v7242_v20  ;;  %v7342_v20 = vld [vmem:[%s8253_s12 + $0x3b0] ss:$116 sps:$4 sm:$0xff]  }
  0x82   : > { %4757 = vmatpush2.bf16.msra.mxu1 %v7245_v21  ;;  %4645 = vmatprep.subr.bf16.mxu0 %v7256_v22  ;;  %v7343_v21 = vld [vmem:[%s8253_s12 + $0x3b8] ss:$116 sps:$4 sm:$0xff]  }
  0x83   : > { %4758 = vmatprep.subr.bf16.mxu1 %v7259_v23  ;;  %v7344_v22 = vld [vmem:[%s10600_s1 + $0x4f0] ss:$8 sps:$4 sm:$0xff]  }
  0x84   : > { %4494 = vmatmul.mubr.bf16.gmra.mxu0 %v7252_v24  ;;  %v7347_v23 = vld [vmem:[%s10600_s1 + $0x5f0] ss:$8 sps:$4 sm:$0xff]   ;;  %v7352_v24 = vld [vmem:[%s10600_s1 + $0x4e4] ss:$8 sps:$4 sm:$0xff]  }
  0x85   : > { %4607 = vmatmul.mubr.bf16.gmra.mxu1 %v7253_v25  ;;  %4646 = vmatpush2.bf16.msra.mxu0 %v7254_v26  ;;  %v7355_v25 = vld [vmem:[%s10600_s1 + $0x5e4] ss:$8 sps:$4 sm:$0xff]   ;;  %v7356_v26 = vld [vmem:[%s8253_s12 + $0x49c] ss:$116 sps:$4 sm:$0xff]  }
  0x86   : > { %4759 = vmatpush2.bf16.msra.mxu1 %v7257_v27  ;;  %4647 = vmatprep.subr.bf16.mxu0 %v7262_v28  ;;  %v7358_v27 = vld [vmem:[%s8253_s12 + $0x4a4] ss:$116 sps:$4 sm:$0xff]   ;;  %v7350_v28 = vld [vmem:[%s10600_s1 + $0x4e0] ss:$8 sps:$4 sm:$0xff]  }
  0x87   : > { %4760 = vmatprep.subr.bf16.mxu1 %v7265_v29  ;;  %4649 = vmatprep.mubr.bf16.mxu0 %v7268_v30  ;;  %v7353_v29 = vld [vmem:[%s10600_s1 + $0x5e0] ss:$8 sps:$4 sm:$0xff]   ;;  %v7364_v30 = vld [vmem:[%s10600_s1 + $0x4d4] ss:$8 sps:$4 sm:$0xff]  }
  0x88   : > { %4762 = vmatprep.mubr.bf16.mxu1 %v7271_v31  ;;  %v7367_v31 = vld [vmem:[%s10600_s1 + $0x5d4] ss:$8 sps:$4 sm:$0xff]  }
  0x89   : > { %4648 = vmatpush2.bf16.msra.mxu0 %v7260_v32  ;;  %v7360_v32 = vld [vmem:[%s8253_s12 + $0x498] ss:$116 sps:$4 sm:$0xff]  }
  0x8a   : > { %4761 = vmatpush2.bf16.msra.mxu1 %v7263_v33  ;;  %4843 = vmatprep.subr.bf16.mxu0 %v7274_v34  ;;  %v7361_v33 = vld [vmem:[%s8253_s12 + $0x4a0] ss:$116 sps:$4 sm:$0xff]   ;;  %v7362_v34 = vld [vmem:[%s10600_s1 + $0x4d0] ss:$8 sps:$4 sm:$0xff]  }
  0x8b   : > { %4956 = vmatprep.subr.bf16.mxu1 %v7277_v35  ;;  %v7365_v35 = vld [vmem:[%s10600_s1 + $0x5d0] ss:$8 sps:$4 sm:$0xff]  }
  0x8c   : > { %4650 = vmatmul.mubr.bf16.vlgmr.msra.gmra.mxu0 %v7266_v36  ;;  %v7370_v36 = vld [vmem:[%s10600_s1 + $0x4c4] ss:$8 sps:$4 sm:$0xff]  }
  0x8d   : > { %4763 = vmatmul.mubr.bf16.vlgmr.msra.gmra.mxu1 %v7269_v37  ;;  %4844 = vmatpush1.bf16.msra.mxu0 %v7272_v38  ;;  %v7373_v37 = vld [vmem:[%s10600_s1 + $0x5c4] ss:$8 sps:$4 sm:$0xff]  }
  0x8e   : > { %4957 = vmatpush1.bf16.msra.mxu1 %v7275_v39  ;;  %4845 = vmatprep.subr.bf16.mxu0 %v7280_v40  ;;  %v7374_v38 = vld [vmem:[%s8253_s12 + $0x584] ss:$116 sps:$4 sm:$0xff]   ;;  %v7376_v39 = vld [vmem:[%s8253_s12 + $0x58c] ss:$116 sps:$4 sm:$0xff]  }
  0x8f   : > { %4958 = vmatprep.subr.bf16.mxu1 %v7283_v41  ;;  %4659 = vmatprep.mubr.bf16.mxu0 %v7284_v42  ;;  %v7368_v40 = vld [vmem:[%s10600_s1 + $0x4c0] ss:$8 sps:$4 sm:$0xff]   ;;  %v7382_v42 = vld [vmem:[%s10600_s1 + $0x4b4] ss:$8 sps:$4 sm:$0xff]  }
  0x90   : > { %4772 = vmatprep.mubr.bf16.mxu1 %v7286_v43  ;;  %v7371_v41 = vld [vmem:[%s10600_s1 + $0x5c0] ss:$8 sps:$4 sm:$0xff]   ;;  %v7385_v43 = vld [vmem:[%s10600_s1 + $0x5b4] ss:$8 sps:$4 sm:$0xff]  }
  0x91   : > { %4846 = vmatpush1.bf16.msra.mxu0 %v7278_v44  ;;  %v7378_v44 = vld [vmem:[%s8253_s12 + $0x580] ss:$116 sps:$4 sm:$0xff]  }
  0x92   : > { %4959 = vmatpush1.bf16.msra.mxu1 %v7281_v45  ;;  %4847 = vmatprep.subr.bf16.mxu0 %v7292_v46  ;;  %v7379_v45 = vld [vmem:[%s8253_s12 + $0x588] ss:$116 sps:$4 sm:$0xff]   ;;  %v7380_v46 = vld [vmem:[%s10600_s1 + $0x4b0] ss:$8 sps:$4 sm:$0xff]  }
  0x93   : > { %4960 = vmatprep.subr.bf16.mxu1 %v7295_v47  ;;  %v7383_v47 = vld [vmem:[%s10600_s1 + $0x5b0] ss:$8 sps:$4 sm:$0xff]  }
  0x94   : > { %4660 = vmatmul.mubr.bf16.gmra.mxu0 %v7288_v48  ;;  %v7388_v48 = vld [vmem:[%s10600_s1 + $0x4a4] ss:$8 sps:$4 sm:$0xff]  }
  0x95   : > { %4773 = vmatmul.mubr.bf16.gmra.mxu1 %v7289_v49  ;;  %4848 = vmatpush1.bf16.msra.mxu0 %v7290_v50  ;;  %v7391_v49 = vld [vmem:[%s10600_s1 + $0x5a4] ss:$8 sps:$4 sm:$0xff]  }
  0x96   : > { %4961 = vmatpush1.bf16.msra.mxu1 %v7293_v51  ;;  %4849 = vmatprep.subr.bf16.mxu0 %v7298_v52  ;;  %v7392_v50 = vld [vmem:[%s8253_s12 + $0x66c] ss:$116 sps:$4 sm:$0xff]   ;;  %v7394_v51 = vld [vmem:[%s8253_s12 + $0x674] ss:$116 sps:$4 sm:$0xff]  }
  0x97   : > { %4962 = vmatprep.subr.bf16.mxu1 %v7301_v53  ;;  %4669 = vmatprep.mubr.bf16.mxu0 %v7302_v54  ;;  %v7386_v52 = vld [vmem:[%s10600_s1 + $0x4a0] ss:$8 sps:$4 sm:$0xff]   ;;  %v7400_v54 = vld [vmem:[%s10600_s1 + $0x494] ss:$8 sps:$4 sm:$0xff]  }
  0x98   : > { %4782 = vmatprep.mubr.bf16.mxu1 %v7304_v55  ;;  %v7389_v53 = vld [vmem:[%s10600_s1 + $0x5a0] ss:$8 sps:$4 sm:$0xff]   ;;  %v7403_v55 = vld [vmem:[%s10600_s1 + $0x594] ss:$8 sps:$4 sm:$0xff]  }
  0x99   : > { %4850 = vmatpush1.bf16.msra.mxu0 %v7296_v56  ;;  %v7396_v56 = vld [vmem:[%s8253_s12 + $0x668] ss:$116 sps:$4 sm:$0xff]  }
  0x9a   : > { %4963 = vmatpush1.bf16.msra.mxu1 %v7299_v57  ;;  %4851 = vmatprep.subr.bf16.mxu0 %v7310_v58  ;;  %v7397_v57 = vld [vmem:[%s8253_s12 + $0x670] ss:$116 sps:$4 sm:$0xff]  }
  0x9b   : > { %4964 = vmatprep.subr.bf16.mxu1 %v7313_v59  ;;  %v7398_v58 = vld [vmem:[%s10600_s1 + $0x490] ss:$8 sps:$4 sm:$0xff]  }
  0x9c   : > { %4670 = vmatmul.mubr.bf16.gmra.mxu0 %v7306_v60  ;;  %v7401_v59 = vld [vmem:[%s10600_s1 + $0x590] ss:$8 sps:$4 sm:$0xff]   ;;  %v7406_v60 = vld [vmem:[%s10600_s1 + $0x484] ss:$8 sps:$4 sm:$0xff]  }
  0x9d   : > { %4783 = vmatmul.mubr.bf16.gmra.mxu1 %v7307_v61  ;;  %4852 = vmatpush1.bf16.msra.mxu0 %v7308_v62  ;;  %v7409_v61 = vld [vmem:[%s10600_s1 + $0x584] ss:$8 sps:$4 sm:$0xff]  }
  0x9e   : > { %4965 = vmatpush1.bf16.msra.mxu1 %v7311_v63  ;;  %4853 = vmatprep.subr.bf16.mxu0 %v7316_v0  ;;  %v7412_v62 = vld [vmem:[%s8253_s12 + $0x24] ss:$116 sps:$4 sm:$0xff]   ;;  %v7415_v63 = vld [vmem:[%s8253_s12 + $0x2c] ss:$116 sps:$4 sm:$0xff]  }
  0x9f   : > { %4966 = vmatprep.subr.bf16.mxu1 %v7319_v1  ;;  %4679 = vmatprep.mubr.bf16.mxu0 %v7320_v2  ;;  %v7404_v0 = vld [vmem:[%s10600_s1 + $0x480] ss:$8 sps:$4 sm:$0xff]   ;;  %v7418_v2 = vld [vmem:[%s10600_s1 + $0x674] ss:$8 sps:$4 sm:$0xff]  }
  0xa0   : > { %4792 = vmatprep.mubr.bf16.mxu1 %v7322_v3  ;;  %v7407_v1 = vld [vmem:[%s10600_s1 + $0x580] ss:$8 sps:$4 sm:$0xff]   ;;  %v7421_v3 = vld [vmem:[%s10600_s1 + $0x774] ss:$8 sps:$4 sm:$0xff]  }
  0xa1   : > { %4854 = vmatpush1.bf16.msra.mxu0 %v7314_v4  ;;  %v7410_v4 = vld [vmem:[%s8253_s12 + $0x20] ss:$116 sps:$4 sm:$0xff]  }
  0xa2   : > { %4967 = vmatpush1.bf16.msra.mxu1 %v7317_v5  ;;  %4855 = vmatprep.subr.bf16.mxu0 %v7328_v6  ;;  %v7413_v5 = vld [vmem:[%s8253_s12 + $0x28] ss:$116 sps:$4 sm:$0xff]   ;;  %v7416_v6 = vld [vmem:[%s10600_s1 + $0x670] ss:$8 sps:$4 sm:$0xff]  }
  0xa3   : > { %4968 = vmatprep.subr.bf16.mxu1 %v7331_v7  ;;  %v7419_v7 = vld [vmem:[%s10600_s1 + $0x770] ss:$8 sps:$4 sm:$0xff]  }
  0xa4   : > { %4680 = vmatmul.mubr.bf16.gmra.mxu0 %v7324_v8  ;;  %v7424_v8 = vld [vmem:[%s10600_s1 + $0x664] ss:$8 sps:$4 sm:$0xff]  }
  0xa5   : > { %4793 = vmatmul.mubr.bf16.gmra.mxu1 %v7325_v9  ;;  %4856 = vmatpush1.bf16.msra.mxu0 %v7326_v10  ;;  %v7427_v9 = vld [vmem:[%s10600_s1 + $0x764] ss:$8 sps:$4 sm:$0xff]  }
  0xa6   : > { %4969 = vmatpush1.bf16.msra.mxu1 %v7329_v11  ;;  %4857 = vmatprep.subr.bf16.mxu0 %v7334_v12  ;;  %v7428_v10 = vld [vmem:[%s8253_s12 + $0x10c] ss:$116 sps:$4 sm:$0xff]   ;;  %v7430_v11 = vld [vmem:[%s8253_s12 + $0x114] ss:$116 sps:$4 sm:$0xff]  }
  0xa7   : > { %4970 = vmatprep.subr.bf16.mxu1 %v7337_v13  ;;  %4689 = vmatprep.mubr.bf16.mxu0 %v7338_v14  ;;  %v7422_v12 = vld [vmem:[%s10600_s1 + $0x660] ss:$8 sps:$4 sm:$0xff]   ;;  %v7436_v14 = vld [vmem:[%s10600_s1 + $0x654] ss:$8 sps:$4 sm:$0xff]  }
  0xa8   : > { %4802 = vmatprep.mubr.bf16.mxu1 %v7340_v15  ;;  %v7425_v13 = vld [vmem:[%s10600_s1 + $0x760] ss:$8 sps:$4 sm:$0xff]   ;;  %v7439_v15 = vld [vmem:[%s10600_s1 + $0x754] ss:$8 sps:$4 sm:$0xff]  }
  0xa9   : > { %4858 = vmatpush1.bf16.msra.mxu0 %v7332_v16  ;;  %v7432_v16 = vld [vmem:[%s8253_s12 + $0x108] ss:$116 sps:$4 sm:$0xff]  }
  0xaa   : > { %4971 = vmatpush1.bf16.msra.mxu1 %v7335_v17  ;;  %4859 = vmatprep.subr.bf16.mxu0 %v7346_v18  ;;  %v7433_v17 = vld [vmem:[%s8253_s12 + $0x110] ss:$116 sps:$4 sm:$0xff]  }
  0xab   : > { %4972 = vmatprep.subr.bf16.mxu1 %v7349_v19  ;;  %v7434_v18 = vld [vmem:[%s10600_s1 + $0x650] ss:$8 sps:$4 sm:$0xff]  }
  0xac   : > { %4690 = vmatmul.mubr.bf16.gmra.mxu0 %v7342_v20  ;;  %v7437_v19 = vld [vmem:[%s10600_s1 + $0x750] ss:$8 sps:$4 sm:$0xff]   ;;  %v7442_v20 = vld [vmem:[%s10600_s1 + $0x644] ss:$8 sps:$4 sm:$0xff]  }
  0xad   : > { %4803 = vmatmul.mubr.bf16.gmra.mxu1 %v7343_v21  ;;  %4860 = vmatpush2.bf16.msra.mxu0 %v7344_v22  ;;  %v7445_v21 = vld [vmem:[%s10600_s1 + $0x744] ss:$8 sps:$4 sm:$0xff]   ;;  %v7446_v22 = vld [vmem:[%s8253_s12 + $0x1f4] ss:$116 sps:$4 sm:$0xff]  }
  0xae   : > { %4973 = vmatpush2.bf16.msra.mxu1 %v7347_v23  ;;  %4861 = vmatprep.subr.bf16.mxu0 %v7352_v24  ;;  %v7448_v23 = vld [vmem:[%s8253_s12 + $0x1fc] ss:$116 sps:$4 sm:$0xff]   ;;  %v7440_v24 = vld [vmem:[%s10600_s1 + $0x640] ss:$8 sps:$4 sm:$0xff]  }
  0xaf   : > { %4974 = vmatprep.subr.bf16.mxu1 %v7355_v25  ;;  %4699 = vmatprep.mubr.bf16.mxu0 %v7356_v26  ;;  %v7443_v25 = vld [vmem:[%s10600_s1 + $0x740] ss:$8 sps:$4 sm:$0xff]   ;;  %v7454_v26 = vld [vmem:[%s10600_s1 + $0x634] ss:$8 sps:$4 sm:$0xff]  }
  0xb0   : > { %4812 = vmatprep.mubr.bf16.mxu1 %v7358_v27  ;;  %v7457_v27 = vld [vmem:[%s10600_s1 + $0x734] ss:$8 sps:$4 sm:$0xff]  }
  0xb1   : > { %4862 = vmatpush2.bf16.msra.mxu0 %v7350_v28  ;;  %v7450_v28 = vld [vmem:[%s8253_s12 + $0x1f0] ss:$116 sps:$4 sm:$0xff]  }
  0xb2   : > { %4975 = vmatpush2.bf16.msra.mxu1 %v7353_v29  ;;  %4863 = vmatprep.subr.bf16.mxu0 %v7364_v30  ;;  %v7451_v29 = vld [vmem:[%s8253_s12 + $0x1f8] ss:$116 sps:$4 sm:$0xff]  }
  0xb3   : > { %4976 = vmatprep.subr.bf16.mxu1 %v7367_v31  ;;  %v7452_v30 = vld [vmem:[%s10600_s1 + $0x630] ss:$8 sps:$4 sm:$0xff]  }
  0xb4   : > { %4700 = vmatmul.mubr.bf16.gmra.mxu0 %v7360_v32  ;;  %v7455_v31 = vld [vmem:[%s10600_s1 + $0x730] ss:$8 sps:$4 sm:$0xff]   ;;  %v7460_v32 = vld [vmem:[%s10600_s1 + $0x624] ss:$8 sps:$4 sm:$0xff]  }
  0xb5   : > { %4813 = vmatmul.mubr.bf16.gmra.mxu1 %v7361_v33  ;;  %4864 = vmatpush2.bf16.msra.mxu0 %v7362_v34  ;;  %v7463_v33 = vld [vmem:[%s10600_s1 + $0x724] ss:$8 sps:$4 sm:$0xff]   ;;  %v7464_v34 = vld [vmem:[%s8253_s12 + $0x2dc] ss:$116 sps:$4 sm:$0xff]  }
  0xb6   : > { %4977 = vmatpush2.bf16.msra.mxu1 %v7365_v35  ;;  %4865 = vmatprep.subr.bf16.mxu0 %v7370_v36  ;;  %v7466_v35 = vld [vmem:[%s8253_s12 + $0x2e4] ss:$116 sps:$4 sm:$0xff]   ;;  %v7458_v36 = vld [vmem:[%s10600_s1 + $0x620] ss:$8 sps:$4 sm:$0xff]  }
  0xb7   : > { %4978 = vmatprep.subr.bf16.mxu1 %v7373_v37  ;;  %4709 = vmatprep.mubr.bf16.mxu0 %v7374_v38  ;;  %v7461_v37 = vld [vmem:[%s10600_s1 + $0x720] ss:$8 sps:$4 sm:$0xff]   ;;  %v7472_v38 = vld [vmem:[%s10600_s1 + $0x614] ss:$8 sps:$4 sm:$0xff]  }
  0xb8   : > { %4822 = vmatprep.mubr.bf16.mxu1 %v7376_v39  ;;  %v7475_v39 = vld [vmem:[%s10600_s1 + $0x714] ss:$8 sps:$4 sm:$0xff]  }
  0xb9   : > { %4866 = vmatpush2.bf16.msra.mxu0 %v7368_v40  ;;  %v7468_v40 = vld [vmem:[%s8253_s12 + $0x2d8] ss:$116 sps:$4 sm:$0xff]  }
  0xba   : > { %4979 = vmatpush2.bf16.msra.mxu1 %v7371_v41  ;;  %4867 = vmatprep.subr.bf16.mxu0 %v7382_v42  ;;  %v7469_v41 = vld [vmem:[%s8253_s12 + $0x2e0] ss:$116 sps:$4 sm:$0xff]   ;;  %v7470_v42 = vld [vmem:[%s10600_s1 + $0x610] ss:$8 sps:$4 sm:$0xff]  }
  0xbb   : > { %4980 = vmatprep.subr.bf16.mxu1 %v7385_v43  ;;  %v7473_v43 = vld [vmem:[%s10600_s1 + $0x710] ss:$8 sps:$4 sm:$0xff]  }
  0xbc   : > { %4710 = vmatmul.mubr.bf16.gmra.mxu0 %v7378_v44  ;;  %v7478_v44 = vld [vmem:[%s10600_s1 + $0x604] ss:$8 sps:$4 sm:$0xff]  }
  0xbd   : > { %4823 = vmatmul.mubr.bf16.gmra.mxu1 %v7379_v45  ;;  %4868 = vmatpush2.bf16.msra.mxu0 %v7380_v46  ;;  %v7481_v45 = vld [vmem:[%s10600_s1 + $0x704] ss:$8 sps:$4 sm:$0xff]  }
  0xbe   : > { %4981 = vmatpush2.bf16.msra.mxu1 %v7383_v47  ;;  %4869 = vmatprep.subr.bf16.mxu0 %v7388_v48  ;;  %v7482_v46 = vld [vmem:[%s8253_s12 + $0x3c4] ss:$116 sps:$4 sm:$0xff]   ;;  %v7484_v47 = vld [vmem:[%s8253_s12 + $0x3cc] ss:$116 sps:$4 sm:$0xff]  }
  0xbf   : > { %4982 = vmatprep.subr.bf16.mxu1 %v7391_v49  ;;  %4719 = vmatprep.mubr.bf16.mxu0 %v7392_v50  ;;  %v7476_v48 = vld [vmem:[%s10600_s1 + $0x600] ss:$8 sps:$4 sm:$0xff]   ;;  %v7490_v50 = vld [vmem:[%s10600_s1 + $0x6f4] ss:$8 sps:$4 sm:$0xff]  }
  0xc0   : > { %4832 = vmatprep.mubr.bf16.mxu1 %v7394_v51  ;;  %v7479_v49 = vld [vmem:[%s10600_s1 + $0x700] ss:$8 sps:$4 sm:$0xff]   ;;  %v7493_v51 = vld [vmem:[%s10600_s1 + $0x7f4] ss:$8 sps:$4 sm:$0xff]  }
  0xc1   : > { %4870 = vmatpush2.bf16.msra.mxu0 %v7386_v52  ;;  %v7486_v52 = vld [vmem:[%s8253_s12 + $0x3c0] ss:$116 sps:$4 sm:$0xff]  }
  0xc2   : > { %4983 = vmatpush2.bf16.msra.mxu1 %v7389_v53  ;;  %4871 = vmatprep.subr.bf16.mxu0 %v7400_v54  ;;  %v7487_v53 = vld [vmem:[%s8253_s12 + $0x3c8] ss:$116 sps:$4 sm:$0xff]   ;;  %v7488_v54 = vld [vmem:[%s10600_s1 + $0x6f0] ss:$8 sps:$4 sm:$0xff]  }
  0xc3   : > { %4984 = vmatprep.subr.bf16.mxu1 %v7403_v55  ;;  %v7491_v55 = vld [vmem:[%s10600_s1 + $0x7f0] ss:$8 sps:$4 sm:$0xff]  }
  0xc4   : > { %4720 = vmatmul.mubr.bf16.gmra.mxu0 %v7396_v56  ;;  %v7496_v56 = vld [vmem:[%s10600_s1 + $0x6e4] ss:$8 sps:$4 sm:$0xff]  }
  0xc5   : > { %4833 = vmatmul.mubr.bf16.gmra.mxu1 %v7397_v57  ;;  %4872 = vmatpush2.bf16.msra.mxu0 %v7398_v58  ;;  %v7499_v57 = vld [vmem:[%s10600_s1 + $0x7e4] ss:$8 sps:$4 sm:$0xff]  }
  0xc6   : > { %4985 = vmatpush2.bf16.msra.mxu1 %v7401_v59  ;;  %4873 = vmatprep.subr.bf16.mxu0 %v7406_v60  ;;  %v7500_v58 = vld [vmem:[%s8253_s12 + $0x4ac] ss:$116 sps:$4 sm:$0xff]   ;;  %v7502_v59 = vld [vmem:[%s8253_s12 + $0x4b4] ss:$116 sps:$4 sm:$0xff]  }
  0xc7   : > { %4986 = vmatprep.subr.bf16.mxu1 %v7409_v61  ;;  %4875 = vmatprep.mubr.bf16.mxu0 %v7412_v62  ;;  %v7494_v60 = vld [vmem:[%s10600_s1 + $0x6e0] ss:$8 sps:$4 sm:$0xff]   ;;  %v7508_v62 = vld [vmem:[%s10600_s1 + $0x6d4] ss:$8 sps:$4 sm:$0xff]  }
  0xc8   : > { %4988 = vmatprep.mubr.bf16.mxu1 %v7415_v63  ;;  %v7497_v61 = vld [vmem:[%s10600_s1 + $0x7e0] ss:$8 sps:$4 sm:$0xff]   ;;  %v7511_v63 = vld [vmem:[%s10600_s1 + $0x7d4] ss:$8 sps:$4 sm:$0xff]  }
  0xc9   : > { %4874 = vmatpush2.bf16.msra.mxu0 %v7404_v0  ;;  %v7504_v0 = vld [vmem:[%s8253_s12 + $0x4a8] ss:$116 sps:$4 sm:$0xff]  }
  0xca   : > { %4987 = vmatpush2.bf16.msra.mxu1 %v7407_v1  ;;  %5069 = vmatprep.subr.bf16.mxu0 %v7418_v2  ;;  %v7505_v1 = vld [vmem:[%s8253_s12 + $0x4b0] ss:$116 sps:$4 sm:$0xff]  }
  0xcb   : > { %5182 = vmatprep.subr.bf16.mxu1 %v7421_v3  ;;  %v7506_v2 = vld [vmem:[%s10600_s1 + $0x6d0] ss:$8 sps:$4 sm:$0xff]  }
  0xcc   : > { %4876 = vmatmul.mubr.bf16.vlgmr.msra.gmra.mxu0 %v7410_v4  ;;  %v7509_v3 = vld [vmem:[%s10600_s1 + $0x7d0] ss:$8 sps:$4 sm:$0xff]   ;;  %v7514_v4 = vld [vmem:[%s10600_s1 + $0x6c4] ss:$8 sps:$4 sm:$0xff]  }
  0xcd   : > { %4989 = vmatmul.mubr.bf16.vlgmr.msra.gmra.mxu1 %v7413_v5  ;;  %5070 = vmatpush1.bf16.msra.mxu0 %v7416_v6  ;;  %v7517_v5 = vld [vmem:[%s10600_s1 + $0x7c4] ss:$8 sps:$4 sm:$0xff]   ;;  %v7518_v6 = vld [vmem:[%s8253_s12 + $0x594] ss:$116 sps:$4 sm:$0xff]  }
  0xce   : > { %5183 = vmatpush1.bf16.msra.mxu1 %v7419_v7  ;;  %5071 = vmatprep.subr.bf16.mxu0 %v7424_v8  ;;  %v7520_v7 = vld [vmem:[%s8253_s12 + $0x59c] ss:$116 sps:$4 sm:$0xff]   ;;  %v7512_v8 = vld [vmem:[%s10600_s1 + $0x6c0] ss:$8 sps:$4 sm:$0xff]  }
  0xcf   : > { %5184 = vmatprep.subr.bf16.mxu1 %v7427_v9  ;;  %4885 = vmatprep.mubr.bf16.mxu0 %v7428_v10  ;;  %v7515_v9 = vld [vmem:[%s10600_s1 + $0x7c0] ss:$8 sps:$4 sm:$0xff]   ;;  %v7526_v10 = vld [vmem:[%s10600_s1 + $0x6b4] ss:$8 sps:$4 sm:$0xff]  }
  0xd0   : > { %4998 = vmatprep.mubr.bf16.mxu1 %v7430_v11  ;;  %v7529_v11 = vld [vmem:[%s10600_s1 + $0x7b4] ss:$8 sps:$4 sm:$0xff]  }
  0xd1   : > { %5072 = vmatpush1.bf16.msra.mxu0 %v7422_v12  ;;  %v7522_v12 = vld [vmem:[%s8253_s12 + $0x590] ss:$116 sps:$4 sm:$0xff]  }
  0xd2   : > { %5185 = vmatpush1.bf16.msra.mxu1 %v7425_v13  ;;  %5073 = vmatprep.subr.bf16.mxu0 %v7436_v14  ;;  %v7523_v13 = vld [vmem:[%s8253_s12 + $0x598] ss:$116 sps:$4 sm:$0xff]  }
  0xd3   : > { %5186 = vmatprep.subr.bf16.mxu1 %v7439_v15  ;;  %v7524_v14 = vld [vmem:[%s10600_s1 + $0x6b0] ss:$8 sps:$4 sm:$0xff]  }
  0xd4   : > { %4886 = vmatmul.mubr.bf16.gmra.mxu0 %v7432_v16  ;;  %v7527_v15 = vld [vmem:[%s10600_s1 + $0x7b0] ss:$8 sps:$4 sm:$0xff]   ;;  %v7532_v16 = vld [vmem:[%s10600_s1 + $0x6a4] ss:$8 sps:$4 sm:$0xff]  }
  0xd5   : > { %4999 = vmatmul.mubr.bf16.gmra.mxu1 %v7433_v17  ;;  %5074 = vmatpush1.bf16.msra.mxu0 %v7434_v18  ;;  %v7535_v17 = vld [vmem:[%s10600_s1 + $0x7a4] ss:$8 sps:$4 sm:$0xff]   ;;  %v7536_v18 = vld [vmem:[%s8253_s12 + $0x67c] ss:$116 sps:$4 sm:$0xff]  }
  0xd6   : > { %5187 = vmatpush1.bf16.msra.mxu1 %v7437_v19  ;;  %5075 = vmatprep.subr.bf16.mxu0 %v7442_v20  ;;  %v7538_v19 = vld [vmem:[%s8253_s12 + $0x684] ss:$116 sps:$4 sm:$0xff]   ;;  %v7530_v20 = vld [vmem:[%s10600_s1 + $0x6a0] ss:$8 sps:$4 sm:$0xff]  }
  0xd7   : > { %5188 = vmatprep.subr.bf16.mxu1 %v7445_v21  ;;  %4895 = vmatprep.mubr.bf16.mxu0 %v7446_v22  ;;  %v7533_v21 = vld [vmem:[%s10600_s1 + $0x7a0] ss:$8 sps:$4 sm:$0xff]   ;;  %v7544_v22 = vld [vmem:[%s10600_s1 + $0x694] ss:$8 sps:$4 sm:$0xff]  }
  0xd8   : > { %5008 = vmatprep.mubr.bf16.mxu1 %v7448_v23  ;;  %v7547_v23 = vld [vmem:[%s10600_s1 + $0x794] ss:$8 sps:$4 sm:$0xff]  }
  0xd9   : > { %5076 = vmatpush1.bf16.msra.mxu0 %v7440_v24  ;;  %v7540_v24 = vld [vmem:[%s8253_s12 + $0x678] ss:$116 sps:$4 sm:$0xff]  }
  0xda   : > { %5189 = vmatpush1.bf16.msra.mxu1 %v7443_v25  ;;  %5077 = vmatprep.subr.bf16.mxu0 %v7454_v26  ;;  %v7541_v25 = vld [vmem:[%s8253_s12 + $0x680] ss:$116 sps:$4 sm:$0xff]   ;;  %v7542_v26 = vld [vmem:[%s10600_s1 + $0x690] ss:$8 sps:$4 sm:$0xff]  }
  0xdb   : > { %5190 = vmatprep.subr.bf16.mxu1 %v7457_v27  ;;  %v7545_v27 = vld [vmem:[%s10600_s1 + $0x790] ss:$8 sps:$4 sm:$0xff]  }
  0xdc   : > { %4896 = vmatmul.mubr.bf16.gmra.mxu0 %v7450_v28  ;;  %v7550_v28 = vld [vmem:[%s10600_s1 + $0x684] ss:$8 sps:$4 sm:$0xff]  }
  0xdd   : > { %5009 = vmatmul.mubr.bf16.gmra.mxu1 %v7451_v29  ;;  %5078 = vmatpush1.bf16.msra.mxu0 %v7452_v30  ;;  %v7553_v29 = vld [vmem:[%s10600_s1 + $0x784] ss:$8 sps:$4 sm:$0xff]   ;;  %v7556_v30 = vld [vmem:[%s8253_s12 + $0x34] ss:$116 sps:$4 sm:$0xff]  }
  0xde   : > { %5191 = vmatpush1.bf16.msra.mxu1 %v7455_v31  ;;  %5079 = vmatprep.subr.bf16.mxu0 %v7460_v32  ;;  %v7559_v31 = vld [vmem:[%s8253_s12 + $0x3c] ss:$116 sps:$4 sm:$0xff]   ;;  %v7548_v32 = vld [vmem:[%s10600_s1 + $0x680] ss:$8 sps:$4 sm:$0xff]  }
  0xdf   : > { %5192 = vmatprep.subr.bf16.mxu1 %v7463_v33  ;;  %4905 = vmatprep.mubr.bf16.mxu0 %v7464_v34  ;;  %v7551_v33 = vld [vmem:[%s10600_s1 + $0x780] ss:$8 sps:$4 sm:$0xff]   ;;  %v7562_v34 = vld [vmem:[%s10600_s1 + $0x874] ss:$8 sps:$4 sm:$0xff]  }
  0xe0   : > { %5018 = vmatprep.mubr.bf16.mxu1 %v7466_v35  ;;  %v7565_v35 = vld [vmem:[%s10600_s1 + $0x974] ss:$8 sps:$4 sm:$0xff]  }
  0xe1   : > { %5080 = vmatpush1.bf16.msra.mxu0 %v7458_v36  ;;  %v7554_v36 = vld [vmem:[%s8253_s12 + $0x30] ss:$116 sps:$4 sm:$0xff]  }
  0xe2   : > { %5193 = vmatpush1.bf16.msra.mxu1 %v7461_v37  ;;  %5081 = vmatprep.subr.bf16.mxu0 %v7472_v38  ;;  %v7557_v37 = vld [vmem:[%s8253_s12 + $0x38] ss:$116 sps:$4 sm:$0xff]  }
  0xe3   : > { %5194 = vmatprep.subr.bf16.mxu1 %v7475_v39  ;;  %v7560_v38 = vld [vmem:[%s10600_s1 + $0x870] ss:$8 sps:$4 sm:$0xff]  }
  0xe4   : > { %4906 = vmatmul.mubr.bf16.gmra.mxu0 %v7468_v40  ;;  %v7563_v39 = vld [vmem:[%s10600_s1 + $0x970] ss:$8 sps:$4 sm:$0xff]   ;;  %v7568_v40 = vld [vmem:[%s10600_s1 + $0x864] ss:$8 sps:$4 sm:$0xff]  }
  0xe5   : > { %5019 = vmatmul.mubr.bf16.gmra.mxu1 %v7469_v41  ;;  %5082 = vmatpush1.bf16.msra.mxu0 %v7470_v42  ;;  %v7571_v41 = vld [vmem:[%s10600_s1 + $0x964] ss:$8 sps:$4 sm:$0xff]   ;;  %v7572_v42 = vld [vmem:[%s8253_s12 + $0x11c] ss:$116 sps:$4 sm:$0xff]  }
  0xe6   : > { %5195 = vmatpush1.bf16.msra.mxu1 %v7473_v43  ;;  %5083 = vmatprep.subr.bf16.mxu0 %v7478_v44  ;;  %v7574_v43 = vld [vmem:[%s8253_s12 + $0x124] ss:$116 sps:$4 sm:$0xff]  }
  0xe7   : > { %5196 = vmatprep.subr.bf16.mxu1 %v7481_v45  ;;  %4915 = vmatprep.mubr.bf16.mxu0 %v7482_v46  ;;  %v7566_v46 = vld [vmem:[%s10600_s1 + $0x860] ss:$8 sps:$4 sm:$0xff]  }
  0xe8   : > { %5028 = vmatprep.mubr.bf16.mxu1 %v7484_v47 }
  0xe9   : > { %5084 = vmatpush1.bf16.msra.mxu0 %v7476_v48  ;;  %v7569_v48 = vld [vmem:[%s10600_s1 + $0x960] ss:$8 sps:$4 sm:$0xff]  }
  0xea   : > { %5197 = vmatpush1.bf16.msra.mxu1 %v7479_v49  ;;  %5085 = vmatprep.subr.bf16.mxu0 %v7490_v50  ;;  %v7580_v49 = vld [vmem:[%s10600_s1 + $0x854] ss:$8 sps:$4 sm:$0xff]  }
  0xeb   : > { %5198 = vmatprep.subr.bf16.mxu1 %v7493_v51 }
  0xec   : > { %4916 = vmatmul.mubr.bf16.gmra.mxu0 %v7486_v52  ;;  %v7583_v52 = vld [vmem:[%s10600_s1 + $0x954] ss:$8 sps:$4 sm:$0xff]  }
  0xed   : > { %5029 = vmatmul.mubr.bf16.gmra.mxu1 %v7487_v53  ;;  %5086 = vmatpush2.bf16.msra.mxu0 %v7488_v54  ;;  %v7576_v54 = vld [vmem:[%s8253_s12 + $0x118] ss:$116 sps:$4 sm:$0xff]  }
  0xee   : > { %5199 = vmatpush2.bf16.msra.mxu1 %v7491_v55  ;;  %5087 = vmatprep.subr.bf16.mxu0 %v7496_v56  ;;  %v7577_v55 = vld [vmem:[%s8253_s12 + $0x120] ss:$116 sps:$4 sm:$0xff]  }
  0xef   : > { %5200 = vmatprep.subr.bf16.mxu1 %v7499_v57  ;;  %4925 = vmatprep.mubr.bf16.mxu0 %v7500_v58  ;;  %v7578_v58 = vld [vmem:[%s10600_s1 + $0x850] ss:$8 sps:$4 sm:$0xff]  }
  0xf0   : > { %5038 = vmatprep.mubr.bf16.mxu1 %v7502_v59  ;;  %v7581_v59 = vld [vmem:[%s10600_s1 + $0x950] ss:$8 sps:$4 sm:$0xff]  }
  0xf1   : > { %5088 = vmatpush2.bf16.msra.mxu0 %v7494_v60 }
  0xf2   : > { %5201 = vmatpush2.bf16.msra.mxu1 %v7497_v61  ;;  %5089 = vmatprep.subr.bf16.mxu0 %v7508_v62  ;;  %v7586_v61 = vld [vmem:[%s10600_s1 + $0x844] ss:$8 sps:$4 sm:$0xff]  }
  0xf3   : > { %5202 = vmatprep.subr.bf16.mxu1 %v7511_v63 }
  0xf4   : > { %4926 = vmatmul.mubr.bf16.gmra.mxu0 %v7504_v0  ;;  %v7589_v0 = vld [vmem:[%s10600_s1 + $0x944] ss:$8 sps:$4 sm:$0xff]  }
  0xf5   : > { %5039 = vmatmul.mubr.bf16.gmra.mxu1 %v7505_v1  ;;  %5090 = vmatpush2.bf16.msra.mxu0 %v7506_v2  ;;  %v7590_v2 = vld [vmem:[%s8253_s12 + $0x204] ss:$116 sps:$4 sm:$0xff]  }
  0xf6   : > { %5203 = vmatpush2.bf16.msra.mxu1 %v7509_v3  ;;  %5091 = vmatprep.subr.bf16.mxu0 %v7514_v4  ;;  %v7592_v3 = vld [vmem:[%s8253_s12 + $0x20c] ss:$116 sps:$4 sm:$0xff]  }
  0xf7   : > { %5204 = vmatprep.subr.bf16.mxu1 %v7517_v5  ;;  %4935 = vmatprep.mubr.bf16.mxu0 %v7518_v6  ;;  %v7584_v6 = vld [vmem:[%s10600_s1 + $0x840] ss:$8 sps:$4 sm:$0xff]  }
  0xf8   : > { %5048 = vmatprep.mubr.bf16.mxu1 %v7520_v7  ;;  %v7587_v7 = vld [vmem:[%s10600_s1 + $0x940] ss:$8 sps:$4 sm:$0xff]  }
  0xf9   : > { %5092 = vmatpush2.bf16.msra.mxu0 %v7512_v8 }
  0xfa   : > { %5205 = vmatpush2.bf16.msra.mxu1 %v7515_v9  ;;  %5093 = vmatprep.subr.bf16.mxu0 %v7526_v10  ;;  %v7598_v9 = vld [vmem:[%s10600_s1 + $0x834] ss:$8 sps:$4 sm:$0xff]  }
  0xfb   : > { %5206 = vmatprep.subr.bf16.mxu1 %v7529_v11 }
  0xfc   : > { %4936 = vmatmul.mubr.bf16.gmra.mxu0 %v7522_v12  ;;  %v7601_v12 = vld [vmem:[%s10600_s1 + $0x934] ss:$8 sps:$4 sm:$0xff]  }
  0xfd   : > { %5049 = vmatmul.mubr.bf16.gmra.mxu1 %v7523_v13  ;;  %5094 = vmatpush2.bf16.msra.mxu0 %v7524_v14  ;;  %v7594_v14 = vld [vmem:[%s8253_s12 + $0x200] ss:$116 sps:$4 sm:$0xff]  }
  0xfe   : > { %5207 = vmatpush2.bf16.msra.mxu1 %v7527_v15  ;;  %5095 = vmatprep.subr.bf16.mxu0 %v7532_v16  ;;  %v7595_v15 = vld [vmem:[%s8253_s12 + $0x208] ss:$116 sps:$4 sm:$0xff]  }
  0xff   : > { %5208 = vmatprep.subr.bf16.mxu1 %v7535_v17  ;;  %4945 = vmatprep.mubr.bf16.mxu0 %v7536_v18  ;;  %v7596_v18 = vld [vmem:[%s10600_s1 + $0x830] ss:$8 sps:$4 sm:$0xff]  }
 0x100   : > { %5058 = vmatprep.mubr.bf16.mxu1 %v7538_v19  ;;  %v7599_v19 = vld [vmem:[%s10600_s1 + $0x930] ss:$8 sps:$4 sm:$0xff]  }
 0x101   : > { %5096 = vmatpush2.bf16.msra.mxu0 %v7530_v20 }
 0x102   : > { %5209 = vmatpush2.bf16.msra.mxu1 %v7533_v21  ;;  %5097 = vmatprep.subr.bf16.mxu0 %v7544_v22  ;;  %v7604_v21 = vld [vmem:[%s10600_s1 + $0x824] ss:$8 sps:$4 sm:$0xff]  }
 0x103   : > { %5210 = vmatprep.subr.bf16.mxu1 %v7547_v23 }
 0x104   : > { %4946 = vmatmul.mubr.bf16.gmra.mxu0 %v7540_v24  ;;  %v7607_v24 = vld [vmem:[%s10600_s1 + $0x924] ss:$8 sps:$4 sm:$0xff]  }
 0x105   : > { %5059 = vmatmul.mubr.bf16.gmra.mxu1 %v7541_v25  ;;  %5098 = vmatpush2.bf16.msra.mxu0 %v7542_v26  ;;  %v7608_v26 = vld [vmem:[%s8253_s12 + $0x2ec] ss:$116 sps:$4 sm:$0xff]  }
 0x106   : > { %5211 = vmatpush2.bf16.msra.mxu1 %v7545_v27  ;;  %5099 = vmatprep.subr.bf16.mxu0 %v7550_v28  ;;  %v7610_v27 = vld [vmem:[%s8253_s12 + $0x2f4] ss:$116 sps:$4 sm:$0xff]  }
 0x107   : > { %5212 = vmatprep.subr.bf16.mxu1 %v7553_v29  ;;  %5101 = vmatprep.mubr.bf16.mxu0 %v7556_v30  ;;  %v7602_v30 = vld [vmem:[%s10600_s1 + $0x820] ss:$8 sps:$4 sm:$0xff]  }
 0x108   : > { %5214 = vmatprep.mubr.bf16.mxu1 %v7559_v31  ;;  %v7605_v31 = vld [vmem:[%s10600_s1 + $0x920] ss:$8 sps:$4 sm:$0xff]  }
 0x109   : > { %5100 = vmatpush2.bf16.msra.mxu0 %v7548_v32 }
 0x10a   : > { %5213 = vmatpush2.bf16.msra.mxu1 %v7551_v33  ;;  %5295 = vmatprep.subr.bf16.mxu0 %v7562_v34  ;;  %v7616_v33 = vld [vmem:[%s10600_s1 + $0x814] ss:$8 sps:$4 sm:$0xff]  }
 0x10b   : > { %5408 = vmatprep.subr.bf16.mxu1 %v7565_v35 }
 0x10c   : > { %v4425_v44 = vpop.f32.mrf.mxu0  ;;  %5102 = vmatmul.mubr.bf16.vlgmr.msra.gmra.mxu0 %v7554_v36  ;;  %v7619_v36 = vld [vmem:[%s10600_s1 + $0x914] ss:$8 sps:$4 sm:$0xff]  }
 0x10d   : > { %v4538_v45 = vpop.f32.mrf.mxu1  ;;  %5215 = vmatmul.mubr.bf16.vlgmr.msra.gmra.mxu1 %v7557_v37  ;;  %5296 = vmatpush1.bf16.msra.mxu0 %v7560_v38  ;;  %v7612_v38 = vld [vmem:[%s8253_s12 + $0x2e8] ss:$116 sps:$4 sm:$0xff]  }
 0x10e   : > { %v9011_v47 = vadd.f32 %v4538_v45, %v4425_v44  ;;  %5409 = vmatpush1.bf16.msra.mxu1 %v7563_v39  ;;  %v4427_v50 = vpop.f32.mrf.mxu0  ;;  %5297 = vmatprep.subr.bf16.mxu0 %v7568_v40  ;;  %v7613_v39 = vld [vmem:[%s8253_s12 + $0x2f0] ss:$116 sps:$4 sm:$0xff]  }
 0x10f   : > { %v4540_v51 = vpop.f32.mrf.mxu1  ;;  %5410 = vmatprep.subr.bf16.mxu1 %v7571_v41  ;;  %5111 = vmatprep.mubr.bf16.mxu0 %v7572_v42  ;;  %v7614_v42 = vld [vmem:[%s10600_s1 + $0x810] ss:$8 sps:$4 sm:$0xff]   ;;  %v7622_v45 = vld [vmem:[%s10600_s1 + $0x804] ss:$8 sps:$4 sm:$0xff]  }
 0x110   : > { %v9022_v53 = vadd.f32 %v4540_v51, %v4427_v50  ;;  %5224 = vmatprep.mubr.bf16.mxu1 %v7574_v43  ;;  %v4429_v56 = vpop.f32.mrf.mxu0  ;;  %v7617_v43 = vld [vmem:[%s10600_s1 + $0x910] ss:$8 sps:$4 sm:$0xff]   ;;  %v7628_v51 = vld [vmem:[%s8253_s12 + $0x3d4] ss:$116 sps:$4 sm:$0xff]  }
 0x111   : > { %v4542_v57 = vpop.f32.mrf.mxu1  ;;  %5298 = vmatpush1.bf16.msra.mxu0 %v7566_v46 }
 0x112   : > { %v9032_v60 = vadd.f32 %v4542_v57, %v4429_v56  ;;  %5411 = vmatpush1.bf16.msra.mxu1 %v7569_v48  ;;  %v4431_v62 = vpop.f32.mrf.mxu0  ;;  %5299 = vmatprep.subr.bf16.mxu0 %v7580_v49  ;;  %v7625_v49 = vld [vmem:[%s10600_s1 + $0x904] ss:$8 sps:$4 sm:$0xff]   ;;  %v7620_v56 = vld [vmem:[%s10600_s1 + $0x800] ss:$8 sps:$4 sm:$0xff]  }
 0x113   : > { %v4544_v63 = vpop.f32.mrf.mxu1  ;;  %5412 = vmatprep.subr.bf16.mxu1 %v7583_v52  ;;  %v7631_v52 = vld [vmem:[%s8253_s12 + $0x3dc] ss:$116 sps:$4 sm:$0xff]   ;;  %v7623_v57 = vld [vmem:[%s10600_s1 + $0x900] ss:$8 sps:$4 sm:$0xff]  }
 0x114   : > { %v9040_v1 = vadd.f32 %v4544_v63, %v4431_v62  ;;  %v4435_v4 = vpop.f32.mrf.mxu0  ;;  %5112 = vmatmul.mubr.bf16.gmra.mxu0 %v7576_v54  ;;  %v7637_v63 = vld [vmem:[%s10600_s1 + $0x9f4] ss:$8 sps:$4 sm:$0xff]  }
 0x115   : > { %v4548_v5 = vpop.f32.mrf.mxu1  ;;  %5225 = vmatmul.mubr.bf16.gmra.mxu1 %v7577_v55  ;;  %5300 = vmatpush1.bf16.msra.mxu0 %v7578_v58 }
 0x116   : > { %v9050_v8 = vadd.f32 %v4548_v5, %v4435_v4  ;;  %5413 = vmatpush1.bf16.msra.mxu1 %v7581_v59  ;;  %v4437_v10 = vpop.f32.mrf.mxu0  ;;  %5301 = vmatprep.subr.bf16.mxu0 %v7586_v61  ;;  %v7634_v59 = vld [vmem:[%s10600_s1 + $0x8f4] ss:$8 sps:$4 sm:$0xff]  }
 0x117   : > { %v4550_v11 = vpop.f32.mrf.mxu1  ;;  %5414 = vmatprep.subr.bf16.mxu1 %v7589_v0  ;;  %5121 = vmatprep.mubr.bf16.mxu0 %v7590_v2  ;;  %v7626_v2 = vld [vmem:[%s8253_s12 + $0x3d0] ss:$116 sps:$4 sm:$0xff]  }
 0x118   : > { %v9058_v13 = vadd.f32 %v4550_v11, %v4437_v10  ;;  %5234 = vmatprep.mubr.bf16.mxu1 %v7592_v3  ;;  %v4439_v16 = vpop.f32.mrf.mxu0  ;;  %v7629_v3 = vld [vmem:[%s8253_s12 + $0x3d8] ss:$116 sps:$4 sm:$0xff]  }
 0x119   : > { %v4552_v17 = vpop.f32.mrf.mxu1  ;;  %5302 = vmatpush1.bf16.msra.mxu0 %v7584_v6  ;;  %v7632_v6 = vld [vmem:[%s10600_s1 + $0x8f0] ss:$8 sps:$4 sm:$0xff]   ;;  %v7640_v10 = vld [vmem:[%s10600_s1 + $0x8e4] ss:$8 sps:$4 sm:$0xff]  }
 0x11a   : > { %v9068_v20 = vadd.f32 %v4552_v17, %v4439_v16  ;;  %5415 = vmatpush1.bf16.msra.mxu1 %v7587_v7  ;;  %v4441_v22 = vpop.f32.mrf.mxu0  ;;  %5303 = vmatprep.subr.bf16.mxu0 %v7598_v9  ;;  %v7635_v7 = vld [vmem:[%s10600_s1 + $0x9f0] ss:$8 sps:$4 sm:$0xff]  }
 0x11b   : > { %v4554_v23 = vpop.f32.mrf.mxu1  ;;  %5416 = vmatprep.subr.bf16.mxu1 %v7601_v12  ;;  %v7646_v16 = vld [vmem:[%s8253_s12 + $0x4bc] ss:$116 sps:$4 sm:$0xff]   ;;  %v7649_v17 = vld [vmem:[%s8253_s12 + $0x4c4] ss:$116 sps:$4 sm:$0xff]  }
 0x11c   : > { %v9076_v25 = vadd.f32 %v4554_v23, %v4441_v22  ;;  %v4445_v28 = vpop.f32.mrf.mxu0  ;;  %5122 = vmatmul.mubr.bf16.gmra.mxu0 %v7594_v14  ;;  %v7643_v14 = vld [vmem:[%s10600_s1 + $0x9e4] ss:$8 sps:$4 sm:$0xff]   ;;  %v7641_v22 = vld [vmem:[%s10600_s1 + $0x9e0] ss:$8 sps:$4 sm:$0xff]  }
 0x11d   : > { %v4558_v29 = vpop.f32.mrf.mxu1  ;;  %5235 = vmatmul.mubr.bf16.gmra.mxu1 %v7595_v15  ;;  %5304 = vmatpush1.bf16.msra.mxu0 %v7596_v18 }
 0x11e   : > { %v9086_v32 = vadd.f32 %v4558_v29, %v4445_v28  ;;  %5417 = vmatpush1.bf16.msra.mxu1 %v7599_v19  ;;  %v4447_v34 = vpop.f32.mrf.mxu0  ;;  %5305 = vmatprep.subr.bf16.mxu0 %v7604_v21  ;;  %v7638_v21 = vld [vmem:[%s10600_s1 + $0x8e0] ss:$8 sps:$4 sm:$0xff]   ;;  %v7655_v28 = vld [vmem:[%s10600_s1 + $0x9d4] ss:$8 sps:$4 sm:$0xff]  }
 0x11f   : > { %v4560_v35 = vpop.f32.mrf.mxu1  ;;  %5418 = vmatprep.subr.bf16.mxu1 %v7607_v24  ;;  %5131 = vmatprep.mubr.bf16.mxu0 %v7608_v26  ;;  %v7652_v24 = vld [vmem:[%s10600_s1 + $0x8d4] ss:$8 sps:$4 sm:$0xff]  }
 0x120   : > { %v9094_v37 = vadd.f32 %v4560_v35, %v4447_v34  ;;  %5244 = vmatprep.mubr.bf16.mxu1 %v7610_v27  ;;  %v4449_v40 = vpop.f32.mrf.mxu0  ;;  %v7650_v35 = vld [vmem:[%s10600_s1 + $0x8d0] ss:$8 sps:$4 sm:$0xff]  }
 0x121   : > { %v4562_v41 = vpop.f32.mrf.mxu1  ;;  %5306 = vmatpush1.bf16.msra.mxu0 %v7602_v30  ;;  %v7644_v30 = vld [vmem:[%s8253_s12 + $0x4b8] ss:$116 sps:$4 sm:$0xff]  }
 0x122   : > { %v9104_v44 = vadd.f32 %v4562_v41, %v4449_v40  ;;  %5419 = vmatpush1.bf16.msra.mxu1 %v7605_v31  ;;  %v4451_v46 = vpop.f32.mrf.mxu0  ;;  %5307 = vmatprep.subr.bf16.mxu0 %v7616_v33  ;;  %v7647_v31 = vld [vmem:[%s8253_s12 + $0x4c0] ss:$116 sps:$4 sm:$0xff]  }
 0x123   : > { %v4564_v48 = vpop.f32.mrf.mxu1  ;;  %5420 = vmatprep.subr.bf16.mxu1 %v7619_v36  ;;  %v7653_v36 = vld [vmem:[%s10600_s1 + $0x9d0] ss:$8 sps:$4 sm:$0xff]  }
 0x124   : > { %v9112_v50 = vadd.f32 %v4564_v48, %v4451_v46  ;;  %v4455_v54 = vpop.f32.mrf.mxu0  ;;  %5132 = vmatmul.mubr.bf16.gmra.mxu0 %v7612_v38  ;;  %v7667_v46 = vld [vmem:[%s8253_s12 + $0x5ac] ss:$116 sps:$4 sm:$0xff]  }
 0x125   : > { %v4568_v55 = vpop.f32.mrf.mxu1  ;;  %5245 = vmatmul.mubr.bf16.gmra.mxu1 %v7613_v39  ;;  %5308 = vmatpush1.bf16.msra.mxu0 %v7614_v42  ;;  %v7658_v39 = vld [vmem:[%s10600_s1 + $0x8c4] ss:$8 sps:$4 sm:$0xff]  }
 0x126   : > { %v9122_v58 = vadd.f32 %v4568_v55, %v4455_v54  ;;  %5421 = vmatpush1.bf16.msra.mxu1 %v7617_v43  ;;  %v4457_v61 = vpop.f32.mrf.mxu0  ;;  %5309 = vmatprep.subr.bf16.mxu0 %v7622_v45  ;;  %v7661_v42 = vld [vmem:[%s10600_s1 + $0x9c4] ss:$8 sps:$4 sm:$0xff]   ;;  %v7670_v55 = vld [vmem:[%s10600_s1 + $0x8b4] ss:$8 sps:$4 sm:$0xff]  }
 0x127   : > { %v4570_v62 = vpop.f32.mrf.mxu1  ;;  %5422 = vmatprep.subr.bf16.mxu1 %v7625_v49  ;;  %5141 = vmatprep.mubr.bf16.mxu0 %v7628_v51  ;;  %v7664_v45 = vld [vmem:[%s8253_s12 + $0x5a4] ss:$116 sps:$4 sm:$0xff]   ;;  %v7656_v51 = vld [vmem:[%s10600_s1 + $0x8c0] ss:$8 sps:$4 sm:$0xff]  }
 0x128   : > { %v9130_v0 = vadd.f32 %v4570_v62, %v4457_v61  ;;  %5254 = vmatprep.mubr.bf16.mxu1 %v7631_v52  ;;  %v4459_v4 = vpop.f32.mrf.mxu0  ;;  %v7659_v52 = vld [vmem:[%s10600_s1 + $0x9c0] ss:$8 sps:$4 sm:$0xff]  }
 0x129   : > { %v4572_v5 = vpop.f32.mrf.mxu1  ;;  %5310 = vmatpush1.bf16.msra.mxu0 %v7620_v56  ;;  %v7662_v62 = vld [vmem:[%s8253_s12 + $0x5a0] ss:$116 sps:$4 sm:$0xff]  }
 0x12a   : > { %v9140_v9 = vadd.f32 %v4572_v5, %v4459_v4  ;;  %5423 = vmatpush1.bf16.msra.mxu1 %v7623_v57  ;;  %v4461_v11 = vpop.f32.mrf.mxu0  ;;  %5311 = vmatprep.subr.bf16.mxu0 %v7634_v59  ;;  %v7673_v59 = vld [vmem:[%s10600_s1 + $0x9b4] ss:$8 sps:$4 sm:$0xff]   ;;  %v7668_v4 = vld [vmem:[%s10600_s1 + $0x8b0] ss:$8 sps:$4 sm:$0xff]  }
 0x12b   : > { %v4574_v12 = vpop.f32.mrf.mxu1  ;;  %5424 = vmatprep.subr.bf16.mxu1 %v7637_v63  ;;  %v7665_v63 = vld [vmem:[%s8253_s12 + $0x5a8] ss:$116 sps:$4 sm:$0xff]   ;;  %v7671_v5 = vld [vmem:[%s10600_s1 + $0x9b0] ss:$8 sps:$4 sm:$0xff]  }
 0x12c   : > { %v9148_v15 = vadd.f32 %v4574_v12, %v4461_v11  ;;  %v4465_v18 = vpop.f32.mrf.mxu0  ;;  %5142 = vmatmul.mubr.bf16.gmra.mxu0 %v7626_v2  ;;  %v7679_v12 = vld [vmem:[%s10600_s1 + $0x9a4] ss:$8 sps:$4 sm:$0xff]  }
 0x12d   : > { %v4578_v19 = vpop.f32.mrf.mxu1  ;;  %5255 = vmatmul.mubr.bf16.gmra.mxu1 %v7629_v3  ;;  %5312 = vmatpush2.bf16.msra.mxu0 %v7632_v6 }
 0x12e   : > { %v9158_v23 = vadd.f32 %v4578_v19, %v4465_v18  ;;  %5425 = vmatpush2.bf16.msra.mxu1 %v7635_v7  ;;  %v4467_v26 = vpop.f32.mrf.mxu0  ;;  %5313 = vmatprep.subr.bf16.mxu0 %v7640_v10  ;;  %v7676_v7 = vld [vmem:[%s10600_s1 + $0x8a4] ss:$8 sps:$4 sm:$0xff]  }
 0x12f   : > { %v4580_v27 = vpop.f32.mrf.mxu1  ;;  %5426 = vmatprep.subr.bf16.mxu1 %v7643_v14  ;;  %5151 = vmatprep.mubr.bf16.mxu0 %v7646_v16  ;;  %v7682_v16 = vld [vmem:[%s8253_s12 + $0x68c] ss:$116 sps:$4 sm:$0xff]  }
 0x130   : > { %v9166_v29 = vadd.f32 %v4580_v27, %v4467_v26  ;;  %5264 = vmatprep.mubr.bf16.mxu1 %v7649_v17  ;;  %v4469_v33 = vpop.f32.mrf.mxu0  ;;  %v7685_v17 = vld [vmem:[%s8253_s12 + $0x694] ss:$116 sps:$4 sm:$0xff]  }
 0x131   : > { %v4582_v34 = vpop.f32.mrf.mxu1  ;;  %5314 = vmatpush2.bf16.msra.mxu0 %v7638_v21  ;;  %v7674_v21 = vld [vmem:[%s10600_s1 + $0x8a0] ss:$8 sps:$4 sm:$0xff]   ;;  %v7688_v26 = vld [vmem:[%s10600_s1 + $0x894] ss:$8 sps:$4 sm:$0xff]  }
 0x132   : > { %v9176_v38 = vadd.f32 %v4582_v34, %v4469_v33  ;;  %5427 = vmatpush2.bf16.msra.mxu1 %v7641_v22  ;;  %v4471_v40 = vpop.f32.mrf.mxu0  ;;  %5315 = vmatprep.subr.bf16.mxu0 %v7652_v24  ;;  %v7677_v22 = vld [vmem:[%s10600_s1 + $0x9a0] ss:$8 sps:$4 sm:$0xff]   ;;  %v7683_v34 = vld [vmem:[%s8253_s12 + $0x690] ss:$116 sps:$4 sm:$0xff]  }
 0x133   : > { %v4584_v41 = vpop.f32.mrf.mxu1  ;;  %5428 = vmatprep.subr.bf16.mxu1 %v7655_v28  ;;  %v7680_v33 = vld [vmem:[%s8253_s12 + $0x688] ss:$116 sps:$4 sm:$0xff]  }
 0x134   : > { %v9184_v43 = vadd.f32 %v4584_v41, %v4471_v40  ;;  %v4475_v48 = vpop.f32.mrf.mxu0  ;;  %5152 = vmatmul.mubr.bf16.gmra.mxu0 %v7644_v30  ;;  %v7691_v30 = vld [vmem:[%s10600_s1 + $0x994] ss:$8 sps:$4 sm:$0xff]   ;;  %v7689_v40 = vld [vmem:[%s10600_s1 + $0x990] ss:$8 sps:$4 sm:$0xff]  }
 0x135   : > { %v4588_v49 = vpop.f32.mrf.mxu1  ;;  %5265 = vmatmul.mubr.bf16.gmra.mxu1 %v7647_v31  ;;  %5316 = vmatpush2.bf16.msra.mxu0 %v7650_v35 }
 0x136   : > { %v9194_v54 = vadd.f32 %v4588_v49, %v4475_v48  ;;  %5429 = vmatpush2.bf16.msra.mxu1 %v7653_v36  ;;  %v4477_v56 = vpop.f32.mrf.mxu0  ;;  %5317 = vmatprep.subr.bf16.mxu0 %v7658_v39  ;;  %v7686_v39 = vld [vmem:[%s10600_s1 + $0x890] ss:$8 sps:$4 sm:$0xff]   ;;  %v7697_v48 = vld [vmem:[%s10600_s1 + $0x984] ss:$8 sps:$4 sm:$0xff]  }
 0x137   : > { %v4590_v57 = vpop.f32.mrf.mxu1  ;;  %5430 = vmatprep.subr.bf16.mxu1 %v7661_v42  ;;  %5161 = vmatprep.mubr.bf16.mxu0 %v7664_v45  ;;  %v7694_v42 = vld [vmem:[%s10600_s1 + $0x884] ss:$8 sps:$4 sm:$0xff]  }
 0x138   : > { %v9202_v61 = vadd.f32 %v4590_v57, %v4477_v56  ;;  %5274 = vmatprep.mubr.bf16.mxu1 %v7667_v46  ;;  %v4479_v2 = vpop.f32.mrf.mxu0  ;;  %v7692_v57 = vld [vmem:[%s10600_s1 + $0x880] ss:$8 sps:$4 sm:$0xff]  }
 0x139   : > { %v4592_v3 = vpop.f32.mrf.mxu1  ;;  %5318 = vmatpush2.bf16.msra.mxu0 %v7656_v51  ;;  %v7700_v51 = vld [vmem:[%s8253_s12 + $0x44] ss:$116 sps:$4 sm:$0xff]  }
 0x13a   : > { %v9212_v6 = vadd.f32 %v4592_v3, %v4479_v2  ;;  %5431 = vmatpush2.bf16.msra.mxu1 %v7659_v52  ;;  %v4481_v10 = vpop.f32.mrf.mxu0  ;;  %5319 = vmatprep.subr.bf16.mxu0 %v7670_v55  ;;  %v7703_v52 = vld [vmem:[%s8253_s12 + $0x4c] ss:$116 sps:$4 sm:$0xff]  }
 0x13b   : > { %v4594_v11 = vpop.f32.mrf.mxu1  ;;  %5432 = vmatprep.subr.bf16.mxu1 %v7673_v59  ;;  %v7695_v59 = vld [vmem:[%s10600_s1 + $0x980] ss:$8 sps:$4 sm:$0xff]  }
 0x13c   : > { %v9220_v14 = vadd.f32 %v4594_v11, %v4481_v10  ;;  %v4485_v18 = vpop.f32.mrf.mxu0  ;;  %5162 = vmatmul.mubr.bf16.gmra.mxu0 %v7662_v62  ;;  %v7701_v10 = vld [vmem:[%s8253_s12 + $0x48] ss:$116 sps:$4 sm:$0xff]  }
 0x13d   : > { %v4598_v19 = vpop.f32.mrf.mxu1  ;;  %5275 = vmatmul.mubr.bf16.gmra.mxu1 %v7665_v63  ;;  %5320 = vmatpush2.bf16.msra.mxu0 %v7668_v4  ;;  %v7706_v63 = vld [vmem:[%s10600_s1 + $0xa74] ss:$8 sps:$4 sm:$0xff]  }
 0x13e   : > { %v9230_v24 = vadd.f32 %v4598_v19, %v4485_v18  ;;  %5433 = vmatpush2.bf16.msra.mxu1 %v7671_v5  ;;  %v4487_v27 = vpop.f32.mrf.mxu0  ;;  %5321 = vmatprep.subr.bf16.mxu0 %v7676_v7  ;;  %v7709_v4 = vld [vmem:[%s10600_s1 + $0xb74] ss:$8 sps:$4 sm:$0xff]   ;;  %v7712_v19 = vld [vmem:[%s10600_s1 + $0xa64] ss:$8 sps:$4 sm:$0xff]  }
 0x13f   : > { %v4600_v28 = vpop.f32.mrf.mxu1  ;;  %5434 = vmatprep.subr.bf16.mxu1 %v7679_v12  ;;  %5171 = vmatprep.mubr.bf16.mxu0 %v7682_v16  ;;  %v7698_v7 = vld [vmem:[%s8253_s12 + $0x40] ss:$116 sps:$4 sm:$0xff]   ;;  %v7704_v16 = vld [vmem:[%s10600_s1 + $0xa70] ss:$8 sps:$4 sm:$0xff]  }
 0x140   : > { %v9238_v31 = vadd.f32 %v4600_v28, %v4487_v27  ;;  %5284 = vmatprep.mubr.bf16.mxu1 %v7685_v17  ;;  %v4489_v35 = vpop.f32.mrf.mxu0  ;;  %v7707_v17 = vld [vmem:[%s10600_s1 + $0xb70] ss:$8 sps:$4 sm:$0xff]   ;;  %v7718_v28 = vld [vmem:[%s8253_s12 + $0x12c] ss:$116 sps:$4 sm:$0xff]  }
 0x141   : > { %v4602_v36 = vpop.f32.mrf.mxu1  ;;  %5322 = vmatpush2.bf16.msra.mxu0 %v7674_v21 }
 0x142   : > { %v9248_v41 = vadd.f32 %v4602_v36, %v4489_v35  ;;  %5435 = vmatpush2.bf16.msra.mxu1 %v7677_v22  ;;  %v4491_v45 = vpop.f32.mrf.mxu0  ;;  %5323 = vmatprep.subr.bf16.mxu0 %v7688_v26  ;;  %v7715_v26 = vld [vmem:[%s10600_s1 + $0xb64] ss:$8 sps:$4 sm:$0xff]   ;;  %v7710_v35 = vld [vmem:[%s10600_s1 + $0xa60] ss:$8 sps:$4 sm:$0xff]  }
 0x143   : > { %v4604_v46 = vpop.f32.mrf.mxu1  ;;  %5436 = vmatprep.subr.bf16.mxu1 %v7691_v30  ;;  %v7721_v30 = vld [vmem:[%s8253_s12 + $0x134] ss:$116 sps:$4 sm:$0xff]  }
 0x144   : > { %v9256_v49 = vadd.f32 %v4604_v46, %v4491_v45  ;;  %v4495_v55 = vpop.f32.mrf.mxu0  ;;  %5172 = vmatmul.mubr.bf16.gmra.mxu0 %v7680_v33  ;;  %v7713_v36 = vld [vmem:[%s10600_s1 + $0xb60] ss:$8 sps:$4 sm:$0xff]   ;;  %v7727_v46 = vld [vmem:[%s10600_s1 + $0xb54] ss:$8 sps:$4 sm:$0xff]  }
 0x145   : > { %v4608_v56 = vpop.f32.mrf.mxu1  ;;  %5285 = vmatmul.mubr.bf16.gmra.mxu1 %v7683_v34  ;;  %5324 = vmatpush2.bf16.msra.mxu0 %v7686_v39 }
 0x146   : > { %v9266_v62 = vadd.f32 %v4608_v56, %v4495_v55  ;;  %5437 = vmatpush2.bf16.msra.mxu1 %v7689_v40  ;;  %v4497_v2 = vpop.f32.mrf.mxu0  ;;  %5325 = vmatprep.subr.bf16.mxu0 %v7694_v42  ;;  %v7724_v40 = vld [vmem:[%s10600_s1 + $0xa54] ss:$8 sps:$4 sm:$0xff]  }
 0x147   : > { %v4610_v3 = vpop.f32.mrf.mxu1  ;;  %5438 = vmatprep.subr.bf16.mxu1 %v7697_v48  ;;  %5327 = vmatprep.mubr.bf16.mxu0 %v7700_v51 }
 0x148   : > { %v9274_v5 = vadd.f32 %v4610_v3, %v4497_v2  ;;  %5440 = vmatprep.mubr.bf16.mxu1 %v7703_v52  ;;  %v4499_v11 = vpop.f32.mrf.mxu0  ;;  %v7716_v52 = vld [vmem:[%s8253_s12 + $0x128] ss:$116 sps:$4 sm:$0xff]   ;;  %v7730_v2 = vld [vmem:[%s10600_s1 + $0xa44] ss:$8 sps:$4 sm:$0xff]  }
 0x149   : > { %v4612_v12 = vpop.f32.mrf.mxu1  ;;  %5326 = vmatpush2.bf16.msra.mxu0 %v7692_v57  ;;  %v7722_v57 = vld [vmem:[%s10600_s1 + $0xa50] ss:$8 sps:$4 sm:$0xff]  }
 0x14a   : > { %v9284_v18 = vadd.f32 %v4612_v12, %v4499_v11  ;;  %5439 = vmatpush2.bf16.msra.mxu1 %v7695_v59  ;;  %v4501_v21 = vpop.f32.mrf.mxu0  ;;  %5521 = vmatprep.subr.bf16.mxu0 %v7706_v63  ;;  %v7725_v59 = vld [vmem:[%s10600_s1 + $0xb50] ss:$8 sps:$4 sm:$0xff]   ;;  %v7736_v12 = vld [vmem:[%s8253_s12 + $0x214] ss:$116 sps:$4 sm:$0xff]  }
 0x14b   : > { %v4614_v22 = vpop.f32.mrf.mxu1  ;;  %5634 = vmatprep.subr.bf16.mxu1 %v7709_v4 }
 0x14c   : > { %v9292_v27 = vadd.f32 %v4614_v22, %v4501_v21  ;;  %v4651_v33 = vpop.f32.mrf.mxu0  ;;  %5328 = vmatmul.mubr.bf16.vlgmr.msra.gmra.mxu0 %v7698_v7  ;;  %v7733_v7 = vld [vmem:[%s10600_s1 + $0xb44] ss:$8 sps:$4 sm:$0xff]   ;;  %v7731_v21 = vld [vmem:[%s10600_s1 + $0xb40] ss:$8 sps:$4 sm:$0xff]  }
 0x14d   : > { %v4764_v34 = vpop.f32.mrf.mxu1  ;;  %5441 = vmatmul.mubr.bf16.vlgmr.msra.gmra.mxu1 %v7701_v10  ;;  %v4652_v39 = vadd.f32 %v4651_v33, %v9011_v47  ;;  %5522 = vmatpush1.bf16.msra.mxu0 %v7704_v16  ;;  %v7719_v47 = vld [vmem:[%s8253_s12 + $0x130] ss:$116 sps:$4 sm:$0xff]   ;;  %v7745_v33 = vld [vmem:[%s10600_s1 + $0xb34] ss:$8 sps:$4 sm:$0xff]  }
 0x14e   : > { %5635 = vmatpush1.bf16.msra.mxu1 %v7707_v17  ;;  %v4653_v42 = vpop.f32.mrf.mxu0  ;;  %5523 = vmatprep.subr.bf16.mxu0 %v7712_v19  ;;  %v7728_v19 = vld [vmem:[%s10600_s1 + $0xa40] ss:$8 sps:$4 sm:$0xff]  }
 0x14f   : > { %v4766_v45 = vpop.f32.mrf.mxu1  ;;  %5636 = vmatprep.subr.bf16.mxu1 %v7715_v26  ;;  %v9309_v48 = vadd.f32 %v4764_v34, %v4652_v39  ;;  %v4654_v51 = vadd.f32 %v4653_v42, %v9022_v53  ;;  %5337 = vmatprep.mubr.bf16.mxu0 %v7718_v28  ;;  %v7742_v26 = vld [vmem:[%s10600_s1 + $0xa34] ss:$8 sps:$4 sm:$0xff]   ;;  %v7740_v42 = vld [vmem:[%s10600_s1 + $0xa30] ss:$8 sps:$4 sm:$0xff]  }
 0x150   : > { %5450 = vmatprep.mubr.bf16.mxu1 %v7721_v30  ;;  %v4655_v55 = vpop.f32.mrf.mxu0 }
 0x151   : > { %v4768_v56 = vpop.f32.mrf.mxu1  ;;  %v9320_v63 = vadd.f32 %v4766_v45, %v4654_v51  ;;  %v4656_v53 = vadd.f32 %v4655_v55, %v9032_v60  ;;  %5524 = vmatpush1.bf16.msra.mxu0 %v7710_v35  ;;  %v7739_v60 = vld [vmem:[%s8253_s12 + $0x21c] ss:$116 sps:$4 sm:$0xff]   ;;  %v7748_v51 = vld [vmem:[%s10600_s1 + $0xa24] ss:$8 sps:$4 sm:$0xff]  }
 0x152   : > { %5637 = vmatpush1.bf16.msra.mxu1 %v7713_v36  ;;  %v4657_v3 = vpop.f32.mrf.mxu0  ;;  %5525 = vmatprep.subr.bf16.mxu0 %v7724_v40  ;;  %v7734_v36 = vld [vmem:[%s8253_s12 + $0x210] ss:$116 sps:$4 sm:$0xff]  }
 0x153   : > { %v4770_v4 = vpop.f32.mrf.mxu1  ;;  %5638 = vmatprep.subr.bf16.mxu1 %v7727_v46  ;;  %v9329_v10 = vadd.f32 %v4768_v56, %v4656_v53  ;;  %v4658_v11 = vadd.f32 %v4657_v3, %v9040_v1  ;;  %v7743_v45 = vld [vmem:[%s10600_s1 + $0xb30] ss:$8 sps:$4 sm:$0xff]   ;;  %v7751_v55 = vld [vmem:[%s10600_s1 + $0xb24] ss:$8 sps:$4 sm:$0xff]   ;;  %v7746_v3 = vld [vmem:[%s10600_s1 + $0xa20] ss:$8 sps:$4 sm:$0xff]  }
 0x154   : > { %v4661_v16 = vpop.f32.mrf.mxu0  ;;  %5338 = vmatmul.mubr.bf16.gmra.mxu0 %v7716_v52 }
 0x155   : > { %v4774_v17 = vpop.f32.mrf.mxu1  ;;  %5451 = vmatmul.mubr.bf16.gmra.mxu1 %v7719_v47  ;;  %v9340_v22 = vadd.f32 %v4770_v4, %v4658_v11  ;;  %v4662_v1 = vadd.f32 %v4661_v16, %v9050_v8  ;;  %5526 = vmatpush1.bf16.msra.mxu0 %v7722_v57  ;;  %v7737_v8 = vld [vmem:[%s8253_s12 + $0x218] ss:$116 sps:$4 sm:$0xff]   ;;  %v7749_v4 = vld [vmem:[%s10600_s1 + $0xb20] ss:$8 sps:$4 sm:$0xff]   ;;  %v7760_v11 = vld [vmem:[%s10600_s1 + $0xa14] ss:$8 sps:$4 sm:$0xff]  }
 0x156   : > { %5639 = vmatpush1.bf16.msra.mxu1 %v7725_v59  ;;  %v4663_v28 = vpop.f32.mrf.mxu0  ;;  %5527 = vmatprep.subr.bf16.mxu0 %v7730_v2  ;;  %v7754_v59 = vld [vmem:[%s8253_s12 + $0x2fc] ss:$116 sps:$4 sm:$0xff]  }
 0x157   : > { %v4776_v30 = vpop.f32.mrf.mxu1  ;;  %5640 = vmatprep.subr.bf16.mxu1 %v7733_v7  ;;  %v9349_v34 = vadd.f32 %v4774_v17, %v4662_v1  ;;  %v4664_v35 = vadd.f32 %v4663_v28, %v9058_v13  ;;  %5347 = vmatprep.mubr.bf16.mxu0 %v7736_v12  ;;  %v7763_v16 = vld [vmem:[%s10600_s1 + $0xb14] ss:$8 sps:$4 sm:$0xff]   ;;  %v7758_v28 = vld [vmem:[%s10600_s1 + $0xa10] ss:$8 sps:$4 sm:$0xff]  }
 0x158   : > { %5460 = vmatprep.mubr.bf16.mxu1 %v7739_v60  ;;  %v4665_v39 = vpop.f32.mrf.mxu0 }
 0x159   : > { %v4778_v40 = vpop.f32.mrf.mxu1  ;;  %v9360_v46 = vadd.f32 %v4776_v30, %v4664_v35  ;;  %v4666_v13 = vadd.f32 %v4665_v39, %v9068_v20  ;;  %5528 = vmatpush1.bf16.msra.mxu0 %v7728_v19  ;;  %v7757_v20 = vld [vmem:[%s8253_s12 + $0x304] ss:$116 sps:$4 sm:$0xff]  }
 0x15a   : > { %5641 = vmatpush1.bf16.msra.mxu1 %v7731_v21  ;;  %v4667_v52 = vpop.f32.mrf.mxu0  ;;  %5529 = vmatprep.subr.bf16.mxu0 %v7742_v26  ;;  %v7752_v21 = vld [vmem:[%s8253_s12 + $0x2f8] ss:$116 sps:$4 sm:$0xff]  }
 0x15b   : > { %v4780_v47 = vpop.f32.mrf.mxu1  ;;  %5642 = vmatprep.subr.bf16.mxu1 %v7745_v33  ;;  %v9369_v56 = vadd.f32 %v4778_v40, %v4666_v13  ;;  %v4668_v57 = vadd.f32 %v4667_v52, %v9076_v25  ;;  %v7761_v30 = vld [vmem:[%s10600_s1 + $0xb10] ss:$8 sps:$4 sm:$0xff]   ;;  %v7766_v35 = vld [vmem:[%s10600_s1 + $0xa04] ss:$8 sps:$4 sm:$0xff]   ;;  %v7764_v52 = vld [vmem:[%s10600_s1 + $0xa00] ss:$8 sps:$4 sm:$0xff]  }
 0x15c   : > { %v4671_v53 = vpop.f32.mrf.mxu0  ;;  %5348 = vmatmul.mubr.bf16.gmra.mxu0 %v7734_v36  ;;  %v7769_v39 = vld [vmem:[%s10600_s1 + $0xb04] ss:$8 sps:$4 sm:$0xff]  }
 0x15d   : > { %v4784_v2 = vpop.f32.mrf.mxu1  ;;  %5461 = vmatmul.mubr.bf16.gmra.mxu1 %v7737_v8  ;;  %v9380_v7 = vadd.f32 %v4780_v47, %v4668_v57  ;;  %v4672_v25 = vadd.f32 %v4671_v53, %v9086_v32  ;;  %5530 = vmatpush1.bf16.msra.mxu0 %v7740_v42  ;;  %v7755_v32 = vld [vmem:[%s8253_s12 + $0x300] ss:$116 sps:$4 sm:$0xff]  }
 0x15e   : > { %5643 = vmatpush1.bf16.msra.mxu1 %v7743_v45  ;;  %v4673_v12 = vpop.f32.mrf.mxu0  ;;  %5531 = vmatprep.subr.bf16.mxu0 %v7748_v51  ;;  %v7772_v45 = vld [vmem:[%s8253_s12 + $0x3e4] ss:$116 sps:$4 sm:$0xff]   ;;  %v7767_v47 = vld [vmem:[%s10600_s1 + $0xb00] ss:$8 sps:$4 sm:$0xff]   ;;  %v7778_v57 = vld [vmem:[%s10600_s1 + $0xaf4] ss:$8 sps:$4 sm:$0xff]  }
 0x15f   : > { %v4786_v60 = vpop.f32.mrf.mxu1  ;;  %5644 = vmatprep.subr.bf16.mxu1 %v7751_v55  ;;  %v9389_v17 = vadd.f32 %v4784_v2, %v4672_v25  ;;  %v4674_v19 = vadd.f32 %v4673_v12, %v9094_v37  ;;  %5357 = vmatprep.mubr.bf16.mxu0 %v7754_v59  ;;  %v7781_v53 = vld [vmem:[%s10600_s1 + $0xbf4] ss:$8 sps:$4 sm:$0xff]   ;;  %v7776_v12 = vld [vmem:[%s10600_s1 + $0xaf0] ss:$8 sps:$4 sm:$0xff]  }
 0x160   : > { %5470 = vmatprep.mubr.bf16.mxu1 %v7757_v20  ;;  %v4675_v1 = vpop.f32.mrf.mxu0 }
 0x161   : > { %v4788_v26 = vpop.f32.mrf.mxu1  ;;  %v9400_v33 = vadd.f32 %v4786_v60, %v4674_v19  ;;  %v4676_v37 = vadd.f32 %v4675_v1, %v9104_v44  ;;  %5532 = vmatpush1.bf16.msra.mxu0 %v7746_v3  ;;  %v7775_v44 = vld [vmem:[%s8253_s12 + $0x3ec] ss:$116 sps:$4 sm:$0xff]   ;;  %v7779_v60 = vld [vmem:[%s10600_s1 + $0xbf0] ss:$8 sps:$4 sm:$0xff]  }
 0x162   : > { %5645 = vmatpush1.bf16.msra.mxu1 %v7749_v4  ;;  %v4677_v36 = vpop.f32.mrf.mxu0  ;;  %5533 = vmatprep.subr.bf16.mxu0 %v7760_v11  ;;  %v7770_v4 = vld [vmem:[%s8253_s12 + $0x3e0] ss:$116 sps:$4 sm:$0xff]   ;;  %v7784_v19 = vld [vmem:[%s10600_s1 + $0xae4] ss:$8 sps:$4 sm:$0xff]  }
 0x163   : > { %v4790_v8 = vpop.f32.mrf.mxu1  ;;  %5646 = vmatprep.subr.bf16.mxu1 %v7763_v16  ;;  %v9409_v40 = vadd.f32 %v4788_v26, %v4676_v37  ;;  %v4678_v42 = vadd.f32 %v4677_v36, %v9112_v50  ;;  %v7787_v1 = vld [vmem:[%s10600_s1 + $0xbe4] ss:$8 sps:$4 sm:$0xff]   ;;  %v7782_v36 = vld [vmem:[%s10600_s1 + $0xae0] ss:$8 sps:$4 sm:$0xff]  }
 0x164   : > { %v4681_v13 = vpop.f32.mrf.mxu0  ;;  %5358 = vmatmul.mubr.bf16.gmra.mxu0 %v7752_v21 }
 0x165   : > { %v4794_v51 = vpop.f32.mrf.mxu1  ;;  %5471 = vmatmul.mubr.bf16.gmra.mxu1 %v7755_v32  ;;  %v9420_v55 = vadd.f32 %v4790_v8, %v4678_v42  ;;  %v4682_v50 = vadd.f32 %v4681_v13, %v9122_v58  ;;  %5534 = vmatpush1.bf16.msra.mxu0 %v7758_v28  ;;  %v7773_v58 = vld [vmem:[%s8253_s12 + $0x3e8] ss:$116 sps:$4 sm:$0xff]  }
 0x166   : > { %5647 = vmatpush1.bf16.msra.mxu1 %v7761_v30  ;;  %v4683_v59 = vpop.f32.mrf.mxu0  ;;  %5535 = vmatprep.subr.bf16.mxu0 %v7766_v35  ;;  %v7790_v30 = vld [vmem:[%s8253_s12 + $0x4cc] ss:$116 sps:$4 sm:$0xff]   ;;  %v7796_v42 = vld [vmem:[%s10600_s1 + $0xad4] ss:$8 sps:$4 sm:$0xff]  }
 0x167   : > { %v4796_v20 = vpop.f32.mrf.mxu1  ;;  %5648 = vmatprep.subr.bf16.mxu1 %v7769_v39  ;;  %v9429_v2 = vadd.f32 %v4794_v51, %v4682_v50  ;;  %v4684_v3 = vadd.f32 %v4683_v59, %v9130_v0  ;;  %5367 = vmatprep.mubr.bf16.mxu0 %v7772_v45  ;;  %v7785_v8 = vld [vmem:[%s10600_s1 + $0xbe0] ss:$8 sps:$4 sm:$0xff]   ;;  %v7799_v13 = vld [vmem:[%s10600_s1 + $0xbd4] ss:$8 sps:$4 sm:$0xff]   ;;  %v7794_v59 = vld [vmem:[%s10600_s1 + $0xad0] ss:$8 sps:$4 sm:$0xff]  }
 0x168   : > { %5480 = vmatprep.mubr.bf16.mxu1 %v7775_v44  ;;  %v4685_v25 = vpop.f32.mrf.mxu0 }
 0x169   : > { %v4798_v11 = vpop.f32.mrf.mxu1  ;;  %v9440_v16 = vadd.f32 %v4796_v20, %v4684_v3  ;;  %v4686_v0 = vadd.f32 %v4685_v25, %v9140_v9  ;;  %5536 = vmatpush1.bf16.msra.mxu0 %v7764_v52  ;;  %v7793_v9 = vld [vmem:[%s8253_s12 + $0x4d4] ss:$116 sps:$4 sm:$0xff]   ;;  %v7797_v20 = vld [vmem:[%s10600_s1 + $0xbd0] ss:$8 sps:$4 sm:$0xff]   ;;  %v7802_v3 = vld [vmem:[%s10600_s1 + $0xac4] ss:$8 sps:$4 sm:$0xff]  }
 0x16a   : > { %5649 = vmatpush1.bf16.msra.mxu1 %v7767_v47  ;;  %v4687_v21 = vpop.f32.mrf.mxu0  ;;  %5537 = vmatprep.subr.bf16.mxu0 %v7778_v57  ;;  %v7788_v47 = vld [vmem:[%s8253_s12 + $0x4c8] ss:$116 sps:$4 sm:$0xff]   ;;  %v7805_v25 = vld [vmem:[%s10600_s1 + $0xbc4] ss:$8 sps:$4 sm:$0xff]  }
 0x16b   : > { %v4800_v32 = vpop.f32.mrf.mxu1  ;;  %5650 = vmatprep.subr.bf16.mxu1 %v7781_v53  ;;  %v9449_v26 = vadd.f32 %v4798_v11, %v4686_v0  ;;  %v4688_v28 = vadd.f32 %v4687_v21, %v9148_v15  ;;  %v7800_v21 = vld [vmem:[%s10600_s1 + $0xac0] ss:$8 sps:$4 sm:$0xff]  }
 0x16c   : > { %v4691_v37 = vpop.f32.mrf.mxu0  ;;  %5368 = vmatmul.mubr.bf16.gmra.mxu0 %v7770_v4 }
 0x16d   : > { %v4804_v35 = vpop.f32.mrf.mxu1  ;;  %5481 = vmatmul.mubr.bf16.gmra.mxu1 %v7773_v58  ;;  %v9460_v39 = vadd.f32 %v4800_v32, %v4688_v28  ;;  %v4692_v15 = vadd.f32 %v4691_v37, %v9158_v23  ;;  %5538 = vmatpush2.bf16.msra.mxu0 %v7776_v12  ;;  %v7791_v23 = vld [vmem:[%s8253_s12 + $0x4d0] ss:$116 sps:$4 sm:$0xff]   ;;  %v7803_v32 = vld [vmem:[%s10600_s1 + $0xbc0] ss:$8 sps:$4 sm:$0xff]   ;;  %v7814_v28 = vld [vmem:[%s10600_s1 + $0xab4] ss:$8 sps:$4 sm:$0xff]  }
 0x16e   : > { %5651 = vmatpush2.bf16.msra.mxu1 %v7779_v60  ;;  %v4693_v45 = vpop.f32.mrf.mxu0  ;;  %5539 = vmatprep.subr.bf16.mxu0 %v7784_v19  ;;  %v7808_v60 = vld [vmem:[%s8253_s12 + $0x5b4] ss:$116 sps:$4 sm:$0xff]  }
 0x16f   : > { %v4806_v44 = vpop.f32.mrf.mxu1  ;;  %5652 = vmatprep.subr.bf16.mxu1 %v7787_v1  ;;  %v9469_v51 = vadd.f32 %v4804_v35, %v4692_v15  ;;  %v4694_v52 = vadd.f32 %v4693_v45, %v9166_v29  ;;  %5377 = vmatprep.mubr.bf16.mxu0 %v7790_v30  ;;  %v7817_v37 = vld [vmem:[%s10600_s1 + $0xbb4] ss:$8 sps:$4 sm:$0xff]   ;;  %v7812_v45 = vld [vmem:[%s10600_s1 + $0xab0] ss:$8 sps:$4 sm:$0xff]  }
 0x170   : > { %5490 = vmatprep.mubr.bf16.mxu1 %v7793_v9  ;;  %v4695_v50 = vpop.f32.mrf.mxu0 }
 0x171   : > { %v4808_v57 = vpop.f32.mrf.mxu1  ;;  %v9480_v53 = vadd.f32 %v4806_v44, %v4694_v52  ;;  %v4696_v29 = vadd.f32 %v4695_v50, %v9176_v38  ;;  %5540 = vmatpush2.bf16.msra.mxu0 %v7782_v36  ;;  %v7811_v38 = vld [vmem:[%s8253_s12 + $0x5bc] ss:$116 sps:$4 sm:$0xff]   ;;  %v7820_v52 = vld [vmem:[%s10600_s1 + $0xaa4] ss:$8 sps:$4 sm:$0xff]  }
 0x172   : > { %5653 = vmatpush2.bf16.msra.mxu1 %v7785_v8  ;;  %v4697_v4 = vpop.f32.mrf.mxu0  ;;  %5541 = vmatprep.subr.bf16.mxu0 %v7796_v42  ;;  %v7806_v8 = vld [vmem:[%s8253_s12 + $0x5b0] ss:$116 sps:$4 sm:$0xff]  }
 0x173   : > { %v4810_v58 = vpop.f32.mrf.mxu1  ;;  %5654 = vmatprep.subr.bf16.mxu1 %v7799_v13  ;;  %v9489_v11 = vadd.f32 %v4808_v57, %v4696_v29  ;;  %v4698_v12 = vadd.f32 %v4697_v4, %v9184_v43  ;;  %v7815_v44 = vld [vmem:[%s10600_s1 + $0xbb0] ss:$8 sps:$4 sm:$0xff]   ;;  %v7823_v50 = vld [vmem:[%s10600_s1 + $0xba4] ss:$8 sps:$4 sm:$0xff]   ;;  %v7818_v4 = vld [vmem:[%s10600_s1 + $0xaa0] ss:$8 sps:$4 sm:$0xff]  }
 0x174   : > { %v4701_v0 = vpop.f32.mrf.mxu0  ;;  %5378 = vmatmul.mubr.bf16.gmra.mxu0 %v7788_v47 }
 0x175   : > { %v4814_v19 = vpop.f32.mrf.mxu1  ;;  %5491 = vmatmul.mubr.bf16.gmra.mxu1 %v7791_v23  ;;  %v9500_v1 = vadd.f32 %v4810_v58, %v4698_v12  ;;  %v4702_v43 = vadd.f32 %v4701_v0, %v9194_v54  ;;  %5542 = vmatpush2.bf16.msra.mxu0 %v7794_v59  ;;  %v7809_v54 = vld [vmem:[%s8253_s12 + $0x5b8] ss:$116 sps:$4 sm:$0xff]   ;;  %v7821_v58 = vld [vmem:[%s10600_s1 + $0xba0] ss:$8 sps:$4 sm:$0xff]   ;;  %v7832_v12 = vld [vmem:[%s10600_s1 + $0xa94] ss:$8 sps:$4 sm:$0xff]  }
 0x176   : > { %5655 = vmatpush2.bf16.msra.mxu1 %v7797_v20  ;;  %v4703_v30 = vpop.f32.mrf.mxu0  ;;  %5543 = vmatprep.subr.bf16.mxu0 %v7802_v3  ;;  %v7826_v20 = vld [vmem:[%s8253_s12 + $0x69c] ss:$116 sps:$4 sm:$0xff]  }
 0x177   : > { %v4816_v9 = vpop.f32.mrf.mxu1  ;;  %5656 = vmatprep.subr.bf16.mxu1 %v7805_v25  ;;  %v9509_v35 = vadd.f32 %v4814_v19, %v4702_v43  ;;  %v4704_v36 = vadd.f32 %v4703_v30, %v9202_v61  ;;  %5387 = vmatprep.mubr.bf16.mxu0 %v7808_v60  ;;  %v7835_v0 = vld [vmem:[%s10600_s1 + $0xb94] ss:$8 sps:$4 sm:$0xff]   ;;  %v7830_v30 = vld [vmem:[%s10600_s1 + $0xa90] ss:$8 sps:$4 sm:$0xff]  }
 0x178   : > { %5500 = vmatprep.mubr.bf16.mxu1 %v7811_v38  ;;  %v4705_v15 = vpop.f32.mrf.mxu0 }
 0x179   : > { %v4818_v42 = vpop.f32.mrf.mxu1  ;;  %v9520_v13 = vadd.f32 %v4816_v9, %v4704_v36  ;;  %v4706_v61 = vadd.f32 %v4705_v15, %v9212_v6  ;;  %5544 = vmatpush2.bf16.msra.mxu0 %v7800_v21  ;;  %v7829_v6 = vld [vmem:[%s8253_s12 + $0x6a4] ss:$116 sps:$4 sm:$0xff]  }
 0x17a   : > { %5657 = vmatpush2.bf16.msra.mxu1 %v7803_v32  ;;  %v4707_v47 = vpop.f32.mrf.mxu0  ;;  %5545 = vmatprep.subr.bf16.mxu0 %v7814_v28  ;;  %v7824_v32 = vld [vmem:[%s8253_s12 + $0x698] ss:$116 sps:$4 sm:$0xff]  }
 0x17b   : > { %v4820_v23 = vpop.f32.mrf.mxu1  ;;  %5658 = vmatprep.subr.bf16.mxu1 %v7817_v37  ;;  %v9529_v57 = vadd.f32 %v4818_v42, %v4706_v61  ;;  %v4708_v59 = vadd.f32 %v4707_v47, %v9220_v14  ;;  %v7833_v9 = vld [vmem:[%s10600_s1 + $0xb90] ss:$8 sps:$4 sm:$0xff]   ;;  %v7838_v36 = vld [vmem:[%s10600_s1 + $0xa84] ss:$8 sps:$4 sm:$0xff]   ;;  %v7836_v47 = vld [vmem:[%s10600_s1 + $0xa80] ss:$8 sps:$4 sm:$0xff]  }
 0x17c   : > { %v4711_v29 = vpop.f32.mrf.mxu0  ;;  %5388 = vmatmul.mubr.bf16.gmra.mxu0 %v7806_v8  ;;  %v7841_v15 = vld [vmem:[%s10600_s1 + $0xb84] ss:$8 sps:$4 sm:$0xff]  }
 0x17d   : > { %v4824_v3 = vpop.f32.mrf.mxu1  ;;  %5501 = vmatmul.mubr.bf16.gmra.mxu1 %v7809_v54  ;;  %v9540_v25 = vadd.f32 %v4820_v23, %v4708_v59  ;;  %v4712_v14 = vadd.f32 %v4711_v29, %v9230_v24  ;;  %5546 = vmatpush2.bf16.msra.mxu0 %v7812_v45  ;;  %v7827_v24 = vld [vmem:[%s8253_s12 + $0x6a0] ss:$116 sps:$4 sm:$0xff]  }
 0x17e   : > { %5659 = vmatpush2.bf16.msra.mxu1 %v7815_v44  ;;  %v4713_v60 = vpop.f32.mrf.mxu0  ;;  %5547 = vmatprep.subr.bf16.mxu0 %v7820_v52  ;;  %v7844_v44 = vld [vmem:[%s8253_s12 + $0x54] ss:$116 sps:$4 sm:$0xff]  }
 0x17f   : > { %v4826_v38 = vpop.f32.mrf.mxu1  ;;  %5660 = vmatprep.subr.bf16.mxu1 %v7823_v50  ;;  %v9549_v19 = vadd.f32 %v4824_v3, %v4712_v14  ;;  %v4714_v21 = vadd.f32 %v4713_v60, %v9238_v31  ;;  %5397 = vmatprep.mubr.bf16.mxu0 %v7826_v20  ;;  %v7839_v23 = vld [vmem:[%s10600_s1 + $0xb80] ss:$8 sps:$4 sm:$0xff]   ;;  %v7850_v59 = vld [vmem:[%s10600_s1 + $0xc74] ss:$8 sps:$4 sm:$0xff]   ;;  %v7848_v60 = vld [vmem:[%s10600_s1 + $0xc70] ss:$8 sps:$4 sm:$0xff]  }
 0x180   : > { %5510 = vmatprep.mubr.bf16.mxu1 %v7829_v6  ;;  %v4715_v43 = vpop.f32.mrf.mxu0  ;;  %v7853_v29 = vld [vmem:[%s10600_s1 + $0xd74] ss:$8 sps:$4 sm:$0xff]  }
 0x181   : > { %v4828_v28 = vpop.f32.mrf.mxu1  ;;  %v9560_v37 = vadd.f32 %v4826_v38, %v4714_v21  ;;  %v4716_v31 = vadd.f32 %v4715_v43, %v9248_v41  ;;  %5548 = vmatpush2.bf16.msra.mxu0 %v7818_v4  ;;  %v7847_v41 = vld [vmem:[%s8253_s12 + $0x5c] ss:$116 sps:$4 sm:$0xff]   ;;  %v7856_v21 = vld [vmem:[%s10600_s1 + $0xc64] ss:$8 sps:$4 sm:$0xff]  }
 0x182   : > { %5661 = vmatpush2.bf16.msra.mxu1 %v7821_v58  ;;  %v4717_v8 = vpop.f32.mrf.mxu0  ;;  %5549 = vmatprep.subr.bf16.mxu0 %v7832_v12  ;;  %v7842_v58 = vld [vmem:[%s8253_s12 + $0x50] ss:$116 sps:$4 sm:$0xff]  }
 0x183   : > { %v4830_v54 = vpop.f32.mrf.mxu1  ;;  %5662 = vmatprep.subr.bf16.mxu1 %v7835_v0  ;;  %v9569_v42 = vadd.f32 %v4828_v28, %v4716_v31  ;;  %v4718_v45 = vadd.f32 %v4717_v8, %v9256_v49  ;;  %v7851_v38 = vld [vmem:[%s10600_s1 + $0xd70] ss:$8 sps:$4 sm:$0xff]   ;;  %v7859_v43 = vld [vmem:[%s10600_s1 + $0xd64] ss:$8 sps:$4 sm:$0xff]   ;;  %v7854_v8 = vld [vmem:[%s10600_s1 + $0xc60] ss:$8 sps:$4 sm:$0xff]  }
 0x184   : > { %v4721_v61 = vpop.f32.mrf.mxu0  ;;  %5398 = vmatmul.mubr.bf16.gmra.mxu0 %v7824_v32 }
 0x185   : > { %v4834_v52 = vpop.f32.mrf.mxu1  ;;  %5511 = vmatmul.mubr.bf16.gmra.mxu1 %v7827_v24  ;;  %v9580_v50 = vadd.f32 %v4830_v54, %v4718_v45  ;;  %v4722_v49 = vadd.f32 %v4721_v61, %v9266_v62  ;;  %5550 = vmatpush2.bf16.msra.mxu0 %v7830_v30  ;;  %v7845_v62 = vld [vmem:[%s8253_s12 + $0x58] ss:$116 sps:$4 sm:$0xff]   ;;  %v7857_v54 = vld [vmem:[%s10600_s1 + $0xd60] ss:$8 sps:$4 sm:$0xff]   ;;  %v7868_v45 = vld [vmem:[%s10600_s1 + $0xc54] ss:$8 sps:$4 sm:$0xff]  }
 0x186   : > { %5663 = vmatpush2.bf16.msra.mxu1 %v7833_v9  ;;  %v4723_v20 = vpop.f32.mrf.mxu0  ;;  %5551 = vmatprep.subr.bf16.mxu0 %v7838_v36  ;;  %v7862_v9 = vld [vmem:[%s8253_s12 + $0x13c] ss:$116 sps:$4 sm:$0xff]  }
 0x187   : > { %v4836_v6 = vpop.f32.mrf.mxu1  ;;  %5664 = vmatprep.subr.bf16.mxu1 %v7841_v15  ;;  %v9589_v3 = vadd.f32 %v4834_v52, %v4722_v49  ;;  %v4724_v4 = vadd.f32 %v4723_v20, %v9274_v5  ;;  %5553 = vmatprep.mubr.bf16.mxu0 %v7844_v44  ;;  %v7871_v61 = vld [vmem:[%s10600_s1 + $0xd54] ss:$8 sps:$4 sm:$0xff]   ;;  %v7866_v20 = vld [vmem:[%s10600_s1 + $0xc50] ss:$8 sps:$4 sm:$0xff]  }
 0x188   : > { %5666 = vmatprep.mubr.bf16.mxu1 %v7847_v41  ;;  %v4725_v14 = vpop.f32.mrf.mxu0 }
 0x189   : > { %v4838_v12 = vpop.f32.mrf.mxu1  ;;  %v9600_v0 = vadd.f32 %v4836_v6, %v4724_v4  ;;  %v4726_v5 = vadd.f32 %v4725_v14, %v9284_v18  ;;  %5552 = vmatpush2.bf16.msra.mxu0 %v7836_v47  ;;  %v7865_v18 = vld [vmem:[%s8253_s12 + $0x144] ss:$116 sps:$4 sm:$0xff]  }
 0x18a   : > { %5665 = vmatpush2.bf16.msra.mxu1 %v7839_v23  ;;  %v4727_v32 = vpop.f32.mrf.mxu0  ;;  %5747 = vmatprep.subr.bf16.mxu0 %v7850_v59  ;;  %v7860_v23 = vld [vmem:[%s8253_s12 + $0x138] ss:$116 sps:$4 sm:$0xff]  }
 0x18b   : > { %v4840_v24 = vpop.f32.mrf.mxu1  ;;  %5860 = vmatprep.subr.bf16.mxu1 %v7853_v29  ;;  %v9609_v28 = vadd.f32 %v4838_v12, %v4726_v5  ;;  %v4728_v30 = vadd.f32 %v4727_v32, %v9292_v27  ;;  %v7869_v6 = vld [vmem:[%s10600_s1 + $0xd50] ss:$8 sps:$4 sm:$0xff]   ;;  %v7874_v4 = vld [vmem:[%s10600_s1 + $0xc44] ss:$8 sps:$4 sm:$0xff]   ;;  %v7872_v32 = vld [vmem:[%s10600_s1 + $0xc40] ss:$8 sps:$4 sm:$0xff]  }
 0x18c   : > { %v4877_v31 = vpop.f32.mrf.mxu0  ;;  %5554 = vmatmul.mubr.bf16.vlgmr.msra.gmra.mxu0 %v7842_v58  ;;  %v7877_v14 = vld [vmem:[%s10600_s1 + $0xd44] ss:$8 sps:$4 sm:$0xff]  }
 0x18d   : > { %v4990_v36 = vpop.f32.mrf.mxu1  ;;  %5667 = vmatmul.mubr.bf16.vlgmr.msra.gmra.mxu1 %v7845_v62  ;;  %v9620_v15 = vadd.f32 %v4840_v24, %v4728_v30  ;;  %v4878_v27 = vadd.f32 %v4877_v31, %v9309_v48  ;;  %5748 = vmatpush1.bf16.msra.mxu0 %v7848_v60  ;;  %v7863_v48 = vld [vmem:[%s8253_s12 + $0x140] ss:$116 sps:$4 sm:$0xff]  }
 0x18e   : > { %5861 = vmatpush1.bf16.msra.mxu1 %v7851_v38  ;;  %v4879_v44 = vpop.f32.mrf.mxu0  ;;  %5749 = vmatprep.subr.bf16.mxu0 %v7856_v21  ;;  %v7880_v38 = vld [vmem:[%s8253_s12 + $0x224] ss:$116 sps:$4 sm:$0xff]   ;;  %v7875_v24 = vld [vmem:[%s10600_s1 + $0xd40] ss:$8 sps:$4 sm:$0xff]   ;;  %v7886_v30 = vld [vmem:[%s10600_s1 + $0xc34] ss:$8 sps:$4 sm:$0xff]  }
 0x18f   : > { %v4992_v41 = vpop.f32.mrf.mxu1  ;;  %5862 = vmatprep.subr.bf16.mxu1 %v7859_v43  ;;  %v9629_v52 = vadd.f32 %v4990_v36, %v4878_v27  ;;  %v4880_v47 = vadd.f32 %v4879_v44, %v9320_v63  ;;  %5563 = vmatprep.mubr.bf16.mxu0 %v7862_v9  ;;  %v7889_v31 = vld [vmem:[%s10600_s1 + $0xd34] ss:$8 sps:$4 sm:$0xff]   ;;  %v7884_v44 = vld [vmem:[%s10600_s1 + $0xc30] ss:$8 sps:$4 sm:$0xff]  }
 0x190   : > { %5676 = vmatprep.mubr.bf16.mxu1 %v7865_v18  ;;  %v4881_v49 = vpop.f32.mrf.mxu0 }
 0x191   : > { %v4994_v59 = vpop.f32.mrf.mxu1  ;;  %v9640_v29 = vadd.f32 %v4992_v41, %v4880_v47  ;;  %v4882_v63 = vadd.f32 %v4881_v49, %v9329_v10  ;;  %5750 = vmatpush1.bf16.msra.mxu0 %v7854_v8  ;;  %v7883_v10 = vld [vmem:[%s8253_s12 + $0x22c] ss:$116 sps:$4 sm:$0xff]   ;;  %v7887_v41 = vld [vmem:[%s10600_s1 + $0xd30] ss:$8 sps:$4 sm:$0xff]  }
 0x192   : > { %5863 = vmatpush1.bf16.msra.mxu1 %v7857_v54  ;;  %v4883_v58 = vpop.f32.mrf.mxu0  ;;  %5751 = vmatprep.subr.bf16.mxu0 %v7868_v45  ;;  %v7878_v54 = vld [vmem:[%s8253_s12 + $0x220] ss:$116 sps:$4 sm:$0xff]   ;;  %v7892_v47 = vld [vmem:[%s10600_s1 + $0xc24] ss:$8 sps:$4 sm:$0xff]  }
 0x193   : > { %v4996_v62 = vpop.f32.mrf.mxu1  ;;  %5864 = vmatprep.subr.bf16.mxu1 %v7871_v61  ;;  %v9649_v12 = vadd.f32 %v4994_v59, %v4882_v63  ;;  %v4884_v60 = vadd.f32 %v4883_v58, %v9340_v22  ;;  %v7895_v49 = vld [vmem:[%s10600_s1 + $0xd24] ss:$8 sps:$4 sm:$0xff]   ;;  %v7890_v58 = vld [vmem:[%s10600_s1 + $0xc20] ss:$8 sps:$4 sm:$0xff]  }
 0x194   : > { %v4887_v5 = vpop.f32.mrf.mxu0  ;;  %5564 = vmatmul.mubr.bf16.gmra.mxu0 %v7860_v23 }
 0x195   : > { %v5000_v21 = vpop.f32.mrf.mxu1  ;;  %5677 = vmatmul.mubr.bf16.gmra.mxu1 %v7863_v48  ;;  %v9660_v43 = vadd.f32 %v4996_v62, %v4884_v60  ;;  %v4888_v22 = vadd.f32 %v4887_v5, %v9349_v34  ;;  %5752 = vmatpush1.bf16.msra.mxu0 %v7866_v20  ;;  %v7881_v34 = vld [vmem:[%s8253_s12 + $0x228] ss:$116 sps:$4 sm:$0xff]  }
 0x196   : > { %5865 = vmatpush1.bf16.msra.mxu1 %v7869_v6  ;;  %v4889_v9 = vpop.f32.mrf.mxu0  ;;  %5753 = vmatprep.subr.bf16.mxu0 %v7874_v4  ;;  %v7898_v6 = vld [vmem:[%s8253_s12 + $0x30c] ss:$116 sps:$4 sm:$0xff]   ;;  %v7904_v60 = vld [vmem:[%s10600_s1 + $0xc14] ss:$8 sps:$4 sm:$0xff]  }
 0x197   : > { %v5002_v18 = vpop.f32.mrf.mxu1  ;;  %5866 = vmatprep.subr.bf16.mxu1 %v7877_v14  ;;  %v9669_v36 = vadd.f32 %v5000_v21, %v4888_v22  ;;  %v4890_v8 = vadd.f32 %v4889_v9, %v9360_v46  ;;  %5573 = vmatprep.mubr.bf16.mxu0 %v7880_v38  ;;  %v7893_v62 = vld [vmem:[%s10600_s1 + $0xd20] ss:$8 sps:$4 sm:$0xff]   ;;  %v7907_v5 = vld [vmem:[%s10600_s1 + $0xd14] ss:$8 sps:$4 sm:$0xff]   ;;  %v7902_v9 = vld [vmem:[%s10600_s1 + $0xc10] ss:$8 sps:$4 sm:$0xff]  }
 0x198   : > { %5686 = vmatprep.mubr.bf16.mxu1 %v7883_v10  ;;  %v4891_v27 = vpop.f32.mrf.mxu0 }
 0x199   : > { %v5004_v45 = vpop.f32.mrf.mxu1  ;;  %v9680_v61 = vadd.f32 %v5002_v18, %v4890_v8  ;;  %v4892_v46 = vadd.f32 %v4891_v27, %v9369_v56  ;;  %5754 = vmatpush1.bf16.msra.mxu0 %v7872_v32  ;;  %v7901_v56 = vld [vmem:[%s8253_s12 + $0x314] ss:$116 sps:$4 sm:$0xff]   ;;  %v7905_v18 = vld [vmem:[%s10600_s1 + $0xd10] ss:$8 sps:$4 sm:$0xff]   ;;  %v7910_v8 = vld [vmem:[%s10600_s1 + $0xc04] ss:$8 sps:$4 sm:$0xff]  }
 0x19a   : > { %5867 = vmatpush1.bf16.msra.mxu1 %v7875_v24  ;;  %v4893_v23 = vpop.f32.mrf.mxu0  ;;  %5755 = vmatprep.subr.bf16.mxu0 %v7886_v30  ;;  %v7896_v24 = vld [vmem:[%s8253_s12 + $0x308] ss:$116 sps:$4 sm:$0xff]   ;;  %v7913_v27 = vld [vmem:[%s10600_s1 + $0xd04] ss:$8 sps:$4 sm:$0xff]  }
 0x19b   : > { %v5006_v48 = vpop.f32.mrf.mxu1  ;;  %5868 = vmatprep.subr.bf16.mxu1 %v7889_v31  ;;  %v9689_v59 = vadd.f32 %v5004_v45, %v4892_v46  ;;  %v4894_v20 = vadd.f32 %v4893_v23, %v9380_v7  ;;  %v7908_v23 = vld [vmem:[%s10600_s1 + $0xc00] ss:$8 sps:$4 sm:$0xff]  }
 0x19c   : > { %v4897_v63 = vpop.f32.mrf.mxu0  ;;  %5574 = vmatmul.mubr.bf16.gmra.mxu0 %v7878_v54 }
 0x19d   : > { %v5010_v4 = vpop.f32.mrf.mxu1  ;;  %5687 = vmatmul.mubr.bf16.gmra.mxu1 %v7881_v34  ;;  %v9700_v14 = vadd.f32 %v5006_v48, %v4894_v20  ;;  %v4898_v7 = vadd.f32 %v4897_v63, %v9389_v17  ;;  %5756 = vmatpush1.bf16.msra.mxu0 %v7884_v44  ;;  %v7899_v17 = vld [vmem:[%s8253_s12 + $0x310] ss:$116 sps:$4 sm:$0xff]   ;;  %v7911_v48 = vld [vmem:[%s10600_s1 + $0xd00] ss:$8 sps:$4 sm:$0xff]   ;;  %v7922_v20 = vld [vmem:[%s10600_s1 + $0xcf4] ss:$8 sps:$4 sm:$0xff]  }
 0x19e   : > { %5869 = vmatpush1.bf16.msra.mxu1 %v7887_v41  ;;  %v4899_v38 = vpop.f32.mrf.mxu0  ;;  %5757 = vmatprep.subr.bf16.mxu0 %v7892_v47  ;;  %v7916_v41 = vld [vmem:[%s8253_s12 + $0x3f4] ss:$116 sps:$4 sm:$0xff]  }
 0x19f   : > { %v5012_v10 = vpop.f32.mrf.mxu1  ;;  %5870 = vmatprep.subr.bf16.mxu1 %v7895_v49  ;;  %v9709_v21 = vadd.f32 %v5010_v4, %v4898_v7  ;;  %v4900_v32 = vadd.f32 %v4899_v38, %v9400_v33  ;;  %5583 = vmatprep.mubr.bf16.mxu0 %v7898_v6  ;;  %v7925_v63 = vld [vmem:[%s10600_s1 + $0xdf4] ss:$8 sps:$4 sm:$0xff]   ;;  %v7920_v38 = vld [vmem:[%s10600_s1 + $0xcf0] ss:$8 sps:$4 sm:$0xff]  }
 0x1a0   : > { %5696 = vmatprep.mubr.bf16.mxu1 %v7901_v56  ;;  %v4901_v22 = vpop.f32.mrf.mxu0 }
 0x1a1   : > { %v5014_v30 = vpop.f32.mrf.mxu1  ;;  %v9720_v31 = vadd.f32 %v5012_v10, %v4900_v32  ;;  %v4902_v33 = vadd.f32 %v4901_v22, %v9409_v40  ;;  %5758 = vmatpush1.bf16.msra.mxu0 %v7890_v58  ;;  %v7919_v40 = vld [vmem:[%s8253_s12 + $0x3fc] ss:$116 sps:$4 sm:$0xff]   ;;  %v7928_v32 = vld [vmem:[%s10600_s1 + $0xce4] ss:$8 sps:$4 sm:$0xff]  }
 0x1a2   : > { %5871 = vmatpush1.bf16.msra.mxu1 %v7893_v62  ;;  %v4903_v54 = vpop.f32.mrf.mxu0  ;;  %5759 = vmatprep.subr.bf16.mxu0 %v7904_v60  ;;  %v7914_v62 = vld [vmem:[%s8253_s12 + $0x3f0] ss:$116 sps:$4 sm:$0xff]  }
 0x1a3   : > { %v5016_v34 = vpop.f32.mrf.mxu1  ;;  %5872 = vmatprep.subr.bf16.mxu1 %v7907_v5  ;;  %v9729_v45 = vadd.f32 %v5014_v30, %v4902_v33  ;;  %v4904_v44 = vadd.f32 %v4903_v54, %v9420_v55  ;;  %v7923_v10 = vld [vmem:[%s10600_s1 + $0xdf0] ss:$8 sps:$4 sm:$0xff]   ;;  %v7931_v22 = vld [vmem:[%s10600_s1 + $0xde4] ss:$8 sps:$4 sm:$0xff]   ;;  %v7926_v54 = vld [vmem:[%s10600_s1 + $0xce0] ss:$8 sps:$4 sm:$0xff]  }
 0x1a4   : > { %v4907_v46 = vpop.f32.mrf.mxu0  ;;  %5584 = vmatmul.mubr.bf16.gmra.mxu0 %v7896_v24 }
 0x1a5   : > { %v5020_v47 = vpop.f32.mrf.mxu1  ;;  %5697 = vmatmul.mubr.bf16.gmra.mxu1 %v7899_v17  ;;  %v9740_v49 = vadd.f32 %v5016_v34, %v4904_v44  ;;  %v4908_v55 = vadd.f32 %v4907_v46, %v9429_v2  ;;  %5760 = vmatpush1.bf16.msra.mxu0 %v7902_v9  ;;  %v7917_v2 = vld [vmem:[%s8253_s12 + $0x3f8] ss:$116 sps:$4 sm:$0xff]   ;;  %v7929_v34 = vld [vmem:[%s10600_s1 + $0xde0] ss:$8 sps:$4 sm:$0xff]   ;;  %v7940_v44 = vld [vmem:[%s10600_s1 + $0xcd4] ss:$8 sps:$4 sm:$0xff]  }
 0x1a6   : > { %5873 = vmatpush1.bf16.msra.mxu1 %v7905_v18  ;;  %v4909_v6 = vpop.f32.mrf.mxu0  ;;  %5761 = vmatprep.subr.bf16.mxu0 %v7910_v8  ;;  %v7934_v18 = vld [vmem:[%s8253_s12 + $0x4dc] ss:$116 sps:$4 sm:$0xff]  }
 0x1a7   : > { %v5022_v56 = vpop.f32.mrf.mxu1  ;;  %5874 = vmatprep.subr.bf16.mxu1 %v7913_v27  ;;  %v9749_v4 = vadd.f32 %v5020_v47, %v4908_v55  ;;  %v4910_v58 = vadd.f32 %v4909_v6, %v9440_v16  ;;  %5593 = vmatprep.mubr.bf16.mxu0 %v7916_v41  ;;  %v7943_v46 = vld [vmem:[%s10600_s1 + $0xdd4] ss:$8 sps:$4 sm:$0xff]   ;;  %v7938_v6 = vld [vmem:[%s10600_s1 + $0xcd0] ss:$8 sps:$4 sm:$0xff]  }
 0x1a8   : > { %5706 = vmatprep.mubr.bf16.mxu1 %v7919_v40  ;;  %v4911_v7 = vpop.f32.mrf.mxu0 }
 0x1a9   : > { %v5024_v60 = vpop.f32.mrf.mxu1  ;;  %v9760_v5 = vadd.f32 %v5022_v56, %v4910_v58  ;;  %v4912_v16 = vadd.f32 %v4911_v7, %v9449_v26  ;;  %5762 = vmatpush1.bf16.msra.mxu0 %v7908_v23  ;;  %v7937_v26 = vld [vmem:[%s8253_s12 + $0x4e4] ss:$116 sps:$4 sm:$0xff]  }
 0x1aa   : > { %5875 = vmatpush1.bf16.msra.mxu1 %v7911_v48  ;;  %v4913_v24 = vpop.f32.mrf.mxu0  ;;  %5763 = vmatprep.subr.bf16.mxu0 %v7922_v20  ;;  %v7932_v48 = vld [vmem:[%s8253_s12 + $0x4d8] ss:$116 sps:$4 sm:$0xff]  }
 0x1ab   : > { %v5026_v17 = vpop.f32.mrf.mxu1  ;;  %5876 = vmatprep.subr.bf16.mxu1 %v7925_v63  ;;  %v9769_v30 = vadd.f32 %v5024_v60, %v4912_v16  ;;  %v4914_v9 = vadd.f32 %v4913_v24, %v9460_v39  ;;  %v7941_v56 = vld [vmem:[%s10600_s1 + $0xdd0] ss:$8 sps:$4 sm:$0xff]   ;;  %v7946_v58 = vld [vmem:[%s10600_s1 + $0xcc4] ss:$8 sps:$4 sm:$0xff]   ;;  %v7944_v24 = vld [vmem:[%s10600_s1 + $0xcc0] ss:$8 sps:$4 sm:$0xff]  }
 0x1ac   : > { %v4917_v33 = vpop.f32.mrf.mxu0  ;;  %5594 = vmatmul.mubr.bf16.gmra.mxu0 %v7914_v62  ;;  %v7949_v7 = vld [vmem:[%s10600_s1 + $0xdc4] ss:$8 sps:$4 sm:$0xff]  }
 0x1ad   : > { %v5030_v8 = vpop.f32.mrf.mxu1  ;;  %5707 = vmatmul.mubr.bf16.gmra.mxu1 %v7917_v2  ;;  %v9780_v27 = vadd.f32 %v5026_v17, %v4914_v9  ;;  %v4918_v39 = vadd.f32 %v4917_v33, %v9469_v51  ;;  %5764 = vmatpush2.bf16.msra.mxu0 %v7920_v38  ;;  %v7935_v51 = vld [vmem:[%s8253_s12 + $0x4e0] ss:$116 sps:$4 sm:$0xff]  }
 0x1ae   : > { %5877 = vmatpush2.bf16.msra.mxu1 %v7923_v10  ;;  %v4919_v41 = vpop.f32.mrf.mxu0  ;;  %5765 = vmatprep.subr.bf16.mxu0 %v7928_v32  ;;  %v7952_v10 = vld [vmem:[%s8253_s12 + $0x5c4] ss:$116 sps:$4 sm:$0xff]   ;;  %v7947_v17 = vld [vmem:[%s10600_s1 + $0xdc0] ss:$8 sps:$4 sm:$0xff]   ;;  %v7958_v9 = vld [vmem:[%s10600_s1 + $0xcb4] ss:$8 sps:$4 sm:$0xff]  }
 0x1af   : > { %v5032_v40 = vpop.f32.mrf.mxu1  ;;  %5878 = vmatprep.subr.bf16.mxu1 %v7931_v22  ;;  %v9789_v47 = vadd.f32 %v5030_v8, %v4918_v39  ;;  %v4920_v23 = vadd.f32 %v4919_v41, %v9480_v53  ;;  %5603 = vmatprep.mubr.bf16.mxu0 %v7934_v18  ;;  %v7961_v33 = vld [vmem:[%s10600_s1 + $0xdb4] ss:$8 sps:$4 sm:$0xff]   ;;  %v7956_v41 = vld [vmem:[%s10600_s1 + $0xcb0] ss:$8 sps:$4 sm:$0xff]  }
 0x1b0   : > { %5716 = vmatprep.mubr.bf16.mxu1 %v7937_v26  ;;  %v4921_v55 = vpop.f32.mrf.mxu0 }
 0x1b1   : > { %v5034_v20 = vpop.f32.mrf.mxu1  ;;  %v9800_v63 = vadd.f32 %v5032_v40, %v4920_v23  ;;  %v4922_v53 = vadd.f32 %v4921_v55, %v9489_v11  ;;  %5766 = vmatpush2.bf16.msra.mxu0 %v7926_v54  ;;  %v7955_v11 = vld [vmem:[%s8253_s12 + $0x5cc] ss:$116 sps:$4 sm:$0xff]   ;;  %v7959_v40 = vld [vmem:[%s10600_s1 + $0xdb0] ss:$8 sps:$4 sm:$0xff]  }
 0x1b2   : > { %5879 = vmatpush2.bf16.msra.mxu1 %v7929_v34  ;;  %v4923_v62 = vpop.f32.mrf.mxu0  ;;  %5767 = vmatprep.subr.bf16.mxu0 %v7940_v44  ;;  %v7950_v34 = vld [vmem:[%s8253_s12 + $0x5c0] ss:$116 sps:$4 sm:$0xff]   ;;  %v7964_v23 = vld [vmem:[%s10600_s1 + $0xca4] ss:$8 sps:$4 sm:$0xff]  }
 0x1b3   : > { %v5036_v2 = vpop.f32.mrf.mxu1  ;;  %5880 = vmatprep.subr.bf16.mxu1 %v7943_v46  ;;  %v9809_v60 = vadd.f32 %v5034_v20, %v4922_v53  ;;  %v4924_v38 = vadd.f32 %v4923_v62, %v9500_v1  ;;  %v7967_v55 = vld [vmem:[%s10600_s1 + $0xda4] ss:$8 sps:$4 sm:$0xff]   ;;  %v7962_v62 = vld [vmem:[%s10600_s1 + $0xca0] ss:$8 sps:$4 sm:$0xff]  }
 0x1b4   : > { %v4927_v16 = vpop.f32.mrf.mxu0  ;;  %5604 = vmatmul.mubr.bf16.gmra.mxu0 %v7932_v48 }
 0x1b5   : > { %v5040_v32 = vpop.f32.mrf.mxu1  ;;  %5717 = vmatmul.mubr.bf16.gmra.mxu1 %v7935_v51  ;;  %v9820_v22 = vadd.f32 %v5036_v2, %v4924_v38  ;;  %v4928_v1 = vadd.f32 %v4927_v16, %v9509_v35  ;;  %5768 = vmatpush2.bf16.msra.mxu0 %v7938_v6  ;;  %v7953_v35 = vld [vmem:[%s8253_s12 + $0x5c8] ss:$116 sps:$4 sm:$0xff]  }
 0x1b6   : > { %5881 = vmatpush2.bf16.msra.mxu1 %v7941_v56  ;;  %v4929_v18 = vpop.f32.mrf.mxu0  ;;  %5769 = vmatprep.subr.bf16.mxu0 %v7946_v58  ;;  %v7970_v56 = vld [vmem:[%s8253_s12 + $0x6ac] ss:$116 sps:$4 sm:$0xff]   ;;  %v7976_v38 = vld [vmem:[%s10600_s1 + $0xc94] ss:$8 sps:$4 sm:$0xff]  }
 0x1b7   : > { %v5042_v26 = vpop.f32.mrf.mxu1  ;;  %5882 = vmatprep.subr.bf16.mxu1 %v7949_v7  ;;  %v9829_v8 = vadd.f32 %v5040_v32, %v4928_v1  ;;  %v4930_v54 = vadd.f32 %v4929_v18, %v9520_v13  ;;  %5613 = vmatprep.mubr.bf16.mxu0 %v7952_v10  ;;  %v7965_v2 = vld [vmem:[%s10600_s1 + $0xda0] ss:$8 sps:$4 sm:$0xff]   ;;  %v7979_v16 = vld [vmem:[%s10600_s1 + $0xd94] ss:$8 sps:$4 sm:$0xff]   ;;  %v7974_v18 = vld [vmem:[%s10600_s1 + $0xc90] ss:$8 sps:$4 sm:$0xff]  }
 0x1b8   : > { %5726 = vmatprep.mubr.bf16.mxu1 %v7955_v11  ;;  %v4931_v39 = vpop.f32.mrf.mxu0 }
 0x1b9   : > { %v5044_v44 = vpop.f32.mrf.mxu1  ;;  %v9840_v46 = vadd.f32 %v5042_v26, %v4930_v54  ;;  %v4932_v13 = vadd.f32 %v4931_v39, %v9529_v57  ;;  %5770 = vmatpush2.bf16.msra.mxu0 %v7944_v24  ;;  %v7973_v57 = vld [vmem:[%s8253_s12 + $0x6b4] ss:$116 sps:$4 sm:$0xff]   ;;  %v7977_v26 = vld [vmem:[%s10600_s1 + $0xd90] ss:$8 sps:$4 sm:$0xff]   ;;  %v7982_v54 = vld [vmem:[%s10600_s1 + $0xc84] ss:$8 sps:$4 sm:$0xff]  }
 0x1ba   : > { %5883 = vmatpush2.bf16.msra.mxu1 %v7947_v17  ;;  %v4933_v48 = vpop.f32.mrf.mxu0  ;;  %5771 = vmatprep.subr.bf16.mxu0 %v7958_v9  ;;  %v7968_v17 = vld [vmem:[%s8253_s12 + $0x6a8] ss:$116 sps:$4 sm:$0xff]   ;;  %v7985_v39 = vld [vmem:[%s10600_s1 + $0xd84] ss:$8 sps:$4 sm:$0xff]  }
 0x1bb   : > { %v5046_v51 = vpop.f32.mrf.mxu1  ;;  %5884 = vmatprep.subr.bf16.mxu1 %v7961_v33  ;;  %v9849_v20 = vadd.f32 %v5044_v44, %v4932_v13  ;;  %v4934_v6 = vadd.f32 %v4933_v48, %v9540_v25  ;;  %v7980_v48 = vld [vmem:[%s10600_s1 + $0xc80] ss:$8 sps:$4 sm:$0xff]  }
 0x1bc   : > { %v4937_v53 = vpop.f32.mrf.mxu0  ;;  %5614 = vmatmul.mubr.bf16.gmra.mxu0 %v7950_v34 }
 0x1bd   : > { %v5050_v58 = vpop.f32.mrf.mxu1  ;;  %5727 = vmatmul.mubr.bf16.gmra.mxu1 %v7953_v35  ;;  %v9860_v7 = vadd.f32 %v5046_v51, %v4934_v6  ;;  %v4938_v25 = vadd.f32 %v4937_v53, %v9549_v19  ;;  %5772 = vmatpush2.bf16.msra.mxu0 %v7956_v41  ;;  %v7971_v19 = vld [vmem:[%s8253_s12 + $0x6b0] ss:$116 sps:$4 sm:$0xff]  }
 0x1be   : > { %5885 = vmatpush2.bf16.msra.mxu1 %v7959_v40  ;;  %v4939_v10 = vpop.f32.mrf.mxu0  ;;  %5773 = vmatprep.subr.bf16.mxu0 %v7964_v23  ;;  %v7988_v40 = vld [vmem:[%s8253_s12 + $0x64] ss:$116 sps:$4 sm:$0xff]  }
 0x1bf   : > { %v5052_v11 = vpop.f32.mrf.mxu1  ;;  %5886 = vmatprep.subr.bf16.mxu1 %v7967_v55  ;;  %v9869_v32 = vadd.f32 %v5050_v58, %v4938_v25  ;;  %v4940_v24 = vadd.f32 %v4939_v10, %v9560_v37  ;;  %5623 = vmatprep.mubr.bf16.mxu0 %v7970_v56  ;;  %v7986_v58 = vld [vmem:[%s8253_s12 + $0x60] ss:$116 sps:$4 sm:$0xff]   ;;  %v7989_v25 = vld [vmem:[%s8253_s12 + $0x68] ss:$116 sps:$4 sm:$0xff]  }
 0x1c0   : > { %5736 = vmatprep.mubr.bf16.mxu1 %v7973_v57  ;;  %v4941_v1 = vpop.f32.mrf.mxu0  ;;  %v7994_v57 = vld [vmem:[%s10600_s1 + $0xe74] ss:$8 sps:$4 sm:$0xff]  }
 0x1c1   : > { %v5054_v9 = vpop.f32.mrf.mxu1  ;;  %v9880_v33 = vadd.f32 %v5052_v11, %v4940_v24  ;;  %v4942_v37 = vadd.f32 %v4941_v1, %v9569_v42  ;;  %5774 = vmatpush2.bf16.msra.mxu0 %v7962_v62  ;;  %v7991_v42 = vld [vmem:[%s8253_s12 + $0x6c] ss:$116 sps:$4 sm:$0xff]  }
 0x1c2   : > { %5887 = vmatpush2.bf16.msra.mxu1 %v7965_v2  ;;  %v4943_v34 = vpop.f32.mrf.mxu0  ;;  %5775 = vmatprep.subr.bf16.mxu0 %v7976_v38  ;;  %v7992_v38 = vld [vmem:[%s10600_s1 + $0xe70] ss:$8 sps:$4 sm:$0xff]  }
 0x1c3   : > { %v5056_v35 = vpop.f32.mrf.mxu1  ;;  %5888 = vmatprep.subr.bf16.mxu1 %v7979_v16  ;;  %v9889_v44 = vadd.f32 %v5054_v9, %v4942_v37  ;;  %v4944_v41 = vadd.f32 %v4943_v34, %v9580_v50  ;;  %v7983_v50 = vld [vmem:[%s10600_s1 + $0xd80] ss:$8 sps:$4 sm:$0xff]   ;;  %v8003_v9 = vld [vmem:[%s10600_s1 + $0xe64] ss:$8 sps:$4 sm:$0xff]  }
 0x1c4   : > { %v4947_v13 = vpop.f32.mrf.mxu0  ;;  %5624 = vmatmul.mubr.bf16.gmra.mxu0 %v7968_v17  ;;  %v7997_v16 = vld [vmem:[%s8253_s12 + $0x14c] ss:$116 sps:$4 sm:$0xff]   ;;  %v8000_v17 = vld [vmem:[%s8253_s12 + $0x154] ss:$116 sps:$4 sm:$0xff]  }
 0x1c5   : > { %v5060_v23 = vpop.f32.mrf.mxu1  ;;  %5737 = vmatmul.mubr.bf16.gmra.mxu1 %v7971_v19  ;;  %v9897_v51 = vadd.f32 %v5056_v35, %v4944_v41  ;;  %v4948_v55 = vadd.f32 %v4947_v13, %v9589_v3  ;;  %5776 = vmatpush2.bf16.msra.mxu0 %v7974_v18  ;;  %v8012_v35 = vld [vmem:[%s10600_s1 + $0xe54] ss:$8 sps:$4 sm:$0xff]   ;;  %v7998_v13 = vld [vmem:[%s8253_s12 + $0x150] ss:$116 sps:$4 sm:$0xff]  }
 0x1c6   : > { %5889 = vmatpush2.bf16.msra.mxu1 %v7977_v26  ;;  %v4949_v6 = vpop.f32.mrf.mxu0  ;;  %5777 = vmatprep.subr.bf16.mxu0 %v7982_v54  ;;  %v7995_v41 = vld [vmem:[%s8253_s12 + $0x148] ss:$116 sps:$4 sm:$0xff]  }
 0x1c7   : > { %v5062_v56 = vpop.f32.mrf.mxu1  ;;  %5890 = vmatprep.subr.bf16.mxu1 %v7985_v39  ;;  %v9906_v53 = vadd.f32 %v5060_v23, %v4948_v55  ;;  %v4950_v3 = vadd.f32 %v4949_v6, %v9600_v0  ;;  %5779 = vmatprep.mubr.bf16.mxu0 %v7988_v40  ;;  %v8006_v23 = vld [vmem:[%s8253_s12 + $0x234] ss:$116 sps:$4 sm:$0xff]  }
 0x1c8   : > { %5892 = vmatprep.mubr.bf16.mxu1 %v7991_v42  ;;  %v4951_v62 = vpop.f32.mrf.mxu0 }
 0x1c9   : > { %v5064_v2 = vpop.f32.mrf.mxu1  ;;  %v9914_v10 = vadd.f32 %v5062_v56, %v4950_v3  ;;  %v4952_v11 = vadd.f32 %v4951_v62, %v9609_v28  ;;  %5778 = vmatpush2.bf16.msra.mxu0 %v7980_v48 }
 0x1ca   : > { %5891 = vmatpush2.bf16.msra.mxu1 %v7983_v50  ;;  %v4953_v24 = vpop.f32.mrf.mxu0  ;;  %5973 = vmatprep.subr.bf16.mxu0 %v7994_v57  ;;  %v8009_v50 = vld [vmem:[%s8253_s12 + $0x23c] ss:$116 sps:$4 sm:$0xff]  }
 0x1cb   : > { %v5066_v0 = vpop.f32.mrf.mxu1  ;;  %7000 = vmatprep.subr.bf16.mxu1 %v7994_v57  ;;  %v9919_v19 = vadd.f32 %v5064_v2, %v4952_v11  ;;  %v4954_v1 = vadd.f32 %v4953_v24, %v9620_v15  ;;  %v8001_v15 = vld [vmem:[%s10600_s1 + $0xe60] ss:$8 sps:$4 sm:$0xff]  }
 0x1cc   : > { %v5103_v18 = vpop.f32.mrf.mxu0  ;;  %5780 = vmatmul.mubr.bf16.vlgmr.msra.gmra.mxu0 %v7986_v58  ;;  %v8019_v24 = vld [vmem:[%s10600_s1 + $0xe40] ss:$8 sps:$4 sm:$0xff]  }
 0x1cd   : > { %v5216_v26 = vpop.f32.mrf.mxu1  ;;  %5893 = vmatmul.mubr.bf16.vlgmr.msra.gmra.mxu1 %v7989_v25  ;;  %v9925_v28 = vadd.f32 %v5066_v0, %v4954_v1  ;;  %v5104_v37 = vadd.f32 %v5103_v18, %v9629_v52  ;;  %5974 = vmatpush1.bf16.msra.mxu0 %v7992_v38  ;;  %v8015_v18 = vld [vmem:[%s8253_s12 + $0x31c] ss:$116 sps:$4 sm:$0xff]  }
 0x1ce   : > { %7008 = vmatpush1.bf16.msra.mxu1 %v7992_v38  ;;  %v5105_v54 = vpop.f32.mrf.mxu0  ;;  %5789 = vmatprep.mubr.bf16.mxu0 %v7997_v16  ;;  %v8004_v16 = vld [vmem:[%s8253_s12 + $0x230] ss:$116 sps:$4 sm:$0xff]  }
 0x1cf   : > { %v5218_v34 = vpop.f32.mrf.mxu1  ;;  %5902 = vmatprep.mubr.bf16.mxu1 %v8000_v17  ;;  %v9934_v39 = vadd.f32 %v5216_v26, %v5104_v37  ;;  %v5106_v52 = vadd.f32 %v5105_v54, %v9640_v29  ;;  %5975 = vmatprep.subr.bf16.mxu0 %v8003_v9  ;;  %v8010_v29 = vld [vmem:[%s10600_s1 + $0xe50] ss:$8 sps:$4 sm:$0xff]  }
 0x1d0   : > { %7001 = vmatprep.subr.bf16.mxu1 %v8003_v9  ;;  %v5107_v40 = vpop.f32.mrf.mxu0 }
 0x1d1   : > { %v5220_v42 = vpop.f32.mrf.mxu1  ;;  %v9940_v48 = vadd.f32 %v5218_v34, %v5106_v52  ;;  %v5108_v55 = vadd.f32 %v5107_v40, %v9649_v12  ;;  %5976 = vmatpush1.bf16.msra.mxu0 %v8001_v15  ;;  %v8021_v12 = vld [vmem:[%s10600_s1 + $0xe44] ss:$8 sps:$4 sm:$0xff]  }
 0x1d2   : > { %7009 = vmatpush1.bf16.msra.mxu1 %v8001_v15  ;;  %v5109_v6 = vpop.f32.mrf.mxu0  ;;  %5977 = vmatprep.subr.bf16.mxu0 %v8012_v35  ;;  %v8018_v15 = vld [vmem:[%s8253_s12 + $0x324] ss:$116 sps:$4 sm:$0xff]  }
 0x1d3   : > { %v5222_v56 = vpop.f32.mrf.mxu1  ;;  %7002 = vmatprep.subr.bf16.mxu1 %v8012_v35  ;;  %v9947_v57 = vadd.f32 %v5220_v42, %v5108_v55  ;;  %v5110_v3 = vadd.f32 %v5109_v6, %v9660_v43  ;;  %v8007_v43 = vld [vmem:[%s8253_s12 + $0x238] ss:$116 sps:$4 sm:$0xff]   ;;  %v8037_v55 = vld [vmem:[%s10600_s1 + $0xe20] ss:$8 sps:$4 sm:$0xff]  }
 0x1d4   : > { %v5113_v58 = vpop.f32.mrf.mxu0  ;;  %5790 = vmatmul.mubr.bf16.gmra.mxu0 %v7995_v41  ;;  %v8039_v41 = vld [vmem:[%s10600_s1 + $0xe24] ss:$8 sps:$4 sm:$0xff]  }
 0x1d5   : > { %v5226_v62 = vpop.f32.mrf.mxu1  ;;  %5903 = vmatmul.mubr.bf16.gmra.mxu1 %v7998_v13  ;;  %v9953_v2 = vadd.f32 %v5222_v56, %v5110_v3  ;;  %v5114_v25 = vadd.f32 %v5113_v58, %v9669_v36  ;;  %5799 = vmatprep.mubr.bf16.mxu0 %v8006_v23  ;;  %v8030_v36 = vld [vmem:[%s10600_s1 + $0xe34] ss:$8 sps:$4 sm:$0xff]   ;;  %v8013_v3 = vld [vmem:[%s8253_s12 + $0x318] ss:$116 sps:$4 sm:$0xff]  }
 0x1d6   : > { %5912 = vmatprep.mubr.bf16.mxu1 %v8009_v50  ;;  %v5115_v38 = vpop.f32.mrf.mxu0  ;;  %5978 = vmatpush1.bf16.msra.mxu0 %v8010_v29 }
 0x1d7   : > { %v5228_v11 = vpop.f32.mrf.mxu1  ;;  %7010 = vmatpush1.bf16.msra.mxu1 %v8010_v29  ;;  %v9961_v0 = vadd.f32 %v5226_v62, %v5114_v25  ;;  %v5116_v17 = vadd.f32 %v5115_v38, %v9680_v61  ;;  %5979 = vmatprep.subr.bf16.mxu0 %v8021_v12  ;;  %v8028_v61 = vld [vmem:[%s10600_s1 + $0xe30] ss:$8 sps:$4 sm:$0xff]   ;;  %v8027_v38 = vld [vmem:[%s8253_s12 + $0x40c] ss:$116 sps:$4 sm:$0xff]  }
 0x1d8   : > { %7003 = vmatprep.subr.bf16.mxu1 %v8021_v12  ;;  %v5117_v1 = vpop.f32.mrf.mxu0  ;;  %v8016_v12 = vld [vmem:[%s8253_s12 + $0x320] ss:$116 sps:$4 sm:$0xff]   ;;  %v8024_v25 = vld [vmem:[%s8253_s12 + $0x404] ss:$116 sps:$4 sm:$0xff]  }
 0x1d9   : > { %v5230_v9 = vpop.f32.mrf.mxu1  ;;  %v9968_v26 = vadd.f32 %v5228_v11, %v5116_v17  ;;  %v5118_v37 = vadd.f32 %v5117_v1, %v9689_v59 }
 0x1da   : > { %v5119_v54 = vpop.f32.mrf.mxu0  ;;  %5980 = vmatpush1.bf16.msra.mxu0 %v8019_v24 }
 0x1db   : > { %v5232_v34 = vpop.f32.mrf.mxu1  ;;  %7011 = vmatpush1.bf16.msra.mxu1 %v8019_v24  ;;  %v9975_v35 = vadd.f32 %v5230_v9, %v5118_v37  ;;  %v5120_v52 = vadd.f32 %v5119_v54, %v9700_v14  ;;  %5981 = vmatprep.subr.bf16.mxu0 %v8030_v36  ;;  %v8055_v37 = vld [vmem:[%s10600_s1 + $0xe00] ss:$8 sps:$4 sm:$0xff]  }
 0x1dc   : > { %7004 = vmatprep.subr.bf16.mxu1 %v8030_v36  ;;  %v5123_v59 = vpop.f32.mrf.mxu0  ;;  %5800 = vmatmul.mubr.bf16.gmra.mxu0 %v8004_v16 }
 0x1dd   : > { %v5236_v40 = vpop.f32.mrf.mxu1  ;;  %5913 = vmatmul.mubr.bf16.gmra.mxu1 %v8007_v43  ;;  %v9981_v42 = vadd.f32 %v5232_v34, %v5120_v52  ;;  %v5124_v13 = vadd.f32 %v5123_v59, %v9709_v21  ;;  %5809 = vmatprep.mubr.bf16.mxu0 %v8015_v18  ;;  %v8048_v21 = vld [vmem:[%s10600_s1 + $0xe14] ss:$8 sps:$4 sm:$0xff]  }
 0x1de   : > { %5922 = vmatprep.mubr.bf16.mxu1 %v8018_v15  ;;  %v5125_v23 = vpop.f32.mrf.mxu0  ;;  %5982 = vmatpush1.bf16.msra.mxu0 %v8028_v61  ;;  %v8025_v52 = vld [vmem:[%s8253_s12 + $0x408] ss:$116 sps:$4 sm:$0xff]  }
 0x1df   : > { %v5238_v14 = vpop.f32.mrf.mxu1  ;;  %7012 = vmatpush1.bf16.msra.mxu1 %v8028_v61  ;;  %v9987_v50 = vadd.f32 %v5236_v40, %v5124_v13  ;;  %v5126_v6 = vadd.f32 %v5125_v23, %v9720_v31  ;;  %5983 = vmatprep.subr.bf16.mxu0 %v8039_v41  ;;  %v8046_v31 = vld [vmem:[%s10600_s1 + $0xe10] ss:$8 sps:$4 sm:$0xff]   ;;  %v8022_v61 = vld [vmem:[%s8253_s12 + $0x400] ss:$116 sps:$4 sm:$0xff]  }
 0x1e0   : > { %7005 = vmatprep.subr.bf16.mxu1 %v8039_v41  ;;  %v5127_v56 = vpop.f32.mrf.mxu0  ;;  %v8033_v40 = vld [vmem:[%s8253_s12 + $0x4ec] ss:$116 sps:$4 sm:$0xff]   ;;  %v8036_v13 = vld [vmem:[%s8253_s12 + $0x4f4] ss:$116 sps:$4 sm:$0xff]  }
 0x1e1   : > { %v5240_v29 = vpop.f32.mrf.mxu1  ;;  %v9995_v58 = vadd.f32 %v5238_v14, %v5126_v6  ;;  %v5128_v62 = vadd.f32 %v5127_v56, %v9729_v45  ;;  %v8057_v45 = vld [vmem:[%s10600_s1 + $0xe04] ss:$8 sps:$4 sm:$0xff]  }
 0x1e2   : > { %v5129_v11 = vpop.f32.mrf.mxu0  ;;  %5984 = vmatpush1.bf16.msra.mxu0 %v8037_v55 }
 0x1e3   : > { %v5242_v16 = vpop.f32.mrf.mxu1  ;;  %7013 = vmatpush1.bf16.msra.mxu1 %v8037_v55  ;;  %v10003_v43 = vadd.f32 %v5240_v29, %v5128_v62  ;;  %v5130_v24 = vadd.f32 %v5129_v11, %v9740_v49  ;;  %5985 = vmatprep.subr.bf16.mxu0 %v8048_v21  ;;  %v8034_v11 = vld [vmem:[%s8253_s12 + $0x4f0] ss:$116 sps:$4 sm:$0xff]  }
 0x1e4   : > { %7006 = vmatprep.subr.bf16.mxu1 %v8048_v21  ;;  %v5133_v17 = vpop.f32.mrf.mxu0  ;;  %5810 = vmatmul.mubr.bf16.gmra.mxu0 %v8013_v3 }
 0x1e5   : > { %v5246_v36 = vpop.f32.mrf.mxu1  ;;  %5923 = vmatmul.mubr.bf16.gmra.mxu1 %v8016_v12  ;;  %v10009_v1 = vadd.f32 %v5242_v16, %v5130_v24  ;;  %v5134_v9 = vadd.f32 %v5133_v17, %v9749_v4  ;;  %5819 = vmatprep.mubr.bf16.mxu0 %v8024_v25  ;;  %v8042_v24 = vld [vmem:[%s8253_s12 + $0x5d4] ss:$116 sps:$4 sm:$0xff]  }
 0x1e6   : > { %5932 = vmatprep.mubr.bf16.mxu1 %v8027_v38  ;;  %v5135_v49 = vpop.f32.mrf.mxu0  ;;  %5986 = vmatpush1.bf16.msra.mxu0 %v8046_v31  ;;  %v8031_v38 = vld [vmem:[%s8253_s12 + $0x4e8] ss:$116 sps:$4 sm:$0xff]  }
 0x1e7   : > { %v5248_v18 = vpop.f32.mrf.mxu1  ;;  %7014 = vmatpush1.bf16.msra.mxu1 %v8046_v31  ;;  %v10015_v15 = vadd.f32 %v5246_v36, %v5134_v9  ;;  %v5136_v54 = vadd.f32 %v5135_v49, %v9760_v5  ;;  %5987 = vmatprep.subr.bf16.mxu0 %v8057_v45 }
 0x1e8   : > { %7007 = vmatprep.subr.bf16.mxu1 %v8057_v45  ;;  %v5137_v34 = vpop.f32.mrf.mxu0  ;;  %v8045_v45 = vld [vmem:[%s8253_s12 + $0x5dc] ss:$116 sps:$4 sm:$0xff]  }
 0x1e9   : > { %v5250_v4 = vpop.f32.mrf.mxu1  ;;  %v10020_v41 = vadd.f32 %v5248_v18, %v5136_v54  ;;  %v5138_v59 = vadd.f32 %v5137_v34, %v9769_v30 }
 0x1ea   : > { %v5139_v23 = vpop.f32.mrf.mxu0  ;;  %5988 = vmatpush1.bf16.msra.mxu0 %v8055_v37 }
 0x1eb   : > { %v5252_v14 = vpop.f32.mrf.mxu1  ;;  %7015 = vmatpush1.bf16.msra.mxu1 %v8055_v37  ;;  %v10025_v55 = vadd.f32 %v5250_v4, %v5138_v59  ;;  %v5140_v5 = vadd.f32 %v5139_v23, %v9780_v27  ;;  %v8043_v59 = vld [vmem:[%s8253_s12 + $0x5d8] ss:$116 sps:$4 sm:$0xff]   ;;  %v8051_v23 = vld [vmem:[%s8253_s12 + $0x6bc] ss:$116 sps:$4 sm:$0xff]  }
 0x1ec   : > { %v5143_v6 = vpop.f32.mrf.mxu0  ;;  %5820 = vmatmul.mubr.bf16.gmra.mxu0 %v8022_v61 }
 0x1ed   : > { %v5256_v21 = vpop.f32.mrf.mxu1  ;;  %5933 = vmatmul.mubr.bf16.gmra.mxu1 %v8025_v52  ;;  %v10028_v56 = vadd.f32 %v5252_v14, %v5140_v5  ;;  %v5144_v30 = vadd.f32 %v5143_v6, %v9789_v47  ;;  %5829 = vmatprep.mubr.bf16.mxu0 %v8033_v40  ;;  %v8040_v52 = vld [vmem:[%s8253_s12 + $0x5d0] ss:$116 sps:$4 sm:$0xff]  }
 0x1ee   : > { %5942 = vmatprep.mubr.bf16.mxu1 %v8036_v13  ;;  %v5145_v29 = vpop.f32.mrf.mxu0  ;;  %v8054_v14 = vld [vmem:[%s8253_s12 + $0x6c4] ss:$116 sps:$4 sm:$0xff]  }
 0x1ef   : > { %v5258_v3 = vpop.f32.mrf.mxu1  ;;  %v10031_v12 = vadd.f32 %v5256_v21, %v5144_v30  ;;  %v5146_v62 = vadd.f32 %v5145_v29, %v9800_v63 }
 0x1f0   : > { %v5147_v27 = vpop.f32.mrf.mxu0 }
 0x1f1   : > { %v5260_v25 = vpop.f32.mrf.mxu1  ;;  %v10036_v16 = vadd.f32 %v5258_v3, %v5146_v62  ;;  %v5148_v31 = vadd.f32 %v5147_v27, %v9809_v60 }
 0x1f2   : > { %v5149_v17 = vpop.f32.mrf.mxu0 }
 0x1f3   : > { %v5262_v47 = vpop.f32.mrf.mxu1  ;;  %v10041_v36 = vadd.f32 %v5260_v25, %v5148_v31  ;;  %v5150_v9 = vadd.f32 %v5149_v17, %v9820_v22  ;;  %v8052_v31 = vld [vmem:[%s8253_s12 + $0x6c0] ss:$116 sps:$4 sm:$0xff]  }
 0x1f4   : > { %v5153_v49 = vpop.f32.mrf.mxu0  ;;  %5830 = vmatmul.mubr.bf16.gmra.mxu0 %v8031_v38 }
 0x1f5   : > { %v5266_v63 = vpop.f32.mrf.mxu1  ;;  %5943 = vmatmul.mubr.bf16.gmra.mxu1 %v8034_v11  ;;  %v10044_v18 = vadd.f32 %v5262_v47, %v5150_v9  ;;  %v5154_v60 = vadd.f32 %v5153_v49, %v9829_v8  ;;  %5839 = vmatprep.mubr.bf16.mxu0 %v8042_v24 }
 0x1f6   : > { %5952 = vmatprep.mubr.bf16.mxu1 %v8045_v45  ;;  %v5155_v37 = vpop.f32.mrf.mxu0 }
 0x1f7   : > { %v5268_v54 = vpop.f32.mrf.mxu1  ;;  %v10047_v34 = vadd.f32 %v5266_v63, %v5154_v60  ;;  %v5156_v4 = vadd.f32 %v5155_v37, %v9840_v46  ;;  %v8074_v37 = vmov 0  }
 0x1f8   : > { %v5157_v22 = vpop.f32.mrf.mxu0 }
 0x1f9   : > { %v5270_v61 = vpop.f32.mrf.mxu1  ;;  %v10052_v40 = vadd.f32 %v5268_v54, %v5156_v4  ;;  %v5158_v13 = vadd.f32 %v5157_v22, %v9849_v20 }
 0x1fa   : > { %v5159_v5 = vpop.f32.mrf.mxu0 }
 0x1fb   : > { %v5272_v8 = vpop.f32.mrf.mxu1  ;;  %v10057_v6 = vadd.f32 %v5270_v61, %v5158_v13  ;;  %v5160_v21 = vadd.f32 %v5159_v5, %v9860_v7  ;;  %v8049_v7 = vld [vmem:[%s8253_s12 + $0x6b8] ss:$116 sps:$4 sm:$0xff]  }
 0x1fc   : > { %v5163_v30 = vpop.f32.mrf.mxu0  ;;  %5840 = vmatmul.mubr.bf16.gmra.mxu0 %v8040_v52  ;;  %v8058_v52 = vld [vmem:[%s8253_s12 + $0x70] ss:$116 sps:$4 sm:$0xff]  }
 0x1fd   : > { %v5276_v46 = vpop.f32.mrf.mxu1  ;;  %5953 = vmatmul.mubr.bf16.gmra.mxu1 %v8043_v59  ;;  %v10060_v29 = vadd.f32 %v5272_v8, %v5160_v21  ;;  %v5164_v3 = vadd.f32 %v5163_v30, %v9869_v32  ;;  %5849 = vmatprep.mubr.bf16.mxu0 %v8051_v23  ;;  %v8059_v59 = vld [vmem:[%s8253_s12 + $0x410] ss:$116 sps:$4 sm:$0xff]  }
 0x1fe   : > { %5962 = vmatprep.mubr.bf16.mxu1 %v8054_v14  ;;  %v5165_v20 = vpop.f32.mrf.mxu0 }
 0x1ff   : > { %v5278_v62 = vpop.f32.mrf.mxu1  ;;  %v10063_v27 = vadd.f32 %v5276_v46, %v5164_v3  ;;  %v5166_v25 = vadd.f32 %v5165_v20, %v9880_v33 }
 0x200   : > { %v5167_v38 = vpop.f32.mrf.mxu0 }
 0x201   : > { %v5280_v11 = vpop.f32.mrf.mxu1  ;;  %v10068_v24 = vadd.f32 %v5278_v62, %v5166_v25  ;;  %v5168_v45 = vadd.f32 %v5167_v38, %v9889_v44  ;;  %v8060_v38 = vld [vmem:[%s8253_s12 + $0x158] ss:$116 sps:$4 sm:$0xff]  }
 0x202   : > { %v5169_v17 = vpop.f32.mrf.mxu0 }
 0x203   : > { %v5282_v47 = vpop.f32.mrf.mxu1  ;;  %v10071_v9 = vadd.f32 %v5280_v11, %v5168_v45  ;;  %v5170_v32 = vadd.f32 %v5169_v17, %v9897_v51  ;;  %v8061_v11 = vld [vmem:[%s8253_s12 + $0x4f8] ss:$116 sps:$4 sm:$0xff]  }
 0x204   : > { %v5173_v49 = vpop.f32.mrf.mxu0  ;;  %5850 = vmatmul.mubr.bf16.gmra.mxu0 %v8049_v7 }
 0x205   : > { %v5286_v63 = vpop.f32.mrf.mxu1  ;;  %5963 = vmatmul.mubr.bf16.gmra.mxu1 %v8052_v31  ;;  %v10074_v33 = vadd.f32 %v5282_v47, %v5170_v32  ;;  %v5174_v60 = vadd.f32 %v5173_v49, %v9906_v53  ;;  %6005 = vmatprep.mubr.bf16.mxu0 %v8074_v37 }
 0x206   : > { %6045 = vmatprep.mubr.bf16.mxu1 %v8074_v37  ;;  %v5175_v44 = vpop.f32.mrf.mxu0 }
 0x207   : > { %v5288_v54 = vpop.f32.mrf.mxu1  ;;  %v10079_v4 = vadd.f32 %v5286_v63, %v5174_v60  ;;  %v5176_v51 = vadd.f32 %v5175_v44, %v9914_v10 }
 0x208   : > { %v5177_v22 = vpop.f32.mrf.mxu0 }
 0x209   : > { %v5290_v61 = vpop.f32.mrf.mxu1  ;;  %v10084_v13 = vadd.f32 %v5288_v54, %v5176_v51  ;;  %v5178_v23 = vadd.f32 %v5177_v22, %v9919_v19  ;;  %v8062_v22 = vld [vmem:[%s8253_s12 + $0x240] ss:$116 sps:$4 sm:$0xff]  }
 0x20a   : > { %v5179_v53 = vpop.f32.mrf.mxu0 }
 0x20b   : > { %v5292_v14 = vpop.f32.mrf.mxu1  ;;  %v10087_v5 = vadd.f32 %v5290_v61, %v5178_v23  ;;  %v5180_v8 = vadd.f32 %v5179_v53, %v9925_v28  ;;  %v8063_v61 = vld [vmem:[%s8253_s12 + $0x5e0] ss:$116 sps:$4 sm:$0xff]  }
 0x20c   : > { %v5329_v21 = vpop.f32.mrf.mxu0  ;;  %6006 = vmatmul.mubr.bf16.vlgmr.msra.gmra.mxu0 %v8058_v52 }
 0x20d   : > { %v5442_v30 = vpop.f32.mrf.mxu1  ;;  %6046 = vmatmul.mubr.bf16.vlgmr.msra.gmra.mxu1 %v8059_v59  ;;  %v10090_v10 = vadd.f32 %v5292_v14, %v5180_v8  ;;  %v5330_v46 = vadd.f32 %v5329_v21, %v9934_v39  ;;  %6015 = vmatprep.mubr.bf16.mxu0 %v8074_v37 }
 0x20e   : > { %6055 = vmatprep.mubr.bf16.mxu1 %v8074_v37  ;;  %v5331_v19 = vpop.f32.mrf.mxu0 }
 0x20f   : > { %v5444_v3 = vpop.f32.mrf.mxu1  ;;  %v10095_v20 = vadd.f32 %v5442_v30, %v5330_v46  ;;  %v5332_v62 = vadd.f32 %v5331_v19, %v9940_v48 }
 0x210   : > { %v5333_v28 = vpop.f32.mrf.mxu0 }
 0x211   : > { %v5446_v25 = vpop.f32.mrf.mxu1  ;;  %v10100_v7 = vadd.f32 %v5444_v3, %v5332_v62  ;;  %v5334_v31 = vadd.f32 %v5333_v28, %v9947_v57  ;;  %v8064_v28 = vld [vmem:[%s8253_s12 + $0x328] ss:$116 sps:$4 sm:$0xff]  }
 0x212   : > { %v5335_v45 = vpop.f32.mrf.mxu0 }
 0x213   : > { %v5448_v39 = vpop.f32.mrf.mxu1  ;;  %v10103_v17 = vadd.f32 %v5446_v25, %v5334_v31  ;;  %v5336_v47 = vadd.f32 %v5335_v45, %v9953_v2  ;;  %v8065_v25 = vld [vmem:[%s8253_s12 + $0x6c8] ss:$116 sps:$4 sm:$0xff]  }
 0x214   : > { %v5339_v32 = vpop.f32.mrf.mxu0  ;;  %6016 = vmatmul.mubr.bf16.gmra.mxu0 %v8060_v38 }
 0x215   : > { %v5452_v49 = vpop.f32.mrf.mxu1  ;;  %6056 = vmatmul.mubr.bf16.gmra.mxu1 %v8061_v11  ;;  %v10106_v48 = vadd.f32 %v5448_v39, %v5336_v47  ;;  %v5340_v63 = vadd.f32 %v5339_v32, %v9961_v0  ;;  %6025 = vmatprep.mubr.bf16.mxu0 %v8074_v37 }
 0x216   : > { %6065 = vmatprep.mubr.bf16.mxu1 %v8074_v37  ;;  %v5341_v57 = vpop.f32.mrf.mxu0 }
 0x217   : > { %v5454_v60 = vpop.f32.mrf.mxu1  ;;  %v10111_v44 = vadd.f32 %v5452_v49, %v5340_v63  ;;  %v5342_v54 = vadd.f32 %v5341_v57, %v9968_v26 }
 0x218   : > { %v5343_v2 = vpop.f32.mrf.mxu0 }
 0x219   : > { %v5456_v51 = vpop.f32.mrf.mxu1  ;;  %v10116_v52 = vadd.f32 %v5454_v60, %v5342_v54  ;;  %v5344_v59 = vadd.f32 %v5343_v2, %v9975_v35 }
 0x21a   : > { %v5345_v23 = vpop.f32.mrf.mxu0 }
 0x21b   : > { %v5458_v0 = vpop.f32.mrf.mxu1  ;;  %v10119_v53 = vadd.f32 %v5456_v51, %v5344_v59  ;;  %v5346_v14 = vadd.f32 %v5345_v23, %v9981_v42 }
 0x21c   : > { %v5349_v8 = vpop.f32.mrf.mxu0  ;;  %6026 = vmatmul.mubr.bf16.gmra.mxu0 %v8062_v22 }
 0x21d   : > { %v5462_v21 = vpop.f32.mrf.mxu1  ;;  %6066 = vmatmul.mubr.bf16.gmra.mxu1 %v8063_v61  ;;  %v10122_v26 = vadd.f32 %v5458_v0, %v5346_v14  ;;  %v5350_v30 = vadd.f32 %v5349_v8, %v9987_v50  ;;  %6035 = vmatprep.mubr.bf16.mxu0 %v8074_v37 }
 0x21e   : > { %6075 = vmatprep.mubr.bf16.mxu1 %v8074_v37  ;;  %v5351_v35 = vpop.f32.mrf.mxu0 }
 0x21f   : > { %v5464_v46 = vpop.f32.mrf.mxu1  ;;  %v10127_v19 = vadd.f32 %v5462_v21, %v5350_v30  ;;  %v5352_v3 = vadd.f32 %v5351_v35, %v9995_v58 }
 0x220   : > { %v5353_v42 = vpop.f32.mrf.mxu0 }
 0x221   : > { %v5466_v62 = vpop.f32.mrf.mxu1  ;;  %v10132_v38 = vadd.f32 %v5464_v46, %v5352_v3  ;;  %v5354_v11 = vadd.f32 %v5353_v42, %v10003_v43 }
 0x222   : > { %v5355_v31 = vpop.f32.mrf.mxu0 }
 0x223   : > { %v5468_v50 = vpop.f32.mrf.mxu1  ;;  %v10135_v45 = vadd.f32 %v5466_v62, %v5354_v11  ;;  %v5356_v37 = vadd.f32 %v5355_v31, %v10009_v1 }
 0x224   : > { %v5359_v39 = vpop.f32.mrf.mxu0  ;;  %6036 = vmatmul.mubr.bf16.gmra.mxu0 %v8064_v28 }
 0x225   : > { %v5472_v47 = vpop.f32.mrf.mxu1  ;;  %6076 = vmatmul.mubr.bf16.gmra.mxu1 %v8065_v25  ;;  %v10138_v32 = vadd.f32 %v5468_v50, %v5356_v37  ;;  %v5360_v58 = vadd.f32 %v5359_v39, %v10015_v15 }
 0x226   : > { %v5361_v49 = vpop.f32.mrf.mxu0 }
 0x227   : > { %v5474_v63 = vpop.f32.mrf.mxu1  ;;  %v10141_v57 = vadd.f32 %v5472_v47, %v5360_v58  ;;  %v5362_v43 = vadd.f32 %v5361_v49, %v10020_v41 }
 0x228   : > { %v5363_v60 = vpop.f32.mrf.mxu0 }
 0x229   : > { %v5476_v54 = vpop.f32.mrf.mxu1  ;;  %v10144_v2 = vadd.f32 %v5474_v63, %v5362_v43  ;;  %v5364_v1 = vadd.f32 %v5363_v60, %v10025_v55 }
 0x22a   : > { %v5365_v51 = vpop.f32.mrf.mxu0 }
 0x22b   : > { %v5478_v22 = vpop.f32.mrf.mxu1  ;;  %v10147_v61 = vadd.f32 %v5476_v54, %v5364_v1  ;;  %v5366_v59 = vadd.f32 %v5365_v51, %v10028_v56 }
 0x22c   : > { %v5369_v23 = vpop.f32.mrf.mxu0 }
 0x22d   : > { %v5482_v15 = vpop.f32.mrf.mxu1  ;;  %v10150_v0 = vadd.f32 %v5478_v22, %v5366_v59  ;;  %v5370_v14 = vadd.f32 %v5369_v23, %v10031_v12 }
 0x22e   : > { %v5371_v8 = vpop.f32.mrf.mxu0 }
 0x22f   : > { %v5484_v41 = vpop.f32.mrf.mxu1  ;;  %v10153_v21 = vadd.f32 %v5482_v15, %v5370_v14  ;;  %v5372_v30 = vadd.f32 %v5371_v8, %v10036_v16 }
 0x230   : > { %v5373_v35 = vpop.f32.mrf.mxu0 }
 0x231   : > { %v5486_v55 = vpop.f32.mrf.mxu1  ;;  %v10156_v46 = vadd.f32 %v5484_v41, %v5372_v30  ;;  %v5374_v3 = vadd.f32 %v5373_v35, %v10041_v36 }
 0x232   : > { %v5375_v42 = vpop.f32.mrf.mxu0 }
 0x233   : > { %v5488_v56 = vpop.f32.mrf.mxu1  ;;  %v10159_v62 = vadd.f32 %v5486_v55, %v5374_v3  ;;  %v5376_v28 = vadd.f32 %v5375_v42, %v10044_v18 }
 0x234   : > { %v5379_v25 = vpop.f32.mrf.mxu0 }
 0x235   : > { %v5492_v12 = vpop.f32.mrf.mxu1  ;;  %v10162_v11 = vadd.f32 %v5488_v56, %v5376_v28  ;;  %v5380_v31 = vadd.f32 %v5379_v25, %v10047_v34 }
 0x236   : > { %v5381_v50 = vpop.f32.mrf.mxu0 }
 0x237   : > { %v5494_v16 = vpop.f32.mrf.mxu1  ;;  %v10165_v37 = vadd.f32 %v5492_v12, %v5380_v31  ;;  %v5382_v39 = vadd.f32 %v5381_v50, %v10052_v40 }
 0x238   : > { %v5383_v47 = vpop.f32.mrf.mxu0 }
 0x239   : > { %v5496_v36 = vpop.f32.mrf.mxu1  ;;  %v10168_v58 = vadd.f32 %v5494_v16, %v5382_v39  ;;  %v5384_v49 = vadd.f32 %v5383_v47, %v10057_v6 }
 0x23a   : > { %v5385_v63 = vpop.f32.mrf.mxu0 }
 0x23b   : > { %v5498_v18 = vpop.f32.mrf.mxu1  ;;  %v10171_v43 = vadd.f32 %v5496_v36, %v5384_v49  ;;  %v5386_v60 = vadd.f32 %v5385_v63, %v10060_v29 }
 0x23c   : > { %v5389_v54 = vpop.f32.mrf.mxu0 }
 0x23d   : > { %v5502_v34 = vpop.f32.mrf.mxu1  ;;  %v10174_v1 = vadd.f32 %v5498_v18, %v5386_v60  ;;  %v5390_v51 = vadd.f32 %v5389_v54, %v10063_v27 }
 0x23e   : > { %v5391_v22 = vpop.f32.mrf.mxu0 }
 0x23f   : > { %v5504_v40 = vpop.f32.mrf.mxu1  ;;  %v10177_v59 = vadd.f32 %v5502_v34, %v5390_v51  ;;  %v5392_v23 = vadd.f32 %v5391_v22, %v10068_v24 }
 0x240   : > { %v5393_v15 = vpop.f32.mrf.mxu0 }
 0x241   : > { %v5506_v6 = vpop.f32.mrf.mxu1  ;;  %v10180_v14 = vadd.f32 %v5504_v40, %v5392_v23  ;;  %v5394_v8 = vadd.f32 %v5393_v15, %v10071_v9 }
 0x242   : > { %v5395_v41 = vpop.f32.mrf.mxu0 }
 0x243   : > { %v5508_v29 = vpop.f32.mrf.mxu1  ;;  %v10183_v30 = vadd.f32 %v5506_v6, %v5394_v8  ;;  %v5396_v35 = vadd.f32 %v5395_v41, %v10074_v33 }
 0x244   : > { %v5399_v55 = vpop.f32.mrf.mxu0 }
 0x245   : > { %v5512_v27 = vpop.f32.mrf.mxu1  ;;  %v10186_v3 = vadd.f32 %v5508_v29, %v5396_v35  ;;  %v5400_v42 = vadd.f32 %v5399_v55, %v10079_v4 }
 0x246   : > { %v5401_v56 = vpop.f32.mrf.mxu0 }
 0x247   : > { %v5514_v24 = vpop.f32.mrf.mxu1  ;;  %v10189_v28 = vadd.f32 %v5512_v27, %v5400_v42  ;;  %v5402_v25 = vadd.f32 %v5401_v56, %v10084_v13 }
 0x248   : > { %v5403_v12 = vpop.f32.mrf.mxu0 }
 0x249   : > { %v5516_v9 = vpop.f32.mrf.mxu1  ;;  %v10192_v31 = vadd.f32 %v5514_v24, %v5402_v25  ;;  %v5404_v50 = vadd.f32 %v5403_v12, %v10087_v5 }
 0x24a   : > { %v5405_v16 = vpop.f32.mrf.mxu0 }
 0x24b   : > { %v5518_v33 = vpop.f32.mrf.mxu1  ;;  %v10195_v39 = vadd.f32 %v5516_v9, %v5404_v50  ;;  %v5406_v47 = vadd.f32 %v5405_v16, %v10090_v10 }
 0x24c   : > { %v5555_v36 = vpop.f32.mrf.mxu0 }
 0x24d   : > { %v5668_v4 = vpop.f32.mrf.mxu1  ;;  %v10198_v49 = vadd.f32 %v5518_v33, %v5406_v47  ;;  %v5556_v63 = vadd.f32 %v5555_v36, %v10095_v20 }
 0x24e   : > { %v5557_v18 = vpop.f32.mrf.mxu0 }
 0x24f   : > { %v5670_v13 = vpop.f32.mrf.mxu1  ;;  %v10201_v60 = vadd.f32 %v5668_v4, %v5556_v63  ;;  %v5558_v54 = vadd.f32 %v5557_v18, %v10100_v7 }
 0x250   : > { %v5559_v34 = vpop.f32.mrf.mxu0 }
 0x251   : > { %v5672_v5 = vpop.f32.mrf.mxu1  ;;  %v10204_v51 = vadd.f32 %v5670_v13, %v5558_v54  ;;  %v5560_v22 = vadd.f32 %v5559_v34, %v10103_v17 }
 0x252   : > { %v5561_v40 = vpop.f32.mrf.mxu0 }
 0x253   : > { %v5674_v10 = vpop.f32.mrf.mxu1  ;;  %v10207_v23 = vadd.f32 %v5672_v5, %v5560_v22  ;;  %v5562_v15 = vadd.f32 %v5561_v40, %v10106_v48 }
 0x254   : > { %v5565_v6 = vpop.f32.mrf.mxu0 }
 0x255   : > { %v5678_v20 = vpop.f32.mrf.mxu1  ;;  %v10210_v8 = vadd.f32 %v5674_v10, %v5562_v15  ;;  %v5566_v41 = vadd.f32 %v5565_v6, %v10111_v44 }
 0x256   : > { %v5567_v29 = vpop.f32.mrf.mxu0 }
 0x257   : > { %v5680_v7 = vpop.f32.mrf.mxu1  ;;  %v10213_v35 = vadd.f32 %v5678_v20, %v5566_v41  ;;  %v5568_v55 = vadd.f32 %v5567_v29, %v10116_v52 }
 0x258   : > { %v5569_v27 = vpop.f32.mrf.mxu0 }
 0x259   : > { %v5682_v17 = vpop.f32.mrf.mxu1  ;;  %v10216_v42 = vadd.f32 %v5680_v7, %v5568_v55  ;;  %v5570_v56 = vadd.f32 %v5569_v27, %v10119_v53 }
 0x25a   : > { %v5571_v24 = vpop.f32.mrf.mxu0 }
 0x25b   : > { %v5684_v48 = vpop.f32.mrf.mxu1  ;;  %v10219_v25 = vadd.f32 %v5682_v17, %v5570_v56  ;;  %v5572_v12 = vadd.f32 %v5571_v24, %v10122_v26 }
 0x25c   : > { %v5575_v9 = vpop.f32.mrf.mxu0 }
 0x25d   : > { %v5688_v44 = vpop.f32.mrf.mxu1  ;;  %v10222_v50 = vadd.f32 %v5684_v48, %v5572_v12  ;;  %v5576_v16 = vadd.f32 %v5575_v9, %v10127_v19 }
 0x25e   : > { %v5577_v33 = vpop.f32.mrf.mxu0 }
 0x25f   : > { %v5690_v52 = vpop.f32.mrf.mxu1  ;;  %v10225_v47 = vadd.f32 %v5688_v44, %v5576_v16  ;;  %v5578_v36 = vadd.f32 %v5577_v33, %v10132_v38 }
 0x260   : > { %v5579_v4 = vpop.f32.mrf.mxu0 }
 0x261   : > { %v5692_v53 = vpop.f32.mrf.mxu1  ;;  %v10228_v63 = vadd.f32 %v5690_v52, %v5578_v36  ;;  %v5580_v18 = vadd.f32 %v5579_v4, %v10135_v45 }
 0x262   : > { %v5581_v13 = vpop.f32.mrf.mxu0 }
 0x263   : > { %v5694_v26 = vpop.f32.mrf.mxu1  ;;  %v10231_v54 = vadd.f32 %v5692_v53, %v5580_v18  ;;  %v5582_v34 = vadd.f32 %v5581_v13, %v10138_v32 }
 0x264   : > { %v5585_v5 = vpop.f32.mrf.mxu0 }
 0x265   : > { %v5698_v19 = vpop.f32.mrf.mxu1  ;;  %v10234_v22 = vadd.f32 %v5694_v26, %v5582_v34  ;;  %v5586_v40 = vadd.f32 %v5585_v5, %v10141_v57 }
 0x266   : > { %v5587_v10 = vpop.f32.mrf.mxu0 }
 0x267   : > { %v5700_v38 = vpop.f32.mrf.mxu1  ;;  %v10237_v15 = vadd.f32 %v5698_v19, %v5586_v40  ;;  %v5588_v6 = vadd.f32 %v5587_v10, %v10144_v2 }
 0x268   : > { %v5589_v20 = vpop.f32.mrf.mxu0 }
 0x269   : > { %v5702_v45 = vpop.f32.mrf.mxu1  ;;  %v10240_v41 = vadd.f32 %v5700_v38, %v5588_v6  ;;  %v5590_v29 = vadd.f32 %v5589_v20, %v10147_v61 }
 0x26a   : > { %v5591_v7 = vpop.f32.mrf.mxu0 }
 0x26b   : > { %v5704_v32 = vpop.f32.mrf.mxu1  ;;  %v10243_v55 = vadd.f32 %v5702_v45, %v5590_v29  ;;  %v5592_v27 = vadd.f32 %v5591_v7, %v10150_v0 }
 0x26c   : > { %v5595_v17 = vpop.f32.mrf.mxu0 }
 0x26d   : > { %v5708_v57 = vpop.f32.mrf.mxu1  ;;  %v10246_v56 = vadd.f32 %v5704_v32, %v5592_v27  ;;  %v5596_v24 = vadd.f32 %v5595_v17, %v10153_v21 }
 0x26e   : > { %v5597_v48 = vpop.f32.mrf.mxu0 }
 0x26f   : > { %v5710_v2 = vpop.f32.mrf.mxu1  ;;  %v10249_v12 = vadd.f32 %v5708_v57, %v5596_v24  ;;  %v5598_v9 = vadd.f32 %v5597_v48, %v10156_v46 }
 0x270   : > { %v5599_v44 = vpop.f32.mrf.mxu0 }
 0x271   : > { %v5712_v61 = vpop.f32.mrf.mxu1  ;;  %v10252_v16 = vadd.f32 %v5710_v2, %v5598_v9  ;;  %v5600_v33 = vadd.f32 %v5599_v44, %v10159_v62 }
 0x272   : > { %v5601_v52 = vpop.f32.mrf.mxu0 }
 0x273   : > { %v5714_v0 = vpop.f32.mrf.mxu1  ;;  %v10255_v36 = vadd.f32 %v5712_v61, %v5600_v33  ;;  %v5602_v4 = vadd.f32 %v5601_v52, %v10162_v11 }
 0x274   : > { %v5605_v53 = vpop.f32.mrf.mxu0 }
 0x275   : > { %v5718_v21 = vpop.f32.mrf.mxu1  ;;  %v10258_v18 = vadd.f32 %v5714_v0, %v5602_v4  ;;  %v5606_v13 = vadd.f32 %v5605_v53, %v10165_v37 }
 0x276   : > { %v5607_v26 = vpop.f32.mrf.mxu0 }
 0x277   : > { %v5720_v46 = vpop.f32.mrf.mxu1  ;;  %v10261_v34 = vadd.f32 %v5718_v21, %v5606_v13  ;;  %v5608_v5 = vadd.f32 %v5607_v26, %v10168_v58 }
 0x278   : > { %v5609_v19 = vpop.f32.mrf.mxu0 }
 0x279   : > { %v5722_v62 = vpop.f32.mrf.mxu1  ;;  %v10264_v40 = vadd.f32 %v5720_v46, %v5608_v5  ;;  %v5610_v10 = vadd.f32 %v5609_v19, %v10171_v43 }
 0x27a   : > { %v5611_v38 = vpop.f32.mrf.mxu0 }
 0x27b   : > { %v5724_v11 = vpop.f32.mrf.mxu1  ;;  %v10267_v6 = vadd.f32 %v5722_v62, %v5610_v10  ;;  %v5612_v20 = vadd.f32 %v5611_v38, %v10174_v1 }
 0x27c   : > { %v5615_v45 = vpop.f32.mrf.mxu0 }
 0x27d   : > { %v5728_v37 = vpop.f32.mrf.mxu1  ;;  %v10270_v29 = vadd.f32 %v5724_v11, %v5612_v20  ;;  %v5616_v7 = vadd.f32 %v5615_v45, %v10177_v59 }
 0x27e   : > { %v5617_v32 = vpop.f32.mrf.mxu0 }
 0x27f   : > { %v5730_v58 = vpop.f32.mrf.mxu1  ;;  %v10273_v27 = vadd.f32 %v5728_v37, %v5616_v7  ;;  %v5618_v17 = vadd.f32 %v5617_v32, %v10180_v14 }
 0x280   : > { %v5619_v57 = vpop.f32.mrf.mxu0 }
 0x281   : > { %v5732_v43 = vpop.f32.mrf.mxu1  ;;  %v10276_v24 = vadd.f32 %v5730_v58, %v5618_v17  ;;  %v5620_v48 = vadd.f32 %v5619_v57, %v10183_v30 }
 0x282   : > { %v5621_v2 = vpop.f32.mrf.mxu0 }
 0x283   : > { %v5734_v1 = vpop.f32.mrf.mxu1  ;;  %v10279_v9 = vadd.f32 %v5732_v43, %v5620_v48  ;;  %v5622_v44 = vadd.f32 %v5621_v2, %v10186_v3 }
 0x284   : > { %v5625_v61 = vpop.f32.mrf.mxu0 }
 0x285   : > { %v5738_v59 = vpop.f32.mrf.mxu1  ;;  %v10282_v33 = vadd.f32 %v5734_v1, %v5622_v44  ;;  %v5626_v52 = vadd.f32 %v5625_v61, %v10189_v28 }
 0x286   : > { %v5627_v0 = vpop.f32.mrf.mxu0 }
 0x287   : > { %v5740_v14 = vpop.f32.mrf.mxu1  ;;  %v10285_v4 = vadd.f32 %v5738_v59, %v5626_v52  ;;  %v5628_v53 = vadd.f32 %v5627_v0, %v10192_v31 }
 0x288   : > { %v5629_v21 = vpop.f32.mrf.mxu0 }
 0x289   : > { %v5742_v30 = vpop.f32.mrf.mxu1  ;;  %v10288_v13 = vadd.f32 %v5740_v14, %v5628_v53  ;;  %v5630_v26 = vadd.f32 %v5629_v21, %v10195_v39 }
 0x28a   : > { %v5631_v46 = vpop.f32.mrf.mxu0 }
 0x28b   : > { %v5744_v3 = vpop.f32.mrf.mxu1  ;;  %v10291_v5 = vadd.f32 %v5742_v30, %v5630_v26  ;;  %v5632_v19 = vadd.f32 %v5631_v46, %v10198_v49 }
 0x28c   : > { %v5781_v62 = vpop.f32.mrf.mxu0 }
 0x28d   : > { %10604 = vst [vmem:[#allocation2_spill] sm:$0xff] %v10291_v5  ;;  %v5894_v28 = vpop.f32.mrf.mxu1  ;;  %v10294_v10 = vadd.f32 %v5744_v3, %v5632_v19  ;;  %v5782_v38 = vadd.f32 %v5781_v62, %v10201_v60 }
 0x28e   : > { %v5783_v11 = vpop.f32.mrf.mxu0 }
 0x28f   : > { %10605 = vst [vmem:[#allocation3_spill] sm:$0xff] %v10294_v10  ;;  %v5896_v31 = vpop.f32.mrf.mxu1  ;;  %v10297_v20 = vadd.f32 %v5894_v28, %v5782_v38  ;;  %v5784_v45 = vadd.f32 %v5783_v11, %v10204_v51 }
 0x290   : > { %v5785_v37 = vpop.f32.mrf.mxu0 }
 0x291   : > { %v5898_v39 = vpop.f32.mrf.mxu1  ;;  %v10300_v7 = vadd.f32 %v5896_v31, %v5784_v45  ;;  %v5786_v32 = vadd.f32 %v5785_v37, %v10207_v23 }
 0x292   : > { %v5787_v58 = vpop.f32.mrf.mxu0 }
 0x293   : > { %10606 = vst [vmem:[#allocation4_spill] sm:$0xff] %v10300_v7  ;;  %v5900_v49 = vpop.f32.mrf.mxu1  ;;  %v10303_v17 = vadd.f32 %v5898_v39, %v5786_v32  ;;  %v5788_v57 = vadd.f32 %v5787_v58, %v10210_v8 }
 0x294   : > { %v5791_v43 = vpop.f32.mrf.mxu0 }
 0x295   : > { %10607 = vst [vmem:[#allocation5_spill] sm:$0xff] %v10303_v17  ;;  %v5904_v60 = vpop.f32.mrf.mxu1  ;;  %v10306_v48 = vadd.f32 %v5900_v49, %v5788_v57  ;;  %v5792_v2 = vadd.f32 %v5791_v43, %v10213_v35  ;;  %v6130_v17 = vld [vmem:[%s10602_s3] sm:$0x3] }
 0x296   : > { %v5793_v1 = vpop.f32.mrf.mxu0 }
 0x297   : > { %10608 = vst [vmem:[#allocation6_spill] sm:$0xff] %v10306_v48  ;;  %v5906_v51 = vpop.f32.mrf.mxu1  ;;  %v10309_v44 = vadd.f32 %v5904_v60, %v5792_v2  ;;  %v5794_v61 = vadd.f32 %v5793_v1, %v10216_v42  ;;  %v6086_v48 = vld [vmem:[%s10601_s2] sm:$0x3] }
 0x298   : > { %v5795_v59 = vpop.f32.mrf.mxu0 }
 0x299   : > { %10609 = vst [vmem:[#allocation7_spill] sm:$0xff] %v10309_v44  ;;  %v5908_v23 = vpop.f32.mrf.mxu1  ;;  %v10312_v52 = vadd.f32 %v5906_v51, %v5794_v61  ;;  %v5796_v0 = vadd.f32 %v5795_v59, %v10219_v25 }
 0x29a   : > { %v5797_v14 = vpop.f32.mrf.mxu0 }
 0x29b   : > { %10610 = vst [vmem:[#allocation8_spill] sm:$0xff] %v10312_v52  ;;  %v5910_v8 = vpop.f32.mrf.mxu1  ;;  %v10315_v53 = vadd.f32 %v5908_v23, %v5796_v0  ;;  %v5798_v21 = vadd.f32 %v5797_v14, %v10222_v50 }
 0x29c   : > { %v5801_v30 = vpop.f32.mrf.mxu0 }
 0x29d   : > { %10611 = vst [vmem:[#allocation9_spill] sm:$0xff] %v10315_v53  ;;  %v10318_v35 = vpop.f32.mrf.mxu1  ;;  %v10320_v26 = vadd.f32 %v5910_v8, %v5798_v21  ;;  %v5802_v52 = vadd.f32 %v5801_v30, %v10225_v47 }
 0x29e   : > { %v5803_v46 = vpop.f32.mrf.mxu0 }
 0x29f   : > { %10612 = vst [vmem:[#allocation10_spill] sm:$0xff] %v10320_v26  ;;  %v10322_v3 = vpop.f32.mrf.mxu1  ;;  %v5804_v44 = vadd.f32 %v5803_v46, %v10228_v63 }
 0x2a0   : > { %v5805_v42 = vpop.f32.mrf.mxu0 }
 0x2a1   : > { %v10324_v19 = vpop.f32.mrf.mxu1 }
 0x2a2   : > { %v5807_v62 = vpop.f32.mrf.mxu0 }
 0x2a3   : > { %v10326_v28 = vpop.f32.mrf.mxu1  ;;  %v5808_v10 = vadd.f32 %v5807_v62, %v10234_v22 }
 0x2a4   : > { %v5811_v25 = vpop.f32.mrf.mxu0 }
 0x2a5   : > { %v5924_v38 = vpop.f32.mrf.mxu1  ;;  %v5812_v11 = vadd.f32 %v5811_v25, %v10237_v15 }
 0x2a6   : > { %v5813_v31 = vpop.f32.mrf.mxu0 }
 0x2a7   : > { %v5926_v50 = vpop.f32.mrf.mxu1  ;;  %v10329_v45 = vadd.f32 %v5924_v38, %v5812_v11  ;;  %v5814_v37 = vadd.f32 %v5813_v31, %v10240_v41 }
 0x2a8   : > { %v5815_v39 = vpop.f32.mrf.mxu0 }
 0x2a9   : > { %10613 = vst [vmem:[#allocation11_spill] sm:$0xff] %v10329_v45  ;;  %v5928_v32 = vpop.f32.mrf.mxu1  ;;  %v10332_v58 = vadd.f32 %v5926_v50, %v5814_v37  ;;  %v5816_v49 = vadd.f32 %v5815_v39, %v10243_v55  ;;  %v6088_v39 = vlaneseq }
 0x2aa   : > { %v5817_v57 = vpop.f32.mrf.mxu0 }
 0x2ab   : > { %10614 = vst [vmem:[#allocation12_spill] sm:$0xff] %v10332_v58  ;;  %v5930_v43 = vpop.f32.mrf.mxu1  ;;  %v10335_v60 = vadd.f32 %v5928_v32, %v5816_v49  ;;  %v5818_v2 = vadd.f32 %v5817_v57, %v10246_v56 }
 0x2ac   : > { %v5821_v1 = vpop.f32.mrf.mxu0 }
 0x2ad   : > { %10615 = vst [vmem:[#allocation13_spill] sm:$0xff] %v10335_v60  ;;  %v5934_v15 = vpop.f32.mrf.mxu1  ;;  %v10338_v51 = vadd.f32 %v5930_v43, %v5818_v2  ;;  %v6089_v2 = vshrl.u32 %v6088_v39, 7  ;;  %v5806_v39 = vadd.f32 %v5805_v42, %v10231_v54  ;;  %v10371_v42 = vadd.f32 %v10318_v35, %v5802_v52 }
 0x2ae   : > { %v5823_v61 = vpop.f32.mrf.mxu0 }
 0x2af   : > { %10616 = vst [vmem:[#allocation14_spill] sm:$0xff] %v10338_v51  ;;  %v5936_v59 = vpop.f32.mrf.mxu1  ;;  %v6090_v26 = vsub.s32 0, %v6089_v2  ;;  %v6094_v53 = vsub.s32 1, %v6089_v2  ;;  %v5822_v2 = vadd.f32 %v5821_v1, %v10249_v12  ;;  %v5824_v47 = vadd.f32 %v5823_v61, %v10252_v16 }
 0x2b0   : > { %v5825_v23 = vpop.f32.mrf.mxu0  ;;  %v10374_v12 = vadd.f32 %v10322_v3, %v5804_v44 }
 0x2b1   : > { %v5938_v41 = vpop.f32.mrf.mxu1  ;;  %v5826_v63 = vadd.f32 %v5825_v23, %v10255_v36  ;;  %v10364_v7 = vrot.slane %v6130_v17, %v6090_v26  ;;  %v10366_v54 = vrot.slane %v6086_v48, %v6094_v53  ;;  %v10368_v22 = vrot.slane %v6130_v17, %v6094_v53 }
 0x2b2   : > { %v5827_v0 = vpop.f32.mrf.mxu0  ;;  %v5935_v35 = vadd.f32 %v5934_v15, %v5822_v2  ;;  %v5937_v62 = vadd.f32 %v5936_v59, %v5824_v47  ;;  %v10626_v47 = vld [vmem:[#allocation5_spill] sm:$0xff] }
 0x2b3   : > { %v5940_v14 = vpop.f32.mrf.mxu1  ;;  %v5828_v30 = vadd.f32 %v5827_v0, %v10258_v18  ;;  %v10379_v18 = vadd.f32 %v10324_v19, %v5806_v39  ;;  %v5939_v44 = vadd.f32 %v5938_v41, %v5826_v63 }
 0x2b4   : > { %v5831_v8 = vpop.f32.mrf.mxu0 }
 0x2b5   : > { %v5944_v21 = vpop.f32.mrf.mxu1  ;;  %v5832_v16 = vadd.f32 %v5831_v8, %v10261_v34  ;;  %v5941_v3 = vadd.f32 %v5940_v14, %v5828_v30 }
 0x2b6   : > { %v5833_v25 = vpop.f32.mrf.mxu0 }
 0x2b7   : > { %v5946_v55 = vpop.f32.mrf.mxu1  ;;  %v5834_v36 = vadd.f32 %v5833_v25, %v10264_v40  ;;  %v5945_v61 = vadd.f32 %v5944_v21, %v5832_v16 }
 0x2b8   : > { %v5835_v38 = vpop.f32.mrf.mxu0 }
 0x2b9   : > { %v5948_v11 = vpop.f32.mrf.mxu1 }
 0x2ba   : > { %v5837_v31 = vpop.f32.mrf.mxu0 }
 0x2bb   : > { %v5950_v50 = vpop.f32.mrf.mxu1  ;;  %v5838_v17 = vadd.f32 %v5837_v31, %v10270_v29  ;;  %v10624_v31 = vld [vmem:[#allocation3_spill] sm:$0xff] }
 0x2bc   : > { %v5841_v37 = vpop.f32.mrf.mxu0 }
 0x2bd   : > { %v10340_v56 = vpop.f32.mrf.mxu1  ;;  %v5842_v34 = vadd.f32 %v5841_v37, %v10273_v27  ;;  %v10393_v15 = vadd.f32 %v5950_v50, %v5838_v17 }
 0x2be   : > { %10617 = vst [vmem:[#allocation15_spill] sm:$0xff] %v10340_v56  ;;  %v5843_v32 = vpop.f32.mrf.mxu0  ;;  %v10362_v56 = vrot.slane %v6086_v48, %v6090_v26  ;;  %v10382_v26 = vadd.f32 %v10326_v28, %v5808_v10  ;;  %v5836_v48 = vadd.f32 %v5835_v38, %v10267_v6  ;;  %v5947_v6 = vadd.f32 %v5946_v55, %v5834_v36 }
 0x2bf   : > { %v10342_v49 = vpop.f32.mrf.mxu1  ;;  %v5844_v40 = vadd.f32 %v5843_v32, %v10276_v24 }
 0x2c0   : > { %10618 = vst [vmem:[#allocation16_spill] sm:$0xff] %v10342_v49  ;;  %v5845_v57 = vpop.f32.mrf.mxu0  ;;  %v10391_v0 = vadd.f32 %v5948_v11, %v5836_v48 }
 0x2c1   : > { %v5958_v43 = vpop.f32.mrf.mxu1  ;;  %v5846_v19 = vadd.f32 %v5845_v57, %v10279_v9 }
 0x2c2   : > { %v5847_v51 = vpop.f32.mrf.mxu0 }
 0x2c3   : > { %v5960_v60 = vpop.f32.mrf.mxu1  ;;  %v5848_v1 = vadd.f32 %v5847_v51, %v10282_v33  ;;  %v10620_v51 = vld [vmem:[#allocation4_spill] sm:$0xff]  ;;  %v10406_v38 = vadd.f32 %v5958_v43, %v5846_v19 }
 0x2c4   : > { %v5851_v58 = vpop.f32.mrf.mxu0 }
 0x2c5   : > { %v10344_v45 = vpop.f32.mrf.mxu1  ;;  %v5852_v59 = vadd.f32 %v5851_v58, %v10285_v4  ;;  %v10621_v21 = vld [vmem:[#allocation15_spill] sm:$0xff]  ;;  %v10408_v4 = vadd.f32 %v5960_v60, %v5848_v1  ;;  %v10623_v58 = vld [vmem:[#allocation2_spill] sm:$0xff] }
 0x2c6   : > { %10619 = vst [vmem:[#allocation17_spill] sm:$0xff] %v10344_v45  ;;  %v5853_v5 = vpop.f32.mrf.mxu0  ;;  %v10628_v1 = vld [vmem:[#allocation7_spill] sm:$0xff] }
 0x2c7   : > { %v5966_v45 = vpop.f32.mrf.mxu1  ;;  %v5854_v27 = vadd.f32 %v5853_v5, %v10288_v13  ;;  %v10622_v25 = vld [vmem:[#allocation16_spill] sm:$0xff] }
 0x2c8   : > { %v5855_v46 = vpop.f32.mrf.mxu0  ;;  %v10404_v55 = vadd.f32 %v10622_v25, %v5844_v40 }
 0x2c9   : > { %v10360_v49 = vpop.f32.mrf.mxu1  ;;  %v5856_v11 = vadd.f32 %v5855_v46, %v10623_v58  ;;  %v10417_v2 = vadd.f32 %v5966_v45, %v5854_v27 }
 0x2ca   : > { %v5857_v53 = vpop.f32.mrf.mxu0 }
 0x2cb   : > { %v5970_v52 = vpop.f32.mrf.mxu1  ;;  %v5858_v50 = vadd.f32 %v5857_v53, %v10624_v31  ;;  %v10627_v53 = vld [vmem:[#allocation6_spill] sm:$0xff]  ;;  %v10436_v40 = vadd.f32 %v10360_v49, %v5856_v11 }
 0x2cc   : > { %v6007_v10 = vpop.f32.mrf.mxu0 }
 0x2cd   : > { %v6047_v28 = vpop.f32.mrf.mxu1  ;;  %v6008_v29 = vadd.f32 %v6007_v10, %v10297_v20  ;;  %v10401_v20 = vadd.f32 %v10621_v21, %v5842_v34  ;;  %v10625_v57 = vld [vmem:[#allocation17_spill] sm:$0xff]  ;;  %v10438_v19 = vadd.f32 %v5970_v52, %v5858_v50 }
 0x2ce   : > { %v6048_v23 = vadd.f32 %v6047_v28, %v5935_v35  ;;  %v6009_v24 = vpop.f32.mrf.mxu0  ;;  %v10415_v39 = vadd.f32 %v10625_v57, %v5852_v59  ;;  %v10630_v50 = vld [vmem:[#allocation9_spill] sm:$0xff] }
 0x2cf   : > { %v6049_v41 = vpop.f32.mrf.mxu1  ;;  %v6098_v9 = vmul.f32 %v10362_v56, %v6008_v29  ;;  %v6010_v14 = vadd.f32 %v6009_v24, %v10620_v51 }
 0x2d0   : > { %v6114_v33 = vmul.f32 %v10362_v56, %v6048_v23  ;;  %v6050_v8 = vadd.f32 %v6049_v41, %v5937_v62  ;;  %v6011_v13 = vpop.f32.mrf.mxu0  ;;  %v10629_v41 = vld [vmem:[#allocation8_spill] sm:$0xff] }
 0x2d1   : > { %v6051_v5 = vpop.f32.mrf.mxu1  ;;  %v6099_v37 = vmul.f32 %v10366_v54, %v6010_v14  ;;  %v6012_v43 = vadd.f32 %v6011_v13, %v10626_v47  ;;  %v10421_v16 = vadd.f32 %v10364_v7, %v6098_v9 }
 0x2d2   : > { %v6115_v32 = vmul.f32 %v10366_v54, %v6050_v8  ;;  %v6052_v63 = vadd.f32 %v6051_v5, %v5939_v44  ;;  %v6013_v60 = vpop.f32.mrf.mxu0  ;;  %v10424_v46 = vadd.f32 %v10364_v7, %v6114_v33 }
 0x2d3   : > { %v6053_v30 = vpop.f32.mrf.mxu1  ;;  %v10427_v36 = vadd.f32 %v10368_v22, %v6099_v37  ;;  %v6100_v45 = vmul.f32 %v10362_v56, %v6012_v43  ;;  %v6014_v35 = vadd.f32 %v6013_v60, %v10627_v53  ;;  %v10631_v53 = vld [vmem:[#allocation10_spill] sm:$0xff] }
 0x2d4   : > { %v10430_v48 = vadd.f32 %v10368_v22, %v6115_v32  ;;  %v6116_v17 = vmul.f32 %v10362_v56, %v6052_v63  ;;  %v6054_v62 = vadd.f32 %v6053_v30, %v5941_v3  ;;  %v6017_v44 = vpop.f32.mrf.mxu0  ;;  %v6190_v51 = vmax.f32 %v10424_v46, 0.0 }
 0x2d5   : > { %v6057_v34 = vpop.f32.mrf.mxu1  ;;  %v6018_v10 = vadd.f32 %v6017_v44, %v10628_v1  ;;  %v10442_v29 = vadd.f32 %v10364_v7, %v6100_v45  ;;  %v6101_v59 = vmul.f32 %v10366_v54, %v6014_v35  ;;  %v6175_v14 = vmax.f32 %v10427_v36, 0.0 }
 0x2d6   : > { %v6058_v28 = vadd.f32 %v6057_v34, %v5945_v61  ;;  %v10445_v23 = vadd.f32 %v10364_v7, %v6116_v17  ;;  %v6117_v3 = vmul.f32 %v10366_v54, %v6054_v62  ;;  %v6019_v27 = vpop.f32.mrf.mxu0  ;;  %v6174_v61 = vmax.f32 %v10421_v16, 0.0 }
 0x2d7   : > { %v6059_v24 = vpop.f32.mrf.mxu1  ;;  %v6102_v49 = vmul.f32 %v10362_v56, %v6018_v10  ;;  %v6020_v9 = vadd.f32 %v6019_v27, %v10629_v41  ;;  %v6191_v8 = vmax.f32 %v10430_v48, 0.0  ;;  %v10457_v13 = vadd.f32 %v10368_v22, %v6101_v59 }
 0x2d8   : > { %v6118_v52 = vmul.f32 %v10362_v56, %v6058_v28  ;;  %v6060_v33 = vadd.f32 %v6059_v24, %v5947_v6  ;;  %v6021_v21 = vpop.f32.mrf.mxu0  ;;  %v10460_v5 = vadd.f32 %v10368_v22, %v6117_v3  ;;  %v6176_v43 = vmax.f32 %v10442_v29, 0.0 }
 0x2d9   : > { %v6061_v25 = vpop.f32.mrf.mxu1  ;;  %v6103_v58 = vmul.f32 %v10366_v54, %v6020_v9  ;;  %v10465_v11 = vadd.f32 %v10364_v7, %v6102_v49  ;;  %v6022_v37 = vadd.f32 %v6021_v21, %v10630_v50  ;;  %v6192_v63 = vmax.f32 %v10445_v23, 0.0 }
 0x2da   : > { %v6119_v6 = vmul.f32 %v10366_v54, %v6060_v33  ;;  %v10468_v31 = vadd.f32 %v10364_v7, %v6118_v52  ;;  %v6062_v32 = vadd.f32 %v6061_v25, %v10391_v0  ;;  %v6023_v57 = vpop.f32.mrf.mxu0  ;;  %v6177_v34 = vmax.f32 %v10457_v13, 0.0 }
 0x2db   : > { %v6063_v47 = vpop.f32.mrf.mxu1  ;;  %v10475_v60 = vadd.f32 %v10368_v22, %v6103_v58  ;;  %v6104_v45 = vmul.f32 %v10362_v56, %v6022_v37  ;;  %v6024_v35 = vadd.f32 %v6023_v57, %v10631_v53  ;;  %v6193_v1 = vmax.f32 %v10460_v5, 0.0 }
 0x2dc   : > { %v10478_v30 = vadd.f32 %v10368_v22, %v6119_v6  ;;  %v6120_v17 = vmul.f32 %v10362_v56, %v6062_v32  ;;  %v6064_v0 = vadd.f32 %v6063_v47, %v10393_v15  ;;  %v6027_v62 = vpop.f32.mrf.mxu0  ;;  %v6178_v59 = vmax.f32 %v10465_v11, 0.0 }
 0x2dd   : > { %v6067_v44 = vpop.f32.mrf.mxu1  ;;  %v6028_v10 = vadd.f32 %v6027_v62, %v10371_v42  ;;  %v6194_v3 = vmax.f32 %v10468_v31, 0.0  ;;  %v10491_v27 = vadd.f32 %v10364_v7, %v6104_v45  ;;  %v6105_v24 = vmul.f32 %v10366_v54, %v6024_v35 }
 0x2de   : > { %v6068_v28 = vadd.f32 %v6067_v44, %v10401_v20  ;;  %v6029_v15 = vpop.f32.mrf.mxu0  ;;  %v6179_v20 = vmax.f32 %v10475_v60, 0.0  ;;  %v6195_v33 = vmax.f32 %v10478_v30, 0.0  ;;  %v10501_v21 = vadd.f32 %v10364_v7, %v6120_v17 }
 0x2df   : > { %v6069_v49 = vpop.f32.mrf.mxu1  ;;  %v6106_v52 = vmul.f32 %v10362_v56, %v6028_v10  ;;  %v6030_v9 = vadd.f32 %v6029_v15, %v10374_v12  ;;  %v10504_v25 = vmul.f32 %v10366_v54, %v6064_v0  ;;  %v6180_v32 = vmax.f32 %v10491_v27, 0.0 }
 0x2e0   : > { %v6122_v41 = vmul.f32 %v10362_v56, %v6068_v28  ;;  %v6070_v42 = vadd.f32 %v6069_v49, %v10404_v55  ;;  %v6031_v58 = vpop.f32.mrf.mxu0  ;;  %v10512_v57 = vadd.f32 %v10368_v22, %v6105_v24 }
 0x2e1   : > { %v6071_v6 = vpop.f32.mrf.mxu1  ;;  %v6150_v50 = vadd.f32 %v10364_v7, %v6106_v52  ;;  %v6107_v12 = vmul.f32 %v10366_v54, %v6030_v9  ;;  %v6032_v47 = vadd.f32 %v6031_v58, %v10379_v18 }
 0x2e2   : > { %v6166_v37 = vadd.f32 %v10364_v7, %v6122_v41  ;;  %v6123_v55 = vmul.f32 %v10366_v54, %v6070_v42  ;;  %v6072_v45 = vadd.f32 %v6071_v6, %v10406_v38  ;;  %v6033_v17 = vpop.f32.mrf.mxu0 }
 0x2e3   : > { %v6073_v53 = vpop.f32.mrf.mxu1  ;;  %v6182_v35 = vmax.f32 %v6150_v50, 0.0  ;;  %v6151_v62 = vadd.f32 %v10368_v22, %v6107_v12  ;;  %v6108_v10 = vmul.f32 %v10362_v56, %v6032_v47  ;;  %v6034_v24 = vadd.f32 %v6033_v17, %v10382_v26  ;;  %v10632_v50 = vld [vmem:[#allocation11_spill] sm:$0xff] }
 0x2e4   : > { %v6198_v0 = vmax.f32 %v6166_v37, 0.0  ;;  %v6167_v44 = vadd.f32 %v10368_v22, %v6123_v55  ;;  %v6124_v28 = vmul.f32 %v10362_v56, %v6072_v45  ;;  %v6074_v15 = vadd.f32 %v6073_v53, %v10408_v4  ;;  %v6037_v18 = vpop.f32.mrf.mxu0 }
 0x2e5   : > { %v6077_v49 = vpop.f32.mrf.mxu1  ;;  %v6206_v38 = vmax.f32 %v6174_v61, %v6182_v35  ;;  %v6183_v41 = vmax.f32 %v6151_v62, 0.0  ;;  %v6152_v26 = vadd.f32 %v10364_v7, %v6108_v10  ;;  %v6109_v42 = vmul.f32 %v10366_v54, %v6034_v24 }
 0x2e6   : > { %v6214_v52 = vmax.f32 %v6190_v51, %v6198_v0  ;;  %v6199_v9 = vmax.f32 %v6167_v44, 0.0  ;;  %v6168_v4 = vadd.f32 %v10364_v7, %v6124_v28  ;;  %v6125_v16 = vmul.f32 %v10366_v54, %v6074_v15  ;;  %v6039_v61 = vpop.f32.mrf.mxu0 }
 0x2e7   : > { %v6079_v58 = vpop.f32.mrf.mxu1  ;;  %v6207_v51 = vmax.f32 %v6175_v14, %v6183_v41  ;;  %v6038_v37 = vadd.f32 %v6037_v18, %v10632_v50  ;;  %v6184_v12 = vmax.f32 %v6152_v26, 0.0  ;;  %v6153_v47 = vadd.f32 %v10368_v22, %v6109_v42  ;;  %v10633_v14 = vld [vmem:[#allocation12_spill] sm:$0xff] }
 0x2e8   : > { %v6222_v46 = vmax.f32 %v6206_v38, %v6214_v52  ;;  %v6215_v6 = vmax.f32 %v6191_v8, %v6199_v9  ;;  %v6200_v55 = vmax.f32 %v6168_v4, 0.0  ;;  %v6169_v45 = vadd.f32 %v10368_v22, %v6125_v16  ;;  %v6041_v17 = vpop.f32.mrf.mxu0 }
 0x2e9   : > { %v6110_v35 = vmul.f32 %v10362_v56, %v6038_v37  ;;  %v6078_v36 = vadd.f32 %v6077_v49, %v10415_v39  ;;  %v6040_v0 = vadd.f32 %v6039_v61, %v10633_v14  ;;  %v6081_v48 = vpop.f32.mrf.mxu1  ;;  %v6208_v8 = vmax.f32 %v6176_v43, %v6184_v12  ;;  %v10634_v43 = vld [vmem:[#allocation13_spill] sm:$0xff] }
 0x2ea   : > { %6230 = vst [vmem:[%s10530_s30] sm:$0xff] %v6222_v46  ;;  %v6223_v53 = vmax.f32 %v6207_v51, %v6215_v6  ;;  %v6216_v62 = vmax.f32 %v6192_v63, %v6200_v55  ;;  %v6185_v44 = vmax.f32 %v6153_v47, 0.0  ;;  %v6201_v10 = vmax.f32 %v6169_v45, 0.0  ;;  %v6043_v18 = vpop.f32.mrf.mxu0 }
 0x2eb   : > { %v6154_v28 = vadd.f32 %v10364_v7, %v6110_v35  ;;  %v6126_v24 = vmul.f32 %v10362_v56, %v6078_v36  ;;  %v6111_v15 = vmul.f32 %v10366_v54, %v6040_v0  ;;  %v6080_v39 = vadd.f32 %v6079_v58, %v10417_v2  ;;  %v6083_v26 = vpop.f32.mrf.mxu1 }
 0x2ec   : > { %6231 = vst [vmem:[%s10530_s30 + $0x8] sm:$0xff] %v6223_v53  ;;  %v6224_v49 = vmax.f32 %v6208_v8, %v6216_v62  ;;  %v6209_v29 = vmax.f32 %v6177_v34, %v6185_v44  ;;  %v6217_v23 = vmax.f32 %v6193_v1, %v6201_v10  ;;  %v6042_v63 = vadd.f32 %v6041_v17, %v10634_v43  ;;  %v10635_v34 = vld [vmem:[#allocation14_spill] sm:$0xff] }
 0x2ed   : > { %v6186_v38 = vmax.f32 %v6154_v28, 0.0  ;;  %v6170_v52 = vadd.f32 %v10364_v7, %v6126_v24  ;;  %v6155_v41 = vadd.f32 %v10368_v22, %v6111_v15  ;;  %v6127_v9 = vmul.f32 %v10366_v54, %v6080_v39 }
 0x2ee   : > { %6232 = vst [vmem:[%s10530_s30 + $0x10] sm:$0xff] %v6224_v49  ;;  %v6225_v2 = vmax.f32 %v6209_v29, %v6217_v23  ;;  %v6112_v4 = vmul.f32 %v10362_v56, %v6042_v63  ;;  %v6082_v13 = vadd.f32 %v6081_v48, %v10436_v40  ;;  %v6044_v5 = vadd.f32 %v6043_v18, %v10635_v34 }
 0x2ef   : > { %v6210_v1 = vmax.f32 %v6178_v59, %v6186_v38  ;;  %v6202_v42 = vmax.f32 %v6170_v52, 0.0  ;;  %v6187_v16 = vmax.f32 %v6155_v41, 0.0  ;;  %v6171_v61 = vadd.f32 %v10368_v22, %v6127_v9 }
 0x2f0   : > { %6233 = vst [vmem:[%s10530_s30 + $0x18] sm:$0xff] %v6225_v2  ;;  %v6156_v58 = vadd.f32 %v10364_v7, %v6112_v4  ;;  %v6128_v46 = vmul.f32 %v10362_v56, %v6082_v13  ;;  %v6113_v51 = vmul.f32 %v10366_v54, %v6044_v5  ;;  %v6084_v6 = vadd.f32 %v6083_v26, %v10438_v19 }
 0x2f1   : > { %v6165_v40 = vadd.f32 %v10368_v22, %v10504_v25  ;;  %v6218_v11 = vmax.f32 %v6194_v3, %v6202_v42  ;;  %v6211_v59 = vmax.f32 %v6179_v20, %v6187_v16  ;;  %v6203_v50 = vmax.f32 %v6171_v61, 0.0 }
 0x2f2   : > { %v6188_v37 = vmax.f32 %v6156_v58, 0.0  ;;  %v6172_v12 = vadd.f32 %v10364_v7, %v6128_v46  ;;  %v6157_v56 = vadd.f32 %v10368_v22, %v6113_v51  ;;  %v6129_v55 = vmul.f32 %v10366_v54, %v6084_v6 }
 0x2f3   : > { %v6196_v19 = vmax.f32 %v10501_v21, 0.0  ;;  %v6181_v25 = vmax.f32 %v10512_v57, 0.0  ;;  %v6226_v31 = vmax.f32 %v6210_v1, %v6218_v11  ;;  %v6219_v3 = vmax.f32 %v6195_v33, %v6203_v50 }
 0x2f4   : > { %v6212_v60 = vmax.f32 %v6180_v32, %v6188_v37  ;;  %v6204_v20 = vmax.f32 %v6172_v12, 0.0  ;;  %v6189_v7 = vmax.f32 %v6157_v56, 0.0  ;;  %v6173_v47 = vadd.f32 %v10368_v22, %v6129_v55 }
 0x2f5   : > { %6234 = vst [vmem:[%s10530_s30 + $0x20] sm:$0xff] %v6226_v31  ;;  %v6227_v45 = vmax.f32 %v6211_v59, %v6219_v3  ;;  %v6197_v54 = vmax.f32 %v6165_v40, 0.0 }
 0x2f6   : > { %v6220_v17 = vmax.f32 %v6196_v19, %v6204_v20  ;;  %v6213_v21 = vmax.f32 %v6181_v25, %v6189_v7  ;;  %v6205_v53 = vmax.f32 %v6173_v47, 0.0 }
 0x2f7   : > { %6235 = vst [vmem:[%s10530_s30 + $0x28] sm:$0xff] %v6227_v45 }
 0x2f8   : > { %v6228_v57 = vmax.f32 %v6212_v60, %v6220_v17  ;;  %v6221_v35 = vmax.f32 %v6197_v54, %v6205_v53 }
 0x2fa   : > { %6236 = vst [vmem:[%s10530_s30 + $0x30] sm:$0xff] %v6228_v57  ;;  %v6229_v30 = vmax.f32 %v6213_v21, %v6221_v35 }
 0x2fc   : > { %6237 = vst [vmem:[%s10530_s30 + $0x38] sm:$0xff] %v6229_v30 }
 0x2fd PF: > { %s14_s15 = sadd.s32 1, %s8072_s15  }
 0x2fe   : > { %p11_p4 = scmp.ge.s32.totalorder %s14_s15, 4  }
 0x300   :  { %13 = sbr.rel (!%p11_p4) target bundleno = 1 (0x1), region = 66 }

</bundles_post_ra>
